<compile_context>
chip_gen: v6e
topology: v6e:2x2x1
jax: 0.10.0
libtpu: 0.0.40
codegen_flags: <defaults>
</compile_context>

<pallas_src>
import math
from functools import partial

import jax
import jax.numpy as jnp
from jax import lax
from jax.experimental import pallas as pl
from jax.experimental.pallas import tpu as pltpu


def _layer_norm_bnd(x, eps):
    """'layer' Normalization of graph_layers.py applied per sample: normalize each
    (nq, D) slab over ALL its elements, unbiased variance (torch.var default)."""
    n = x.shape[1] * x.shape[2]
    s = jnp.sum(jnp.sum(x, axis=2, keepdims=True), axis=1, keepdims=True)    # (Bb,1,1)
    mean = s * (1.0 / n)
    c = x - mean
    ssq = jnp.sum(jnp.sum(c * c, axis=2, keepdims=True), axis=1, keepdims=True)
    var = ssq * (1.0 / (n - 1))
    return c * lax.rsqrt(var + eps)


def nns_encoder_kernel(h_ref, aux_ref, wproj_ref,
                       s1w_ref, s1b_ref, s2w_ref, s2b_ref,
                       ff1_ref, ff2_ref, o_ref,
                       *, n_heads, hidden_dim, n_query, input_dim, eps):
    Bb = o_ref.shape[0]
    nq, D = n_query, input_dim
    HH = n_heads * hidden_dim
    rows = Bb * nq

    h2 = h_ref[...]                                                   # (rows, D) f32

    # --- single fused projection matmul: [Wq | Wk | Wv@Wout per head] ----------
    P = jnp.dot(h2, wproj_ref[...], preferred_element_type=jnp.float32)  # (rows, 2HH+H*D)
    P3 = P.reshape(Bb, nq, 2 * HH + n_heads * D)       # leading-dim split (safe)

    aux4 = aux_ref[...]                                               # (Bb, H, nq, nq)

    # --- per-head compatibilities Q_h K_h^T (batched over Bb), then aux maps ---
    feats = []
    for hd in range(n_heads):
        q_h = P3[:, :, hd * hidden_dim:(hd + 1) * hidden_dim]          # (Bb, nq, hid)
        k_h = P3[:, :, HH + hd * hidden_dim:HH + (hd + 1) * hidden_dim]
        feats.append(jnp.einsum('bqe,bke->bqk', q_h, k_h,
                                preferred_element_type=jnp.float32))   # (Bb, nq, nq)
    for hd in range(n_heads):
        feats.append(aux4[:, hd])                                      # (Bb, nq, nq)

    # --- score_aggr MLP (2H -> 2H -> H), pointwise over (b, q, k); SMEM weights -
    two_h = 2 * n_heads
    hid_maps = []
    for o in range(two_h):
        acc = s1w_ref[o, 0] * feats[0]
        for i in range(1, two_h):
            acc = acc + s1w_ref[o, i] * feats[i]
        hid_maps.append(jnp.maximum(acc + s1b_ref[o], 0.0))

    # --- per-head softmax + attn @ (V_h W_out_h), accumulate h_wave ------------
    h_wave = None
    for hd in range(n_heads):
        acc = s2w_ref[hd, 0] * hid_maps[0]
        for i in range(1, two_h):
            acc = acc + s2w_ref[hd, i] * hid_maps[i]
        logits = acc + s2b_ref[hd]                                     # (Bb, nq, nq)

        m = jnp.max(logits, axis=-1, keepdims=True)
        p = jnp.exp(logits - m)
        attn = p * pl.reciprocal(jnp.sum(p, axis=-1, keepdims=True), approx=False)

        vo_h = P3[:, :, 2 * HH + hd * D:2 * HH + (hd + 1) * D]         # (Bb, nq, D)
        contrib = jnp.einsum('bqk,bkd->bqd', attn, vo_h,
                             preferred_element_type=jnp.float32)       # (Bb, nq, D)
        h_wave = contrib if h_wave is None else h_wave + contrib

    # --- residual + layer norm, feed-forward, residual + layer norm ------------
    h3 = h2.reshape(Bb, nq, D)                                         # leading split
    y1 = _layer_norm_bnd(h_wave + h3, eps)                             # (Bb, nq, D)

    y1f = y1.reshape(rows, D)                                          # leading merge
    f = jnp.maximum(jnp.dot(y1f, ff1_ref[...], preferred_element_type=jnp.float32), 0.0)
    f = jnp.dot(f, ff2_ref[...], preferred_element_type=jnp.float32)   # (rows, D)

    o_ref[...] = _layer_norm_bnd(f.reshape(Bb, nq, D) + y1, eps).astype(o_ref.dtype)


def nns_encoder_forward(h_fea, aux_att_score,
                        W_query, W_key, W_val, W_out,
                        score_w1, score_b1, score_w2, score_b2,
                        W_ff1, W_ff2, *, eps=1e-5, block_batch=64):
    """h_fea: (B, nq, D); aux_att_score: (H, B, nq, nq).
    W_query/W_key/W_val: (H, D, hid); W_out: (H, hid, D).
    score_w1: (2H, 2H), score_b1: (2H,), score_w2: (H, 2H), score_b2: (H,).
    W_ff1: (FFH, D), W_ff2: (D, FFH)  (PyTorch nn.Linear weight layout).
    Returns (out (B, nq, D), aux_att_score)."""
    B, nq, D = h_fea.shape
    H, _, hid = W_query.shape
    FFH = W_ff1.shape[0]
    HH = H * hid
    f32 = jnp.float32

    # Batch block size; pad batch to a multiple of it (padded samples are zeros,
    # perfectly well-defined through the kernel, and sliced off afterwards).
    Bb = max(1, min(block_batch, B))
    B_pad = ((B + Bb - 1) // Bb) * Bb
    assert (Bb * nq) % 8 == 0 or B_pad == Bb, "block rows must be sublane-aligned"

    # --- weight prep (all head dims fused into lane dims) ----------------------
    wq = jnp.transpose(W_query, (1, 0, 2)).reshape(D, HH)
    wk = jnp.transpose(W_key, (1, 0, 2)).reshape(D, HH)
    wvo = jnp.einsum('hde,hef->hdf', W_val, W_out)            # (H, D, D) = Wv_h @ Wo_h
    wvo = jnp.transpose(wvo, (1, 0, 2)).reshape(D, H * D)
    wproj = jnp.concatenate([wq, wk, wvo], axis=1).astype(f32)  # (D, 2*HH + H*D)
    ff1 = W_ff1.T.astype(f32)                                   # (D, FFH)
    ff2 = W_ff2.T.astype(f32)                                   # (FFH, D)

    # --- activation prep: flat rows for h, batch-major contiguous aux ----------
    h_in = h_fea.astype(f32)
    aux_bm = jnp.transpose(aux_att_score, (1, 0, 2, 3)).astype(f32)   # (B, H, nq, nq)
    if B_pad != B:
        h_in = jnp.pad(h_in, ((0, B_pad - B), (0, 0), (0, 0)))
        aux_bm = jnp.pad(aux_bm, ((0, B_pad - B), (0, 0), (0, 0), (0, 0)))
    h2d = h_in.reshape(B_pad * nq, D)

    kernel = partial(nns_encoder_kernel, n_heads=H, hidden_dim=hid,
                     n_query=nq, input_dim=D, eps=eps)

    flops = B_pad * (nq * D * (2 * HH + H * D) * 2          # fused projection
                     + H * nq * nq * hid * 2                # QK^T
                     + nq * nq * (4 * H * H + 2 * H * H) * 2  # score_aggr MLP
                     + H * nq * nq * D * 2                  # attn @ (V Wout)
                     + 2 * nq * D * FFH * 2)                # feed-forward
    bytes_accessed = 4 * (h2d.size + aux_bm.size + B_pad * nq * D
                          + wproj.size + score_w1.size + score_b1.size
                          + score_w2.size + score_b2.size + ff1.size + ff2.size)
    cost = pl.CostEstimate(flops=int(flops),
                           transcendentals=int(B_pad * (H * nq * nq + 2 * H + 2)),
                           bytes_accessed=int(bytes_accessed))

    smem_spec = pl.BlockSpec(memory_space=pltpu.MemorySpace.SMEM)

    out = pl.pallas_call(
        kernel,
        out_shape=jax.ShapeDtypeStruct((B_pad, nq, D), f32),
        grid_spec=pltpu.PrefetchScalarGridSpec(
            num_scalar_prefetch=0,
            grid=(B_pad // Bb,),
            in_specs=[
                pl.BlockSpec((Bb * nq, D), lambda g: (g, 0)),             # h rows
                pl.BlockSpec((Bb, H, nq, nq), lambda g: (g, 0, 0, 0)),    # aux (batch-major)
                pl.BlockSpec((D, 2 * HH + H * D), lambda g: (0, 0)),      # fused proj W (resident)
                smem_spec,                                                # score_w1
                smem_spec,                                                # score_b1
                smem_spec,                                                # score_w2
                smem_spec,                                                # score_b2
                pl.BlockSpec((D, FFH), lambda g: (0, 0)),                 # W_ff1^T (resident)
                pl.BlockSpec((FFH, D), lambda g: (0, 0)),                 # W_ff2^T (resident)
            ],
            out_specs=pl.BlockSpec((Bb, nq, D), lambda g: (g, 0, 0)),
        ),
        compiler_params=pltpu.CompilerParams(dimension_semantics=("parallel",)),
        cost_estimate=cost,
    )(h2d, aux_bm, wproj, score_w1.astype(f32), score_b1.astype(f32),
      score_w2.astype(f32), score_b2.astype(f32), ff1, ff2)

    return out[:B], aux_att_score


def reference(h_fea, aux, W_query, W_key, W_val, W_out,
              score_w1, score_b1, score_w2, score_b2, W_ff1, W_ff2, eps=1e-5):
    """Pure-JAX replica of NNSEncoder.forward with normalization='layer'."""
    Q = jnp.einsum('bqd,hde->hbqe', h_fea, W_query)
    K = jnp.einsum('bkd,hde->hbke', h_fea, W_key)
    V = jnp.einsum('bkd,hde->hbke', h_fea, W_val)
    compat = jnp.concatenate([jnp.einsum('hbqe,hbke->hbqk', Q, K), aux], axis=0)
    attn_raw = jnp.transpose(compat, (1, 2, 3, 0))                    # (B,nq,nq,2H)
    mid = jax.nn.relu(attn_raw @ score_w1.T + score_b1)
    attn = jnp.transpose(mid @ score_w2.T + score_b2, (3, 0, 1, 2))   # (H,B,nq,nq)
    A = jax.nn.softmax(attn, axis=-1)
    heads = jnp.einsum('hbqk,hbke->hbqe', A, V)
    h_wave = jnp.einsum('hbqe,hed->bqd', heads, W_out)

    def norm(x):
        mean = x.mean(axis=(1, 2), keepdims=True)
        var = x.var(axis=(1, 2), keepdims=True, ddof=1)
        return (x - mean) / jnp.sqrt(var + eps)

    y1 = norm(h_wave + h_fea)
    f = jax.nn.relu(y1 @ W_ff1.T) @ W_ff2.T
    return norm(f + y1), aux


if __name__ == "__main__":
    n_heads = 4
    input_dim = 16
    hidden_dim = input_dim // n_heads
    feed_forward_hidden = 32
    batch = 16
    n_query = 8
    block_batch = 8            # -> grid = (2,): both v7x TensorCores get a step

    key = jax.random.PRNGKey(0)
    keys = jax.random.split(key, 12)

    def unif(k, shape, stdv):
        return jax.random.uniform(k, shape, jnp.float32, -stdv, stdv)

    s_hid = 1.0 / math.sqrt(hidden_dim)
    s_dim = 1.0 / math.sqrt(input_dim)
    s_2h = 1.0 / math.sqrt(2 * n_heads)
    s_h = 1.0 / math.sqrt(n_heads)
    s_ff = 1.0 / math.sqrt(feed_forward_hidden)

    W_query = unif(keys[0], (n_heads, input_dim, hidden_dim), s_hid)
    W_key = unif(keys[1], (n_heads, input_dim, hidden_dim), s_hid)
    W_val = unif(keys[2], (n_heads, input_dim, hidden_dim), s_hid)
    W_out = unif(keys[3], (n_heads, hidden_dim, input_dim), s_dim)
    score_w1 = unif(keys[4], (2 * n_heads, 2 * n_heads), s_2h)
    score_b1 = unif(keys[5], (2 * n_heads,), s_2h)
    score_w2 = unif(keys[6], (n_heads, 2 * n_heads), s_2h)
    score_b2 = unif(keys[7], (n_heads,), s_h)
    W_ff1 = unif(keys[8], (feed_forward_hidden, input_dim), s_dim)   # Linear(D, FFH).weight
    W_ff2 = unif(keys[9], (input_dim, feed_forward_hidden), s_ff)    # Linear(FFH, D).weight

    h_fea = jax.random.normal(keys[10], (batch, n_query, input_dim), jnp.float32)
    aux_att_score = jax.random.normal(keys[11], (n_heads, batch, n_query, n_query),
                                      jnp.float32)

    out, aux_out = nns_encoder_forward(h_fea, aux_att_score,
                                       W_query, W_key, W_val, W_out,
                                       score_w1, score_b1, score_w2, score_b2,
                                       W_ff1, W_ff2, block_batch=block_batch)
    out = jax.block_until_ready(out)

    ref_out, ref_aux = reference(h_fea, aux_att_score,
                                 W_query, W_key, W_val, W_out,
                                 score_w1, score_b1, score_w2, score_b2,
                                 W_ff1, W_ff2)

    assert out.shape == (batch, n_query, input_dim)
    assert aux_out.shape == aux_att_score.shape
    assert jnp.array_equal(aux_out, aux_att_score)
    # Tolerance covers f32 reassociation from the (Wv @ Wout) algebraic fold.
    assert jnp.allclose(out, ref_out, atol=2e-3, rtol=2e-3), "mismatch vs reference"

    print("KERNEL_OK")
</pallas_src>

<mosaic_0001>
module attributes {stable_mosaic.version = 11 : i64} {
  func.func @nns_encoder_kernel(%arg0: i32, %arg1: memref<64x16xf32, #tpu.memory_space<vmem>>, %arg2: memref<8x4x8x8xf32, #tpu.memory_space<vmem>>, %arg3: memref<16x96xf32, #tpu.memory_space<vmem>>, %arg4: memref<8x8xf32, #tpu.memory_space<smem>>, %arg5: memref<8xf32, #tpu.memory_space<smem>>, %arg6: memref<4x8xf32, #tpu.memory_space<smem>>, %arg7: memref<4xf32, #tpu.memory_space<smem>>, %arg8: memref<16x32xf32, #tpu.memory_space<vmem>>, %arg9: memref<32x16xf32, #tpu.memory_space<vmem>>, %arg10: memref<8x8x16xf32, #tpu.memory_space<vmem>>) attributes {dimension_semantics = [#tpu.dimension_semantics<parallel>], iteration_bounds = array<i64: 2>, scalar_prefetch = 0 : i64, scratch_operands = 0 : i64, tpu.core_type = #tpu.core_type<tc>, window_params = [{transform_indices = @transform_0, window_bounds = array<i64: 64, 16>}, {transform_indices = @transform_1, window_bounds = array<i64: 8, 4, 8, 8>}, {pipeline_mode = #tpu.pipeline_mode<synchronous>, transform_indices = @transform_2, window_bounds = array<i64: 16, 96>}, {transform_indices = @transform_3, window_bounds = array<i64: 8, 8>}, {transform_indices = @transform_4, window_bounds = array<i64: 8>}, {transform_indices = @transform_5, window_bounds = array<i64: 4, 8>}, {transform_indices = @transform_6, window_bounds = array<i64: 4>}, {pipeline_mode = #tpu.pipeline_mode<synchronous>, transform_indices = @transform_7, window_bounds = array<i64: 16, 32>}, {pipeline_mode = #tpu.pipeline_mode<synchronous>, transform_indices = @transform_8, window_bounds = array<i64: 32, 16>}, {transform_indices = @transform_9, window_bounds = array<i64: 8, 8, 16>}]} {
    %c0 = arith.constant 0 : index
    %c0_0 = arith.constant 0 : index
    %0 = vector.load %arg1[%c0, %c0_0] : memref<64x16xf32, #tpu.memory_space<vmem>>, vector<64x16xf32>
    %c0_1 = arith.constant 0 : index
    %c0_2 = arith.constant 0 : index
    %1 = vector.load %arg3[%c0_1, %c0_2] : memref<16x96xf32, #tpu.memory_space<vmem>>, vector<16x96xf32>
    %cst = arith.constant dense<0.000000e+00> : vector<64x96xf32>
    %2 = tpu.matmul %0, %1, %cst {dimension_numbers = #tpu.dot_dimension_numbers<[1], [0], [0], [1], [0, 0, 1, 1], [], []>} : vector<64x16xf32>, vector<16x96xf32>, vector<64x96xf32> -> vector<64x96xf32>
    %3 = vector.shape_cast %2 : vector<64x96xf32> to vector<8x8x96xf32>
    %c0_3 = arith.constant 0 : index
    %c0_4 = arith.constant 0 : index
    %c0_5 = arith.constant 0 : index
    %c0_6 = arith.constant 0 : index
    %4 = vector.load %arg2[%c0_3, %c0_4, %c0_5, %c0_6] : memref<8x4x8x8xf32, #tpu.memory_space<vmem>>, vector<8x4x8x8xf32>
    %5 = vector.extract_strided_slice %3 {offsets = [0, 0, 0], sizes = [8, 8, 4], strides = [1, 1, 1]} : vector<8x8x96xf32> to vector<8x8x4xf32>
    %6 = vector.extract_strided_slice %3 {offsets = [0, 0, 16], sizes = [8, 8, 4], strides = [1, 1, 1]} : vector<8x8x96xf32> to vector<8x8x4xf32>
    "tpu.trace_start"() <{level = 10 : i32, message = "bqe,bke->bqk"}> : () -> ()
    %cst_7 = arith.constant dense<0.000000e+00> : vector<8x8x8xf32>
    %7 = tpu.matmul %5, %6, %cst_7 {dimension_numbers = #tpu.dot_dimension_numbers<[2], [2], [1], [1], [0, 0, 0, 1, 1, 1], [0], [0]>} : vector<8x8x4xf32>, vector<8x8x4xf32>, vector<8x8x8xf32> -> vector<8x8x8xf32>
    "tpu.trace_stop"() : () -> ()
    %8 = vector.extract_strided_slice %3 {offsets = [0, 0, 4], sizes = [8, 8, 4], strides = [1, 1, 1]} : vector<8x8x96xf32> to vector<8x8x4xf32>
    %9 = vector.extract_strided_slice %3 {offsets = [0, 0, 20], sizes = [8, 8, 4], strides = [1, 1, 1]} : vector<8x8x96xf32> to vector<8x8x4xf32>
    "tpu.trace_start"() <{level = 10 : i32, message = "bqe,bke->bqk"}> : () -> ()
    %cst_8 = arith.constant dense<0.000000e+00> : vector<8x8x8xf32>
    %10 = tpu.matmul %8, %9, %cst_8 {dimension_numbers = #tpu.dot_dimension_numbers<[2], [2], [1], [1], [0, 0, 0, 1, 1, 1], [0], [0]>} : vector<8x8x4xf32>, vector<8x8x4xf32>, vector<8x8x8xf32> -> vector<8x8x8xf32>
    "tpu.trace_stop"() : () -> ()
    %11 = vector.extract_strided_slice %3 {offsets = [0, 0, 8], sizes = [8, 8, 4], strides = [1, 1, 1]} : vector<8x8x96xf32> to vector<8x8x4xf32>
    %12 = vector.extract_strided_slice %3 {offsets = [0, 0, 24], sizes = [8, 8, 4], strides = [1, 1, 1]} : vector<8x8x96xf32> to vector<8x8x4xf32>
    "tpu.trace_start"() <{level = 10 : i32, message = "bqe,bke->bqk"}> : () -> ()
    %cst_9 = arith.constant dense<0.000000e+00> : vector<8x8x8xf32>
    %13 = tpu.matmul %11, %12, %cst_9 {dimension_numbers = #tpu.dot_dimension_numbers<[2], [2], [1], [1], [0, 0, 0, 1, 1, 1], [0], [0]>} : vector<8x8x4xf32>, vector<8x8x4xf32>, vector<8x8x8xf32> -> vector<8x8x8xf32>
    "tpu.trace_stop"() : () -> ()
    %14 = vector.extract_strided_slice %3 {offsets = [0, 0, 12], sizes = [8, 8, 4], strides = [1, 1, 1]} : vector<8x8x96xf32> to vector<8x8x4xf32>
    %15 = vector.extract_strided_slice %3 {offsets = [0, 0, 28], sizes = [8, 8, 4], strides = [1, 1, 1]} : vector<8x8x96xf32> to vector<8x8x4xf32>
    "tpu.trace_start"() <{level = 10 : i32, message = "bqe,bke->bqk"}> : () -> ()
    %cst_10 = arith.constant dense<0.000000e+00> : vector<8x8x8xf32>
    %16 = tpu.matmul %14, %15, %cst_10 {dimension_numbers = #tpu.dot_dimension_numbers<[2], [2], [1], [1], [0, 0, 0, 1, 1, 1], [0], [0]>} : vector<8x8x4xf32>, vector<8x8x4xf32>, vector<8x8x8xf32> -> vector<8x8x8xf32>
    "tpu.trace_stop"() : () -> ()
    %17 = vector.extract_strided_slice %4 {offsets = [0, 0, 0, 0], sizes = [8, 1, 8, 8], strides = [1, 1, 1, 1]} : vector<8x4x8x8xf32> to vector<8x1x8x8xf32>
    %18 = vector.shape_cast %17 : vector<8x1x8x8xf32> to vector<8x8x8xf32>
    %19 = vector.extract_strided_slice %4 {offsets = [0, 1, 0, 0], sizes = [8, 1, 8, 8], strides = [1, 1, 1, 1]} : vector<8x4x8x8xf32> to vector<8x1x8x8xf32>
    %20 = vector.shape_cast %19 : vector<8x1x8x8xf32> to vector<8x8x8xf32>
    %21 = vector.extract_strided_slice %4 {offsets = [0, 2, 0, 0], sizes = [8, 1, 8, 8], strides = [1, 1, 1, 1]} : vector<8x4x8x8xf32> to vector<8x1x8x8xf32>
    %22 = vector.shape_cast %21 : vector<8x1x8x8xf32> to vector<8x8x8xf32>
    %23 = vector.extract_strided_slice %4 {offsets = [0, 3, 0, 0], sizes = [8, 1, 8, 8], strides = [1, 1, 1, 1]} : vector<8x4x8x8xf32> to vector<8x1x8x8xf32>
    %24 = vector.shape_cast %23 : vector<8x1x8x8xf32> to vector<8x8x8xf32>
    %c0_11 = arith.constant 0 : index
    %c0_12 = arith.constant 0 : index
    %25 = memref.load %arg4[%c0_11, %c0_12] : memref<8x8xf32, #tpu.memory_space<smem>>
    %26 = vector.broadcast %25 : f32 to vector<8x8x8xf32>
    %27 = arith.mulf %26, %7 : vector<8x8x8xf32>
    %c0_13 = arith.constant 0 : index
    %c1 = arith.constant 1 : index
    %28 = memref.load %arg4[%c0_13, %c1] : memref<8x8xf32, #tpu.memory_space<smem>>
    %29 = vector.broadcast %28 : f32 to vector<8x8x8xf32>
    %30 = arith.mulf %29, %10 : vector<8x8x8xf32>
    %31 = arith.addf %27, %30 : vector<8x8x8xf32>
    %c0_14 = arith.constant 0 : index
    %c2 = arith.constant 2 : index
    %32 = memref.load %arg4[%c0_14, %c2] : memref<8x8xf32, #tpu.memory_space<smem>>
    %33 = vector.broadcast %32 : f32 to vector<8x8x8xf32>
    %34 = arith.mulf %33, %13 : vector<8x8x8xf32>
    %35 = arith.addf %31, %34 : vector<8x8x8xf32>
    %c0_15 = arith.constant 0 : index
    %c3 = arith.constant 3 : index
    %36 = memref.load %arg4[%c0_15, %c3] : memref<8x8xf32, #tpu.memory_space<smem>>
    %37 = vector.broadcast %36 : f32 to vector<8x8x8xf32>
    %38 = arith.mulf %37, %16 : vector<8x8x8xf32>
    %39 = arith.addf %35, %38 : vector<8x8x8xf32>
    %c0_16 = arith.constant 0 : index
    %c4 = arith.constant 4 : index
    %40 = memref.load %arg4[%c0_16, %c4] : memref<8x8xf32, #tpu.memory_space<smem>>
    %41 = vector.broadcast %40 : f32 to vector<8x8x8xf32>
    %42 = arith.mulf %41, %18 : vector<8x8x8xf32>
    %43 = arith.addf %39, %42 : vector<8x8x8xf32>
    %c0_17 = arith.constant 0 : index
    %c5 = arith.constant 5 : index
    %44 = memref.load %arg4[%c0_17, %c5] : memref<8x8xf32, #tpu.memory_space<smem>>
    %45 = vector.broadcast %44 : f32 to vector<8x8x8xf32>
    %46 = arith.mulf %45, %20 : vector<8x8x8xf32>
    %47 = arith.addf %43, %46 : vector<8x8x8xf32>
    %c0_18 = arith.constant 0 : index
    %c6 = arith.constant 6 : index
    %48 = memref.load %arg4[%c0_18, %c6] : memref<8x8xf32, #tpu.memory_space<smem>>
    %49 = vector.broadcast %48 : f32 to vector<8x8x8xf32>
    %50 = arith.mulf %49, %22 : vector<8x8x8xf32>
    %51 = arith.addf %47, %50 : vector<8x8x8xf32>
    %c0_19 = arith.constant 0 : index
    %c7 = arith.constant 7 : index
    %52 = memref.load %arg4[%c0_19, %c7] : memref<8x8xf32, #tpu.memory_space<smem>>
    %53 = vector.broadcast %52 : f32 to vector<8x8x8xf32>
    %54 = arith.mulf %53, %24 : vector<8x8x8xf32>
    %55 = arith.addf %51, %54 : vector<8x8x8xf32>
    %c0_20 = arith.constant 0 : index
    %56 = memref.load %arg5[%c0_20] : memref<8xf32, #tpu.memory_space<smem>>
    %57 = vector.broadcast %56 : f32 to vector<8x8x8xf32>
    %58 = arith.addf %55, %57 : vector<8x8x8xf32>
    %cst_21 = arith.constant 0.000000e+00 : f32
    %59 = vector.broadcast %cst_21 : f32 to vector<8x8x8xf32>
    %60 = arith.maximumf %58, %59 : vector<8x8x8xf32>
    %c1_22 = arith.constant 1 : index
    %c0_23 = arith.constant 0 : index
    %61 = memref.load %arg4[%c1_22, %c0_23] : memref<8x8xf32, #tpu.memory_space<smem>>
    %62 = vector.broadcast %61 : f32 to vector<8x8x8xf32>
    %63 = arith.mulf %62, %7 : vector<8x8x8xf32>
    %c1_24 = arith.constant 1 : index
    %c1_25 = arith.constant 1 : index
    %64 = memref.load %arg4[%c1_24, %c1_25] : memref<8x8xf32, #tpu.memory_space<smem>>
    %65 = vector.broadcast %64 : f32 to vector<8x8x8xf32>
    %66 = arith.mulf %65, %10 : vector<8x8x8xf32>
    %67 = arith.addf %63, %66 : vector<8x8x8xf32>
    %c1_26 = arith.constant 1 : index
    %c2_27 = arith.constant 2 : index
    %68 = memref.load %arg4[%c1_26, %c2_27] : memref<8x8xf32, #tpu.memory_space<smem>>
    %69 = vector.broadcast %68 : f32 to vector<8x8x8xf32>
    %70 = arith.mulf %69, %13 : vector<8x8x8xf32>
    %71 = arith.addf %67, %70 : vector<8x8x8xf32>
    %c1_28 = arith.constant 1 : index
    %c3_29 = arith.constant 3 : index
    %72 = memref.load %arg4[%c1_28, %c3_29] : memref<8x8xf32, #tpu.memory_space<smem>>
    %73 = vector.broadcast %72 : f32 to vector<8x8x8xf32>
    %74 = arith.mulf %73, %16 : vector<8x8x8xf32>
    %75 = arith.addf %71, %74 : vector<8x8x8xf32>
    %c1_30 = arith.constant 1 : index
    %c4_31 = arith.constant 4 : index
    %76 = memref.load %arg4[%c1_30, %c4_31] : memref<8x8xf32, #tpu.memory_space<smem>>
    %77 = vector.broadcast %76 : f32 to vector<8x8x8xf32>
    %78 = arith.mulf %77, %18 : vector<8x8x8xf32>
    %79 = arith.addf %75, %78 : vector<8x8x8xf32>
    %c1_32 = arith.constant 1 : index
    %c5_33 = arith.constant 5 : index
    %80 = memref.load %arg4[%c1_32, %c5_33] : memref<8x8xf32, #tpu.memory_space<smem>>
    %81 = vector.broadcast %80 : f32 to vector<8x8x8xf32>
    %82 = arith.mulf %81, %20 : vector<8x8x8xf32>
    %83 = arith.addf %79, %82 : vector<8x8x8xf32>
    %c1_34 = arith.constant 1 : index
    %c6_35 = arith.constant 6 : index
    %84 = memref.load %arg4[%c1_34, %c6_35] : memref<8x8xf32, #tpu.memory_space<smem>>
    %85 = vector.broadcast %84 : f32 to vector<8x8x8xf32>
    %86 = arith.mulf %85, %22 : vector<8x8x8xf32>
    %87 = arith.addf %83, %86 : vector<8x8x8xf32>
    %c1_36 = arith.constant 1 : index
    %c7_37 = arith.constant 7 : index
    %88 = memref.load %arg4[%c1_36, %c7_37] : memref<8x8xf32, #tpu.memory_space<smem>>
    %89 = vector.broadcast %88 : f32 to vector<8x8x8xf32>
    %90 = arith.mulf %89, %24 : vector<8x8x8xf32>
    %91 = arith.addf %87, %90 : vector<8x8x8xf32>
    %c1_38 = arith.constant 1 : index
    %92 = memref.load %arg5[%c1_38] : memref<8xf32, #tpu.memory_space<smem>>
    %93 = vector.broadcast %92 : f32 to vector<8x8x8xf32>
    %94 = arith.addf %91, %93 : vector<8x8x8xf32>
    %cst_39 = arith.constant 0.000000e+00 : f32
    %95 = vector.broadcast %cst_39 : f32 to vector<8x8x8xf32>
    %96 = arith.maximumf %94, %95 : vector<8x8x8xf32>
    %c2_40 = arith.constant 2 : index
    %c0_41 = arith.constant 0 : index
    %97 = memref.load %arg4[%c2_40, %c0_41] : memref<8x8xf32, #tpu.memory_space<smem>>
    %98 = vector.broadcast %97 : f32 to vector<8x8x8xf32>
    %99 = arith.mulf %98, %7 : vector<8x8x8xf32>
    %c2_42 = arith.constant 2 : index
    %c1_43 = arith.constant 1 : index
    %100 = memref.load %arg4[%c2_42, %c1_43] : memref<8x8xf32, #tpu.memory_space<smem>>
    %101 = vector.broadcast %100 : f32 to vector<8x8x8xf32>
    %102 = arith.mulf %101, %10 : vector<8x8x8xf32>
    %103 = arith.addf %99, %102 : vector<8x8x8xf32>
    %c2_44 = arith.constant 2 : index
    %c2_45 = arith.constant 2 : index
    %104 = memref.load %arg4[%c2_44, %c2_45] : memref<8x8xf32, #tpu.memory_space<smem>>
    %105 = vector.broadcast %104 : f32 to vector<8x8x8xf32>
    %106 = arith.mulf %105, %13 : vector<8x8x8xf32>
    %107 = arith.addf %103, %106 : vector<8x8x8xf32>
    %c2_46 = arith.constant 2 : index
    %c3_47 = arith.constant 3 : index
    %108 = memref.load %arg4[%c2_46, %c3_47] : memref<8x8xf32, #tpu.memory_space<smem>>
    %109 = vector.broadcast %108 : f32 to vector<8x8x8xf32>
    %110 = arith.mulf %109, %16 : vector<8x8x8xf32>
    %111 = arith.addf %107, %110 : vector<8x8x8xf32>
    %c2_48 = arith.constant 2 : index
    %c4_49 = arith.constant 4 : index
    %112 = memref.load %arg4[%c2_48, %c4_49] : memref<8x8xf32, #tpu.memory_space<smem>>
    %113 = vector.broadcast %112 : f32 to vector<8x8x8xf32>
    %114 = arith.mulf %113, %18 : vector<8x8x8xf32>
    %115 = arith.addf %111, %114 : vector<8x8x8xf32>
    %c2_50 = arith.constant 2 : index
    %c5_51 = arith.constant 5 : index
    %116 = memref.load %arg4[%c2_50, %c5_51] : memref<8x8xf32, #tpu.memory_space<smem>>
    %117 = vector.broadcast %116 : f32 to vector<8x8x8xf32>
    %118 = arith.mulf %117, %20 : vector<8x8x8xf32>
    %119 = arith.addf %115, %118 : vector<8x8x8xf32>
    %c2_52 = arith.constant 2 : index
    %c6_53 = arith.constant 6 : index
    %120 = memref.load %arg4[%c2_52, %c6_53] : memref<8x8xf32, #tpu.memory_space<smem>>
    %121 = vector.broadcast %120 : f32 to vector<8x8x8xf32>
    %122 = arith.mulf %121, %22 : vector<8x8x8xf32>
    %123 = arith.addf %119, %122 : vector<8x8x8xf32>
    %c2_54 = arith.constant 2 : index
    %c7_55 = arith.constant 7 : index
    %124 = memref.load %arg4[%c2_54, %c7_55] : memref<8x8xf32, #tpu.memory_space<smem>>
    %125 = vector.broadcast %124 : f32 to vector<8x8x8xf32>
    %126 = arith.mulf %125, %24 : vector<8x8x8xf32>
    %127 = arith.addf %123, %126 : vector<8x8x8xf32>
    %c2_56 = arith.constant 2 : index
    %128 = memref.load %arg5[%c2_56] : memref<8xf32, #tpu.memory_space<smem>>
    %129 = vector.broadcast %128 : f32 to vector<8x8x8xf32>
    %130 = arith.addf %127, %129 : vector<8x8x8xf32>
    %cst_57 = arith.constant 0.000000e+00 : f32
    %131 = vector.broadcast %cst_57 : f32 to vector<8x8x8xf32>
    %132 = arith.maximumf %130, %131 : vector<8x8x8xf32>
    %c3_58 = arith.constant 3 : index
    %c0_59 = arith.constant 0 : index
    %133 = memref.load %arg4[%c3_58, %c0_59] : memref<8x8xf32, #tpu.memory_space<smem>>
    %134 = vector.broadcast %133 : f32 to vector<8x8x8xf32>
    %135 = arith.mulf %134, %7 : vector<8x8x8xf32>
    %c3_60 = arith.constant 3 : index
    %c1_61 = arith.constant 1 : index
    %136 = memref.load %arg4[%c3_60, %c1_61] : memref<8x8xf32, #tpu.memory_space<smem>>
    %137 = vector.broadcast %136 : f32 to vector<8x8x8xf32>
    %138 = arith.mulf %137, %10 : vector<8x8x8xf32>
    %139 = arith.addf %135, %138 : vector<8x8x8xf32>
    %c3_62 = arith.constant 3 : index
    %c2_63 = arith.constant 2 : index
    %140 = memref.load %arg4[%c3_62, %c2_63] : memref<8x8xf32, #tpu.memory_space<smem>>
    %141 = vector.broadcast %140 : f32 to vector<8x8x8xf32>
    %142 = arith.mulf %141, %13 : vector<8x8x8xf32>
    %143 = arith.addf %139, %142 : vector<8x8x8xf32>
    %c3_64 = arith.constant 3 : index
    %c3_65 = arith.constant 3 : index
    %144 = memref.load %arg4[%c3_64, %c3_65] : memref<8x8xf32, #tpu.memory_space<smem>>
    %145 = vector.broadcast %144 : f32 to vector<8x8x8xf32>
    %146 = arith.mulf %145, %16 : vector<8x8x8xf32>
    %147 = arith.addf %143, %146 : vector<8x8x8xf32>
    %c3_66 = arith.constant 3 : index
    %c4_67 = arith.constant 4 : index
    %148 = memref.load %arg4[%c3_66, %c4_67] : memref<8x8xf32, #tpu.memory_space<smem>>
    %149 = vector.broadcast %148 : f32 to vector<8x8x8xf32>
    %150 = arith.mulf %149, %18 : vector<8x8x8xf32>
    %151 = arith.addf %147, %150 : vector<8x8x8xf32>
    %c3_68 = arith.constant 3 : index
    %c5_69 = arith.constant 5 : index
    %152 = memref.load %arg4[%c3_68, %c5_69] : memref<8x8xf32, #tpu.memory_space<smem>>
    %153 = vector.broadcast %152 : f32 to vector<8x8x8xf32>
    %154 = arith.mulf %153, %20 : vector<8x8x8xf32>
    %155 = arith.addf %151, %154 : vector<8x8x8xf32>
    %c3_70 = arith.constant 3 : index
    %c6_71 = arith.constant 6 : index
    %156 = memref.load %arg4[%c3_70, %c6_71] : memref<8x8xf32, #tpu.memory_space<smem>>
    %157 = vector.broadcast %156 : f32 to vector<8x8x8xf32>
    %158 = arith.mulf %157, %22 : vector<8x8x8xf32>
    %159 = arith.addf %155, %158 : vector<8x8x8xf32>
    %c3_72 = arith.constant 3 : index
    %c7_73 = arith.constant 7 : index
    %160 = memref.load %arg4[%c3_72, %c7_73] : memref<8x8xf32, #tpu.memory_space<smem>>
    %161 = vector.broadcast %160 : f32 to vector<8x8x8xf32>
    %162 = arith.mulf %161, %24 : vector<8x8x8xf32>
    %163 = arith.addf %159, %162 : vector<8x8x8xf32>
    %c3_74 = arith.constant 3 : index
    %164 = memref.load %arg5[%c3_74] : memref<8xf32, #tpu.memory_space<smem>>
    %165 = vector.broadcast %164 : f32 to vector<8x8x8xf32>
    %166 = arith.addf %163, %165 : vector<8x8x8xf32>
    %cst_75 = arith.constant 0.000000e+00 : f32
    %167 = vector.broadcast %cst_75 : f32 to vector<8x8x8xf32>
    %168 = arith.maximumf %166, %167 : vector<8x8x8xf32>
    %c4_76 = arith.constant 4 : index
    %c0_77 = arith.constant 0 : index
    %169 = memref.load %arg4[%c4_76, %c0_77] : memref<8x8xf32, #tpu.memory_space<smem>>
    %170 = vector.broadcast %169 : f32 to vector<8x8x8xf32>
    %171 = arith.mulf %170, %7 : vector<8x8x8xf32>
    %c4_78 = arith.constant 4 : index
    %c1_79 = arith.constant 1 : index
    %172 = memref.load %arg4[%c4_78, %c1_79] : memref<8x8xf32, #tpu.memory_space<smem>>
    %173 = vector.broadcast %172 : f32 to vector<8x8x8xf32>
    %174 = arith.mulf %173, %10 : vector<8x8x8xf32>
    %175 = arith.addf %171, %174 : vector<8x8x8xf32>
    %c4_80 = arith.constant 4 : index
    %c2_81 = arith.constant 2 : index
    %176 = memref.load %arg4[%c4_80, %c2_81] : memref<8x8xf32, #tpu.memory_space<smem>>
    %177 = vector.broadcast %176 : f32 to vector<8x8x8xf32>
    %178 = arith.mulf %177, %13 : vector<8x8x8xf32>
    %179 = arith.addf %175, %178 : vector<8x8x8xf32>
    %c4_82 = arith.constant 4 : index
    %c3_83 = arith.constant 3 : index
    %180 = memref.load %arg4[%c4_82, %c3_83] : memref<8x8xf32, #tpu.memory_space<smem>>
    %181 = vector.broadcast %180 : f32 to vector<8x8x8xf32>
    %182 = arith.mulf %181, %16 : vector<8x8x8xf32>
    %183 = arith.addf %179, %182 : vector<8x8x8xf32>
    %c4_84 = arith.constant 4 : index
    %c4_85 = arith.constant 4 : index
    %184 = memref.load %arg4[%c4_84, %c4_85] : memref<8x8xf32, #tpu.memory_space<smem>>
    %185 = vector.broadcast %184 : f32 to vector<8x8x8xf32>
    %186 = arith.mulf %185, %18 : vector<8x8x8xf32>
    %187 = arith.addf %183, %186 : vector<8x8x8xf32>
    %c4_86 = arith.constant 4 : index
    %c5_87 = arith.constant 5 : index
    %188 = memref.load %arg4[%c4_86, %c5_87] : memref<8x8xf32, #tpu.memory_space<smem>>
    %189 = vector.broadcast %188 : f32 to vector<8x8x8xf32>
    %190 = arith.mulf %189, %20 : vector<8x8x8xf32>
    %191 = arith.addf %187, %190 : vector<8x8x8xf32>
    %c4_88 = arith.constant 4 : index
    %c6_89 = arith.constant 6 : index
    %192 = memref.load %arg4[%c4_88, %c6_89] : memref<8x8xf32, #tpu.memory_space<smem>>
    %193 = vector.broadcast %192 : f32 to vector<8x8x8xf32>
    %194 = arith.mulf %193, %22 : vector<8x8x8xf32>
    %195 = arith.addf %191, %194 : vector<8x8x8xf32>
    %c4_90 = arith.constant 4 : index
    %c7_91 = arith.constant 7 : index
    %196 = memref.load %arg4[%c4_90, %c7_91] : memref<8x8xf32, #tpu.memory_space<smem>>
    %197 = vector.broadcast %196 : f32 to vector<8x8x8xf32>
    %198 = arith.mulf %197, %24 : vector<8x8x8xf32>
    %199 = arith.addf %195, %198 : vector<8x8x8xf32>
    %c4_92 = arith.constant 4 : index
    %200 = memref.load %arg5[%c4_92] : memref<8xf32, #tpu.memory_space<smem>>
    %201 = vector.broadcast %200 : f32 to vector<8x8x8xf32>
    %202 = arith.addf %199, %201 : vector<8x8x8xf32>
    %cst_93 = arith.constant 0.000000e+00 : f32
    %203 = vector.broadcast %cst_93 : f32 to vector<8x8x8xf32>
    %204 = arith.maximumf %202, %203 : vector<8x8x8xf32>
    %c5_94 = arith.constant 5 : index
    %c0_95 = arith.constant 0 : index
    %205 = memref.load %arg4[%c5_94, %c0_95] : memref<8x8xf32, #tpu.memory_space<smem>>
    %206 = vector.broadcast %205 : f32 to vector<8x8x8xf32>
    %207 = arith.mulf %206, %7 : vector<8x8x8xf32>
    %c5_96 = arith.constant 5 : index
    %c1_97 = arith.constant 1 : index
    %208 = memref.load %arg4[%c5_96, %c1_97] : memref<8x8xf32, #tpu.memory_space<smem>>
    %209 = vector.broadcast %208 : f32 to vector<8x8x8xf32>
    %210 = arith.mulf %209, %10 : vector<8x8x8xf32>
    %211 = arith.addf %207, %210 : vector<8x8x8xf32>
    %c5_98 = arith.constant 5 : index
    %c2_99 = arith.constant 2 : index
    %212 = memref.load %arg4[%c5_98, %c2_99] : memref<8x8xf32, #tpu.memory_space<smem>>
    %213 = vector.broadcast %212 : f32 to vector<8x8x8xf32>
    %214 = arith.mulf %213, %13 : vector<8x8x8xf32>
    %215 = arith.addf %211, %214 : vector<8x8x8xf32>
    %c5_100 = arith.constant 5 : index
    %c3_101 = arith.constant 3 : index
    %216 = memref.load %arg4[%c5_100, %c3_101] : memref<8x8xf32, #tpu.memory_space<smem>>
    %217 = vector.broadcast %216 : f32 to vector<8x8x8xf32>
    %218 = arith.mulf %217, %16 : vector<8x8x8xf32>
    %219 = arith.addf %215, %218 : vector<8x8x8xf32>
    %c5_102 = arith.constant 5 : index
    %c4_103 = arith.constant 4 : index
    %220 = memref.load %arg4[%c5_102, %c4_103] : memref<8x8xf32, #tpu.memory_space<smem>>
    %221 = vector.broadcast %220 : f32 to vector<8x8x8xf32>
    %222 = arith.mulf %221, %18 : vector<8x8x8xf32>
    %223 = arith.addf %219, %222 : vector<8x8x8xf32>
    %c5_104 = arith.constant 5 : index
    %c5_105 = arith.constant 5 : index
    %224 = memref.load %arg4[%c5_104, %c5_105] : memref<8x8xf32, #tpu.memory_space<smem>>
    %225 = vector.broadcast %224 : f32 to vector<8x8x8xf32>
    %226 = arith.mulf %225, %20 : vector<8x8x8xf32>
    %227 = arith.addf %223, %226 : vector<8x8x8xf32>
    %c5_106 = arith.constant 5 : index
    %c6_107 = arith.constant 6 : index
    %228 = memref.load %arg4[%c5_106, %c6_107] : memref<8x8xf32, #tpu.memory_space<smem>>
    %229 = vector.broadcast %228 : f32 to vector<8x8x8xf32>
    %230 = arith.mulf %229, %22 : vector<8x8x8xf32>
    %231 = arith.addf %227, %230 : vector<8x8x8xf32>
    %c5_108 = arith.constant 5 : index
    %c7_109 = arith.constant 7 : index
    %232 = memref.load %arg4[%c5_108, %c7_109] : memref<8x8xf32, #tpu.memory_space<smem>>
    %233 = vector.broadcast %232 : f32 to vector<8x8x8xf32>
    %234 = arith.mulf %233, %24 : vector<8x8x8xf32>
    %235 = arith.addf %231, %234 : vector<8x8x8xf32>
    %c5_110 = arith.constant 5 : index
    %236 = memref.load %arg5[%c5_110] : memref<8xf32, #tpu.memory_space<smem>>
    %237 = vector.broadcast %236 : f32 to vector<8x8x8xf32>
    %238 = arith.addf %235, %237 : vector<8x8x8xf32>
    %cst_111 = arith.constant 0.000000e+00 : f32
    %239 = vector.broadcast %cst_111 : f32 to vector<8x8x8xf32>
    %240 = arith.maximumf %238, %239 : vector<8x8x8xf32>
    %c6_112 = arith.constant 6 : index
    %c0_113 = arith.constant 0 : index
    %241 = memref.load %arg4[%c6_112, %c0_113] : memref<8x8xf32, #tpu.memory_space<smem>>
    %242 = vector.broadcast %241 : f32 to vector<8x8x8xf32>
    %243 = arith.mulf %242, %7 : vector<8x8x8xf32>
    %c6_114 = arith.constant 6 : index
    %c1_115 = arith.constant 1 : index
    %244 = memref.load %arg4[%c6_114, %c1_115] : memref<8x8xf32, #tpu.memory_space<smem>>
    %245 = vector.broadcast %244 : f32 to vector<8x8x8xf32>
    %246 = arith.mulf %245, %10 : vector<8x8x8xf32>
    %247 = arith.addf %243, %246 : vector<8x8x8xf32>
    %c6_116 = arith.constant 6 : index
    %c2_117 = arith.constant 2 : index
    %248 = memref.load %arg4[%c6_116, %c2_117] : memref<8x8xf32, #tpu.memory_space<smem>>
    %249 = vector.broadcast %248 : f32 to vector<8x8x8xf32>
    %250 = arith.mulf %249, %13 : vector<8x8x8xf32>
    %251 = arith.addf %247, %250 : vector<8x8x8xf32>
    %c6_118 = arith.constant 6 : index
    %c3_119 = arith.constant 3 : index
    %252 = memref.load %arg4[%c6_118, %c3_119] : memref<8x8xf32, #tpu.memory_space<smem>>
    %253 = vector.broadcast %252 : f32 to vector<8x8x8xf32>
    %254 = arith.mulf %253, %16 : vector<8x8x8xf32>
    %255 = arith.addf %251, %254 : vector<8x8x8xf32>
    %c6_120 = arith.constant 6 : index
    %c4_121 = arith.constant 4 : index
    %256 = memref.load %arg4[%c6_120, %c4_121] : memref<8x8xf32, #tpu.memory_space<smem>>
    %257 = vector.broadcast %256 : f32 to vector<8x8x8xf32>
    %258 = arith.mulf %257, %18 : vector<8x8x8xf32>
    %259 = arith.addf %255, %258 : vector<8x8x8xf32>
    %c6_122 = arith.constant 6 : index
    %c5_123 = arith.constant 5 : index
    %260 = memref.load %arg4[%c6_122, %c5_123] : memref<8x8xf32, #tpu.memory_space<smem>>
    %261 = vector.broadcast %260 : f32 to vector<8x8x8xf32>
    %262 = arith.mulf %261, %20 : vector<8x8x8xf32>
    %263 = arith.addf %259, %262 : vector<8x8x8xf32>
    %c6_124 = arith.constant 6 : index
    %c6_125 = arith.constant 6 : index
    %264 = memref.load %arg4[%c6_124, %c6_125] : memref<8x8xf32, #tpu.memory_space<smem>>
    %265 = vector.broadcast %264 : f32 to vector<8x8x8xf32>
    %266 = arith.mulf %265, %22 : vector<8x8x8xf32>
    %267 = arith.addf %263, %266 : vector<8x8x8xf32>
    %c6_126 = arith.constant 6 : index
    %c7_127 = arith.constant 7 : index
    %268 = memref.load %arg4[%c6_126, %c7_127] : memref<8x8xf32, #tpu.memory_space<smem>>
    %269 = vector.broadcast %268 : f32 to vector<8x8x8xf32>
    %270 = arith.mulf %269, %24 : vector<8x8x8xf32>
    %271 = arith.addf %267, %270 : vector<8x8x8xf32>
    %c6_128 = arith.constant 6 : index
    %272 = memref.load %arg5[%c6_128] : memref<8xf32, #tpu.memory_space<smem>>
    %273 = vector.broadcast %272 : f32 to vector<8x8x8xf32>
    %274 = arith.addf %271, %273 : vector<8x8x8xf32>
    %cst_129 = arith.constant 0.000000e+00 : f32
    %275 = vector.broadcast %cst_129 : f32 to vector<8x8x8xf32>
    %276 = arith.maximumf %274, %275 : vector<8x8x8xf32>
    %c7_130 = arith.constant 7 : index
    %c0_131 = arith.constant 0 : index
    %277 = memref.load %arg4[%c7_130, %c0_131] : memref<8x8xf32, #tpu.memory_space<smem>>
    %278 = vector.broadcast %277 : f32 to vector<8x8x8xf32>
    %279 = arith.mulf %278, %7 : vector<8x8x8xf32>
    %c7_132 = arith.constant 7 : index
    %c1_133 = arith.constant 1 : index
    %280 = memref.load %arg4[%c7_132, %c1_133] : memref<8x8xf32, #tpu.memory_space<smem>>
    %281 = vector.broadcast %280 : f32 to vector<8x8x8xf32>
    %282 = arith.mulf %281, %10 : vector<8x8x8xf32>
    %283 = arith.addf %279, %282 : vector<8x8x8xf32>
    %c7_134 = arith.constant 7 : index
    %c2_135 = arith.constant 2 : index
    %284 = memref.load %arg4[%c7_134, %c2_135] : memref<8x8xf32, #tpu.memory_space<smem>>
    %285 = vector.broadcast %284 : f32 to vector<8x8x8xf32>
    %286 = arith.mulf %285, %13 : vector<8x8x8xf32>
    %287 = arith.addf %283, %286 : vector<8x8x8xf32>
    %c7_136 = arith.constant 7 : index
    %c3_137 = arith.constant 3 : index
    %288 = memref.load %arg4[%c7_136, %c3_137] : memref<8x8xf32, #tpu.memory_space<smem>>
    %289 = vector.broadcast %288 : f32 to vector<8x8x8xf32>
    %290 = arith.mulf %289, %16 : vector<8x8x8xf32>
    %291 = arith.addf %287, %290 : vector<8x8x8xf32>
    %c7_138 = arith.constant 7 : index
    %c4_139 = arith.constant 4 : index
    %292 = memref.load %arg4[%c7_138, %c4_139] : memref<8x8xf32, #tpu.memory_space<smem>>
    %293 = vector.broadcast %292 : f32 to vector<8x8x8xf32>
    %294 = arith.mulf %293, %18 : vector<8x8x8xf32>
    %295 = arith.addf %291, %294 : vector<8x8x8xf32>
    %c7_140 = arith.constant 7 : index
    %c5_141 = arith.constant 5 : index
    %296 = memref.load %arg4[%c7_140, %c5_141] : memref<8x8xf32, #tpu.memory_space<smem>>
    %297 = vector.broadcast %296 : f32 to vector<8x8x8xf32>
    %298 = arith.mulf %297, %20 : vector<8x8x8xf32>
    %299 = arith.addf %295, %298 : vector<8x8x8xf32>
    %c7_142 = arith.constant 7 : index
    %c6_143 = arith.constant 6 : index
    %300 = memref.load %arg4[%c7_142, %c6_143] : memref<8x8xf32, #tpu.memory_space<smem>>
    %301 = vector.broadcast %300 : f32 to vector<8x8x8xf32>
    %302 = arith.mulf %301, %22 : vector<8x8x8xf32>
    %303 = arith.addf %299, %302 : vector<8x8x8xf32>
    %c7_144 = arith.constant 7 : index
    %c7_145 = arith.constant 7 : index
    %304 = memref.load %arg4[%c7_144, %c7_145] : memref<8x8xf32, #tpu.memory_space<smem>>
    %305 = vector.broadcast %304 : f32 to vector<8x8x8xf32>
    %306 = arith.mulf %305, %24 : vector<8x8x8xf32>
    %307 = arith.addf %303, %306 : vector<8x8x8xf32>
    %c7_146 = arith.constant 7 : index
    %308 = memref.load %arg5[%c7_146] : memref<8xf32, #tpu.memory_space<smem>>
    %309 = vector.broadcast %308 : f32 to vector<8x8x8xf32>
    %310 = arith.addf %307, %309 : vector<8x8x8xf32>
    %cst_147 = arith.constant 0.000000e+00 : f32
    %311 = vector.broadcast %cst_147 : f32 to vector<8x8x8xf32>
    %312 = arith.maximumf %310, %311 : vector<8x8x8xf32>
    %c0_148 = arith.constant 0 : index
    %c0_149 = arith.constant 0 : index
    %313 = memref.load %arg6[%c0_148, %c0_149] : memref<4x8xf32, #tpu.memory_space<smem>>
    %314 = vector.broadcast %313 : f32 to vector<8x8x8xf32>
    %315 = arith.mulf %314, %60 : vector<8x8x8xf32>
    %c0_150 = arith.constant 0 : index
    %c1_151 = arith.constant 1 : index
    %316 = memref.load %arg6[%c0_150, %c1_151] : memref<4x8xf32, #tpu.memory_space<smem>>
    %317 = vector.broadcast %316 : f32 to vector<8x8x8xf32>
    %318 = arith.mulf %317, %96 : vector<8x8x8xf32>
    %319 = arith.addf %315, %318 : vector<8x8x8xf32>
    %c0_152 = arith.constant 0 : index
    %c2_153 = arith.constant 2 : index
    %320 = memref.load %arg6[%c0_152, %c2_153] : memref<4x8xf32, #tpu.memory_space<smem>>
    %321 = vector.broadcast %320 : f32 to vector<8x8x8xf32>
    %322 = arith.mulf %321, %132 : vector<8x8x8xf32>
    %323 = arith.addf %319, %322 : vector<8x8x8xf32>
    %c0_154 = arith.constant 0 : index
    %c3_155 = arith.constant 3 : index
    %324 = memref.load %arg6[%c0_154, %c3_155] : memref<4x8xf32, #tpu.memory_space<smem>>
    %325 = vector.broadcast %324 : f32 to vector<8x8x8xf32>
    %326 = arith.mulf %325, %168 : vector<8x8x8xf32>
    %327 = arith.addf %323, %326 : vector<8x8x8xf32>
    %c0_156 = arith.constant 0 : index
    %c4_157 = arith.constant 4 : index
    %328 = memref.load %arg6[%c0_156, %c4_157] : memref<4x8xf32, #tpu.memory_space<smem>>
    %329 = vector.broadcast %328 : f32 to vector<8x8x8xf32>
    %330 = arith.mulf %329, %204 : vector<8x8x8xf32>
    %331 = arith.addf %327, %330 : vector<8x8x8xf32>
    %c0_158 = arith.constant 0 : index
    %c5_159 = arith.constant 5 : index
    %332 = memref.load %arg6[%c0_158, %c5_159] : memref<4x8xf32, #tpu.memory_space<smem>>
    %333 = vector.broadcast %332 : f32 to vector<8x8x8xf32>
    %334 = arith.mulf %333, %240 : vector<8x8x8xf32>
    %335 = arith.addf %331, %334 : vector<8x8x8xf32>
    %c0_160 = arith.constant 0 : index
    %c6_161 = arith.constant 6 : index
    %336 = memref.load %arg6[%c0_160, %c6_161] : memref<4x8xf32, #tpu.memory_space<smem>>
    %337 = vector.broadcast %336 : f32 to vector<8x8x8xf32>
    %338 = arith.mulf %337, %276 : vector<8x8x8xf32>
    %339 = arith.addf %335, %338 : vector<8x8x8xf32>
    %c0_162 = arith.constant 0 : index
    %c7_163 = arith.constant 7 : index
    %340 = memref.load %arg6[%c0_162, %c7_163] : memref<4x8xf32, #tpu.memory_space<smem>>
    %341 = vector.broadcast %340 : f32 to vector<8x8x8xf32>
    %342 = arith.mulf %341, %312 : vector<8x8x8xf32>
    %343 = arith.addf %339, %342 : vector<8x8x8xf32>
    %c0_164 = arith.constant 0 : index
    %344 = memref.load %arg7[%c0_164] : memref<4xf32, #tpu.memory_space<smem>>
    %345 = vector.broadcast %344 : f32 to vector<8x8x8xf32>
    %346 = arith.addf %343, %345 : vector<8x8x8xf32>
    %cst_165 = arith.constant dense<0xFF800000> : vector<8x8xf32>
    %347 = vector.multi_reduction <maximumf>, %346, %cst_165 [2] : vector<8x8x8xf32> to vector<8x8xf32>
    %348 = vector.shape_cast %347 : vector<8x8xf32> to vector<8x8x1xf32>
    %349 = vector.broadcast %348 : vector<8x8x1xf32> to vector<8x8x8xf32>
    %350 = arith.subf %346, %349 : vector<8x8x8xf32>
    %351 = math.exp %350 : vector<8x8x8xf32>
    %cst_166 = arith.constant dense<0.000000e+00> : vector<8x8xf32>
    %352 = vector.multi_reduction <add>, %351, %cst_166 [2] : vector<8x8x8xf32> to vector<8x8xf32>
    %353 = vector.shape_cast %352 : vector<8x8xf32> to vector<8x8x1xf32>
    %354 = tpu.reciprocal %353 : vector<8x8x1xf32> -> vector<8x8x1xf32>
    %355 = vector.broadcast %354 : vector<8x8x1xf32> to vector<8x8x8xf32>
    %356 = arith.mulf %351, %355 : vector<8x8x8xf32>
    %357 = vector.extract_strided_slice %3 {offsets = [0, 0, 32], sizes = [8, 8, 16], strides = [1, 1, 1]} : vector<8x8x96xf32> to vector<8x8x16xf32>
    "tpu.trace_start"() <{level = 10 : i32, message = "bqk,bkd->bqd"}> : () -> ()
    %cst_167 = arith.constant dense<0.000000e+00> : vector<8x8x16xf32>
    %358 = tpu.matmul %356, %357, %cst_167 {dimension_numbers = #tpu.dot_dimension_numbers<[2], [1], [1], [2], [0, 0, 0, 1, 1, 2], [0], [0]>} : vector<8x8x8xf32>, vector<8x8x16xf32>, vector<8x8x16xf32> -> vector<8x8x16xf32>
    "tpu.trace_stop"() : () -> ()
    %c1_168 = arith.constant 1 : index
    %c0_169 = arith.constant 0 : index
    %359 = memref.load %arg6[%c1_168, %c0_169] : memref<4x8xf32, #tpu.memory_space<smem>>
    %360 = vector.broadcast %359 : f32 to vector<8x8x8xf32>
    %361 = arith.mulf %360, %60 : vector<8x8x8xf32>
    %c1_170 = arith.constant 1 : index
    %c1_171 = arith.constant 1 : index
    %362 = memref.load %arg6[%c1_170, %c1_171] : memref<4x8xf32, #tpu.memory_space<smem>>
    %363 = vector.broadcast %362 : f32 to vector<8x8x8xf32>
    %364 = arith.mulf %363, %96 : vector<8x8x8xf32>
    %365 = arith.addf %361, %364 : vector<8x8x8xf32>
    %c1_172 = arith.constant 1 : index
    %c2_173 = arith.constant 2 : index
    %366 = memref.load %arg6[%c1_172, %c2_173] : memref<4x8xf32, #tpu.memory_space<smem>>
    %367 = vector.broadcast %366 : f32 to vector<8x8x8xf32>
    %368 = arith.mulf %367, %132 : vector<8x8x8xf32>
    %369 = arith.addf %365, %368 : vector<8x8x8xf32>
    %c1_174 = arith.constant 1 : index
    %c3_175 = arith.constant 3 : index
    %370 = memref.load %arg6[%c1_174, %c3_175] : memref<4x8xf32, #tpu.memory_space<smem>>
    %371 = vector.broadcast %370 : f32 to vector<8x8x8xf32>
    %372 = arith.mulf %371, %168 : vector<8x8x8xf32>
    %373 = arith.addf %369, %372 : vector<8x8x8xf32>
    %c1_176 = arith.constant 1 : index
    %c4_177 = arith.constant 4 : index
    %374 = memref.load %arg6[%c1_176, %c4_177] : memref<4x8xf32, #tpu.memory_space<smem>>
    %375 = vector.broadcast %374 : f32 to vector<8x8x8xf32>
    %376 = arith.mulf %375, %204 : vector<8x8x8xf32>
    %377 = arith.addf %373, %376 : vector<8x8x8xf32>
    %c1_178 = arith.constant 1 : index
    %c5_179 = arith.constant 5 : index
    %378 = memref.load %arg6[%c1_178, %c5_179] : memref<4x8xf32, #tpu.memory_space<smem>>
    %379 = vector.broadcast %378 : f32 to vector<8x8x8xf32>
    %380 = arith.mulf %379, %240 : vector<8x8x8xf32>
    %381 = arith.addf %377, %380 : vector<8x8x8xf32>
    %c1_180 = arith.constant 1 : index
    %c6_181 = arith.constant 6 : index
    %382 = memref.load %arg6[%c1_180, %c6_181] : memref<4x8xf32, #tpu.memory_space<smem>>
    %383 = vector.broadcast %382 : f32 to vector<8x8x8xf32>
    %384 = arith.mulf %383, %276 : vector<8x8x8xf32>
    %385 = arith.addf %381, %384 : vector<8x8x8xf32>
    %c1_182 = arith.constant 1 : index
    %c7_183 = arith.constant 7 : index
    %386 = memref.load %arg6[%c1_182, %c7_183] : memref<4x8xf32, #tpu.memory_space<smem>>
    %387 = vector.broadcast %386 : f32 to vector<8x8x8xf32>
    %388 = arith.mulf %387, %312 : vector<8x8x8xf32>
    %389 = arith.addf %385, %388 : vector<8x8x8xf32>
    %c1_184 = arith.constant 1 : index
    %390 = memref.load %arg7[%c1_184] : memref<4xf32, #tpu.memory_space<smem>>
    %391 = vector.broadcast %390 : f32 to vector<8x8x8xf32>
    %392 = arith.addf %389, %391 : vector<8x8x8xf32>
    %cst_185 = arith.constant dense<0xFF800000> : vector<8x8xf32>
    %393 = vector.multi_reduction <maximumf>, %392, %cst_185 [2] : vector<8x8x8xf32> to vector<8x8xf32>
    %394 = vector.shape_cast %393 : vector<8x8xf32> to vector<8x8x1xf32>
    %395 = vector.broadcast %394 : vector<8x8x1xf32> to vector<8x8x8xf32>
    %396 = arith.subf %392, %395 : vector<8x8x8xf32>
    %397 = math.exp %396 : vector<8x8x8xf32>
    %cst_186 = arith.constant dense<0.000000e+00> : vector<8x8xf32>
    %398 = vector.multi_reduction <add>, %397, %cst_186 [2] : vector<8x8x8xf32> to vector<8x8xf32>
    %399 = vector.shape_cast %398 : vector<8x8xf32> to vector<8x8x1xf32>
    %400 = tpu.reciprocal %399 : vector<8x8x1xf32> -> vector<8x8x1xf32>
    %401 = vector.broadcast %400 : vector<8x8x1xf32> to vector<8x8x8xf32>
    %402 = arith.mulf %397, %401 : vector<8x8x8xf32>
    %403 = vector.extract_strided_slice %3 {offsets = [0, 0, 48], sizes = [8, 8, 16], strides = [1, 1, 1]} : vector<8x8x96xf32> to vector<8x8x16xf32>
    "tpu.trace_start"() <{level = 10 : i32, message = "bqk,bkd->bqd"}> : () -> ()
    %cst_187 = arith.constant dense<0.000000e+00> : vector<8x8x16xf32>
    %404 = tpu.matmul %402, %403, %cst_187 {dimension_numbers = #tpu.dot_dimension_numbers<[2], [1], [1], [2], [0, 0, 0, 1, 1, 2], [0], [0]>} : vector<8x8x8xf32>, vector<8x8x16xf32>, vector<8x8x16xf32> -> vector<8x8x16xf32>
    "tpu.trace_stop"() : () -> ()
    %405 = arith.addf %358, %404 : vector<8x8x16xf32>
    %c2_188 = arith.constant 2 : index
    %c0_189 = arith.constant 0 : index
    %406 = memref.load %arg6[%c2_188, %c0_189] : memref<4x8xf32, #tpu.memory_space<smem>>
    %407 = vector.broadcast %406 : f32 to vector<8x8x8xf32>
    %408 = arith.mulf %407, %60 : vector<8x8x8xf32>
    %c2_190 = arith.constant 2 : index
    %c1_191 = arith.constant 1 : index
    %409 = memref.load %arg6[%c2_190, %c1_191] : memref<4x8xf32, #tpu.memory_space<smem>>
    %410 = vector.broadcast %409 : f32 to vector<8x8x8xf32>
    %411 = arith.mulf %410, %96 : vector<8x8x8xf32>
    %412 = arith.addf %408, %411 : vector<8x8x8xf32>
    %c2_192 = arith.constant 2 : index
    %c2_193 = arith.constant 2 : index
    %413 = memref.load %arg6[%c2_192, %c2_193] : memref<4x8xf32, #tpu.memory_space<smem>>
    %414 = vector.broadcast %413 : f32 to vector<8x8x8xf32>
    %415 = arith.mulf %414, %132 : vector<8x8x8xf32>
    %416 = arith.addf %412, %415 : vector<8x8x8xf32>
    %c2_194 = arith.constant 2 : index
    %c3_195 = arith.constant 3 : index
    %417 = memref.load %arg6[%c2_194, %c3_195] : memref<4x8xf32, #tpu.memory_space<smem>>
    %418 = vector.broadcast %417 : f32 to vector<8x8x8xf32>
    %419 = arith.mulf %418, %168 : vector<8x8x8xf32>
    %420 = arith.addf %416, %419 : vector<8x8x8xf32>
    %c2_196 = arith.constant 2 : index
    %c4_197 = arith.constant 4 : index
    %421 = memref.load %arg6[%c2_196, %c4_197] : memref<4x8xf32, #tpu.memory_space<smem>>
    %422 = vector.broadcast %421 : f32 to vector<8x8x8xf32>
    %423 = arith.mulf %422, %204 : vector<8x8x8xf32>
    %424 = arith.addf %420, %423 : vector<8x8x8xf32>
    %c2_198 = arith.constant 2 : index
    %c5_199 = arith.constant 5 : index
    %425 = memref.load %arg6[%c2_198, %c5_199] : memref<4x8xf32, #tpu.memory_space<smem>>
    %426 = vector.broadcast %425 : f32 to vector<8x8x8xf32>
    %427 = arith.mulf %426, %240 : vector<8x8x8xf32>
    %428 = arith.addf %424, %427 : vector<8x8x8xf32>
    %c2_200 = arith.constant 2 : index
    %c6_201 = arith.constant 6 : index
    %429 = memref.load %arg6[%c2_200, %c6_201] : memref<4x8xf32, #tpu.memory_space<smem>>
    %430 = vector.broadcast %429 : f32 to vector<8x8x8xf32>
    %431 = arith.mulf %430, %276 : vector<8x8x8xf32>
    %432 = arith.addf %428, %431 : vector<8x8x8xf32>
    %c2_202 = arith.constant 2 : index
    %c7_203 = arith.constant 7 : index
    %433 = memref.load %arg6[%c2_202, %c7_203] : memref<4x8xf32, #tpu.memory_space<smem>>
    %434 = vector.broadcast %433 : f32 to vector<8x8x8xf32>
    %435 = arith.mulf %434, %312 : vector<8x8x8xf32>
    %436 = arith.addf %432, %435 : vector<8x8x8xf32>
    %c2_204 = arith.constant 2 : index
    %437 = memref.load %arg7[%c2_204] : memref<4xf32, #tpu.memory_space<smem>>
    %438 = vector.broadcast %437 : f32 to vector<8x8x8xf32>
    %439 = arith.addf %436, %438 : vector<8x8x8xf32>
    %cst_205 = arith.constant dense<0xFF800000> : vector<8x8xf32>
    %440 = vector.multi_reduction <maximumf>, %439, %cst_205 [2] : vector<8x8x8xf32> to vector<8x8xf32>
    %441 = vector.shape_cast %440 : vector<8x8xf32> to vector<8x8x1xf32>
    %442 = vector.broadcast %441 : vector<8x8x1xf32> to vector<8x8x8xf32>
    %443 = arith.subf %439, %442 : vector<8x8x8xf32>
    %444 = math.exp %443 : vector<8x8x8xf32>
    %cst_206 = arith.constant dense<0.000000e+00> : vector<8x8xf32>
    %445 = vector.multi_reduction <add>, %444, %cst_206 [2] : vector<8x8x8xf32> to vector<8x8xf32>
    %446 = vector.shape_cast %445 : vector<8x8xf32> to vector<8x8x1xf32>
    %447 = tpu.reciprocal %446 : vector<8x8x1xf32> -> vector<8x8x1xf32>
    %448 = vector.broadcast %447 : vector<8x8x1xf32> to vector<8x8x8xf32>
    %449 = arith.mulf %444, %448 : vector<8x8x8xf32>
    %450 = vector.extract_strided_slice %3 {offsets = [0, 0, 64], sizes = [8, 8, 16], strides = [1, 1, 1]} : vector<8x8x96xf32> to vector<8x8x16xf32>
    "tpu.trace_start"() <{level = 10 : i32, message = "bqk,bkd->bqd"}> : () -> ()
    %cst_207 = arith.constant dense<0.000000e+00> : vector<8x8x16xf32>
    %451 = tpu.matmul %449, %450, %cst_207 {dimension_numbers = #tpu.dot_dimension_numbers<[2], [1], [1], [2], [0, 0, 0, 1, 1, 2], [0], [0]>} : vector<8x8x8xf32>, vector<8x8x16xf32>, vector<8x8x16xf32> -> vector<8x8x16xf32>
    "tpu.trace_stop"() : () -> ()
    %452 = arith.addf %405, %451 : vector<8x8x16xf32>
    %c3_208 = arith.constant 3 : index
    %c0_209 = arith.constant 0 : index
    %453 = memref.load %arg6[%c3_208, %c0_209] : memref<4x8xf32, #tpu.memory_space<smem>>
    %454 = vector.broadcast %453 : f32 to vector<8x8x8xf32>
    %455 = arith.mulf %454, %60 : vector<8x8x8xf32>
    %c3_210 = arith.constant 3 : index
    %c1_211 = arith.constant 1 : index
    %456 = memref.load %arg6[%c3_210, %c1_211] : memref<4x8xf32, #tpu.memory_space<smem>>
    %457 = vector.broadcast %456 : f32 to vector<8x8x8xf32>
    %458 = arith.mulf %457, %96 : vector<8x8x8xf32>
    %459 = arith.addf %455, %458 : vector<8x8x8xf32>
    %c3_212 = arith.constant 3 : index
    %c2_213 = arith.constant 2 : index
    %460 = memref.load %arg6[%c3_212, %c2_213] : memref<4x8xf32, #tpu.memory_space<smem>>
    %461 = vector.broadcast %460 : f32 to vector<8x8x8xf32>
    %462 = arith.mulf %461, %132 : vector<8x8x8xf32>
    %463 = arith.addf %459, %462 : vector<8x8x8xf32>
    %c3_214 = arith.constant 3 : index
    %c3_215 = arith.constant 3 : index
    %464 = memref.load %arg6[%c3_214, %c3_215] : memref<4x8xf32, #tpu.memory_space<smem>>
    %465 = vector.broadcast %464 : f32 to vector<8x8x8xf32>
    %466 = arith.mulf %465, %168 : vector<8x8x8xf32>
    %467 = arith.addf %463, %466 : vector<8x8x8xf32>
    %c3_216 = arith.constant 3 : index
    %c4_217 = arith.constant 4 : index
    %468 = memref.load %arg6[%c3_216, %c4_217] : memref<4x8xf32, #tpu.memory_space<smem>>
    %469 = vector.broadcast %468 : f32 to vector<8x8x8xf32>
    %470 = arith.mulf %469, %204 : vector<8x8x8xf32>
    %471 = arith.addf %467, %470 : vector<8x8x8xf32>
    %c3_218 = arith.constant 3 : index
    %c5_219 = arith.constant 5 : index
    %472 = memref.load %arg6[%c3_218, %c5_219] : memref<4x8xf32, #tpu.memory_space<smem>>
    %473 = vector.broadcast %472 : f32 to vector<8x8x8xf32>
    %474 = arith.mulf %473, %240 : vector<8x8x8xf32>
    %475 = arith.addf %471, %474 : vector<8x8x8xf32>
    %c3_220 = arith.constant 3 : index
    %c6_221 = arith.constant 6 : index
    %476 = memref.load %arg6[%c3_220, %c6_221] : memref<4x8xf32, #tpu.memory_space<smem>>
    %477 = vector.broadcast %476 : f32 to vector<8x8x8xf32>
    %478 = arith.mulf %477, %276 : vector<8x8x8xf32>
    %479 = arith.addf %475, %478 : vector<8x8x8xf32>
    %c3_222 = arith.constant 3 : index
    %c7_223 = arith.constant 7 : index
    %480 = memref.load %arg6[%c3_222, %c7_223] : memref<4x8xf32, #tpu.memory_space<smem>>
    %481 = vector.broadcast %480 : f32 to vector<8x8x8xf32>
    %482 = arith.mulf %481, %312 : vector<8x8x8xf32>
    %483 = arith.addf %479, %482 : vector<8x8x8xf32>
    %c3_224 = arith.constant 3 : index
    %484 = memref.load %arg7[%c3_224] : memref<4xf32, #tpu.memory_space<smem>>
    %485 = vector.broadcast %484 : f32 to vector<8x8x8xf32>
    %486 = arith.addf %483, %485 : vector<8x8x8xf32>
    %cst_225 = arith.constant dense<0xFF800000> : vector<8x8xf32>
    %487 = vector.multi_reduction <maximumf>, %486, %cst_225 [2] : vector<8x8x8xf32> to vector<8x8xf32>
    %488 = vector.shape_cast %487 : vector<8x8xf32> to vector<8x8x1xf32>
    %489 = vector.broadcast %488 : vector<8x8x1xf32> to vector<8x8x8xf32>
    %490 = arith.subf %486, %489 : vector<8x8x8xf32>
    %491 = math.exp %490 : vector<8x8x8xf32>
    %cst_226 = arith.constant dense<0.000000e+00> : vector<8x8xf32>
    %492 = vector.multi_reduction <add>, %491, %cst_226 [2] : vector<8x8x8xf32> to vector<8x8xf32>
    %493 = vector.shape_cast %492 : vector<8x8xf32> to vector<8x8x1xf32>
    %494 = tpu.reciprocal %493 : vector<8x8x1xf32> -> vector<8x8x1xf32>
    %495 = vector.broadcast %494 : vector<8x8x1xf32> to vector<8x8x8xf32>
    %496 = arith.mulf %491, %495 : vector<8x8x8xf32>
    %497 = vector.extract_strided_slice %3 {offsets = [0, 0, 80], sizes = [8, 8, 16], strides = [1, 1, 1]} : vector<8x8x96xf32> to vector<8x8x16xf32>
    "tpu.trace_start"() <{level = 10 : i32, message = "bqk,bkd->bqd"}> : () -> ()
    %cst_227 = arith.constant dense<0.000000e+00> : vector<8x8x16xf32>
    %498 = tpu.matmul %496, %497, %cst_227 {dimension_numbers = #tpu.dot_dimension_numbers<[2], [1], [1], [2], [0, 0, 0, 1, 1, 2], [0], [0]>} : vector<8x8x8xf32>, vector<8x8x16xf32>, vector<8x8x16xf32> -> vector<8x8x16xf32>
    "tpu.trace_stop"() : () -> ()
    %499 = arith.addf %452, %498 : vector<8x8x16xf32>
    %500 = vector.shape_cast %0 : vector<64x16xf32> to vector<8x8x16xf32>
    %501 = arith.addf %499, %500 : vector<8x8x16xf32>
    %cst_228 = arith.constant dense<0.000000e+00> : vector<8x8xf32>
    %502 = vector.multi_reduction <add>, %501, %cst_228 [2] : vector<8x8x16xf32> to vector<8x8xf32>
    %503 = vector.shape_cast %502 : vector<8x8xf32> to vector<8x8x1xf32>
    %cst_229 = arith.constant dense<0.000000e+00> : vector<8x1xf32>
    %504 = vector.multi_reduction <add>, %503, %cst_229 [1] : vector<8x8x1xf32> to vector<8x1xf32>
    %505 = vector.shape_cast %504 : vector<8x1xf32> to vector<8x1x1xf32>
    %cst_230 = arith.constant 7.812500e-03 : f32
    %506 = vector.broadcast %cst_230 : f32 to vector<8x1x1xf32>
    %507 = arith.mulf %505, %506 : vector<8x1x1xf32>
    %508 = vector.broadcast %507 : vector<8x1x1xf32> to vector<8x8x16xf32>
    %509 = arith.subf %501, %508 : vector<8x8x16xf32>
    %510 = arith.mulf %509, %509 : vector<8x8x16xf32>
    %cst_231 = arith.constant dense<0.000000e+00> : vector<8x8xf32>
    %511 = vector.multi_reduction <add>, %510, %cst_231 [2] : vector<8x8x16xf32> to vector<8x8xf32>
    %512 = vector.shape_cast %511 : vector<8x8xf32> to vector<8x8x1xf32>
    %cst_232 = arith.constant dense<0.000000e+00> : vector<8x1xf32>
    %513 = vector.multi_reduction <add>, %512, %cst_232 [1] : vector<8x8x1xf32> to vector<8x1xf32>
    %514 = vector.shape_cast %513 : vector<8x1xf32> to vector<8x1x1xf32>
    %cst_233 = arith.constant 0.00787401571 : f32
    %515 = vector.broadcast %cst_233 : f32 to vector<8x1x1xf32>
    %516 = arith.mulf %514, %515 : vector<8x1x1xf32>
    %cst_234 = arith.constant 9.99999974E-6 : f32
    %517 = vector.broadcast %cst_234 : f32 to vector<8x1x1xf32>
    %518 = arith.addf %516, %517 : vector<8x1x1xf32>
    %519 = math.rsqrt %518 : vector<8x1x1xf32>
    %520 = vector.broadcast %519 : vector<8x1x1xf32> to vector<8x8x16xf32>
    %521 = arith.mulf %509, %520 : vector<8x8x16xf32>
    %522 = vector.shape_cast %521 : vector<8x8x16xf32> to vector<64x16xf32>
    %c0_235 = arith.constant 0 : index
    %c0_236 = arith.constant 0 : index
    %523 = vector.load %arg8[%c0_235, %c0_236] : memref<16x32xf32, #tpu.memory_space<vmem>>, vector<16x32xf32>
    %cst_237 = arith.constant dense<0.000000e+00> : vector<64x32xf32>
    %524 = tpu.matmul %522, %523, %cst_237 {dimension_numbers = #tpu.dot_dimension_numbers<[1], [0], [0], [1], [0, 0, 1, 1], [], []>} : vector<64x16xf32>, vector<16x32xf32>, vector<64x32xf32> -> vector<64x32xf32>
    %cst_238 = arith.constant 0.000000e+00 : f32
    %525 = vector.broadcast %cst_238 : f32 to vector<64x32xf32>
    %526 = arith.maximumf %524, %525 : vector<64x32xf32>
    %c0_239 = arith.constant 0 : index
    %c0_240 = arith.constant 0 : index
    %527 = vector.load %arg9[%c0_239, %c0_240] : memref<32x16xf32, #tpu.memory_space<vmem>>, vector<32x16xf32>
    %cst_241 = arith.constant dense<0.000000e+00> : vector<64x16xf32>
    %528 = tpu.matmul %526, %527, %cst_241 {dimension_numbers = #tpu.dot_dimension_numbers<[1], [0], [0], [1], [0, 0, 1, 1], [], []>} : vector<64x32xf32>, vector<32x16xf32>, vector<64x16xf32> -> vector<64x16xf32>
    %529 = vector.shape_cast %528 : vector<64x16xf32> to vector<8x8x16xf32>
    %530 = arith.addf %529, %521 : vector<8x8x16xf32>
    %cst_242 = arith.constant dense<0.000000e+00> : vector<8x8xf32>
    %531 = vector.multi_reduction <add>, %530, %cst_242 [2] : vector<8x8x16xf32> to vector<8x8xf32>
    %532 = vector.shape_cast %531 : vector<8x8xf32> to vector<8x8x1xf32>
    %cst_243 = arith.constant dense<0.000000e+00> : vector<8x1xf32>
    %533 = vector.multi_reduction <add>, %532, %cst_243 [1] : vector<8x8x1xf32> to vector<8x1xf32>
    %534 = vector.shape_cast %533 : vector<8x1xf32> to vector<8x1x1xf32>
    %cst_244 = arith.constant 7.812500e-03 : f32
    %535 = vector.broadcast %cst_244 : f32 to vector<8x1x1xf32>
    %536 = arith.mulf %534, %535 : vector<8x1x1xf32>
    %537 = vector.broadcast %536 : vector<8x1x1xf32> to vector<8x8x16xf32>
    %538 = arith.subf %530, %537 : vector<8x8x16xf32>
    %539 = arith.mulf %538, %538 : vector<8x8x16xf32>
    %cst_245 = arith.constant dense<0.000000e+00> : vector<8x8xf32>
    %540 = vector.multi_reduction <add>, %539, %cst_245 [2] : vector<8x8x16xf32> to vector<8x8xf32>
    %541 = vector.shape_cast %540 : vector<8x8xf32> to vector<8x8x1xf32>
    %cst_246 = arith.constant dense<0.000000e+00> : vector<8x1xf32>
    %542 = vector.multi_reduction <add>, %541, %cst_246 [1] : vector<8x8x1xf32> to vector<8x1xf32>
    %543 = vector.shape_cast %542 : vector<8x1xf32> to vector<8x1x1xf32>
    %cst_247 = arith.constant 0.00787401571 : f32
    %544 = vector.broadcast %cst_247 : f32 to vector<8x1x1xf32>
    %545 = arith.mulf %543, %544 : vector<8x1x1xf32>
    %cst_248 = arith.constant 9.99999974E-6 : f32
    %546 = vector.broadcast %cst_248 : f32 to vector<8x1x1xf32>
    %547 = arith.addf %545, %546 : vector<8x1x1xf32>
    %548 = math.rsqrt %547 : vector<8x1x1xf32>
    %549 = vector.broadcast %548 : vector<8x1x1xf32> to vector<8x8x16xf32>
    %550 = arith.mulf %538, %549 : vector<8x8x16xf32>
    %c0_249 = arith.constant 0 : index
    %c0_250 = arith.constant 0 : index
    %c0_251 = arith.constant 0 : index
    %551 = vector.load %arg10[%c0_249, %c0_250, %c0_251] : memref<8x8x16xf32, #tpu.memory_space<vmem>>, vector<8x8x16xf32>
    tpu.vector_store %arg10[%c0_249, %c0_250, %c0_251], %550 {strides = array<i32>} : memref<8x8x16xf32, #tpu.memory_space<vmem>>, vector<8x8x16xf32>,
    return
  }
  func.func @transform_0(%arg0: i32) -> (i32, i32) {
    %c0_i32 = arith.constant 0 : i32
    %c0_i32_0 = arith.constant 0 : i32
    return %arg0, %c0_i32 : i32, i32
  }
  func.func @transform_1(%arg0: i32) -> (i32, i32, i32, i32) {
    %c0_i32 = arith.constant 0 : i32
    %c0_i32_0 = arith.constant 0 : i32
    %c0_i32_1 = arith.constant 0 : i32
    %c0_i32_2 = arith.constant 0 : i32
    return %arg0, %c0_i32, %c0_i32_0, %c0_i32_1 : i32, i32, i32, i32
  }
  func.func @transform_2(%arg0: i32) -> (i32, i32) {
    %c0_i32 = arith.constant 0 : i32
    %c0_i32_0 = arith.constant 0 : i32
    %c0_i32_1 = arith.constant 0 : i32
    return %c0_i32, %c0_i32_0 : i32, i32
  }
  func.func @transform_3(%arg0: i32) -> (i32, i32) {
    %c0_i32 = arith.constant 0 : i32
    %c0_i32_0 = arith.constant 0 : i32
    %c0_i32_1 = arith.constant 0 : i32
    return %c0_i32, %c0_i32_0 : i32, i32
  }
  func.func @transform_4(%arg0: i32) -> i32 {
    %c0_i32 = arith.constant 0 : i32
    %c0_i32_0 = arith.constant 0 : i32
    return %c0_i32 : i32
  }
  func.func @transform_5(%arg0: i32) -> (i32, i32) {
    %c0_i32 = arith.constant 0 : i32
    %c0_i32_0 = arith.constant 0 : i32
    %c0_i32_1 = arith.constant 0 : i32
    return %c0_i32, %c0_i32_0 : i32, i32
  }
  func.func @transform_6(%arg0: i32) -> i32 {
    %c0_i32 = arith.constant 0 : i32
    %c0_i32_0 = arith.constant 0 : i32
    return %c0_i32 : i32
  }
  func.func @transform_7(%arg0: i32) -> (i32, i32) {
    %c0_i32 = arith.constant 0 : i32
    %c0_i32_0 = arith.constant 0 : i32
    %c0_i32_1 = arith.constant 0 : i32
    return %c0_i32, %c0_i32_0 : i32, i32
  }
  func.func @transform_8(%arg0: i32) -> (i32, i32) {
    %c0_i32 = arith.constant 0 : i32
    %c0_i32_0 = arith.constant 0 : i32
    %c0_i32_1 = arith.constant 0 : i32
    return %c0_i32, %c0_i32_0 : i32, i32
  }
  func.func @transform_9(%arg0: i32) -> (i32, i32, i32) {
    %c0_i32 = arith.constant 0 : i32
    %c0_i32_0 = arith.constant 0 : i32
    %c0_i32_1 = arith.constant 0 : i32
    return %arg0, %c0_i32, %c0_i32_0 : i32, i32, i32
  }
}

</mosaic_0001>

<bundles_post_ra>
// kernel: tpu_custom_call.1
= control target key start
LH: loop header
LB: loop body
LE: loop exit
PB: predicated region body
PF: predicated region fallthrough
CT: control target
= control target key end

     0   :  { %s14543_s0 = inlined_call_operand.vmem [shape: f32[128,16], index: 0, kind: input, shape index: {}]   ;;  %s14544_s1 = inlined_call_operand.vmem [shape: f32[16,4,8,8], index: 1, kind: input, shape index: {}]   ;;  %s14545_s2 = inlined_call_operand.vmem [shape: f32[16,96], index: 2, kind: input, shape index: {}]   ;;  %s14546_s3 = inlined_call_operand.vmem [shape: f32[8,8], index: 3, kind: input, shape index: {}]   ;;  %s14547_s4 = inlined_call_operand.vmem [shape: f32[8], index: 4, kind: input, shape index: {}]   ;;  %s14548_s5 = inlined_call_operand.vmem [shape: f32[4,8], index: 5, kind: input, shape index: {}]   ;;  %s14549_s6 = inlined_call_operand.vmem [shape: f32[4], index: 6, kind: input, shape index: {}]   ;;  %s14550_s7 = inlined_call_operand.vmem [shape: f32[16,32], index: 7, kind: input, shape index: {}]   ;;  %s14551_s8 = inlined_call_operand.vmem [shape: f32[32,16], index: 8, kind: input, shape index: {}]   ;;  %s14552_s9 = inlined_call_operand.hbm [shape: f32[16,8,16], index: 9, kind: output, shape index: {}]  }
   0x1   :  { %14826 = sst [smem:[#allocation218_spill]] %s14543_s0 }
   0x2   :  { %14827 = sst [smem:[#allocation219_spill]] %s14545_s2 }
   0x3   :  { %14828 = sst [smem:[#allocation220_spill]] %s14546_s3 }
   0x4   :  { %14829 = sst [smem:[#allocation221_spill]] %s14547_s4 }
   0x5   :  { %14830 = sst [smem:[#allocation222_spill]] %s14548_s5 }
   0x6   :  { %14831 = sst [smem:[#allocation223_spill]] %s14549_s6 }
   0x7   :  { %14832 = sst [smem:[#allocation224_spill]] %s14550_s7 }
   0x8   :  { %14833 = sst [smem:[#allocation225_spill]] %s14551_s8 }
   0x9   :  { %14834 = sst [smem:[#allocation226_spill]] %s14552_s9 }
   0xa   :  { %14 = vsyncpa [#allocation4], 0 }
   0xb   :  { %15 = vsyncpa [#allocation6], 0 }
   0xc   :  { %16 = vsyncpa [#allocation9], 0 }
   0xd   :  { %17 = vsyncpa [#allocation3], 0 }
   0xe   :  { %19 = vsyncpa [#allocation3 + $0x1], 0  ;;  %s9790_s30 = smov 0   ;;  %s9792_s10 = smov 0  }
   0xf   :  { %s9794_s11 = smov 0   ;;  %s9796_s12 = smov 0  }
  0x10 LB: > { %14835 = sst [smem:[#allocation15_spill]] %s9706_s30  ;;  %s9811_s13 = sadd.s32 4294967295, %s9718_s12   ;;  %s9718_s12 = sphi %s9796_s12, %s15833_s12   ;;  %s9714_s11 = sphi %s9794_s11, %s15836_s11   ;;  %s9710_s10 = sphi %s9792_s10, %s15835_s10   ;;  %s9706_s30 = sphi %s9790_s30, %s15834_s30  }
  0x11   : > { %14836 = sst [smem:[#allocation16_spill]] %s9710_s10  ;;  %s8515_s14 = sadd.s32 4294967294, %s9718_s12  }
  0x12   : > { %14837 = sst [smem:[#allocation17_spill]] %s9714_s11  ;;  %s9815_s15 = sadd.s32 1, %s9718_s12  }
  0x13   : > { %14838 = sst [smem:[#allocation18_spill]] %s9718_s12  ;;  %s231_s16 = sadd.s32 1, %s9714_s11 }
  0x14   : > { %14839 = sst [smem:[#allocation19_spill]] %s9811_s13  ;;  %s228_s17 = ssub.s32 %s9718_s12, %s9815_s15 }
  0x15   : > { %14840 = sst [smem:[#allocation20_spill]] %s9815_s15  ;;  %p241_p0 = scmp.ne.s32.totalorder %s9714_s11, %s9710_s10 }
  0x16   : > { %p229_p1 = scmp.eq.s32.totalorder %s228_s17, 0  ;;  %p242_p2 = scmp.eq.s32.totalorder %s9811_s13, 1 }
  0x17   : > { %p247_p3 = scmp.ne.s32.totalorder %s9710_s10, %s9706_s30  ;;  %p248_p4 = scmp.eq.s32.totalorder %s8515_s14, 1 }
  0x18   : > { %s9826_s18 = scalar_select %p229_p1, %s9714_s11, %s231_s16  }
  0x19   : > { %p9828_p5 = por %p242_p2, %p241_p0  ;;  %p9832_p6 = por %p248_p4, %p247_p3 }
  0x1a   : > { %14841 = sst [smem:[#allocation21_spill]] %s9826_s18  ;;  %p8516_p7 = scmp.ge.s32.totalorder %s9718_s12, 1 }
  0x1b   : > { %s14842_s19 = scalar_select %p9828_p5, 1, 0 }
  0x1c   : > { %s14844_s20 = scalar_select %p9832_p6, 1, 0 }
  0x1d   : > { %14843 = sst [smem:[#allocation22_spill]] %s14842_s19  ;;  %p255_p8 = scmp.lt.s32.totalorder %s9718_s12, 3 }
  0x1e   : > { %14845 = sst [smem:[#allocation23_spill]] %s14844_s20  ;;  %p14553_p9 = scmp.eq.s32.totalorder %s9811_s13, 0 }
  0x1f   : > { %p9839_p10 = pnand %p8516_p7, %p255_p8  ;;  %s14847_s4 = sld [smem:[#allocation221_spill]] }
  0x20   : > { %s14848_s3 = sld [smem:[#allocation220_spill]] }
  0x21   : > { %s14846_s21 = scalar_select %p9839_p10, 1, 0 }
  0x22   : > { %p9314_p11 = pneg %p9839_p10  ;;  %s14850_s5 = sld [smem:[#allocation222_spill]] }
  0x23   : > { %s14851_s6 = sld [smem:[#allocation223_spill]] }
  0x24   : > { %p9853_p12 = pnand %p14553_p9, %p9314_p11 }
  0x25   : > { %s282_s24 = sshll.u32 %s14847_s4, 4  ;;  %s283_s24 = int_to_ptr.vmem [resolvable:$true] %s282_s24 }
  0x26   : > { %s271_s27 = sshll.u32 %s14848_s3, 4  ;;  %s9586_s25 = scalar_lea.vmem %s283_s24, 16  ;;  %s272_s27 = int_to_ptr.vmem [resolvable:$true] %s271_s27 }
  0x27   : > { %p9587_p13 = scmp.ne.s32.totalorder %s283_s24, %s9586_s25  ;;  %p9588_p0 = pneg %p9853_p12 }
  0x28   : > { %s293_s16 = sshll.u32 %s14850_s5, 4  ;;  %p9594_p3 = scmp.lt.s32.totalorder %s283_s24, %s283_s24  ;;  %s9860_s16 = int_to_ptr.vmem [resolvable:$true] %s293_s16 }
  0x29   : > { %s304_s23 = sshll.u32 %s14851_s6, 4  ;;  %p9589_p1 = pnand %p9588_p0, %p9587_p13  ;;  %s305_s23 = int_to_ptr.vmem [resolvable:$true] %s304_s23 }
  0x2a   : > { %p9595_p4 = scmp.lt.s32.totalorder %s9586_s25, %s9586_s25 }
  0x2b   : > { %p9590_p2 = pneg %p9589_p1 }
  0x2c   : > { %p9596_p7 = por %p9595_p4, %p9594_p3 }
  0x2e   : > { %p9597_p8 = pnand %p9596_p7, %p9590_p2 }
  0x30   : > { %9600 = shalt.err (!%p9597_p8)
}
  0x31   : > { %s9720_s26 = smov [#allocation5]   ;;  %s9601_s29 = scalar_lea.vmem %s272_s27, 128 }
  0x32   : > { %9320 = dma.vmem_to_smem (!%p9853_p12), %s283_s24, 16, %s9720_s26, [#allocation6]  }
  0x33   : > { %p9602_p11 = scmp.ne.s32.totalorder %s272_s27, %s9601_s29  ;;  %p9609_p5 = scmp.lt.s32.totalorder %s272_s27, %s272_s27 }
  0x34   : > { %p9610_p10 = scmp.lt.s32.totalorder %s9601_s29, %s9601_s29 }
  0x35   : > { %p9604_p9 = pnand %p9602_p11, %p9588_p0 }
  0x36   : > { %p9611_p13 = por %p9610_p10, %p9609_p5 }
  0x37   : > { %p9605_p6 = pneg %p9604_p9 }
  0x39   : > { %p9612_p1 = pnand %p9611_p13, %p9605_p6 }
  0x3b   : > { %9615 = shalt.err (!%p9612_p1)
}
  0x3c   : > { %s9721_s14 = smov [#allocation2]   ;;  %s9616_s24 = scalar_lea.vmem %s9860_s16, 64 }
  0x3d   : > { %9317 = dma.vmem_to_smem (!%p9853_p12), %s272_s27, 128, %s9721_s14, [#allocation4]  }
  0x3e   : > { %p9617_p2 = scmp.ne.s32.totalorder %s9860_s16, %s9616_s24  ;;  %p9624_p9 = scmp.lt.s32.totalorder %s9860_s16, %s9860_s16 }
  0x3f   : > { %p9625_p7 = scmp.lt.s32.totalorder %s9616_s24, %s9616_s24 }
  0x40   : > { %p9619_p3 = pnand %p9617_p2, %p9588_p0 }
  0x41   : > { %p9626_p5 = por %p9625_p7, %p9624_p9 }
  0x42   : > { %p9620_p4 = pneg %p9619_p3 }
  0x44   : > { %p9627_p6 = pnand %p9626_p5, %p9620_p4 }
  0x46   : > { %9630 = shalt.err (!%p9627_p6)
}
  0x47   : > { %s9722_s17 = smov [#allocation7]   ;;  %s9631_s25 = scalar_lea.vmem %s305_s23, 16 }
  0x48   : > { %9323 = dma.vmem_to_smem (!%p9853_p12), %s9860_s16, 64, %s9722_s17, [#allocation6]  }
  0x49   : > { %p9632_p10 = scmp.ne.s32.totalorder %s305_s23, %s9631_s25  ;;  %p9639_p13 = scmp.lt.s32.totalorder %s305_s23, %s305_s23 }
  0x4a   : > { %p9640_p1 = scmp.lt.s32.totalorder %s9631_s25, %s9631_s25 }
  0x4b   : > { %p9634_p8 = pnand %p9632_p10, %p9588_p0 }
  0x4c   : > { %p9641_p2 = por %p9640_p1, %p9639_p13 }
  0x4d   : > { %p9635_p11 = pneg %p9634_p8 }
  0x4f   : > { %p9642_p3 = pnand %p9641_p2, %p9635_p11 }
  0x51   : > { %9645 = shalt.err (!%p9642_p3)
}
  0x52   : > { %s9723_s26 = smov [#allocation8]   ;;  %p14852_p4 = scmp.ne.s32.totalorder %s14846_s21, 0 }
  0x53   : > { %9326 = dma.vmem_to_smem (!%p9853_p12), %s305_s23, 16, %s9723_s26, [#allocation9]  }
  0x54   : > { %342 = sbr.rel (%p14852_p4) target bundleno = 2771 (0xad3), region = 56 }
  0x59   : > { %p14853_p9 = scmp.eq.s32.totalorder %s9811_s13, 0 }
  0x5b   : > { %9689 = dma.done.wait (%p14853_p9), [#allocation4], 128   ;;  %p14854_p7 = pmov %p14853_p9 }
  0x5d   : > { %9691 = vsyncadd (%p14854_p7), [#allocation4], 4294967168  ;;  %p14855_p0 = pmov %p14854_p7 }
  0x5f   : > { %9693 = dma.done.wait (%p14855_p0), [#allocation6], 80   ;;  %p14856_p5 = pmov %p14855_p0 }
  0x60   : > { %p14857_p6 = pmov %p14855_p0 }
  0x61   : > { %9695 = vsyncadd (%p14856_p5), [#allocation6], 4294967216 }
  0x62   : > { %9697 = dma.done.wait (%p14857_p6), [#allocation9], 16   ;;  %p14858_p12 = pmov %p14855_p0 }
  0x64   : > { %9699 = vsyncadd (%p14858_p12), [#allocation9], 4294967280 }
  0x65   : > { %360 = sfence }
  0x66   : > { %s14859_s2 = sld [smem:[#allocation219_spill]]  ;;  %s8528_s29 = sshll.u32 %s9811_s13, 3  ;;  %vm421_vm0 = vcmask 130048   ;;  %v14574_v10 = vmov 0.0   ;;  %vm9725_vm1 = vmmov 0   ;;  %vm586_vm2 = vcmask 31744  }
  0x67   : > { %p398_p10 = scmp.lt.s32.totalorder %s8528_s29, 15  ;;  %s14860_s0 = sld [smem:[#allocation218_spill]]  ;;  %8940 = vmatprep.subr.mxu1 %v14574_v10  ;;  %8942 = vmatprep.mubr.msk.f32.mxu1 %vm9725_vm1, %v14574_v10  ;;  %vm4450_vm3 = vcmask 64512   ;;  %vm8040_vm4 = vcmask 261120  }
  0x68   : > { %s9726_s27 = smov 108   ;;  %s9727_s25 = smov 112  }
  0x69   : > { %s15838_s29 = smov (!%p398_p10, %s8528_s29), 15  ;;  %s9728_s26 = smov 124  }
  0x6a   : > { %s8529_s14 = sshll.u32 %s15838_s29, 3  ;;  %s9729_s21 = smov 104  }
  0x6b   : > { %s9730_s28 = smov 120   ;;  %s9731_s16 = smov 100  }
  0x6c   : > { %v420_v0 = vld [vmem:[%s14859_s2 + $0x8] sm:$0xff]  ;;  %v419_v1 = vld [vmem:[%s14859_s2] sm:$0xff]  ;;  %s9732_s23 = smov 116   ;;  %s9734_s24 = smov 96  }
  0x6d   : > { %8924 = vmatprep.subr.mxu0 %v420_v0  ;;  %s9923_s22 = scalar_lea.vmem %s14860_s0, %s8529_s14  ;;  %s9733_s14 = smov 80  }
  0x6e   : > { %8925 = vmatpush3.msra.mxu0 %v420_v0  ;;  %14861 = sst [smem:[#allocation24_spill]] %s9923_s22  ;;  %v411_v2 = vld [vmem:[%s9923_s22] sm:$0xff]  ;;  %v412_v3 = vld [vmem:[%s9923_s22 + $0x8] sm:$0xff]  ;;  %v413_v4 = vld [vmem:[%s9923_s22 + $0x10] sm:$0xff]  ;;  %s14556_s17 = smov 64  }
  0x6f   : > { %8926 = vmatprep.subr.mxu0 %v419_v1  ;;  %8928 = vmatprep.mubr.msk.f32.mxu0 %vm421_vm0, %v411_v2  ;;  %v414_v5 = vld [vmem:[%s9923_s22 + $0x18] sm:$0xff]  ;;  %v415_v6 = vld [vmem:[%s9923_s22 + $0x20] sm:$0xff]  ;;  %v416_v7 = vld [vmem:[%s9923_s22 + $0x28] sm:$0xff]  ;;  %s10346_s0 = sld [smem:[#allocation2 + $0x101]] }
  0x70   : > { %8927 = vmatpush3.msra.mxu0 %v419_v1  ;;  %v417_v8 = vld [vmem:[%s9923_s22 + $0x30] sm:$0xff]  ;;  %v418_v9 = vld [vmem:[%s9923_s22 + $0x38] sm:$0xff]  ;;  %s10348_s2 = sld [smem:[#allocation2 + $0x181]] }
  0x71   : > { %8929 = vmatmul.mubr.msk.f32.vlgmr.msra.gmra.mxu0 %vm421_vm0, %v412_v3  ;;  %8960 = vmatprep.subr.mxu0 %v14574_v10  ;;  %s10350_s3 = sld [smem:[#allocation2 + $0x201]] }
  0x72   : > { %8931 = vmatprep.mubr.msk.f32.mxu0 %vm421_vm0, %v413_v4  ;;  %s10352_s4 = sld [smem:[#allocation2 + $0x281]] }
  0x73   : > { %s10354_s5 = sld [smem:[#allocation2 + $0x301]] }
  0x74   : > { %s10356_s6 = sld [smem:[#allocation2 + $0x381]] }
  0x75   : > { %8932 = vmatmul.mubr.msk.f32.gmra.mxu0 %vm421_vm0, %v414_v5  ;;  %s10358_s18 = sld [smem:[#allocation2 + $0x2]] }
  0x76   : > { %8934 = vmatprep.mubr.msk.f32.mxu0 %vm421_vm0, %v415_v6  ;;  %s10360_s11 = sld [smem:[#allocation2 + $0x82]] }
  0x77   : > { %s10362_s15 = sld [smem:[#allocation2 + $0x102]] }
  0x78   : > { %s10364_s20 = sld [smem:[#allocation2 + $0x182]] }
  0x79   : > { %8935 = vmatmul.mubr.msk.f32.gmra.mxu0 %vm421_vm0, %v416_v7  ;;  %s10366_s30 = sld [smem:[#allocation2 + $0x202]] }
  0x7a   : > { %8937 = vmatprep.mubr.msk.f32.mxu0 %vm421_vm0, %v417_v8  ;;  %s10368_s12 = sld [smem:[#allocation2 + $0x282]] }
  0x7b   : > { %s10370_s9 = sld [smem:[#allocation2 + $0x302]] }
  0x7c   : > { %s10372_s19 = sld [smem:[#allocation2 + $0x382]] }
  0x7d   : > { %8938 = vmatmul.mubr.msk.f32.gmra.mxu0 %vm421_vm0, %v418_v9  ;;  %s10374_s13 = sld [smem:[#allocation2 + $0x3]] }
  0x7e   : > { %8962 = vmatprep.mubr.msk.f32.mxu0 %vm9725_vm1, %v14574_v10  ;;  %s10376_s10 = sld [smem:[#allocation2 + $0x83]] }
  0x7f   : > { %14870 = sst [smem:[#allocation33_spill]] %s10366_s30 }
  0x80   : > { %s10378_s8 = sld [smem:[#allocation2 + $0x4]] }
  0x81   : > { %14871 = sst [smem:[#allocation34_spill]] %s10370_s9 }
  0x82   : > { %14872 = sst [smem:[#allocation35_spill]] %s10372_s19  ;;  %s8762_s19 = sshll.u32 %s15838_s29, 5 }
  0x83   : > { %14873 = sst [smem:[#allocation36_spill]] %s10374_s13 }
  0x84   : > { %14874 = sst [smem:[#allocation37_spill]] %s10376_s10 }
  0x85   : > { %s10380_s7 = sld [smem:[#allocation2 + $0x84]] }
  0x86   : > { %s10382_s22 = sld [smem:[#allocation2 + $0x5]] }
  0x87   : > { %s10384_s30 = sld [smem:[#allocation2 + $0x85]] }
  0x88   : > { %s10386_s9 = sld [smem:[#allocation2 + $0x6]] }
  0x89   : > { %s10389_s13 = sld [smem:[#allocation2 + $0x86]] }
  0x8a   : > { %s10403_s10 = sld [smem:[#allocation2 + $0x103]] }
  0x8b   : > { %s10419_s29 = sld [smem:[#allocation2 + $0x104]] }
 0x131   : > { %v9947_v11 = vpop.f32.mrf.mxu0 }
 0x132   : > { %14862 = vst [vmem:[#allocation25_spill] sm:$0xff] %v9947_v11  ;;  %1280 = vrot.lane.b32.xlu1 %v9947_v11, %s9726_s27  ;;  %662 = vrot.lane.b32.xlu0 %v9947_v11, %s9727_s25 }
 0x133   : > { %v9953_v12 = vpop.f32.mrf.mxu0 }
 0x134   : > { %14863 = vst [vmem:[#allocation26_spill] sm:$0xff] %v9953_v12 }
 0x135   : > { %v9967_v13 = vpop.f32.mrf.mxu0 }
 0x136   : > { %1278 = vrot.lane.b32.xlu1 %v9947_v11, %s9728_s26  ;;  %584 = vrot.lane.b32.xlu0 %v9953_v12, %s9727_s25  ;;  %14864 = vst [vmem:[#allocation27_spill] sm:$0xff] %v9967_v13 }
 0x137   : > { %v9977_v14 = vpop.f32.mrf.mxu0 }
 0x138   : > { %14865 = vst [vmem:[#allocation28_spill] sm:$0xff] %v9977_v14 }
 0x139   : > { %v9991_v15 = vpop.f32.mrf.mxu0 }
 0x13a   : > { %1904 = vrot.lane.b32.xlu1 %v9947_v11, %s9729_s21  ;;  %1202 = vrot.lane.b32.xlu0 %v9953_v12, %s9726_s27  ;;  %14866 = vst [vmem:[#allocation29_spill] sm:$0xff] %v9991_v15 }
 0x13b   : > { %v9997_v16 = vpop.f32.mrf.mxu0 }
 0x13c   : > { %14867 = vst [vmem:[#allocation30_spill] sm:$0xff] %v9997_v16 }
 0x13d   : > { %v10011_v17 = vpop.f32.mrf.mxu0 }
 0x13e   : > { %1902 = vrot.lane.b32.xlu1 %v9947_v11, %s9730_s28  ;;  %1200 = vrot.lane.b32.xlu0 %v9953_v12, %s9728_s26  ;;  %14868 = vst [vmem:[#allocation31_spill] sm:$0xff] %v10011_v17 }
 0x13f   : > { %v10017_v18 = vpop.f32.mrf.mxu0 }
 0x140   : > { %14869 = vst [vmem:[#allocation32_spill] sm:$0xff] %v10017_v18 }
 0x142   : > { %1826 = vrot.lane.b32.xlu0 %v9953_v12, %s9729_s21  ;;  %816 = vrot.lane.b32.xlu1 %v9967_v13, %s9727_s25 }
 0x146   : > { %1824 = vrot.lane.b32.xlu0 %v9953_v12, %s9730_s28  ;;  %1436 = vrot.lane.b32.xlu1 %v9967_v13, %s9726_s27 }
 0x14a   : > { %1434 = vrot.lane.b32.xlu1 %v9967_v13, %s9728_s26  ;;  %1358 = vrot.lane.b32.xlu0 %v9977_v14, %s9726_s27 }
 0x14e   : > { %2060 = vrot.lane.b32.xlu1 %v9967_v13, %s9729_s21  ;;  %1356 = vrot.lane.b32.xlu0 %v9977_v14, %s9728_s26 }
 0x152   : > { %2058 = vrot.lane.b32.xlu1 %v9967_v13, %s9730_s28  ;;  %1982 = vrot.lane.b32.xlu0 %v9977_v14, %s9729_s21 }
 0x156   : > { %1980 = vrot.lane.b32.xlu0 %v9977_v14, %s9730_s28  ;;  %739 = vrot.lane.b32.xlu1 %v9977_v14, %s9727_s25 }
 0x15a   : > { %970 = vrot.lane.b32.xlu1 %v9991_v15, %s9727_s25  ;;  %893 = vrot.lane.b32.xlu0 %v9997_v16, %s9727_s25 }
 0x15e   : > { %1592 = vrot.lane.b32.xlu1 %v9991_v15, %s9726_s27  ;;  %1514 = vrot.lane.b32.xlu0 %v9997_v16, %s9726_s27 }
 0x162   : > { %1590 = vrot.lane.b32.xlu1 %v9991_v15, %s9728_s26  ;;  %1512 = vrot.lane.b32.xlu0 %v9997_v16, %s9728_s26 }
 0x166   : > { %2216 = vrot.lane.b32.xlu1 %v9991_v15, %s9729_s21  ;;  %2138 = vrot.lane.b32.xlu0 %v9997_v16, %s9729_s21 }
 0x16a   : > { %1124 = vrot.lane.b32.xlu1 %v10011_v17, %s9727_s25  ;;  %1047 = vrot.lane.b32.xlu0 %v10017_v18, %s9727_s25  ;;  %s10328_s25 = sld [smem:[#allocation2 + $0x80]] }
 0x16e   : > { %1748 = vrot.lane.b32.xlu1 %v10011_v17, %s9726_s27  ;;  %2136 = vrot.lane.b32.xlu0 %v9997_v16, %s9730_s28 }
 0x172   : > { %1746 = vrot.lane.b32.xlu1 %v10011_v17, %s9728_s26  ;;  %2450 = vrot.lane.b32.xlu0 %v9953_v12, %s9731_s16 }
 0x176   : > { %2214 = vrot.lane.b32.xlu1 %v9991_v15, %s9730_s28  ;;  %2448 = vrot.lane.b32.xlu0 %v9953_v12, %s9732_s23 }
 0x17a   : > { %2372 = vrot.lane.b32.xlu1 %v10011_v17, %s9729_s21  ;;  %1670 = vrot.lane.b32.xlu0 %v10017_v18, %s9726_s27  ;;  %s10326_s27 = sld [smem:[#allocation2]] }
 0x17e   : > { %2370 = vrot.lane.b32.xlu1 %v10011_v17, %s9730_s28  ;;  %1668 = vrot.lane.b32.xlu0 %v10017_v18, %s9728_s26  ;;  %s10330_s26 = sld [smem:[#allocation2 + $0x100]] }
 0x182   : > { %2528 = vrot.lane.b32.xlu1 %v9947_v11, %s9731_s16  ;;  %2606 = vrot.lane.b32.xlu0 %v9977_v14, %s9731_s16 }
 0x186   : > { %2526 = vrot.lane.b32.xlu1 %v9947_v11, %s9732_s23  ;;  %2604 = vrot.lane.b32.xlu0 %v9977_v14, %s9732_s23 }
 0x18a   : > { %2684 = vrot.lane.b32.xlu1 %v9967_v13, %s9731_s16  ;;  %2294 = vrot.lane.b32.xlu0 %v10017_v18, %s9729_s21  ;;  %s10332_s21 = sld [smem:[#allocation2 + $0x180]] }
 0x18e   : > { %2682 = vrot.lane.b32.xlu1 %v9967_v13, %s9732_s23  ;;  %2292 = vrot.lane.b32.xlu0 %v10017_v18, %s9730_s28  ;;  %s10334_s28 = sld [smem:[#allocation2 + $0x200]] }
 0x192   : > { %2840 = vrot.lane.b32.xlu1 %v9991_v15, %s9731_s16  ;;  %2762 = vrot.lane.b32.xlu0 %v9997_v16, %s9731_s16 }
 0x196   : > { %2838 = vrot.lane.b32.xlu1 %v9991_v15, %s9732_s23  ;;  %2760 = vrot.lane.b32.xlu0 %v9997_v16, %s9732_s23 }
 0x19a   : > { %2996 = vrot.lane.b32.xlu1 %v10011_v17, %s9731_s16  ;;  %2918 = vrot.lane.b32.xlu0 %v10017_v18, %s9731_s16  ;;  %s10336_s16 = sld [smem:[#allocation2 + $0x280]] }
 0x19e   : > { %2994 = vrot.lane.b32.xlu1 %v10011_v17, %s9732_s23  ;;  %2916 = vrot.lane.b32.xlu0 %v10017_v18, %s9732_s23  ;;  %s10338_s23 = sld [smem:[#allocation2 + $0x300]] }
 0x1a2   : > { %4773 = vrot.lane.b32.xlu1 %v9953_v12, %s9733_s14  ;;  %4849 = vrot.lane.b32.xlu0 %v9947_v11, %s9733_s14 }
 0x1a4   : > { %v10063_v19 = vpop.permute.xlu1 %1280  ;;  %v663_v20 = vpop.permute.xlu0 %662 }
 0x1a6   : > { %5077 = vrot.lane.b32.xlu1 %v9997_v16, %s9733_s14  ;;  %4925 = vrot.lane.b32.xlu0 %v9977_v14, %s9733_s14 }
 0x1a8   : > { %v10069_v21 = vpop.permute.xlu1 %1278  ;;  %v585_v22 = vpop.permute.xlu0 %584 }
 0x1a9   : > { %8941 = vmatpush3.xpose.msk.msra.mxu1 %vm586_vm2, %v585_v22  ;;  %v10392_v22 = vstv %s10326_s27  ;;  %s12210_s27 = sld [smem:[#allocation2 + $0x187]] }
 0x1aa   : > { %5381 = vrot.lane.b32.xlu1 %v9953_v12, %s9734_s24  ;;  %5001 = vrot.lane.b32.xlu0 %v9967_v13, %s9733_s14 }
 0x1ab   : > { %8945 = vmatprep.subr.mxu1 %v14574_v10 }
 0x1ac   : > { %v10077_v23 = vpop.permute.xlu1 %1904  ;;  %8943 = vmatmul.mubr.msk.f32.vlgmr.msra.gmra.mxu1 %vm586_vm2, %v9953_v12  ;;  %v10081_v24 = vpop.permute.xlu0 %1202 }
 0x1ad   : > { %8946 = vmatpush3.xpose.msk.msra.mxu1 %vm586_vm2, %v663_v20  ;;  %8947 = vmatprep.mubr.msk.f32.mxu1 %vm9725_vm1, %v14574_v10 }
 0x1ae   : > { %5533 = vrot.lane.b32.xlu1 %v9977_v14, %s9734_s24  ;;  %5153 = vrot.lane.b32.xlu0 %v9991_v15, %s9733_s14 }
 0x1af   : > { %8950 = vmatprep.subr.mxu1 %v14574_v10 }
 0x1b0   : > { %v10091_v25 = vpop.permute.xlu1 %1902  ;;  %8948 = vmatmul.mubr.msk.f32.vlgmr.msra.gmra.mxu1 %vm586_vm2, %v9947_v11  ;;  %v10095_v26 = vpop.permute.xlu0 %1200 }
 0x1b1   : > { %8952 = vmatprep.mubr.msk.f32.mxu1 %vm9725_vm1, %v14574_v10 }
 0x1b2   : > { %5685 = vrot.lane.b32.xlu1 %v9997_v16, %s9734_s24  ;;  %5305 = vrot.lane.b32.xlu0 %v10011_v17, %s9733_s14 }
 0x1b4   : > { %v10103_v27 = vpop.permute.xlu0 %1826  ;;  %v817_v28 = vpop.permute.xlu1 %816 }
 0x1b6   : > { %5229 = vrot.lane.b32.xlu1 %v10017_v18, %s9733_s14  ;;  %5457 = vrot.lane.b32.xlu0 %v9947_v11, %s9734_s24  ;;  %s10340_s14 = sld [smem:[#allocation2 + $0x380]] }
 0x1b8   : > { %v10109_v29 = vpop.permute.xlu0 %1824  ;;  %v10111_v30 = vpop.permute.xlu1 %1436 }
 0x1ba   : > { %5837 = vrot.lane.b32.xlu1 %v10017_v18, %s9734_s24  ;;  %5609 = vrot.lane.b32.xlu0 %v9967_v13, %s9734_s24 }
 0x1bc   : > { %v10117_v31 = vpop.permute.xlu1 %1434  ;;  %v1359_v32 = vpop.permute.xlu0 %1358 }
 0x1be   : > { %6223 = vrot.lane.b32.xlu1 %v9953_v12, %s14556_s17  ;;  %5761 = vrot.lane.b32.xlu0 %v9991_v15, %s9734_s24 }
 0x1c0   : > { %v10123_v33 = vpop.permute.xlu1 %2060  ;;  %v1357_v34 = vpop.permute.xlu0 %1356 }
 0x1c2   : > { %6375 = vrot.lane.b32.xlu1 %v9977_v14, %s14556_s17  ;;  %5913 = vrot.lane.b32.xlu0 %v10011_v17, %s9734_s24  ;;  %s10342_s24 = sld [smem:[#allocation2 + $0x1]] }
 0x1c4   : > { %v10129_v35 = vpop.permute.xlu1 %2058  ;;  %v10131_v36 = vpop.permute.xlu0 %1982 }
 0x1c6   : > { %6299 = vrot.lane.b32.xlu0 %v9947_v11, %s14556_s17 }
 0x1c8   : > { %v10135_v37 = vpop.permute.xlu0 %1980  ;;  %v740_v38 = vpop.permute.xlu1 %739 }
 0x1c9   : > { %8951 = vmatpush3.xpose.msk.msra.mxu1 %vm586_vm2, %v740_v38  ;;  %v10447_v38 = vstv %s10354_s5  ;;  %s14885_s5 = sld [smem:[#allocation37_spill]] }
 0x1ca   : > { %6451 = vrot.lane.b32.xlu0 %v9967_v13, %s14556_s17  ;;  %8955 = vmatprep.subr.mxu1 %v14574_v10  ;;  %s10344_s17 = sld [smem:[#allocation2 + $0x81]] }
 0x1cc   : > { %8953 = vmatmul.mubr.msk.f32.vlgmr.msra.gmra.mxu1 %vm586_vm2, %v9977_v14  ;;  %v971_v39 = vpop.permute.xlu1 %970  ;;  %v894_v40 = vpop.permute.xlu0 %893 }
 0x1cd   : > { %8956 = vmatpush3.xpose.msk.msra.mxu1 %vm586_vm2, %v817_v28  ;;  %8961 = vmatpush3.xpose.msk.msra.mxu0 %vm586_vm2, %v894_v40  ;;  %v10411_v28 = vstv %s10336_s16  ;;  %v10455_v40 = vstv %s10358_s18  ;;  %s10652_s18 = sld [smem:[#allocation2 + $0x383]] }
 0x1ce   : > { %8957 = vmatprep.mubr.msk.f32.mxu1 %vm9725_vm1, %v14574_v10  ;;  %8965 = vmatprep.subr.mxu1 %v14574_v10  ;;  %14876 = vst [vmem:[#allocation38_spill] sm:$0xff] %v10455_v40  ;;  %s11037_s16 = sld [smem:[#allocation2 + $0x384]] }
 0x1cf   : > { %8970 = vmatprep.subr.mxu0 %v14574_v10 }
 0x1d0   : > { %8958 = vmatmul.mubr.msk.f32.vlgmr.msra.gmra.mxu1 %vm586_vm2, %v9967_v13  ;;  %v1593_v41 = vpop.permute.xlu1 %1592  ;;  %8963 = vmatmul.mubr.msk.f32.vlgmr.msra.gmra.mxu0 %vm586_vm2, %v9997_v16  ;;  %v1515_v42 = vpop.permute.xlu0 %1514 }
 0x1d1   : > { %8966 = vmatpush3.xpose.msk.msra.mxu1 %vm586_vm2, %v971_v39  ;;  %8967 = vmatprep.mubr.msk.f32.mxu1 %vm9725_vm1, %v14574_v10  ;;  %v10450_v39 = vstv %s10356_s6  ;;  %s10480_s6 = sld [smem:[#allocation2 + $0x183]] }
 0x1d2   : > { %8975 = vmatprep.subr.mxu1 %v14574_v10  ;;  %8972 = vmatprep.mubr.msk.f32.mxu0 %vm9725_vm1, %v14574_v10 }
 0x1d4   : > { %8968 = vmatmul.mubr.msk.f32.vlgmr.msra.gmra.mxu1 %vm586_vm2, %v9991_v15  ;;  %v1591_v43 = vpop.permute.xlu1 %1590  ;;  %v1513_v44 = vpop.permute.xlu0 %1512 }
 0x1d5   : > { %8977 = vmatprep.mubr.msk.f32.mxu1 %vm9725_vm1, %v14574_v10 }
 0x1d8   : > { %v10163_v45 = vpop.permute.xlu1 %2216  ;;  %v10165_v46 = vpop.permute.xlu0 %2138 }
 0x1dc   : > { %v1125_v47 = vpop.permute.xlu1 %1124  ;;  %v1048_v48 = vpop.permute.xlu0 %1047 }
 0x1dd   : > { %8971 = vmatpush3.xpose.msk.msra.mxu0 %vm586_vm2, %v1048_v48  ;;  %8976 = vmatpush3.xpose.msk.msra.mxu1 %vm586_vm2, %v1125_v47 }
 0x1de   : > { %8985 = vmatprep.subr.mxu1 %v14574_v10  ;;  %8980 = vmatprep.subr.mxu0 %v14574_v10 }
 0x1e0   : > { %8978 = vmatmul.mubr.msk.f32.vlgmr.msra.gmra.mxu1 %vm586_vm2, %v10011_v17  ;;  %v1749_v49 = vpop.permute.xlu1 %1748  ;;  %8973 = vmatmul.mubr.msk.f32.vlgmr.msra.gmra.mxu0 %vm586_vm2, %v10017_v18  ;;  %v10175_v50 = vpop.permute.xlu0 %2136 }
 0x1e1   : > { %8981 = vmatpush3.xpose.msk.msra.mxu0 %vm586_vm2, %v10081_v24  ;;  %8986 = vmatpush3.xpose.msk.msra.mxu1 %vm586_vm2, %v10063_v19  ;;  %v10398_v24 = vstv %s10330_s26  ;;  %s10424_s26 = scalar_lea.vmem %s14544_s1, %s8762_s19  ;;  %s10974_s19 = sld [smem:[#allocation2 + $0x7]] }
 0x1e2   : > { %8982 = vmatprep.mubr.msk.f32.mxu0 %vm9725_vm1, %v14574_v10  ;;  %8987 = vmatprep.mubr.msk.f32.mxu1 %vm9725_vm1, %v14574_v10  ;;  %v10475_v47 = vld [vmem:[%s10424_s26 + $0x20] sm:$0xff]  ;;  %v10478_v48 = vld [vmem:[%s10424_s26 + $0x28] sm:$0xff] }
 0x1e3   : > { %8995 = vmatprep.subr.mxu1 %v14574_v10  ;;  %8990 = vmatprep.subr.mxu0 %v14574_v10 }
 0x1e4   : > { %8988 = vmatmul.mubr.msk.f32.vlgmr.msra.gmra.mxu1 %vm586_vm2, %v10069_v21  ;;  %v1747_v51 = vpop.permute.xlu1 %1746  ;;  %8983 = vmatmul.mubr.msk.f32.vlgmr.msra.gmra.mxu0 %vm586_vm2, %v10095_v26  ;;  %v10191_v52 = vpop.permute.xlu0 %2450 }
 0x1e5   : > { %8991 = vmatpush3.xpose.msk.msra.mxu0 %vm586_vm2, %v1359_v32  ;;  %8996 = vmatpush3.xpose.msk.msra.mxu1 %vm586_vm2, %v10111_v30  ;;  %v10417_v30 = vstv %s10340_s14  ;;  %v10430_v32 = vstv %s10344_s17  ;;  %s11017_s17 = sld [smem:[#allocation2 + $0x285]] }
 0x1e6   : > { %8992 = vmatprep.mubr.msk.f32.mxu0 %vm9725_vm1, %v14574_v10  ;;  %8997 = vmatprep.mubr.msk.f32.mxu1 %vm9725_vm1, %v14574_v10  ;;  %s12180_s14 = sld [smem:[#allocation2 + $0x206]] }
 0x1e7   : > { %9005 = vmatprep.subr.mxu1 %v14574_v10  ;;  %9000 = vmatprep.subr.mxu0 %v14574_v10 }
 0x1e8   : > { %8998 = vmatmul.mubr.msk.f32.vlgmr.msra.gmra.mxu1 %vm586_vm2, %v10117_v31  ;;  %v2215_v53 = vpop.permute.xlu1 %2214  ;;  %8993 = vmatmul.mubr.msk.f32.vlgmr.msra.gmra.mxu0 %vm586_vm2, %v1357_v34  ;;  %v10205_v54 = vpop.permute.xlu0 %2448  ;;  %v10427_v31 = vstv %s10342_s24  ;;  %v10436_v34 = vstv %s10348_s2  ;;  %s14881_s2 = sld [smem:[#allocation34_spill]] }
 0x1e9   : > { %9001 = vmatpush3.xpose.msk.msra.mxu0 %vm586_vm2, %v1515_v42  ;;  %9006 = vmatpush3.xpose.msk.msra.mxu1 %vm586_vm2, %v1593_v41  ;;  %v10458_v41 = vstv %s10360_s11  ;;  %v10461_v42 = vstv %s10362_s15  ;;  %s10494_s11 = sld [smem:[#allocation2 + $0x184]] }
 0x1ea   : > { %9002 = vmatprep.mubr.msk.f32.mxu0 %vm9725_vm1, %v14574_v10  ;;  %9007 = vmatprep.mubr.msk.f32.mxu1 %vm9725_vm1, %v14574_v10  ;;  %14877 = vst [vmem:[#allocation39_spill] sm:$0xff] %v10458_v41  ;;  %14878 = vst [vmem:[#allocation40_spill] sm:$0xff] %v10461_v42  ;;  %s10620_s15 = sld [smem:[#allocation2 + $0x303]] }
 0x1eb   : > { %9015 = vmatprep.subr.mxu1 %v14574_v10  ;;  %9010 = vmatprep.subr.mxu0 %v14574_v10  ;;  %s12192_s24 = sld [smem:[#allocation5]] }
 0x1ec   : > { %9008 = vmatmul.mubr.msk.f32.vlgmr.msra.gmra.mxu1 %vm586_vm2, %v1591_v43  ;;  %v2373_v55 = vpop.permute.xlu1 %2372  ;;  %9003 = vmatmul.mubr.msk.f32.vlgmr.msra.gmra.mxu0 %vm586_vm2, %v1513_v44  ;;  %v1671_v56 = vpop.permute.xlu0 %1670  ;;  %v10464_v43 = vstv %s10364_s20  ;;  %s10989_s20 = sld [smem:[#allocation2 + $0x87]] }
 0x1ed   : > { %9011 = vmatpush3.xpose.msk.msra.mxu0 %vm586_vm2, %v1671_v56  ;;  %9016 = vmatpush3.xpose.msk.msra.mxu1 %vm586_vm2, %v1749_v49  ;;  %14879 = vst [vmem:[#allocation41_spill] sm:$0xff] %v10464_v43  ;;  %v10483_v49 = vstv %s10378_s8  ;;  %v10501_v56 = vstv %s10389_s13  ;;  %s10538_s8 = sld [smem:[#allocation2 + $0x205]] }
 0x1ee   : > { %9017 = vmatprep.mubr.msk.f32.mxu1 %vm9725_vm1, %v14574_v10  ;;  %9025 = vmatprep.subr.mxu1 %v14574_v10  ;;  %14886 = vst [vmem:[#allocation44_spill] sm:$0xff] %v10501_v56  ;;  %s10601_s13 = sld [smem:[#allocation2 + $0x304]] }
 0x1ef   : > { %9012 = vmatprep.mubr.msk.f32.mxu0 %vm9725_vm1, %v14574_v10  ;;  %9020 = vmatprep.subr.mxu0 %v14574_v10 }
 0x1f0   : > { %9018 = vmatmul.mubr.msk.f32.vlgmr.msra.gmra.mxu1 %vm586_vm2, %v1747_v51  ;;  %v2371_v57 = vpop.permute.xlu1 %2370  ;;  %v1669_v58 = vpop.permute.xlu0 %1668  ;;  %v10489_v51 = vstv %s10380_s7  ;;  %s10520_s7 = sld [smem:[#allocation2 + $0x204]] }
 0x1f1   : > { %9013 = vmatmul.mubr.msk.f32.vlgmr.msra.gmra.mxu0 %vm586_vm2, %v1669_v58  ;;  %9026 = vmatpush3.xpose.msk.msra.mxu1 %vm586_vm2, %v10077_v23  ;;  %v10395_v23 = vstv %s10328_s25  ;;  %v10509_v58 = vstv %s14881_s2  ;;  %s12217_s25 = sld [smem:[#allocation5 + $0x2]] }
 0x1f2   : > { %9021 = vmatpush3.xpose.msk.msra.mxu0 %vm586_vm2, %v10103_v27  ;;  %9027 = vmatprep.mubr.msk.f32.mxu1 %vm9725_vm1, %v14574_v10  ;;  %v10408_v27 = vstv %s10334_s28  ;;  %s10438_s28 = sld [smem:[#allocation2 + $0x105]]  ;;  %14887 = vst [vmem:[#allocation45_spill] sm:$0xff] %v10509_v58  ;;  %v563_v58 = vld [vmem:[%s10424_s26 + $0x60] sm:$0xff] }
 0x1f3   : > { %9035 = vmatprep.subr.mxu1 %v14574_v10  ;;  %9022 = vmatprep.mubr.msk.f32.mxu0 %vm9725_vm1, %v14574_v10  ;;  %s12255_s2 = sld [smem:[#allocation2 + $0x286]] }
 0x1f4   : > { %9028 = vmatmul.mubr.msk.f32.vlgmr.msra.gmra.mxu1 %vm586_vm2, %v10091_v25  ;;  %v2529_v59 = vpop.permute.xlu1 %2528  ;;  %9030 = vmatprep.subr.mxu0 %v14574_v10  ;;  %v2607_v60 = vpop.permute.xlu0 %2606  ;;  %v10401_v25 = vstv %s10332_s21  ;;  %s14875_s21 = sld [smem:[#allocation33_spill]] }
 0x1f5   : > { %9023 = vmatmul.mubr.msk.f32.vlgmr.msra.gmra.mxu0 %vm586_vm2, %v10109_v29  ;;  %9036 = vmatpush3.xpose.msk.msra.mxu1 %vm586_vm2, %v10123_v33  ;;  %v10414_v29 = vstv %s10338_s23  ;;  %v10433_v33 = vstv %s10346_s0  ;;  %s10452_s0 = sld [smem:[#allocation2 + $0x106]] }
 0x1f6   : > { %9031 = vmatpush3.xpose.msk.msra.mxu0 %vm586_vm2, %v10131_v36  ;;  %9037 = vmatprep.mubr.msk.f32.mxu1 %vm9725_vm1, %v14574_v10  ;;  %v10441_v36 = vstv %s10350_s3  ;;  %s14883_s3 = sld [smem:[#allocation35_spill]] }
 0x1f7   : > { %9045 = vmatprep.subr.mxu1 %v14574_v10  ;;  %9032 = vmatprep.mubr.msk.f32.mxu0 %vm9725_vm1, %v14574_v10  ;;  %s12169_s23 = sld [smem:[#allocation2 + $0x107]] }
 0x1f8   : > { %9038 = vmatmul.mubr.msk.f32.vlgmr.msra.gmra.mxu1 %vm586_vm2, %v10129_v35  ;;  %v2527_v61 = vpop.permute.xlu1 %2526  ;;  %9040 = vmatprep.subr.mxu0 %v14574_v10  ;;  %v2605_v62 = vpop.permute.xlu0 %2604 }
 0x1f9   : > { %9033 = vmatmul.mubr.msk.f32.vlgmr.msra.gmra.mxu0 %vm586_vm2, %v10135_v37  ;;  %9046 = vmatpush3.xpose.msk.msra.mxu1 %vm586_vm2, %v10163_v45  ;;  %v10444_v37 = vstv %s10352_s4  ;;  %s14884_s4 = sld [smem:[#allocation36_spill]] }
 0x1fa   : > { %9041 = vmatpush3.xpose.msk.msra.mxu0 %vm586_vm2, %v10165_v46  ;;  %9047 = vmatprep.mubr.msk.f32.mxu1 %vm9725_vm1, %v14574_v10  ;;  %v10469_v45 = vstv %s14875_s21  ;;  %v10472_v46 = vstv %s10368_s12  ;;  %s10503_s12 = sld [smem:[#allocation2 + $0x185]] }
 0x1fb   : > { %9055 = vmatprep.subr.mxu1 %v14574_v10  ;;  %9042 = vmatprep.mubr.msk.f32.mxu0 %vm9725_vm1, %v14574_v10  ;;  %14880 = vst [vmem:[#allocation42_spill] sm:$0xff] %v10469_v45  ;;  %14882 = vst [vmem:[#allocation43_spill] sm:$0xff] %v10472_v46  ;;  %v564_v46 = vld [vmem:[%s10424_s26 + $0x68] sm:$0xff]  ;;  %s12223_s21 = sld [smem:[#allocation2 + $0x305]] }
 0x1fc   : > { %9048 = vmatmul.mubr.msk.f32.vlgmr.msra.gmra.mxu1 %vm586_vm2, %v2215_v53  ;;  %v2685_v63 = vpop.permute.xlu1 %2684  ;;  %9050 = vmatprep.subr.mxu0 %v14574_v10  ;;  %v2295_v0 = vpop.permute.xlu0 %2294 }
 0x1fd   : > { %9043 = vmatmul.mubr.msk.f32.vlgmr.msra.gmra.mxu0 %vm586_vm2, %v10175_v50  ;;  %9056 = vmatpush3.xpose.msk.msra.mxu1 %vm586_vm2, %v2373_v55  ;;  %v10486_v50 = vstv %s10382_s22  ;;  %v10498_v55 = vstv %s10386_s9  ;;  %s10549_s9 = sld [smem:[#allocation2 + $0x203]] }
 0x1fe   : > { %9051 = vmatpush3.xpose.msk.msra.mxu0 %vm586_vm2, %v2295_v0  ;;  %9057 = vmatprep.mubr.msk.f32.mxu1 %vm9725_vm1, %v14574_v10  ;;  %v10532_v0 = vmul.f32 %v10489_v51, %v10475_v47  ;;  %s11003_s22 = sld [smem:[#allocation2 + $0x186]] }
 0x1ff   : > { %9065 = vmatprep.subr.mxu1 %v14574_v10  ;;  %9052 = vmatprep.mubr.msk.f32.mxu0 %vm9725_vm1, %v14574_v10 }
 0x200   : > { %9058 = vmatmul.mubr.msk.f32.vlgmr.msra.gmra.mxu1 %vm586_vm2, %v2371_v57  ;;  %v2683_v1 = vpop.permute.xlu1 %2682  ;;  %9060 = vmatprep.subr.mxu0 %v14574_v10  ;;  %v2293_v2 = vpop.permute.xlu0 %2292  ;;  %v10506_v57 = vld [vmem:[%s10424_s26] sm:$0xff]  ;;  %14893 = vst [vmem:[#allocation51_spill] sm:$0xff] %v10532_v0  ;;  %v10667_v0 = vstv %s10538_s8  ;;  %s12316_s8 = sld [smem:[#allocation5 + $0x6]] }
 0x201   : > { %9053 = vmatmul.mubr.msk.f32.vlgmr.msra.gmra.mxu0 %vm586_vm2, %v2293_v2  ;;  %9066 = vmatpush3.xpose.msk.msra.mxu1 %vm586_vm2, %v2529_v59  ;;  %v10512_v59 = vstv %s14883_s3  ;;  %14908 = vst [vmem:[#allocation66_spill] sm:$0xff] %v10667_v0  ;;  %s12266_s3 = sld [smem:[#allocation2 + $0x287]] }
 0x202   : > { %9061 = vmatpush3.xpose.msk.msra.mxu0 %vm586_vm2, %v10191_v52  ;;  %9067 = vmatprep.mubr.msk.f32.mxu1 %vm9725_vm1, %v14574_v10  ;;  %v10492_v52 = vstv %s10384_s30  ;;  %14888 = vst [vmem:[#allocation46_spill] sm:$0xff] %v10512_v59  ;;  %s10569_s30 = sld [smem:[#allocation2 + $0x284]] }
 0x203   : > { %9075 = vmatprep.subr.mxu1 %v14574_v10  ;;  %9062 = vmatprep.mubr.msk.f32.mxu0 %vm9725_vm1, %v14574_v10 }
 0x204   : > { %9068 = vmatmul.mubr.msk.f32.vlgmr.msra.gmra.mxu1 %vm586_vm2, %v2527_v61  ;;  %v2841_v3 = vpop.permute.xlu1 %2840  ;;  %9070 = vmatprep.subr.mxu0 %v14574_v10  ;;  %v2763_v4 = vpop.permute.xlu0 %2762  ;;  %v10518_v61 = vstv %s14885_s5  ;;  %s12282_s5 = sld [smem:[#allocation2 + $0x306]] }
 0x205   : > { %9063 = vmatmul.mubr.msk.f32.vlgmr.msra.gmra.mxu0 %vm586_vm2, %v10205_v54  ;;  %9076 = vmatpush3.xpose.msk.msra.mxu1 %vm586_vm2, %v2685_v63  ;;  %v557_v54 = vld [vmem:[%s10424_s26 + $0x30] sm:$0xff]  ;;  %14890 = vst [vmem:[#allocation48_spill] sm:$0xff] %v10518_v61  ;;  %v10528_v63 = vmul.f32 %v10486_v50, %v10478_v48 }
 0x206   : > { %9071 = vmatpush3.xpose.msk.msra.mxu0 %vm586_vm2, %v2607_v60  ;;  %9077 = vmatprep.mubr.msk.f32.mxu1 %vm9725_vm1, %v14574_v10  ;;  %v10515_v60 = vstv %s14884_s4  ;;  %v10541_v2 = vmul.f32 %v10498_v55, %v557_v54  ;;  %s12274_s4 = sld [smem:[#allocation5 + $0x4]] }
 0x207   : > { %9085 = vmatprep.subr.mxu1 %v14574_v10  ;;  %9072 = vmatprep.mubr.msk.f32.mxu0 %vm9725_vm1, %v14574_v10  ;;  %14889 = vst [vmem:[#allocation47_spill] sm:$0xff] %v10515_v60  ;;  %14892 = vst [vmem:[#allocation50_spill] sm:$0xff] %v10528_v63 }
 0x208   : > { %9078 = vmatmul.mubr.msk.f32.vlgmr.msra.gmra.mxu1 %vm586_vm2, %v2683_v1  ;;  %v2839_v5 = vpop.permute.xlu1 %2838  ;;  %9080 = vmatprep.subr.mxu0 %v14574_v10  ;;  %v2761_v6 = vpop.permute.xlu0 %2760  ;;  %v10536_v1 = vmul.f32 %v10492_v52, %v10478_v48  ;;  %14895 = vst [vmem:[#allocation53_spill] sm:$0xff] %v10541_v2  ;;  %v10688_v60 = vstv %s10569_s30  ;;  %s12333_s30 = sld [smem:[#allocation5 + $0x7]] }
 0x209   : > { %9073 = vmatmul.mubr.msk.f32.vlgmr.msra.gmra.mxu0 %vm586_vm2, %v2605_v62  ;;  %9086 = vmatpush3.xpose.msk.msra.mxu1 %vm586_vm2, %v2841_v3  ;;  %v10524_v62 = vmul.f32 %v10483_v49, %v10475_v47  ;;  %v10544_v3 = vmul.f32 %v10501_v56, %v557_v54  ;;  %14914 = vst [vmem:[#allocation72_spill] sm:$0xff] %v10688_v60 }
 0x20a   : > { %9081 = vmatpush3.xpose.msk.msra.mxu0 %vm586_vm2, %v2763_v4  ;;  %9087 = vmatprep.mubr.msk.f32.mxu1 %vm9725_vm1, %v14574_v10  ;;  %14894 = vst [vmem:[#allocation52_spill] sm:$0xff] %v10536_v1  ;;  %v10547_v4 = vstv %s10403_s10  ;;  %s10587_s10 = sld [smem:[#allocation2 + $0x283]] }
 0x20b   : > { %9095 = vmatprep.subr.mxu1 %v14574_v10  ;;  %9082 = vmatprep.mubr.msk.f32.mxu0 %vm9725_vm1, %v14574_v10  ;;  %14891 = vst [vmem:[#allocation49_spill] sm:$0xff] %v10524_v62  ;;  %14896 = vst [vmem:[#allocation54_spill] sm:$0xff] %v10544_v3  ;;  %v10631_v3 = vstv %s10494_s11  ;;  %s12296_s11 = sld [smem:[#allocation2 + $0x307]] }
 0x20c   : > { %9088 = vmatmul.mubr.msk.f32.vlgmr.msra.gmra.mxu1 %vm586_vm2, %v2839_v5  ;;  %v2997_v7 = vpop.permute.xlu1 %2996  ;;  %9090 = vmatprep.subr.mxu0 %v14574_v10  ;;  %v2919_v8 = vpop.permute.xlu0 %2918  ;;  %14897 = vst [vmem:[#allocation55_spill] sm:$0xff] %v10547_v4  ;;  %v552_v5 = vld [vmem:[%s10424_s26 + $0x8] sm:$0xff]  ;;  %v10671_v62 = vmul.f32 %v10631_v3, %v10475_v47  ;;  %v10678_v4 = vstv %s10549_s9  ;;  %s12322_s9 = sld [smem:[#allocation2 + $0x387]] }
 0x20d   : > { %9083 = vmatmul.mubr.msk.f32.vlgmr.msra.gmra.mxu0 %vm586_vm2, %v2761_v6  ;;  %9096 = vmatpush3.xpose.msk.msra.mxu1 %vm586_vm2, %v2997_v7  ;;  %v10554_v6 = vmul.f32 %v10483_v49, %v10506_v57  ;;  %v10604_v17 = vmul.f32 %v10486_v50, %v552_v5  ;;  %14911 = vst [vmem:[#allocation69_spill] sm:$0xff] %v10678_v4 }
 0x20e   : > { %9091 = vmatpush3.xpose.msk.msra.mxu0 %vm586_vm2, %v2919_v8  ;;  %9097 = vmatprep.mubr.msk.f32.mxu1 %vm9725_vm1, %v14574_v10  ;;  %v10561_v8 = vstv %s10419_s29  ;;  %14909 = vst [vmem:[#allocation67_spill] sm:$0xff] %v10671_v62  ;;  %v10692_v62 = vmul.f32 %v10489_v51, %v10506_v57  ;;  %v10695_v59 = vmul.f32 %v10492_v52, %v552_v5  ;;  %s12202_s29 = sld [smem:[#allocation5 + $0x1]] }
 0x20f   : > { %9092 = vmatprep.mubr.msk.f32.mxu0 %vm9725_vm1, %v14574_v10  ;;  %9105 = vmatprep.subr.mxu1 %v14574_v10  ;;  %14898 = vst [vmem:[#allocation56_spill] sm:$0xff] %v10554_v6  ;;  %14901 = vst [vmem:[#allocation59_spill] sm:$0xff] %v10604_v17  ;;  %v10608_v18 = vmul.f32 %v10561_v8, %v10475_v47  ;;  %v10634_v17 = vstv %s10503_s12  ;;  %s12303_s12 = sld [smem:[#allocation2 + $0x385]] }
 0x210   : > { %v2995_v9 = vpop.permute.xlu1 %2994  ;;  %v2917_v19 = vpop.permute.xlu0 %2916  ;;  %9100 = vmatprep.subr.mxu0 %v14574_v10  ;;  %14906 = vst [vmem:[#allocation64_spill] sm:$0xff] %v10634_v17  ;;  %14915 = vst [vmem:[#allocation73_spill] sm:$0xff] %v10692_v62  ;;  %v10702_v4 = vstv %s10587_s10  ;;  %v10714_v62 = vstv %s10601_s13  ;;  %v10735_v45 = vmul.f32 %v10634_v17, %v552_v5  ;;  %s12343_s10 = sld [smem:[#allocation7 + $0x80]] }
 0x211   : > { %9093 = vmatmul.mubr.msk.f32.vlgmr.msra.gmra.mxu0 %vm586_vm2, %v2917_v19  ;;  %9098 = vmatmul.mubr.msk.f32.vlgmr.msra.gmra.mxu1 %vm586_vm2, %v2995_v9  ;;  %v10564_v9 = vstv %s10438_s28  ;;  %v10567_v19 = vstv %s10452_s0  ;;  %14902 = vst [vmem:[#allocation60_spill] sm:$0xff] %v10608_v18  ;;  %14916 = vst [vmem:[#allocation74_spill] sm:$0xff] %v10695_v59  ;;  %s12232_s28 = sld [smem:[#allocation5 + $0x3]] }
 0x212   : > { %9102 = vmatprep.mubr.msk.f32.mxu0 %vm9725_vm1, %v14574_v10  ;;  %9107 = vmatprep.mubr.msk.f32.mxu1 %vm9725_vm1, %v14574_v10  ;;  %14899 = vst [vmem:[#allocation57_spill] sm:$0xff] %v10564_v9  ;;  %14900 = vst [vmem:[#allocation58_spill] sm:$0xff] %v10567_v19  ;;  %v10612_v15 = vmul.f32 %v10564_v9, %v10478_v48  ;;  %v10615_v14 = vmul.f32 %v10567_v19, %v557_v54  ;;  %v553_v54 = vld [vmem:[%s10424_s26 + $0x10] sm:$0xff]  ;;  %s12242_s0 = sld [smem:[#allocation2 + $0x207]] }
 0x213   : > { %v10681_v61 = vmul.f32 %v10498_v55, %v553_v54  ;;  %14918 = vst [vmem:[#allocation76_spill] sm:$0xff] %v10702_v4  ;;  %14921 = vst [vmem:[#allocation79_spill] sm:$0xff] %v10714_v62  ;;  %v10717_v59 = vmul.f32 %v10564_v9, %v552_v5  ;;  %v10729_v4 = vmul.f32 %v10688_v60, %v10475_v47  ;;  %s12353_s13 = sld [smem:[#allocation7 + $0x81]] }
 0x214   : > { %v4774_v20 = vpop.permute.xlu1 %4773  ;;  %v4850_v21 = vpop.permute.xlu0 %4849  ;;  %14903 = vst [vmem:[#allocation61_spill] sm:$0xff] %v10612_v15  ;;  %14904 = vst [vmem:[#allocation62_spill] sm:$0xff] %v10615_v14  ;;  %v10650_v15 = vstv %s10520_s7  ;;  %s12309_s7 = sld [smem:[#allocation2 + $0x386]] }
 0x215   : > { %9101 = vmatpush3.msra.mxu0 %v4774_v20  ;;  %9106 = vmatpush3.msra.mxu1 %v4850_v21  ;;  %14907 = vst [vmem:[#allocation65_spill] sm:$0xff] %v10650_v15  ;;  %14912 = vst [vmem:[#allocation70_spill] sm:$0xff] %v10681_v61  ;;  %v10705_v61 = vmul.f32 %v10501_v56, %v553_v54 }
 0x216   : > { %9110 = vmatprep.subr.mxu0 %v14574_v10  ;;  %9115 = vmatprep.subr.mxu1 %v14574_v10  ;;  %14922 = vst [vmem:[#allocation80_spill] sm:$0xff] %v10717_v59  ;;  %14925 = vst [vmem:[#allocation83_spill] sm:$0xff] %v10729_v4  ;;  %v10746_v59 = vmul.f32 %v10688_v60, %v10506_v57  ;;  %v10752_v4 = vmul.f32 %v10486_v50, %v564_v46 }
 0x217   : > { %14919 = vst [vmem:[#allocation77_spill] sm:$0xff] %v10705_v61  ;;  %v565_v61 = vld [vmem:[%s10424_s26 + $0x70] sm:$0xff]  ;;  %14927 = vst [vmem:[#allocation85_spill] sm:$0xff] %v10735_v45  ;;  %v10756_v45 = vmul.f32 %v10714_v62, %v10475_v47 }
 0x218   : > { %14930 = vst [vmem:[#allocation88_spill] sm:$0xff] %v10746_v59  ;;  %14932 = vst [vmem:[#allocation90_spill] sm:$0xff] %v10752_v4  ;;  %v10769_v59 = vmul.f32 %v10489_v51, %v563_v58  ;;  %v10775_v4 = vmul.f32 %v10501_v56, %v565_v61 }
 0x219   : > { %14933 = vst [vmem:[#allocation91_spill] sm:$0xff] %v10756_v45  ;;  %v560_v45 = vld [vmem:[%s10424_s26 + $0x48] sm:$0xff] }
 0x21a   : > { %14937 = vst [vmem:[#allocation95_spill] sm:$0xff] %v10769_v59  ;;  %14939 = vst [vmem:[#allocation97_spill] sm:$0xff] %v10775_v4  ;;  %v10789_v59 = vmul.f32 %v10631_v3, %v563_v58  ;;  %v561_v4 = vld [vmem:[%s10424_s26 + $0x50] sm:$0xff] }
 0x21c   : > { %14943 = vst [vmem:[#allocation101_spill] sm:$0xff] %v10789_v59  ;;  %v573_v59 = vld [vmem:[%s10424_s26 + $0xb0] sm:$0xff] }
 0x26c   : > { %v10405_v26 = vpop.f32.mrf.mxu1 }
 0x26d   : > { %v10558_v7 = vmul.f32 %v10392_v22, %v10405_v26  ;;  %v10573_v20 = vmul.f32 %v10395_v23, %v10405_v26  ;;  %v10577_v21 = vmul.f32 %v10398_v24, %v10405_v26  ;;  %v10591_v10 = vmul.f32 %v10411_v28, %v10405_v26 }
 0x26e   : > { %v8944_v35 = vpop.f32.mrf.mxu1  ;;  %v10595_v13 = vmul.f32 %v10414_v29, %v10405_v26  ;;  %v10599_v11 = vmul.f32 %v10417_v30, %v10405_v26 }
 0x26f   : > { %v10581_v35 = vmul.f32 %v10401_v25, %v10405_v26 }
 0x270   : > { %v10466_v44 = vpop.f32.mrf.mxu1 }
 0x271   : > { %v10624_v12 = vmul.f32 %v10392_v22, %v10466_v44  ;;  %v10628_v16 = vmul.f32 %v10395_v23, %v10466_v44  ;;  %v10639_v14 = vmul.f32 %v10398_v24, %v10466_v44  ;;  %v10643_v6 = vmul.f32 %v10401_v25, %v10466_v44 }
 0x272   : > { %v8949_v53 = vpop.f32.mrf.mxu1  ;;  %v10647_v2 = vmul.f32 %v10408_v27, %v10466_v44  ;;  %v10656_v1 = vmul.f32 %v10411_v28, %v10466_v44  ;;  %v10660_v63 = vmul.f32 %v10414_v29, %v10466_v44  ;;  %v10664_v18 = vmul.f32 %v10417_v30, %v10466_v44 }
 0x273   : > { %v10585_v53 = vmul.f32 %v10408_v27, %v10405_v26  ;;  %v10618_v26 = vstv %s10480_s6  ;;  %v10685_v44 = vmul.f32 %v10650_v15, %v10475_v47  ;;  %v10778_v47 = vmul.f32 %v10561_v8, %v563_v58  ;;  %s12289_s6 = sld [smem:[#allocation5 + $0x5]] }
 0x274   : > { %14905 = vst [vmem:[#allocation63_spill] sm:$0xff] %v10618_v26  ;;  %v10675_v26 = vmul.f32 %v10634_v17, %v10478_v48 }
 0x275   : > { %14913 = vst [vmem:[#allocation71_spill] sm:$0xff] %v10685_v44  ;;  %v10709_v44 = vmul.f32 %v10561_v8, %v10506_v57  ;;  %14940 = vst [vmem:[#allocation98_spill] sm:$0xff] %v10778_v47  ;;  %v10799_v47 = vmul.f32 %v10667_v0, %v564_v46 }
 0x276   : > { %14910 = vst [vmem:[#allocation68_spill] sm:$0xff] %v10675_v26  ;;  %v10699_v26 = vmul.f32 %v10667_v0, %v10478_v48  ;;  %v10720_v48 = vmul.f32 %v10567_v19, %v553_v54  ;;  %v10739_v54 = vmul.f32 %v10650_v15, %v10506_v57 }
 0x277   : > { %14920 = vst [vmem:[#allocation78_spill] sm:$0xff] %v10709_v44  ;;  %v10732_v44 = vstv %s10620_s15  ;;  %14946 = vst [vmem:[#allocation104_spill] sm:$0xff] %v10799_v47  ;;  %v10821_v47 = vmul.f32 %v10498_v55, %v561_v4  ;;  %s12366_s15 = sld [smem:[#allocation7 + $0x82]] }
 0x278   : > { %14917 = vst [vmem:[#allocation75_spill] sm:$0xff] %v10699_v26  ;;  %14923 = vst [vmem:[#allocation81_spill] sm:$0xff] %v10720_v48  ;;  %v10724_v26 = vmul.f32 %v10631_v3, %v10506_v57  ;;  %v10742_v48 = vmul.f32 %v10667_v0, %v552_v5  ;;  %v10763_v5 = vmul.f32 %v10714_v62, %v10506_v57 }
 0x279   : > { %14926 = vst [vmem:[#allocation84_spill] sm:$0xff] %v10732_v44  ;;  %14928 = vst [vmem:[#allocation86_spill] sm:$0xff] %v10739_v54  ;;  %v10759_v44 = vstv %s10652_s18  ;;  %v559_v54 = vld [vmem:[%s10424_s26 + $0x40] sm:$0xff]  ;;  %v10783_v57 = vmul.f32 %v10564_v9, %v564_v46  ;;  %s12379_s18 = sld [smem:[#allocation7 + $0x83]] }
 0x27a   : > { %14924 = vst [vmem:[#allocation82_spill] sm:$0xff] %v10724_v26  ;;  %14929 = vst [vmem:[#allocation87_spill] sm:$0xff] %v10742_v48  ;;  %v10749_v26 = vmul.f32 %v10483_v49, %v563_v58  ;;  %v10766_v48 = vmul.f32 %v10498_v55, %v565_v61 }
 0x27b   : > { %14934 = vst [vmem:[#allocation92_spill] sm:$0xff] %v10759_v44  ;;  %14935 = vst [vmem:[#allocation93_spill] sm:$0xff] %v10763_v5  ;;  %v10796_v5 = vmul.f32 %v10650_v15, %v563_v58  ;;  %v10802_v44 = vmul.f32 %v10688_v60, %v563_v58 }
 0x27c   : > { %14931 = vst [vmem:[#allocation89_spill] sm:$0xff] %v10749_v26  ;;  %14936 = vst [vmem:[#allocation94_spill] sm:$0xff] %v10766_v48  ;;  %v10772_v26 = vmul.f32 %v10492_v52, %v564_v46  ;;  %v10786_v48 = vmul.f32 %v10567_v19, %v565_v61  ;;  %v10805_v61 = vmul.f32 %v10714_v62, %v563_v58 }
 0x27d   : > { %14941 = vst [vmem:[#allocation99_spill] sm:$0xff] %v10783_v57  ;;  %14945 = vst [vmem:[#allocation103_spill] sm:$0xff] %v10796_v5  ;;  %v10811_v57 = vmul.f32 %v10486_v50, %v560_v45  ;;  %v10817_v5 = vmul.f32 %v10561_v8, %v559_v54  ;;  %v10824_v58 = vmul.f32 %v10631_v3, %v559_v54 }
 0x27e   : > { %14938 = vst [vmem:[#allocation96_spill] sm:$0xff] %v10772_v26  ;;  %14942 = vst [vmem:[#allocation100_spill] sm:$0xff] %v10786_v48  ;;  %v10792_v26 = vmul.f32 %v10634_v17, %v564_v46  ;;  %v10808_v48 = vmul.f32 %v10483_v49, %v559_v54  ;;  %v571_v46 = vld [vmem:[%s10424_s26 + $0xa0] sm:$0xff] }
 0x27f   : > { %14947 = vst [vmem:[#allocation105_spill] sm:$0xff] %v10802_v44  ;;  %14948 = vst [vmem:[#allocation106_spill] sm:$0xff] %v10805_v61  ;;  %v10827_v61 = vmul.f32 %v10650_v15, %v559_v54  ;;  %v10840_v44 = vmul.f32 %v10634_v17, %v560_v45 }
 0x280   : > { %14944 = vst [vmem:[#allocation102_spill] sm:$0xff] %v10792_v26  ;;  %14949 = vst [vmem:[#allocation107_spill] sm:$0xff] %v10808_v48  ;;  %v10814_v26 = vmul.f32 %v10489_v51, %v559_v54  ;;  %v572_v48 = vld [vmem:[%s10424_s26 + $0xa8] sm:$0xff] }
 0x281   : > { %14950 = vst [vmem:[#allocation108_spill] sm:$0xff] %v10811_v57  ;;  %14952 = vst [vmem:[#allocation110_spill] sm:$0xff] %v10817_v5  ;;  %v10830_v57 = vmul.f32 %v10688_v60, %v559_v54  ;;  %v10837_v5 = vmul.f32 %v10564_v9, %v560_v45 }
 0x282   : > { %14951 = vst [vmem:[#allocation109_spill] sm:$0xff] %v10814_v26  ;;  %14953 = vst [vmem:[#allocation111_spill] sm:$0xff] %v10821_v47  ;;  %v10834_v26 = vmul.f32 %v10492_v52, %v560_v45  ;;  %v10843_v47 = vmul.f32 %v10714_v62, %v559_v54  ;;  %v10862_v54 = vmul.f32 %v10489_v51, %v571_v46 }
 0x283   : > { %14954 = vst [vmem:[#allocation112_spill] sm:$0xff] %v10824_v58  ;;  %14955 = vst [vmem:[#allocation113_spill] sm:$0xff] %v10827_v61  ;;  %v10846_v58 = vmul.f32 %v10501_v56, %v561_v4  ;;  %v10849_v61 = vmul.f32 %v10567_v19, %v561_v4  ;;  %v10868_v4 = vmul.f32 %v10631_v3, %v571_v46 }
 0x284   : > { %14956 = vst [vmem:[#allocation114_spill] sm:$0xff] %v10830_v57  ;;  %14957 = vst [vmem:[#allocation115_spill] sm:$0xff] %v10834_v26  ;;  %v10852_v57 = vmul.f32 %v10667_v0, %v560_v45  ;;  %v10856_v26 = vmul.f32 %v10483_v49, %v571_v46 }
 0x285   : > { %14958 = vst [vmem:[#allocation116_spill] sm:$0xff] %v10837_v5  ;;  %14959 = vst [vmem:[#allocation117_spill] sm:$0xff] %v10840_v44  ;;  %v10859_v5 = vmul.f32 %v10486_v50, %v572_v48  ;;  %v10865_v44 = vmul.f32 %v10561_v8, %v571_v46 }
 0x286   : > { %14960 = vst [vmem:[#allocation118_spill] sm:$0xff] %v10843_v47  ;;  %14961 = vst [vmem:[#allocation119_spill] sm:$0xff] %v10846_v58  ;;  %v10874_v58 = vmul.f32 %v10492_v52, %v572_v48  ;;  %v10898_v47 = vld [vmem:[%s10424_s26 + $0x88] sm:$0xff] }
 0x287   : > { %14962 = vst [vmem:[#allocation120_spill] sm:$0xff] %v10849_v61  ;;  %14963 = vst [vmem:[#allocation121_spill] sm:$0xff] %v10852_v57  ;;  %v10871_v61 = vld [vmem:[%s10424_s26 + $0x80] sm:$0xff]  ;;  %v10892_v57 = vmul.f32 %v10634_v17, %v572_v48  ;;  %v10936_v43 = vmul.f32 %v10486_v50, %v10898_v47 }
 0x288   : > { %14964 = vst [vmem:[#allocation122_spill] sm:$0xff] %v10856_v26  ;;  %14965 = vst [vmem:[#allocation123_spill] sm:$0xff] %v10859_v5  ;;  %v10877_v26 = vmul.f32 %v10564_v9, %v572_v48  ;;  %v10880_v5 = vmul.f32 %v10650_v15, %v571_v46 }
 0x289   : > { %14966 = vst [vmem:[#allocation124_spill] sm:$0xff] %v10862_v54  ;;  %14967 = vst [vmem:[#allocation125_spill] sm:$0xff] %v10865_v44  ;;  %v10883_v54 = vmul.f32 %v10688_v60, %v571_v46  ;;  %v10886_v44 = vmul.f32 %v10498_v55, %v573_v59 }
 0x28a   : > { %14968 = vst [vmem:[#allocation126_spill] sm:$0xff] %v10868_v4  ;;  %14969 = vst [vmem:[#allocation127_spill] sm:$0xff] %v10874_v58  ;;  %v10889_v4 = vmul.f32 %v10501_v56, %v573_v59  ;;  %v10895_v58 = vmul.f32 %v10714_v62, %v571_v46 }
 0x28b   : > { %14970 = vst [vmem:[#allocation128_spill] sm:$0xff] %v10877_v26  ;;  %14971 = vst [vmem:[#allocation129_spill] sm:$0xff] %v10880_v5 }
 0x28c   : > { %v811_v45 = vpop.f32.mrf.mxu1  ;;  %14972 = vst [vmem:[#allocation130_spill] sm:$0xff] %v10883_v54  ;;  %14973 = vst [vmem:[#allocation131_spill] sm:$0xff] %v10886_v44  ;;  %v10904_v54 = vmul.f32 %v10567_v19, %v573_v59  ;;  %v10907_v44 = vmul.f32 %v10667_v0, %v572_v48 }
 0x28d   : > { %14974 = vst [vmem:[#allocation132_spill] sm:$0xff] %v10889_v4  ;;  %14975 = vst [vmem:[#allocation133_spill] sm:$0xff] %v10892_v57  ;;  %v10901_v26 = vmul.f32 %v10392_v22, %v811_v45  ;;  %v10911_v4 = vmul.f32 %v10483_v49, %v10871_v61  ;;  %v10914_v57 = vmul.f32 %v10395_v23, %v811_v45 }
 0x28e   : > { %14976 = vst [vmem:[#allocation134_spill] sm:$0xff] %v10895_v58  ;;  %v8954_v5 = vpop.f32.mrf.mxu1  ;;  %14977 = vst [vmem:[#allocation135_spill] sm:$0xff] %v10904_v54  ;;  %v10917_v46 = vmul.f32 %v10398_v24, %v811_v45  ;;  %v10920_v58 = vmul.f32 %v10401_v25, %v811_v45  ;;  %v10926_v59 = vmul.f32 %v10411_v28, %v811_v45 }
 0x28f   : > { %14978 = vst [vmem:[#allocation136_spill] sm:$0xff] %v10907_v44  ;;  %14979 = vst [vmem:[#allocation137_spill] sm:$0xff] %v10911_v4  ;;  %v10923_v5 = vmul.f32 %v10408_v27, %v811_v45  ;;  %v10929_v48 = vmul.f32 %v10414_v29, %v811_v45  ;;  %v10932_v44 = vmul.f32 %v10417_v30, %v811_v45 }
 0x290   : > { %14981 = vst [vmem:[#allocation139_spill] sm:$0xff] %v10926_v59  ;;  %v888_v54 = vpop.f32.mrf.mxu1  ;;  %v965_v4 = vpop.f32.mrf.mxu0  ;;  %14984 = vst [vmem:[#allocation142_spill] sm:$0xff] %v10936_v43 }
 0x291   : > { %14980 = vst [vmem:[#allocation138_spill] sm:$0xff] %v10923_v5  ;;  %14982 = vst [vmem:[#allocation140_spill] sm:$0xff] %v10929_v48  ;;  %v10939_v42 = vmul.f32 %v10392_v22, %v888_v54  ;;  %v10942_v41 = vmul.f32 %v10395_v23, %v888_v54  ;;  %v10945_v40 = vmul.f32 %v10398_v24, %v888_v54 }
 0x292   : > { %14983 = vst [vmem:[#allocation141_spill] sm:$0xff] %v10932_v44  ;;  %v10948_v48 = vmul.f32 %v10401_v25, %v888_v54  ;;  %v10951_v45 = vmul.f32 %v10408_v27, %v888_v54  ;;  %v10954_v44 = vmul.f32 %v10411_v28, %v888_v54  ;;  %v10957_v43 = vmul.f32 %v10414_v29, %v888_v54  ;;  %v8964_v59 = vpop.f32.mrf.mxu0 }
 0x293   : > { %14985 = vst [vmem:[#allocation143_spill] sm:$0xff] %v10939_v42  ;;  %14986 = vst [vmem:[#allocation144_spill] sm:$0xff] %v10942_v41  ;;  %v10960_v42 = vmul.f32 %v10417_v30, %v888_v54  ;;  %v8959_v41 = vpop.f32.mrf.mxu1  ;;  %v10972_v5 = vmul.f32 %v10401_v25, %v965_v4  ;;  %v10983_v54 = vmul.f32 %v10414_v29, %v965_v4 }
 0x294   : > { %14987 = vst [vmem:[#allocation145_spill] sm:$0xff] %v10945_v40  ;;  %14988 = vst [vmem:[#allocation146_spill] sm:$0xff] %v10948_v48  ;;  %v10963_v40 = vmul.f32 %v10392_v22, %v965_v4  ;;  %v10966_v48 = vmul.f32 %v10395_v23, %v965_v4  ;;  %v10980_v41 = vmul.f32 %v10411_v28, %v965_v4 }
 0x295   : > { %14989 = vst [vmem:[#allocation147_spill] sm:$0xff] %v10951_v45  ;;  %14990 = vst [vmem:[#allocation148_spill] sm:$0xff] %v10957_v43  ;;  %v10969_v45 = vmul.f32 %v10398_v24, %v965_v4  ;;  %v10977_v43 = vmul.f32 %v10408_v27, %v965_v4  ;;  %v10986_v59 = vmul.f32 %v10417_v30, %v965_v4 }
 0x296   : > { %14991 = vst [vmem:[#allocation149_spill] sm:$0xff] %v10960_v42  ;;  %14992 = vst [vmem:[#allocation150_spill] sm:$0xff] %v10963_v40  ;;  %v569_v40 = vld [vmem:[%s10424_s26 + $0x90] sm:$0xff]  ;;  %v11059_v42 = vmul.f32 %v10650_v15, %v10871_v61 }
 0x297   : > { %14993 = vst [vmem:[#allocation151_spill] sm:$0xff] %v10966_v48  ;;  %14994 = vst [vmem:[#allocation152_spill] sm:$0xff] %v10969_v45  ;;  %v1042_v48 = vpop.f32.mrf.mxu1 }
 0x298   : > { %14995 = vst [vmem:[#allocation153_spill] sm:$0xff] %v10972_v5  ;;  %14996 = vst [vmem:[#allocation154_spill] sm:$0xff] %v10977_v43  ;;  %v10992_v5 = vmul.f32 %v10392_v22, %v1042_v48  ;;  %v10995_v43 = vmul.f32 %v10395_v23, %v1042_v48  ;;  %v11006_v4 = vmul.f32 %v10408_v27, %v1042_v48 }
 0x299   : > { %14997 = vst [vmem:[#allocation155_spill] sm:$0xff] %v10980_v41  ;;  %14998 = vst [vmem:[#allocation156_spill] sm:$0xff] %v10983_v54  ;;  %v10998_v41 = vmul.f32 %v10398_v24, %v1042_v48  ;;  %v11001_v54 = vmul.f32 %v10401_v25, %v1042_v48  ;;  %v8969_v45 = vpop.f32.mrf.mxu1 }
 0x29a   : > { %14999 = vst [vmem:[#allocation157_spill] sm:$0xff] %v10986_v59  ;;  %15000 = vst [vmem:[#allocation158_spill] sm:$0xff] %v10992_v5  ;;  %v11009_v59 = vmul.f32 %v10411_v28, %v1042_v48  ;;  %v11012_v5 = vmul.f32 %v10414_v29, %v1042_v48  ;;  %v577_v45 = vld [vmem:[%s10424_s26 + $0xd0] sm:$0xff] }
 0x29b   : > { %15001 = vst [vmem:[#allocation159_spill] sm:$0xff] %v10995_v43  ;;  %15002 = vst [vmem:[#allocation160_spill] sm:$0xff] %v10998_v41  ;;  %v11015_v43 = vmul.f32 %v10417_v30, %v1042_v48  ;;  %v11020_v41 = vmul.f32 %v10498_v55, %v569_v40  ;;  %v575_v48 = vld [vmem:[%s10424_s26 + $0xc0] sm:$0xff] }
 0x29c   : > { %15003 = vst [vmem:[#allocation161_spill] sm:$0xff] %v11001_v54  ;;  %15004 = vst [vmem:[#allocation162_spill] sm:$0xff] %v11006_v4  ;;  %v11024_v54 = vmul.f32 %v10489_v51, %v10871_v61  ;;  %v11028_v4 = vmul.f32 %v10492_v52, %v10898_v47 }
 0x29d   : > { %15005 = vst [vmem:[#allocation163_spill] sm:$0xff] %v11009_v59  ;;  %15006 = vst [vmem:[#allocation164_spill] sm:$0xff] %v11012_v5  ;;  %v11032_v5 = vmul.f32 %v10561_v8, %v10871_v61  ;;  %v11040_v59 = vmul.f32 %v10501_v56, %v569_v40 }
 0x29e   : > { %15007 = vst [vmem:[#allocation165_spill] sm:$0xff] %v11015_v43  ;;  %15008 = vst [vmem:[#allocation166_spill] sm:$0xff] %v11020_v41  ;;  %v576_v43 = vld [vmem:[%s10424_s26 + $0xc8] sm:$0xff]  ;;  %v11044_v41 = vmul.f32 %v10564_v9, %v10898_v47 }
 0x29f   : > { %15009 = vst [vmem:[#allocation167_spill] sm:$0xff] %v11024_v54  ;;  %15010 = vst [vmem:[#allocation168_spill] sm:$0xff] %v11028_v4  ;;  %v11048_v4 = vmul.f32 %v10631_v3, %v10871_v61  ;;  %v11055_v54 = vmul.f32 %v10567_v19, %v569_v40  ;;  %v11074_v40 = vmul.f32 %v10483_v49, %v575_v48 }
 0x2a0   : > { %15011 = vst [vmem:[#allocation169_spill] sm:$0xff] %v11032_v5  ;;  %15012 = vst [vmem:[#allocation170_spill] sm:$0xff] %v11040_v59  ;;  %v11052_v5 = vmul.f32 %v10634_v17, %v10898_v47  ;;  %v11063_v59 = vmul.f32 %v10667_v0, %v10898_v47  ;;  %v11083_v47 = vmul.f32 %v10489_v51, %v575_v48 }
 0x2a1   : > { %15013 = vst [vmem:[#allocation171_spill] sm:$0xff] %v11044_v41  ;;  %15014 = vst [vmem:[#allocation172_spill] sm:$0xff] %v11048_v4  ;;  %v11067_v41 = vmul.f32 %v10688_v60, %v10871_v61  ;;  %v11071_v4 = vmul.f32 %v10714_v62, %v10871_v61  ;;  %v11089_v61 = vmul.f32 %v10501_v56, %v577_v45  ;;  %v11110_v56 = vld [vmem:[%s10424_s26 + $0xe8] sm:$0xff] }
 0x2a2   : > { %15015 = vst [vmem:[#allocation173_spill] sm:$0xff] %v11052_v5  ;;  %15016 = vst [vmem:[#allocation174_spill] sm:$0xff] %v11055_v54  ;;  %v11077_v54 = vmul.f32 %v10486_v50, %v576_v43  ;;  %v11080_v5 = vmul.f32 %v10498_v55, %v577_v45 }
 0x2a3   : > { %15017 = vst [vmem:[#allocation175_spill] sm:$0xff] %v11059_v42  ;;  %15018 = vst [vmem:[#allocation176_spill] sm:$0xff] %v11063_v59  ;;  %v11086_v59 = vmul.f32 %v10492_v52, %v576_v43 }
 0x2a4   : > { %15019 = vst [vmem:[#allocation177_spill] sm:$0xff] %v11067_v41  ;;  %15020 = vst [vmem:[#allocation178_spill] sm:$0xff] %v11071_v4  ;;  %v11095_v4 = vld [vmem:[%s10424_s26 + $0xe0] sm:$0xff] }
 0x2a5   : > { %15021 = vst [vmem:[#allocation179_spill] sm:$0xff] %v11074_v40  ;;  %15022 = vst [vmem:[#allocation180_spill] sm:$0xff] %v11077_v54  ;;  %v11092_v40 = vmul.f32 %v10561_v8, %v575_v48  ;;  %v11098_v54 = vmul.f32 %v10564_v9, %v576_v43 }
 0x2a6   : > { %15023 = vst [vmem:[#allocation181_spill] sm:$0xff] %v11080_v5  ;;  %15024 = vst [vmem:[#allocation182_spill] sm:$0xff] %v11083_v47  ;;  %v11101_v5 = vmul.f32 %v10567_v19, %v577_v45  ;;  %v11116_v47 = vmul.f32 %v10667_v0, %v576_v43  ;;  %v11122_v45 = vmul.f32 %v10714_v62, %v575_v48  ;;  %v11150_v62 = vstv %s11037_s16  ;;  %v1196_v0 = vpop.f32.mrf.mxu1  ;;  %s12429_s16 = sld [smem:[#allocation7]] }
 0x2a7   : > { %15025 = vst [vmem:[#allocation183_spill] sm:$0xff] %v11086_v59  ;;  %15026 = vst [vmem:[#allocation184_spill] sm:$0xff] %v11089_v61  ;;  %v11104_v59 = vmul.f32 %v10631_v3, %v575_v48  ;;  %v11107_v61 = vmul.f32 %v10634_v17, %v576_v43  ;;  %v11127_v19 = vmul.f32 %v10483_v49, %v11095_v4  ;;  %v11130_v17 = vstv %s10974_s19  ;;  %v1119_v49 = vpop.f32.mrf.mxu0  ;;  %s12391_s19 = sld [smem:[#allocation7 + $0x84]] }
 0x2a8   : > { %15027 = vst [vmem:[#allocation185_spill] sm:$0xff] %v11092_v40  ;;  %15028 = vst [vmem:[#allocation186_spill] sm:$0xff] %v11095_v4  ;;  %v11113_v40 = vmul.f32 %v10650_v15, %v575_v48  ;;  %v11141_v43 = vmul.f32 %v10486_v50, %v11110_v56  ;;  %v11165_v50 = vmul.f32 %v10631_v3, %v11095_v4 }
 0x2a9   : > { %15029 = vst [vmem:[#allocation187_spill] sm:$0xff] %v11098_v54  ;;  %15030 = vst [vmem:[#allocation188_spill] sm:$0xff] %v11101_v5  ;;  %v11119_v54 = vmul.f32 %v10688_v60, %v575_v48  ;;  %v581_v5 = vld [vmem:[%s10424_s26 + $0xf0] sm:$0xff]  ;;  %v11144_v60 = vstv %s11003_s22  ;;  %v11147_v48 = vstv %s11017_s17  ;;  %v11186_v3 = vmul.f32 %v10414_v29, %v1119_v49  ;;  %s12410_s22 = sld [smem:[#allocation7 + $0x86]] }
 0x2aa   : > { %15031 = vst [vmem:[#allocation189_spill] sm:$0xff] %v11104_v59  ;;  %15032 = vst [vmem:[#allocation190_spill] sm:$0xff] %v11107_v61  ;;  %v11134_v61 = vmul.f32 %v10489_v51, %v11095_v4  ;;  %v11157_v51 = vmul.f32 %v10492_v52, %v11110_v56  ;;  %v11177_v52 = vmul.f32 %v10401_v25, %v1119_v49  ;;  %s12418_s17 = sld [smem:[#allocation7 + $0x87]] }
 0x2ab   : > { %15033 = vst [vmem:[#allocation191_spill] sm:$0xff] %v11110_v56  ;;  %15034 = vst [vmem:[#allocation192_spill] sm:$0xff] %v11113_v40  ;;  %v11137_v40 = vstv %s10989_s20  ;;  %s12398_s20 = sld [smem:[#allocation7 + $0x85]] }
 0x2ac   : > { %15035 = vst [vmem:[#allocation193_spill] sm:$0xff] %v11116_v47  ;;  %15036 = vst [vmem:[#allocation194_spill] sm:$0xff] %v11119_v54 }
 0x2ad   : > { %15037 = vst [vmem:[#allocation195_spill] sm:$0xff] %v11122_v45  ;;  %15038 = vst [vmem:[#allocation196_spill] sm:$0xff] %v11127_v19  ;;  %v11153_v19 = vmul.f32 %v10498_v55, %v581_v5  ;;  %v11174_v55 = vmul.f32 %v10398_v24, %v1119_v49  ;;  %v11180_v5 = vmul.f32 %v10408_v27, %v1119_v49 }
 0x2ae   : > { %15039 = vst [vmem:[#allocation197_spill] sm:$0xff] %v11130_v17  ;;  %15040 = vst [vmem:[#allocation198_spill] sm:$0xff] %v11134_v61  ;;  %v11161_v61 = vmul.f32 %v10561_v8, %v11095_v4  ;;  %v11183_v8 = vmul.f32 %v10411_v28, %v1119_v49  ;;  %v11204_v17 = vmul.f32 %v10408_v27, %v1196_v0 }
 0x2af   : > { %15041 = vst [vmem:[#allocation199_spill] sm:$0xff] %v11137_v40  ;;  %15042 = vst [vmem:[#allocation200_spill] sm:$0xff] %v11141_v43  ;;  %v11195_v43 = vmul.f32 %v10395_v23, %v1196_v0  ;;  %v11201_v40 = vmul.f32 %v10401_v25, %v1196_v0 }
 0x2b0   : > { %15043 = vst [vmem:[#allocation201_spill] sm:$0xff] %v11144_v60  ;;  %15044 = vst [vmem:[#allocation202_spill] sm:$0xff] %v11147_v48  ;;  %v11168_v48 = vmul.f32 %v10392_v22, %v1119_v49  ;;  %v11198_v60 = vmul.f32 %v10398_v24, %v1196_v0 }
 0x2b1   : > { %15045 = vst [vmem:[#allocation203_spill] sm:$0xff] %v11150_v62  ;;  %15046 = vst [vmem:[#allocation204_spill] sm:$0xff] %v11153_v19  ;;  %v11171_v62 = vmul.f32 %v10395_v23, %v1119_v49  ;;  %v11189_v19 = vmul.f32 %v10417_v30, %v1119_v49  ;;  %v11207_v49 = vmul.f32 %v10411_v28, %v1196_v0 }
 0x2b2   : > { %15047 = vst [vmem:[#allocation205_spill] sm:$0xff] %v11157_v51  ;;  %15048 = vst [vmem:[#allocation206_spill] sm:$0xff] %v11161_v61  ;;  %v8979_v51 = vpop.f32.mrf.mxu1  ;;  %v11192_v61 = vmul.f32 %v10392_v22, %v1196_v0  ;;  %v11213_v22 = vmul.f32 %v10417_v30, %v1196_v0 }
 0x2b3   : > { %15049 = vst [vmem:[#allocation207_spill] sm:$0xff] %v11165_v50  ;;  %v8974_v50 = vpop.f32.mrf.mxu0  ;;  %v11210_v51 = vmul.f32 %v10414_v29, %v1196_v0 }
 0x2b4   : > { %v1352_v50 = vpop.f32.mrf.mxu1 }
 0x2b5   : > { %v1274_v23 = vpop.f32.mrf.mxu0 }
 0x2b6   : > { %v3084_v24 = vmul.f32 %v10427_v31, %v1274_v23  ;;  %v3238_v47 = vmul.f32 %v10430_v32, %v1274_v23  ;;  %v3392_v25 = vmul.f32 %v10433_v33, %v1274_v23  ;;  %v3546_v27 = vmul.f32 %v10436_v34, %v1274_v23  ;;  %v8989_v0 = vpop.f32.mrf.mxu1 }
 0x2b7   : > { %v3700_v45 = vmul.f32 %v10441_v36, %v1274_v23  ;;  %v3854_v28 = vmul.f32 %v10444_v37, %v1274_v23  ;;  %v4008_v29 = vmul.f32 %v10447_v38, %v1274_v23  ;;  %v4162_v54 = vmul.f32 %v10450_v39, %v1274_v23  ;;  %v8984_v30 = vpop.f32.mrf.mxu0 }
 0x2b8   : > { %v11224_v59 = vadd.f32 %v3084_v24, %v10558_v7  ;;  %v11227_v41 = vadd.f32 %v3238_v47, %v10573_v20  ;;  %v11230_v42 = vadd.f32 %v3392_v25, %v10577_v21  ;;  %v11233_v15 = vadd.f32 %v3546_v27, %v10581_v35  ;;  %v1508_v47 = vpop.f32.mrf.mxu1 }
 0x2b9   : > { %v11236_v4 = vadd.f32 %v3700_v45, %v10585_v53  ;;  %v11239_v9 = vadd.f32 %v3854_v28, %v10591_v10  ;;  %v11242_v23 = vadd.f32 %v4008_v29, %v10595_v13  ;;  %v11245_v7 = vadd.f32 %v4162_v54, %v10599_v11  ;;  %v1430_v20 = vpop.f32.mrf.mxu0 }
 0x2ba   : > { %v3085_v21 = vmul.f32 %v10427_v31, %v1352_v50  ;;  %v3239_v24 = vmul.f32 %v10430_v32, %v1352_v50  ;;  %v3393_v35 = vmul.f32 %v10433_v33, %v1352_v50  ;;  %v3547_v53 = vmul.f32 %v10436_v34, %v1352_v50  ;;  %v8999_v54 = vpop.f32.mrf.mxu1 }
 0x2bb   : > { %15050 = vst [vmem:[#allocation208_spill] sm:$0xff] %v11236_v4  ;;  %15051 = vst [vmem:[#allocation209_spill] sm:$0xff] %v11239_v9  ;;  %v3701_v45 = vmul.f32 %v10441_v36, %v1352_v50  ;;  %v3855_v10 = vmul.f32 %v10444_v37, %v1352_v50  ;;  %v4009_v13 = vmul.f32 %v10447_v38, %v1352_v50  ;;  %v8994_v11 = vpop.f32.mrf.mxu0  ;;  %v15058_v54 = vld [vmem:[#allocation138_spill] sm:$0xff] }
 0x2bc   : > { %15052 = vst [vmem:[#allocation210_spill] sm:$0xff] %v11242_v23  ;;  %15053 = vst [vmem:[#allocation211_spill] sm:$0xff] %v11245_v7  ;;  %v4163_v25 = vmul.f32 %v10450_v39, %v1352_v50  ;;  %v11256_v27 = vadd.f32 %v3085_v21, %v10624_v12  ;;  %v11259_v28 = vadd.f32 %v3239_v24, %v10628_v16  ;;  %v11279_v21 = vpop.f32.mrf.mxu1  ;;  %v15060_v23 = vld [vmem:[#allocation139_spill] sm:$0xff] }
 0x2bd   : > { %v11262_v29 = vadd.f32 %v3393_v35, %v10639_v14  ;;  %v11265_v30 = vadd.f32 %v3547_v53, %v10643_v6  ;;  %v11268_v0 = vadd.f32 %v3701_v45, %v10647_v2  ;;  %v11271_v56 = vadd.f32 %v3855_v10, %v10656_v1  ;;  %v1586_v16 = vpop.f32.mrf.mxu0 }
 0x2be   : > { %v11274_v50 = vadd.f32 %v4009_v13, %v10660_v63  ;;  %v11277_v12 = vadd.f32 %v4163_v25, %v10664_v18  ;;  %v3086_v14 = vmul.f32 %v10427_v31, %v1430_v20  ;;  %v3240_v6 = vmul.f32 %v10430_v32, %v1430_v20  ;;  %v9009_v45 = vpop.f32.mrf.mxu1 }
 0x2bf   : > { %v3394_v24 = vmul.f32 %v10433_v33, %v1430_v20  ;;  %v3548_v2 = vmul.f32 %v10436_v34, %v1430_v20  ;;  %v3702_v1 = vmul.f32 %v10441_v36, %v1430_v20  ;;  %v3856_v35 = vmul.f32 %v10444_v37, %v1430_v20  ;;  %v9004_v53 = vpop.f32.mrf.mxu0  ;;  %v15066_v45 = vld [vmem:[#allocation143_spill] sm:$0xff] }
 0x2c0   : > { %v4010_v63 = vmul.f32 %v10447_v38, %v1430_v20  ;;  %v4164_v18 = vmul.f32 %v10450_v39, %v1430_v20  ;;  %v11290_v10 = vadd.f32 %v3086_v14, %v10901_v26  ;;  %v11293_v13 = vadd.f32 %v3240_v6, %v10914_v57  ;;  %v15062_v20 = vld [vmem:[#allocation140_spill] sm:$0xff]  ;;  %v15064_v26 = vld [vmem:[#allocation141_spill] sm:$0xff]  ;;  %v11313_v57 = vpop.f32.mrf.mxu1 }
 0x2c1   : > { %v11296_v25 = vadd.f32 %v3394_v24, %v10917_v46  ;;  %v11299_v11 = vadd.f32 %v3548_v2, %v10920_v58  ;;  %v11302_v7 = vadd.f32 %v3702_v1, %v15058_v54  ;;  %v11305_v9 = vadd.f32 %v3856_v35, %v15060_v23  ;;  %v11319_v2 = vpop.f32.mrf.mxu0 }
 0x2c2   : > { %15054 = vst [vmem:[#allocation212_spill] sm:$0xff] %v11290_v10  ;;  %15055 = vst [vmem:[#allocation213_spill] sm:$0xff] %v11293_v13  ;;  %v11308_v53 = vadd.f32 %v4010_v63, %v15062_v20  ;;  %v11311_v14 = vadd.f32 %v4164_v18, %v15064_v26  ;;  %v3087_v46 = vmul.f32 %v10427_v31, %v1508_v47  ;;  %v9019_v18 = vpop.f32.mrf.mxu1  ;;  %v15068_v20 = vld [vmem:[#allocation144_spill] sm:$0xff] }
 0x2c3   : > { %15056 = vst [vmem:[#allocation214_spill] sm:$0xff] %v11296_v25  ;;  %15057 = vst [vmem:[#allocation215_spill] sm:$0xff] %v11299_v11  ;;  %v3241_v6 = vmul.f32 %v10430_v32, %v1508_v47  ;;  %v3395_v58 = vmul.f32 %v10433_v33, %v1508_v47  ;;  %v3549_v24 = vmul.f32 %v10436_v34, %v1508_v47  ;;  %v9014_v11 = vpop.f32.mrf.mxu0  ;;  %v15074_v25 = vld [vmem:[#allocation147_spill] sm:$0xff] }
 0x2c4   : > { %15059 = vst [vmem:[#allocation138_spill] sm:$0xff] %v11302_v7  ;;  %15061 = vst [vmem:[#allocation139_spill] sm:$0xff] %v11305_v9  ;;  %v3703_v23 = vmul.f32 %v10441_v36, %v1508_v47  ;;  %v3857_v1 = vmul.f32 %v10444_v37, %v1508_v47  ;;  %v4011_v35 = vmul.f32 %v10447_v38, %v1508_v47  ;;  %v15072_v9 = vld [vmem:[#allocation146_spill] sm:$0xff] }
 0x2c5   : > { %15063 = vst [vmem:[#allocation140_spill] sm:$0xff] %v11308_v53  ;;  %15065 = vst [vmem:[#allocation141_spill] sm:$0xff] %v11311_v14  ;;  %v4165_v63 = vmul.f32 %v10450_v39, %v1508_v47  ;;  %v11326_v54 = vadd.f32 %v3087_v46, %v15066_v45  ;;  %v11329_v26 = vadd.f32 %v3241_v6, %v15068_v20  ;;  %v15070_v14 = vld [vmem:[#allocation145_spill] sm:$0xff]  ;;  %v15077_v47 = vld [vmem:[#allocation148_spill] sm:$0xff]  ;;  %v11349_v6 = vpop.f32.mrf.mxu1 }
 0x2c6   : > { %v11332_v53 = vadd.f32 %v3395_v58, %v15070_v14  ;;  %v11335_v7 = vadd.f32 %v3549_v24, %v15072_v9  ;;  %v11338_v13 = vadd.f32 %v3703_v23, %v15074_v25  ;;  %v11341_v10 = vadd.f32 %v3857_v1, %v10954_v44  ;;  %v15079_v46 = vld [vmem:[#allocation149_spill] sm:$0xff]  ;;  %v11355_v58 = vpop.f32.mrf.mxu0 }
 0x2c7   : > { %15067 = vst [vmem:[#allocation143_spill] sm:$0xff] %v11326_v54  ;;  %15069 = vst [vmem:[#allocation144_spill] sm:$0xff] %v11329_v26  ;;  %v11344_v18 = vadd.f32 %v4011_v35, %v15077_v47  ;;  %v11347_v45 = vadd.f32 %v4165_v63, %v15079_v46  ;;  %v3088_v14 = vmul.f32 %v10427_v31, %v1586_v16  ;;  %v9029_v35 = vpop.f32.mrf.mxu1  ;;  %v15081_v63 = vld [vmem:[#allocation150_spill] sm:$0xff]  ;;  %v15083_v47 = vld [vmem:[#allocation151_spill] sm:$0xff] }
 0x2c8   : > { %15071 = vst [vmem:[#allocation145_spill] sm:$0xff] %v11332_v53  ;;  %15073 = vst [vmem:[#allocation146_spill] sm:$0xff] %v11335_v7  ;;  %v3242_v9 = vmul.f32 %v10430_v32, %v1586_v16  ;;  %v3396_v11 = vmul.f32 %v10433_v33, %v1586_v16  ;;  %v3550_v25 = vmul.f32 %v10436_v34, %v1586_v16  ;;  %v9024_v7 = vpop.f32.mrf.mxu0  ;;  %v15089_v53 = vld [vmem:[#allocation154_spill] sm:$0xff]  ;;  %v15091_v54 = vld [vmem:[#allocation155_spill] sm:$0xff] }
 0x2c9   : > { %15075 = vst [vmem:[#allocation147_spill] sm:$0xff] %v11338_v13  ;;  %15076 = vst [vmem:[#allocation216_spill] sm:$0xff] %v11341_v10  ;;  %v3704_v44 = vmul.f32 %v10441_v36, %v1586_v16  ;;  %v3858_v24 = vmul.f32 %v10444_v37, %v1586_v16  ;;  %v4012_v23 = vmul.f32 %v10447_v38, %v1586_v16  ;;  %v15087_v10 = vld [vmem:[#allocation153_spill] sm:$0xff] }
 0x2ca   : > { %15078 = vst [vmem:[#allocation148_spill] sm:$0xff] %v11344_v18  ;;  %15080 = vst [vmem:[#allocation149_spill] sm:$0xff] %v11347_v45  ;;  %v4166_v1 = vmul.f32 %v10450_v39, %v1586_v16  ;;  %v11362_v20 = vadd.f32 %v3088_v14, %v15081_v63  ;;  %v11365_v46 = vadd.f32 %v3242_v9, %v15083_v47  ;;  %v15085_v45 = vld [vmem:[#allocation152_spill] sm:$0xff]  ;;  %v15095_v14 = vld [vmem:[#allocation157_spill] sm:$0xff]  ;;  %v11385_v9 = vpop.f32.mrf.mxu1 }
 0x2cb   : > { %v11368_v18 = vadd.f32 %v3396_v11, %v15085_v45  ;;  %v11371_v13 = vadd.f32 %v3550_v25, %v15087_v10  ;;  %v11374_v26 = vadd.f32 %v3704_v44, %v15089_v53  ;;  %v11377_v4 = vadd.f32 %v3858_v24, %v15091_v54  ;;  %v15093_v16 = vld [vmem:[#allocation156_spill] sm:$0xff]  ;;  %v11395_v54 = vpop.f32.mrf.mxu0 }
 0x2cc   : > { %15082 = vst [vmem:[#allocation150_spill] sm:$0xff] %v11362_v20  ;;  %15084 = vst [vmem:[#allocation151_spill] sm:$0xff] %v11365_v46  ;;  %v11380_v35 = vadd.f32 %v4012_v23, %v15093_v16  ;;  %v11383_v63 = vadd.f32 %v4166_v1, %v15095_v14  ;;  %v3089_v45 = vmul.f32 %v10427_v31, %v11279_v21  ;;  %v9039_v23 = vpop.f32.mrf.mxu1  ;;  %v15098_v1 = vld [vmem:[#allocation158_spill] sm:$0xff]  ;;  %v15099_v16 = vld [vmem:[#allocation159_spill] sm:$0xff] }
 0x2cd   : > { %15086 = vst [vmem:[#allocation152_spill] sm:$0xff] %v11368_v18  ;;  %15088 = vst [vmem:[#allocation153_spill] sm:$0xff] %v11371_v13  ;;  %v3243_v7 = vmul.f32 %v10430_v32, %v11279_v21  ;;  %v3397_v10 = vmul.f32 %v10433_v33, %v11279_v21  ;;  %v3551_v53 = vmul.f32 %v10436_v34, %v11279_v21  ;;  %v9034_v13 = vpop.f32.mrf.mxu0  ;;  %v15102_v18 = vld [vmem:[#allocation162_spill] sm:$0xff]  ;;  %v15103_v20 = vld [vmem:[#allocation163_spill] sm:$0xff] }
 0x2ce   : > { %15090 = vst [vmem:[#allocation154_spill] sm:$0xff] %v11374_v26  ;;  %15092 = vst [vmem:[#allocation155_spill] sm:$0xff] %v11377_v4  ;;  %v3705_v11 = vmul.f32 %v10441_v36, %v11279_v21  ;;  %v3859_v25 = vmul.f32 %v10444_v37, %v11279_v21  ;;  %v4013_v44 = vmul.f32 %v10447_v38, %v11279_v21  ;;  %v15101_v4 = vld [vmem:[#allocation161_spill] sm:$0xff] }
 0x2cf   : > { %15094 = vst [vmem:[#allocation156_spill] sm:$0xff] %v11380_v35  ;;  %15096 = vst [vmem:[#allocation157_spill] sm:$0xff] %v11383_v63  ;;  %v4167_v24 = vmul.f32 %v10450_v39, %v11279_v21  ;;  %v11406_v47 = vadd.f32 %v3089_v45, %v15098_v1  ;;  %v11409_v14 = vadd.f32 %v3243_v7, %v15099_v16  ;;  %v15100_v63 = vld [vmem:[#allocation160_spill] sm:$0xff]  ;;  %v15106_v45 = vld [vmem:[#allocation165_spill] sm:$0xff]  ;;  %v11429_v7 = vpop.f32.mrf.mxu1 }
 0x2d0   : > { %15097 = vst [vmem:[#allocation217_spill] sm:$0xff] %v11395_v54  ;;  %v11412_v35 = vadd.f32 %v3397_v10, %v15100_v63  ;;  %v11415_v26 = vadd.f32 %v3551_v53, %v15101_v4  ;;  %v11418_v46 = vadd.f32 %v3705_v11, %v15102_v18  ;;  %v11421_v54 = vadd.f32 %v3859_v25, %v15103_v20  ;;  %v15104_v21 = vld [vmem:[#allocation164_spill] sm:$0xff]  ;;  %v11439_v20 = vpop.f32.mrf.mxu0 }
 0x2d1   : > { %v11424_v23 = vadd.f32 %v4013_v44, %v15104_v21  ;;  %v11427_v1 = vadd.f32 %v4167_v24, %v15106_v45  ;;  %v3091_v63 = vmul.f32 %v10427_v31, %v11313_v57  ;;  %v3245_v4 = vmul.f32 %v10430_v32, %v11313_v57  ;;  %15108 = vst [vmem:[#allocation160_spill] sm:$0xff] %v11439_v20  ;;  %v9049_v44 = vpop.f32.mrf.mxu1 }
 0x2d2   : > { %v3399_v13 = vmul.f32 %v10433_v33, %v11313_v57  ;;  %v3553_v18 = vmul.f32 %v10436_v34, %v11313_v57  ;;  %v3707_v10 = vmul.f32 %v10441_v36, %v11313_v57  ;;  %v3861_v53 = vmul.f32 %v10444_v37, %v11313_v57  ;;  %v9044_v20 = vpop.f32.mrf.mxu0 }
 0x2d3   : > { %15105 = vst [vmem:[#allocation158_spill] sm:$0xff] %v11424_v23  ;;  %15107 = vst [vmem:[#allocation159_spill] sm:$0xff] %v11427_v1  ;;  %v4015_v11 = vmul.f32 %v10447_v38, %v11313_v57  ;;  %v4169_v25 = vmul.f32 %v10450_v39, %v11313_v57  ;;  %v11450_v24 = vadd.f32 %v3091_v63, %v11192_v61 }
 0x2d4   : > { %v11453_v16 = vadd.f32 %v3245_v4, %v11195_v43  ;;  %v11456_v21 = vadd.f32 %v3399_v13, %v11198_v60  ;;  %v11459_v45 = vadd.f32 %v3553_v18, %v11201_v40  ;;  %v11462_v1 = vadd.f32 %v3707_v10, %v11204_v17  ;;  %v11473_v43 = vpop.f32.mrf.mxu1  ;;  %v11483_v63 = vpop.f32.mrf.mxu0 }
 0x2d5   : > { %v11465_v23 = vadd.f32 %v3861_v53, %v11207_v49  ;;  %v11468_v57 = vadd.f32 %v4015_v11, %v11210_v51  ;;  %v11471_v61 = vadd.f32 %v4169_v25, %v11213_v22  ;;  %v3090_v60 = vmul.f32 %v10427_v31, %v11319_v2  ;;  %v15116_v25 = vld [vmem:[#allocation43_spill] sm:$0xff] }
 0x2d6   : > { %v3244_v40 = vmul.f32 %v10430_v32, %v11319_v2  ;;  %v3398_v17 = vmul.f32 %v10433_v33, %v11319_v2  ;;  %v3552_v49 = vmul.f32 %v10436_v34, %v11319_v2  ;;  %v3706_v51 = vmul.f32 %v10441_v36, %v11319_v2  ;;  %v9059_v4 = vpop.f32.mrf.mxu1 }
 0x2d7   : > { %v3860_v22 = vmul.f32 %v10444_v37, %v11319_v2  ;;  %v4014_v31 = vmul.f32 %v10447_v38, %v11319_v2  ;;  %v4168_v32 = vmul.f32 %v10450_v39, %v11319_v2  ;;  %v11494_v33 = vadd.f32 %v3090_v60, %v11168_v48  ;;  %v9054_v37 = vpop.f32.mrf.mxu0  ;;  %v15117_v60 = vld [vmem:[#allocation45_spill] sm:$0xff] }
 0x2d8   : > { %v11497_v34 = vadd.f32 %v3244_v40, %v11171_v62  ;;  %v11500_v13 = vadd.f32 %v3398_v17, %v11174_v55  ;;  %v11503_v36 = vadd.f32 %v3552_v49, %v11177_v52  ;;  %v11506_v18 = vadd.f32 %v3706_v51, %v11180_v5  ;;  %v11517_v62 = vpop.f32.mrf.mxu1  ;;  %v15110_v55 = vld [vmem:[#allocation38_spill] sm:$0xff]  ;;  %v15111_v52 = vld [vmem:[#allocation39_spill] sm:$0xff]  ;;  %v15112_v5 = vld [vmem:[#allocation40_spill] sm:$0xff] }
 0x2d9   : > { %v11509_v38 = vadd.f32 %v3860_v22, %v11183_v8  ;;  %v11512_v39 = vadd.f32 %v4014_v31, %v11186_v3  ;;  %v11515_v48 = vadd.f32 %v4168_v32, %v11189_v19  ;;  %15109 = vst [vmem:[#allocation161_spill] sm:$0xff] %v11517_v62  ;;  %v3103_v2 = vmul.f32 %v15110_v55, %v11349_v6  ;;  %v15113_v8 = vld [vmem:[#allocation41_spill] sm:$0xff]  ;;  %v11527_v11 = vpop.f32.mrf.mxu0  ;;  %v15115_v3 = vld [vmem:[#allocation42_spill] sm:$0xff] }
 0x2da   : > { %v3257_v20 = vmul.f32 %v15111_v52, %v11349_v6  ;;  %v3411_v10 = vmul.f32 %v15112_v5, %v11349_v6  ;;  %v3565_v53 = vmul.f32 %v15113_v8, %v11349_v6  ;;  %15114 = vst [vmem:[#allocation162_spill] sm:$0xff] %v11527_v11  ;;  %v3719_v19 = vmul.f32 %v15115_v3, %v11349_v6  ;;  %v15118_v17 = vld [vmem:[#allocation46_spill] sm:$0xff]  ;;  %v9069_v51 = vpop.f32.mrf.mxu1 }
 0x2db   : > { %v3873_v44 = vmul.f32 %v15116_v25, %v11349_v6  ;;  %v4027_v40 = vmul.f32 %v15117_v60, %v11349_v6  ;;  %v4181_v49 = vmul.f32 %v15118_v17, %v11349_v6  ;;  %v11538_v22 = vadd.f32 %v3103_v2, %v11256_v27  ;;  %v9064_v37 = vpop.f32.mrf.mxu0 }
 0x2dc   : > { %v11541_v31 = vadd.f32 %v3257_v20, %v11259_v28  ;;  %v11544_v32 = vadd.f32 %v3411_v10, %v11262_v29  ;;  %v11547_v4 = vadd.f32 %v3565_v53, %v11265_v30  ;;  %v11550_v11 = vadd.f32 %v3719_v19, %v11268_v0  ;;  %v11561_v28 = vpop.f32.mrf.mxu1  ;;  %v15125_v37 = vld [vmem:[#allocation208_spill] sm:$0xff] }
 0x2dd   : > { %v11553_v62 = vadd.f32 %v3873_v44, %v11271_v56  ;;  %v11556_v6 = vadd.f32 %v4027_v40, %v11274_v50  ;;  %v11559_v27 = vadd.f32 %v4181_v49, %v11277_v12  ;;  %15120 = vst [vmem:[#allocation164_spill] sm:$0xff] %v11561_v28  ;;  %v3102_v29 = vmul.f32 %v15110_v55, %v11355_v58  ;;  %v11571_v2 = vpop.f32.mrf.mxu0  ;;  %v15127_v28 = vld [vmem:[#allocation209_spill] sm:$0xff] }
 0x2de   : > { %v3256_v30 = vmul.f32 %v15111_v52, %v11355_v58  ;;  %v3410_v0 = vmul.f32 %v15112_v5, %v11355_v58  ;;  %v3564_v56 = vmul.f32 %v15113_v8, %v11355_v58  ;;  %15121 = vst [vmem:[#allocation165_spill] sm:$0xff] %v11571_v2  ;;  %v3718_v50 = vmul.f32 %v15115_v3, %v11355_v58  ;;  %v9079_v53 = vpop.f32.mrf.mxu1 }
 0x2df   : > { %15119 = vst [vmem:[#allocation163_spill] sm:$0xff] %v11559_v27  ;;  %v3872_v12 = vmul.f32 %v15116_v25, %v11355_v58  ;;  %v4026_v20 = vmul.f32 %v15117_v60, %v11355_v58  ;;  %v4180_v10 = vmul.f32 %v15118_v17, %v11355_v58  ;;  %v11582_v19 = vadd.f32 %v3102_v29, %v11224_v59  ;;  %v9074_v51 = vpop.f32.mrf.mxu0  ;;  %v15129_v58 = vld [vmem:[#allocation210_spill] sm:$0xff]  ;;  %v15131_v59 = vld [vmem:[#allocation211_spill] sm:$0xff] }
 0x2e0   : > { %v11585_v44 = vadd.f32 %v3256_v30, %v11227_v41  ;;  %v11588_v40 = vadd.f32 %v3410_v0, %v11230_v42  ;;  %v11591_v49 = vadd.f32 %v3564_v56, %v11233_v15  ;;  %v11594_v2 = vadd.f32 %v3718_v50, %v15125_v37  ;;  %v11605_v41 = vpop.f32.mrf.mxu1  ;;  %v15135_v51 = vld [vmem:[#allocation143_spill] sm:$0xff] }
 0x2e1   : > { %v11597_v27 = vadd.f32 %v3872_v12, %v15127_v28  ;;  %v11600_v53 = vadd.f32 %v4026_v20, %v15129_v58  ;;  %v11603_v29 = vadd.f32 %v4180_v10, %v15131_v59  ;;  %15133 = vst [vmem:[#allocation46_spill] sm:$0xff] %v11605_v41  ;;  %v3105_v42 = vmul.f32 %v15110_v55, %v11385_v9  ;;  %v11615_v0 = vpop.f32.mrf.mxu0  ;;  %v15137_v58 = vld [vmem:[#allocation144_spill] sm:$0xff] }
 0x2e2   : > { %15122 = vst [vmem:[#allocation38_spill] sm:$0xff] %v11585_v44  ;;  %15123 = vst [vmem:[#allocation39_spill] sm:$0xff] %v11588_v40  ;;  %v3259_v15 = vmul.f32 %v15111_v52, %v11385_v9  ;;  %v3413_v30 = vmul.f32 %v15112_v5, %v11385_v9  ;;  %v3567_v28 = vmul.f32 %v15113_v8, %v11385_v9  ;;  %v9089_v10 = vpop.f32.mrf.mxu1  ;;  %v15145_v40 = vld [vmem:[#allocation216_spill] sm:$0xff] }
 0x2e3   : > { %15124 = vst [vmem:[#allocation40_spill] sm:$0xff] %v11591_v49  ;;  %15126 = vst [vmem:[#allocation41_spill] sm:$0xff] %v11594_v2  ;;  %v3721_v56 = vmul.f32 %v15115_v3, %v11385_v9  ;;  %v3875_v50 = vmul.f32 %v15116_v25, %v11385_v9  ;;  %v4029_v12 = vmul.f32 %v15117_v60, %v11385_v9  ;;  %v15143_v2 = vld [vmem:[#allocation147_spill] sm:$0xff] }
 0x2e4   : > { %15128 = vst [vmem:[#allocation42_spill] sm:$0xff] %v11597_v27  ;;  %15130 = vst [vmem:[#allocation43_spill] sm:$0xff] %v11600_v53  ;;  %v4183_v20 = vmul.f32 %v15118_v17, %v11385_v9  ;;  %v11626_v37 = vadd.f32 %v3105_v42, %v15135_v51  ;;  %v11629_v59 = vadd.f32 %v3259_v15, %v15137_v58  ;;  %v9084_v27 = vpop.f32.mrf.mxu0  ;;  %v15147_v9 = vld [vmem:[#allocation148_spill] sm:$0xff]  ;;  %v15149_v42 = vld [vmem:[#allocation149_spill] sm:$0xff] }
 0x2e5   : > { %15132 = vst [vmem:[#allocation45_spill] sm:$0xff] %v11603_v29  ;;  %15134 = vst [vmem:[#allocation208_spill] sm:$0xff] %v11615_v0  ;;  %v15139_v0 = vld [vmem:[#allocation145_spill] sm:$0xff]  ;;  %v15141_v29 = vld [vmem:[#allocation146_spill] sm:$0xff]  ;;  %v11638_v49 = vadd.f32 %v3721_v56, %v15143_v2  ;;  %v11641_v44 = vadd.f32 %v3875_v50, %v15145_v40  ;;  %v11644_v10 = vadd.f32 %v4029_v12, %v15147_v9 }
 0x2e6   : > { %15136 = vst [vmem:[#allocation209_spill] sm:$0xff] %v11626_v37  ;;  %15138 = vst [vmem:[#allocation210_spill] sm:$0xff] %v11629_v59  ;;  %v11632_v41 = vadd.f32 %v3413_v30, %v15139_v0  ;;  %v11635_v53 = vadd.f32 %v3567_v28, %v15141_v29  ;;  %v11647_v51 = vadd.f32 %v4183_v20, %v15149_v42  ;;  %v15151_v15 = vld [vmem:[#allocation217_spill] sm:$0xff]  ;;  %v11657_v40 = vpop.f32.mrf.mxu0  ;;  %v11659_v28 = vpop.f32.mrf.mxu1  ;;  %v15154_v20 = vld [vmem:[#allocation212_spill] sm:$0xff] }
 0x2e7   : > { %15144 = vst [vmem:[#allocation144_spill] sm:$0xff] %v11638_v49  ;;  %15146 = vst [vmem:[#allocation145_spill] sm:$0xff] %v11641_v44  ;;  %v3104_v30 = vmul.f32 %v15110_v55, %v15151_v15  ;;  %v3258_v29 = vmul.f32 %v15111_v52, %v15151_v15  ;;  %v3412_v27 = vmul.f32 %v15112_v5, %v15151_v15  ;;  %v15155_v9 = vld [vmem:[#allocation213_spill] sm:$0xff]  ;;  %v15159_v59 = vld [vmem:[#allocation139_spill] sm:$0xff] }
 0x2e8   : > { %15140 = vst [vmem:[#allocation211_spill] sm:$0xff] %v11632_v41  ;;  %15142 = vst [vmem:[#allocation143_spill] sm:$0xff] %v11635_v53  ;;  %v3566_v2 = vmul.f32 %v15113_v8, %v15151_v15  ;;  %v3720_v0 = vmul.f32 %v15115_v3, %v15151_v15  ;;  %v3874_v56 = vmul.f32 %v15116_v25, %v15151_v15  ;;  %v9094_v44 = vpop.f32.mrf.mxu0  ;;  %v9099_v49 = vpop.f32.mrf.mxu1  ;;  %v15158_v53 = vld [vmem:[#allocation138_spill] sm:$0xff] }
 0x2e9   : > { %15148 = vst [vmem:[#allocation146_spill] sm:$0xff] %v11644_v10  ;;  %15150 = vst [vmem:[#allocation147_spill] sm:$0xff] %v11647_v51  ;;  %v4028_v50 = vmul.f32 %v15117_v60, %v15151_v15  ;;  %v4182_v12 = vmul.f32 %v15118_v17, %v15151_v15  ;;  %v11670_v58 = vadd.f32 %v3104_v30, %v15154_v20  ;;  %v15157_v51 = vld [vmem:[#allocation215_spill] sm:$0xff]  ;;  %v15160_v15 = vld [vmem:[#allocation140_spill] sm:$0xff] }
 0x2ea   : > { %15152 = vst [vmem:[#allocation216_spill] sm:$0xff] %v11657_v40  ;;  %15153 = vst [vmem:[#allocation148_spill] sm:$0xff] %v11659_v28  ;;  %v11673_v42 = vadd.f32 %v3258_v29, %v15155_v9  ;;  %v15156_v40 = vld [vmem:[#allocation214_spill] sm:$0xff]  ;;  %v11679_v10 = vadd.f32 %v3566_v2, %v15157_v51  ;;  %v11682_v41 = vadd.f32 %v3720_v0, %v15158_v53  ;;  %v15161_v20 = vld [vmem:[#allocation141_spill] sm:$0xff] }
 0x2eb   : > { %v11676_v28 = vadd.f32 %v3412_v27, %v15156_v40  ;;  %v11685_v37 = vadd.f32 %v3874_v56, %v15159_v59  ;;  %v11688_v30 = vadd.f32 %v4028_v50, %v15160_v15  ;;  %v11691_v29 = vadd.f32 %v4182_v12, %v15161_v20  ;;  %v15168_v20 = vld [vmem:[#allocation158_spill] sm:$0xff] }
 0x2ec   : > { %v3107_v27 = vmul.f32 %v15110_v55, %v11429_v7  ;;  %v3261_v51 = vmul.f32 %v15111_v52, %v11429_v7  ;;  %v3415_v44 = vmul.f32 %v15112_v5, %v11429_v7  ;;  %v3569_v49 = vmul.f32 %v15113_v8, %v11429_v7 }
 0x2ed   : > { %v3723_v53 = vmul.f32 %v15115_v3, %v11429_v7  ;;  %v3877_v59 = vmul.f32 %v15116_v25, %v11429_v7  ;;  %v4031_v2 = vmul.f32 %v15117_v60, %v11429_v7  ;;  %v4185_v40 = vmul.f32 %v15118_v17, %v11429_v7 }
 0x2ee   : > { %v11710_v0 = vadd.f32 %v3107_v27, %v11406_v47  ;;  %v11713_v56 = vadd.f32 %v3261_v51, %v11409_v14  ;;  %v11716_v50 = vadd.f32 %v3415_v44, %v11412_v35  ;;  %v11719_v12 = vadd.f32 %v3569_v49, %v11415_v26  ;;  %v15170_v47 = vld [vmem:[#allocation159_spill] sm:$0xff]  ;;  %v15172_v14 = vld [vmem:[#allocation160_spill] sm:$0xff] }
 0x2ef   : > { %v11722_v9 = vadd.f32 %v3723_v53, %v11418_v46  ;;  %v11725_v15 = vadd.f32 %v3877_v59, %v11421_v54  ;;  %v11728_v7 = vadd.f32 %v4031_v2, %v15168_v20  ;;  %v11731_v27 = vadd.f32 %v4185_v40, %v15170_v47  ;;  %v15173_v59 = vld [vmem:[#allocation150_spill] sm:$0xff]  ;;  %v15174_v40 = vld [vmem:[#allocation151_spill] sm:$0xff]  ;;  %v15175_v47 = vld [vmem:[#allocation152_spill] sm:$0xff] }
 0x2f0   : > { %15162 = vst [vmem:[#allocation149_spill] sm:$0xff] %v11710_v0  ;;  %15163 = vst [vmem:[#allocation217_spill] sm:$0xff] %v11713_v56  ;;  %v3106_v51 = vmul.f32 %v15110_v55, %v15172_v14  ;;  %v3260_v35 = vmul.f32 %v15111_v52, %v15172_v14  ;;  %v3414_v26 = vmul.f32 %v15112_v5, %v15172_v14  ;;  %v15179_v0 = vld [vmem:[#allocation156_spill] sm:$0xff] }
 0x2f1   : > { %15164 = vst [vmem:[#allocation212_spill] sm:$0xff] %v11716_v50  ;;  %15165 = vst [vmem:[#allocation213_spill] sm:$0xff] %v11719_v12  ;;  %v3568_v46 = vmul.f32 %v15113_v8, %v15172_v14  ;;  %v3722_v54 = vmul.f32 %v15115_v3, %v15172_v14  ;;  %v3876_v44 = vmul.f32 %v15116_v25, %v15172_v14  ;;  %v15178_v50 = vld [vmem:[#allocation155_spill] sm:$0xff] }
 0x2f2   : > { %15166 = vst [vmem:[#allocation214_spill] sm:$0xff] %v11722_v9  ;;  %15167 = vst [vmem:[#allocation215_spill] sm:$0xff] %v11725_v15  ;;  %v4030_v49 = vmul.f32 %v15117_v60, %v15172_v14  ;;  %v4184_v53 = vmul.f32 %v15118_v17, %v15172_v14  ;;  %v11750_v2 = vadd.f32 %v3106_v51, %v15173_v59  ;;  %v15177_v9 = vld [vmem:[#allocation154_spill] sm:$0xff]  ;;  %v15180_v51 = vld [vmem:[#allocation157_spill] sm:$0xff] }
 0x2f3   : > { %15169 = vst [vmem:[#allocation138_spill] sm:$0xff] %v11728_v7  ;;  %15171 = vst [vmem:[#allocation139_spill] sm:$0xff] %v11731_v27  ;;  %v11753_v20 = vadd.f32 %v3260_v35, %v15174_v40  ;;  %v11756_v27 = vadd.f32 %v3414_v26, %v15175_v47  ;;  %v15176_v7 = vld [vmem:[#allocation153_spill] sm:$0xff]  ;;  %v11762_v12 = vadd.f32 %v3722_v54, %v15177_v9 }
 0x2f4   : > { %v11759_v15 = vadd.f32 %v3568_v46, %v15176_v7  ;;  %v11765_v56 = vadd.f32 %v3876_v44, %v15178_v50  ;;  %v11768_v14 = vadd.f32 %v4030_v49, %v15179_v0  ;;  %v11771_v59 = vadd.f32 %v4184_v53, %v15180_v51 }
 0x2f5   : > { %v3109_v35 = vmul.f32 %v15110_v55, %v11473_v43  ;;  %v3263_v26 = vmul.f32 %v15111_v52, %v11473_v43  ;;  %v3417_v7 = vmul.f32 %v15112_v5, %v11473_v43  ;;  %v3571_v9 = vmul.f32 %v15113_v8, %v11473_v43 }
 0x2f6   : > { %v3725_v50 = vmul.f32 %v15115_v3, %v11473_v43  ;;  %v3879_v0 = vmul.f32 %v15116_v25, %v11473_v43  ;;  %v4033_v46 = vmul.f32 %v15117_v60, %v11473_v43  ;;  %v4187_v54 = vmul.f32 %v15118_v17, %v11473_v43 }
 0x2f7   : > { %v11790_v44 = vadd.f32 %v3109_v35, %v11450_v24  ;;  %v11793_v49 = vadd.f32 %v3263_v26, %v11453_v16  ;;  %v11796_v53 = vadd.f32 %v3417_v7, %v11456_v21  ;;  %v11799_v40 = vadd.f32 %v3571_v9, %v11459_v45 }
 0x2f8   : > { %v11802_v47 = vadd.f32 %v3725_v50, %v11462_v1  ;;  %v11805_v51 = vadd.f32 %v3879_v0, %v11465_v23  ;;  %v11808_v43 = vadd.f32 %v4033_v46, %v11468_v57  ;;  %v11811_v24 = vadd.f32 %v4187_v54, %v11471_v61  ;;  %v15195_v54 = vld [vmem:[#allocation92_spill] sm:$0xff] }
 0x2f9   : > { %15181 = vst [vmem:[#allocation140_spill] sm:$0xff] %v11796_v53  ;;  %15182 = vst [vmem:[#allocation141_spill] sm:$0xff] %v11799_v40  ;;  %v3108_v16 = vmul.f32 %v15110_v55, %v11483_v63  ;;  %v3262_v21 = vmul.f32 %v15111_v52, %v11483_v63  ;;  %v3416_v45 = vmul.f32 %v15112_v5, %v11483_v63 }
 0x2fa   : > { %15183 = vst [vmem:[#allocation158_spill] sm:$0xff] %v11802_v47  ;;  %15184 = vst [vmem:[#allocation159_spill] sm:$0xff] %v11805_v51  ;;  %v3570_v1 = vmul.f32 %v15113_v8, %v11483_v63  ;;  %v3724_v23 = vmul.f32 %v15115_v3, %v11483_v63  ;;  %v3878_v57 = vmul.f32 %v15116_v25, %v11483_v63  ;;  %v15198_v51 = vld [vmem:[#allocation49_spill] sm:$0xff] }
 0x2fb   : > { %15185 = vst [vmem:[#allocation160_spill] sm:$0xff] %v11808_v43  ;;  %15186 = vst [vmem:[#allocation150_spill] sm:$0xff] %v11811_v24  ;;  %v4032_v61 = vmul.f32 %v15117_v60, %v11483_v63  ;;  %v4186_v55 = vmul.f32 %v15118_v17, %v11483_v63  ;;  %v11830_v52 = vadd.f32 %v3108_v16, %v11494_v33  ;;  %v15188_v17 = vld [vmem:[#allocation47_spill] sm:$0xff] }
 0x2fc   : > { %v11833_v5 = vadd.f32 %v3262_v21, %v11497_v34  ;;  %v11836_v8 = vadd.f32 %v3416_v45, %v11500_v13  ;;  %v11839_v3 = vadd.f32 %v3570_v1, %v11503_v36  ;;  %v11842_v25 = vadd.f32 %v3724_v23, %v11506_v18  ;;  %v15187_v34 = vld [vmem:[#allocation161_spill] sm:$0xff]  ;;  %v15189_v13 = vld [vmem:[#allocation48_spill] sm:$0xff]  ;;  %v15190_v36 = vld [vmem:[#allocation55_spill] sm:$0xff] }
 0x2fd   : > { %v11845_v60 = vadd.f32 %v3878_v57, %v11509_v38  ;;  %v11848_v63 = vadd.f32 %v4032_v61, %v11512_v39  ;;  %v11851_v33 = vadd.f32 %v4186_v55, %v11515_v48  ;;  %v3121_v35 = vmul.f32 %v15188_v17, %v15187_v34  ;;  %v15191_v18 = vld [vmem:[#allocation63_spill] sm:$0xff]  ;;  %v15192_v38 = vld [vmem:[#allocation69_spill] sm:$0xff]  ;;  %v15193_v39 = vld [vmem:[#allocation76_spill] sm:$0xff] }
 0x2fe   : > { %v3275_v26 = vmul.f32 %v15189_v13, %v15187_v34  ;;  %v3429_v7 = vmul.f32 %v15190_v36, %v15187_v34  ;;  %v3583_v9 = vmul.f32 %v15191_v18, %v15187_v34  ;;  %v3737_v50 = vmul.f32 %v15192_v38, %v15187_v34  ;;  %v15194_v48 = vld [vmem:[#allocation84_spill] sm:$0xff]  ;;  %v15196_v24 = vld [vmem:[#allocation163_spill] sm:$0xff] }
 0x2ff   : > { %v3891_v0 = vmul.f32 %v15193_v39, %v15187_v34  ;;  %v4045_v46 = vmul.f32 %v15194_v48, %v15187_v34  ;;  %v4199_v16 = vmul.f32 %v15195_v54, %v15187_v34  ;;  %v3129_v21 = vadd.f32 %v3121_v35, %v11538_v22  ;;  %v15199_v34 = vld [vmem:[#allocation51_spill] sm:$0xff]  ;;  %v15200_v22 = vld [vmem:[#allocation60_spill] sm:$0xff] }
 0x300   : > { %v3283_v45 = vadd.f32 %v3275_v26, %v11541_v31  ;;  %v3437_v1 = vadd.f32 %v3429_v7, %v11544_v32  ;;  %v3591_v23 = vadd.f32 %v3583_v9, %v11547_v4  ;;  %v3745_v57 = vadd.f32 %v3737_v50, %v11550_v11  ;;  %v15201_v31 = vld [vmem:[#allocation67_spill] sm:$0xff]  ;;  %v15203_v4 = vld [vmem:[#allocation162_spill] sm:$0xff] }
 0x301   : > { %v3899_v61 = vadd.f32 %v3891_v0, %v11553_v62  ;;  %v4053_v55 = vadd.f32 %v4045_v46, %v11556_v6  ;;  %v11877_v43 = vadd.f32 %v4199_v16, %v15196_v24  ;;  %v3147_v47 = vadd.f32 %v15198_v51, %v3129_v21  ;;  %v15202_v32 = vld [vmem:[#allocation71_spill] sm:$0xff]  ;;  %v15205_v62 = vld [vmem:[#allocation57_spill] sm:$0xff]  ;;  %v15207_v6 = vld [vmem:[#allocation186_spill] sm:$0xff] }
 0x302   : > { %v3301_v40 = vadd.f32 %v15199_v34, %v3283_v45  ;;  %v3455_v35 = vadd.f32 %v15200_v22, %v3437_v1  ;;  %v3609_v26 = vadd.f32 %v15201_v31, %v3591_v23  ;;  %v3763_v7 = vadd.f32 %v15202_v32, %v3745_v57  ;;  %v15204_v9 = vld [vmem:[#allocation191_spill] sm:$0xff]  ;;  %v15208_v24 = vld [vmem:[#allocation65_spill] sm:$0xff]  ;;  %v15210_v51 = vld [vmem:[#allocation50_spill] sm:$0xff] }
 0x303   : > { %15197 = vst [vmem:[#allocation151_spill] sm:$0xff] %v11877_v43  ;;  %v3120_v11 = vmul.f32 %v15188_v17, %v15203_v4  ;;  %v11888_v50 = vmul.f32 %v15205_v62, %v15204_v9  ;;  %v11892_v0 = vmul.f32 %v15208_v24, %v15207_v6  ;;  %v3165_v46 = vadd.f32 %v15210_v51, %v3147_v47  ;;  %v15211_v16 = vld [vmem:[#allocation52_spill] sm:$0xff]  ;;  %v15212_v45 = vld [vmem:[#allocation83_spill] sm:$0xff]  ;;  %v15216_v34 = vld [vmem:[#allocation61_spill] sm:$0xff] }
 0x304   : > { %v3319_v21 = vadd.f32 %v15211_v16, %v3301_v40  ;;  %v11897_v1 = vadd.f32 %v15212_v45, %v3899_v61  ;;  %v15214_v23 = vld [vmem:[#allocation91_spill] sm:$0xff]  ;;  %v3473_v22 = vadd.f32 %v15216_v34, %v3455_v35  ;;  %v3274_v32 = vmul.f32 %v15189_v13, %v15203_v4  ;;  %v15217_v62 = vld [vmem:[#allocation53_spill] sm:$0xff]  ;;  %v15219_v40 = vld [vmem:[#allocation68_spill] sm:$0xff] }
 0x305   : > { %15206 = vst [vmem:[#allocation152_spill] sm:$0xff] %v11888_v50  ;;  %15209 = vst [vmem:[#allocation153_spill] sm:$0xff] %v11892_v0  ;;  %v11900_v57 = vadd.f32 %v15214_v23, %v4053_v55  ;;  %v3128_v31 = vadd.f32 %v3120_v11, %v11582_v19  ;;  %v3428_v9 = vmul.f32 %v15190_v36, %v15203_v4  ;;  %v15221_v61 = vld [vmem:[#allocation75_spill] sm:$0xff]  ;;  %v15223_v35 = vld [vmem:[#allocation56_spill] sm:$0xff] }
 0x306   : > { %15213 = vst [vmem:[#allocation154_spill] sm:$0xff] %v11897_v1  ;;  %v11909_v47 = vadd.f32 %v15217_v62, %v3165_v46  ;;  %v11912_v6 = vadd.f32 %v15219_v40, %v3609_v26  ;;  %v11915_v24 = vadd.f32 %v15221_v61, %v3763_v7  ;;  %v3582_v55 = vmul.f32 %v15191_v18, %v15203_v4  ;;  %v15224_v11 = vld [vmem:[#allocation38_spill] sm:$0xff]  ;;  %v15225_v16 = vld [vmem:[#allocation39_spill] sm:$0xff]  ;;  %v15226_v46 = vld [vmem:[#allocation40_spill] sm:$0xff] }
 0x307   : > { %15215 = vst [vmem:[#allocation155_spill] sm:$0xff] %v11900_v57  ;;  %v3146_v19 = vadd.f32 %v15223_v35, %v3128_v31  ;;  %v3282_v51 = vadd.f32 %v3274_v32, %v15224_v11  ;;  %v3436_v45 = vadd.f32 %v3428_v9, %v15225_v16  ;;  %v3736_v23 = vmul.f32 %v15192_v38, %v15203_v4  ;;  %v15227_v40 = vld [vmem:[#allocation59_spill] sm:$0xff]  ;;  %v15228_v61 = vld [vmem:[#allocation73_spill] sm:$0xff]  ;;  %v15229_v35 = vld [vmem:[#allocation78_spill] sm:$0xff] }
 0x308   : > { %15218 = vst [vmem:[#allocation156_spill] sm:$0xff] %v11909_v47  ;;  %15220 = vst [vmem:[#allocation157_spill] sm:$0xff] %v11912_v6  ;;  %v3590_v34 = vadd.f32 %v3582_v55, %v15226_v46  ;;  %v3890_v26 = vmul.f32 %v15193_v39, %v15203_v4  ;;  %v4044_v7 = vmul.f32 %v15194_v48, %v15203_v4  ;;  %v15230_v11 = vld [vmem:[#allocation41_spill] sm:$0xff]  ;;  %v15231_v43 = vld [vmem:[#allocation82_spill] sm:$0xff] }
 0x309   : > { %15222 = vst [vmem:[#allocation161_spill] sm:$0xff] %v11915_v24  ;;  %v4198_v62 = vmul.f32 %v15195_v54, %v15203_v4  ;;  %v3164_v31 = vadd.f32 %v15227_v40, %v3146_v19  ;;  %v3300_v32 = vadd.f32 %v15228_v61, %v3282_v51  ;;  %v3454_v9 = vadd.f32 %v15229_v35, %v3436_v45  ;;  %v15232_v55 = vld [vmem:[#allocation42_spill] sm:$0xff]  ;;  %v15233_v1 = vld [vmem:[#allocation43_spill] sm:$0xff]  ;;  %v15234_v6 = vld [vmem:[#allocation45_spill] sm:$0xff] }
 0x30a   : > { %v3744_v16 = vadd.f32 %v3736_v23, %v15230_v11  ;;  %v3608_v57 = vadd.f32 %v15231_v43, %v3590_v34  ;;  %v3898_v46 = vadd.f32 %v3890_v26, %v15232_v55  ;;  %v4052_v24 = vadd.f32 %v4044_v7, %v15233_v1  ;;  %v15236_v0 = vld [vmem:[#allocation54_spill] sm:$0xff]  ;;  %v15243_v61 = vld [vmem:[#allocation80_spill] sm:$0xff]  ;;  %v15244_v34 = vld [vmem:[#allocation85_spill] sm:$0xff] }
 0x30b   : > { %v11939_v47 = vadd.f32 %v4198_v62, %v15234_v6  ;;  %v11942_v50 = vadd.f32 %v15236_v0, %v3319_v21  ;;  %v15238_v4 = vld [vmem:[#allocation62_spill] sm:$0xff]  ;;  %v3472_v43 = vadd.f32 %v15243_v61, %v3454_v9  ;;  %v15247_v6 = vld [vmem:[#allocation164_spill] sm:$0xff]  ;;  %v15248_v0 = vld [vmem:[#allocation77_spill] sm:$0xff] }
 0x30c   : > { %v11945_v19 = vadd.f32 %v15238_v4, %v3473_v22  ;;  %v15240_v51 = vld [vmem:[#allocation70_spill] sm:$0xff]  ;;  %v11953_v26 = vadd.f32 %v15244_v34, %v3608_v57  ;;  %v3123_v62 = vmul.f32 %v15188_v17, %v15247_v6  ;;  %v15250_v22 = vld [vmem:[#allocation88_spill] sm:$0xff]  ;;  %v15254_v9 = vld [vmem:[#allocation209_spill] sm:$0xff]  ;;  %v3585_v55 = vmul.f32 %v15191_v18, %v15247_v6 }
 0x30d   : > { %15235 = vst [vmem:[#allocation47_spill] sm:$0xff] %v11939_v47  ;;  %15237 = vst [vmem:[#allocation48_spill] sm:$0xff] %v11942_v50  ;;  %v11948_v40 = vadd.f32 %v15240_v51, %v3164_v31  ;;  %v15242_v45 = vld [vmem:[#allocation74_spill] sm:$0xff]  ;;  %v11962_v35 = vadd.f32 %v15250_v22, %v3898_v46  ;;  %v15252_v31 = vld [vmem:[#allocation93_spill] sm:$0xff]  ;;  %v3739_v4 = vmul.f32 %v15192_v38, %v15247_v6 }
 0x30e   : > { %15239 = vst [vmem:[#allocation55_spill] sm:$0xff] %v11945_v19  ;;  %v3318_v23 = vadd.f32 %v15242_v45, %v3300_v32  ;;  %15245 = vst [vmem:[#allocation69_spill] sm:$0xff] %v11953_v26  ;;  %v15246_v1 = vld [vmem:[#allocation86_spill] sm:$0xff]  ;;  %v11965_v11 = vadd.f32 %v15252_v31, %v4052_v24  ;;  %v3277_v32 = vmul.f32 %v15189_v13, %v15247_v6  ;;  %v15256_v61 = vld [vmem:[#allocation89_spill] sm:$0xff] }
 0x30f   : > { %15241 = vst [vmem:[#allocation63_spill] sm:$0xff] %v11948_v40  ;;  %v3762_v7 = vadd.f32 %v15246_v1, %v3744_v16  ;;  %15251 = vst [vmem:[#allocation84_spill] sm:$0xff] %v11962_v35  ;;  %v3131_v57 = vadd.f32 %v3123_v62, %v15254_v9  ;;  %v3431_v16 = vmul.f32 %v15190_v36, %v15247_v6  ;;  %v15255_v51 = vld [vmem:[#allocation210_spill] sm:$0xff]  ;;  %v15257_v1 = vld [vmem:[#allocation211_spill] sm:$0xff] }
 0x310   : > { %v11959_v21 = vadd.f32 %v15248_v0, %v3318_v23  ;;  %15253 = vst [vmem:[#allocation92_spill] sm:$0xff] %v11965_v11  ;;  %v3285_v46 = vadd.f32 %v3277_v32, %v15255_v51  ;;  %v3893_v24 = vmul.f32 %v15193_v39, %v15247_v6  ;;  %v4047_v45 = vmul.f32 %v15194_v48, %v15247_v6  ;;  %v15258_v0 = vld [vmem:[#allocation143_spill] sm:$0xff]  ;;  %v15259_v31 = vld [vmem:[#allocation144_spill] sm:$0xff]  ;;  %v15261_v32 = vld [vmem:[#allocation145_spill] sm:$0xff] }
 0x311   : > { %v4201_v23 = vmul.f32 %v15195_v54, %v15247_v6  ;;  %v3149_v34 = vadd.f32 %v15256_v61, %v3131_v57  ;;  %v3439_v62 = vadd.f32 %v3431_v16, %v15257_v1  ;;  %v3593_v22 = vadd.f32 %v3585_v55, %v15258_v0  ;;  %v15260_v19 = vld [vmem:[#allocation95_spill] sm:$0xff]  ;;  %v15262_v47 = vld [vmem:[#allocation146_spill] sm:$0xff]  ;;  %v15267_v57 = vld [vmem:[#allocation101_spill] sm:$0xff] }
 0x312   : > { %15249 = vst [vmem:[#allocation76_spill] sm:$0xff] %v11959_v21  ;;  %v3747_v9 = vadd.f32 %v3739_v4, %v15259_v31  ;;  %v3303_v50 = vadd.f32 %v15260_v19, %v3285_v46  ;;  %v3901_v51 = vadd.f32 %v3893_v24, %v15261_v32  ;;  %v4055_v11 = vadd.f32 %v4047_v45, %v15262_v47  ;;  %v15263_v35 = vld [vmem:[#allocation147_spill] sm:$0xff]  ;;  %v15265_v21 = vld [vmem:[#allocation90_spill] sm:$0xff]  ;;  %v15269_v55 = vld [vmem:[#allocation81_spill] sm:$0xff] }
 0x313   : > { %v11991_v26 = vadd.f32 %v4201_v23, %v15263_v35  ;;  %v3167_v40 = vadd.f32 %v15265_v21, %v3149_v34  ;;  %v15266_v6 = vld [vmem:[#allocation98_spill] sm:$0xff]  ;;  %v3611_v61 = vadd.f32 %v15267_v57, %v3593_v22  ;;  %v15268_v16 = vld [vmem:[#allocation103_spill] sm:$0xff]  ;;  %v11998_v0 = vadd.f32 %v15269_v55, %v3472_v43  ;;  %v15271_v46 = vld [vmem:[#allocation96_spill] sm:$0xff] }
 0x314   : > { %v3457_v53 = vadd.f32 %v15266_v6, %v3439_v62  ;;  %v3765_v1 = vadd.f32 %v15268_v16, %v3747_v9  ;;  %v15270_v4 = vld [vmem:[#allocation87_spill] sm:$0xff]  ;;  %v3321_v24 = vadd.f32 %v15271_v46, %v3303_v50  ;;  %v15272_v47 = vld [vmem:[#allocation165_spill] sm:$0xff]  ;;  %v15273_v45 = vld [vmem:[#allocation94_spill] sm:$0xff] }
 0x315   : > { %15264 = vst [vmem:[#allocation163_spill] sm:$0xff] %v11991_v26  ;;  %v12001_v19 = vadd.f32 %v15270_v4, %v3762_v7  ;;  %v3122_v35 = vmul.f32 %v15188_v17, %v15272_v47  ;;  %v12007_v23 = vadd.f32 %v15273_v45, %v3167_v40  ;;  %v15275_v21 = vld [vmem:[#allocation99_spill] sm:$0xff]  ;;  %v15276_v62 = vld [vmem:[#allocation105_spill] sm:$0xff]  ;;  %v15278_v31 = vld [vmem:[#allocation106_spill] sm:$0xff]  ;;  %v3276_v50 = vmul.f32 %v15189_v13, %v15272_v47 }
 0x316   : > { %v3475_v34 = vadd.f32 %v15275_v21, %v3457_v53  ;;  %v12011_v22 = vadd.f32 %v15276_v62, %v3901_v51  ;;  %v12014_v9 = vadd.f32 %v15278_v31, %v4055_v11  ;;  %v15280_v43 = vld [vmem:[#allocation102_spill] sm:$0xff]  ;;  %v3430_v40 = vmul.f32 %v15190_v36, %v15272_v47  ;;  %v15282_v6 = vld [vmem:[#allocation104_spill] sm:$0xff]  ;;  %v15286_v31 = vld [vmem:[#allocation109_spill] sm:$0xff] }
 0x317   : > { %15274 = vst [vmem:[#allocation49_spill] sm:$0xff] %v12007_v23  ;;  %v12017_v32 = vadd.f32 %v15280_v43, %v3611_v61  ;;  %v3130_v7 = vadd.f32 %v3122_v35, %v11670_v58  ;;  %v12025_v57 = vadd.f32 %v15282_v6, %v3765_v1  ;;  %v3584_v53 = vmul.f32 %v15191_v18, %v15272_v47  ;;  %v15284_v61 = vld [vmem:[#allocation107_spill] sm:$0xff]  ;;  %v15285_v21 = vld [vmem:[#allocation108_spill] sm:$0xff] }
 0x318   : > { %15277 = vst [vmem:[#allocation51_spill] sm:$0xff] %v12011_v22  ;;  %15279 = vst [vmem:[#allocation60_spill] sm:$0xff] %v12014_v9  ;;  %v3738_v11 = vmul.f32 %v15192_v38, %v15272_v47  ;;  %v3892_v51 = vmul.f32 %v15193_v39, %v15272_v47  ;;  %v3284_v16 = vadd.f32 %v3276_v50, %v11673_v42  ;;  %v15288_v50 = vld [vmem:[#allocation97_spill] sm:$0xff]  ;;  %v15290_v6 = vld [vmem:[#allocation112_spill] sm:$0xff] }
 0x319   : > { %15281 = vst [vmem:[#allocation67_spill] sm:$0xff] %v12017_v32  ;;  %15283 = vst [vmem:[#allocation71_spill] sm:$0xff] %v12025_v57  ;;  %v3148_v58 = vadd.f32 %v15284_v61, %v3130_v7  ;;  %v3438_v55 = vadd.f32 %v3430_v40, %v11676_v28  ;;  %v4046_v4 = vmul.f32 %v15194_v48, %v15272_v47  ;;  %v15287_v7 = vld [vmem:[#allocation110_spill] sm:$0xff]  ;;  %v15310_v9 = vld [vmem:[#allocation125_spill] sm:$0xff] }
 0x31a   : > { %v3592_v1 = vadd.f32 %v3584_v53, %v11679_v10  ;;  %v3746_v46 = vadd.f32 %v3738_v11, %v11682_v41  ;;  %v3900_v35 = vadd.f32 %v3892_v51, %v11685_v37  ;;  %v4200_v45 = vmul.f32 %v15195_v54, %v15272_v47  ;;  %v15291_v53 = vld [vmem:[#allocation113_spill] sm:$0xff]  ;;  %v15292_v11 = vld [vmem:[#allocation100_spill] sm:$0xff]  ;;  %v15294_v51 = vld [vmem:[#allocation111_spill] sm:$0xff] }
 0x31b   : > { %v3166_v62 = vadd.f32 %v15285_v21, %v3148_v58  ;;  %v3302_v43 = vadd.f32 %v15286_v31, %v3284_v16  ;;  %v3456_v42 = vadd.f32 %v15287_v7, %v3438_v55  ;;  %v4054_v28 = vadd.f32 %v4046_v4, %v11688_v30  ;;  %v15295_v58 = vld [vmem:[#allocation115_spill] sm:$0xff]  ;;  %v15296_v55 = vld [vmem:[#allocation114_spill] sm:$0xff] }
 0x31c   : > { %v12048_v40 = vadd.f32 %v15288_v50, %v3321_v24  ;;  %v3610_v10 = vadd.f32 %v15290_v6, %v3592_v1  ;;  %v3764_v41 = vadd.f32 %v15291_v53, %v3746_v46  ;;  %v12053_v37 = vadd.f32 %v4200_v45, %v11691_v29  ;;  %v15297_v24 = vld [vmem:[#allocation116_spill] sm:$0xff]  ;;  %v15298_v21 = vld [vmem:[#allocation118_spill] sm:$0xff]  ;;  %v15300_v45 = vld [vmem:[#allocation117_spill] sm:$0xff] }
 0x31d   : > { %v12056_v47 = vadd.f32 %v15292_v11, %v3475_v34  ;;  %v12059_v61 = vadd.f32 %v15294_v51, %v3166_v62  ;;  %v3320_v16 = vadd.f32 %v15295_v58, %v3302_v43  ;;  %v12063_v30 = vadd.f32 %v15296_v55, %v3900_v35  ;;  %v15299_v46 = vld [vmem:[#allocation46_spill] sm:$0xff]  ;;  %v15301_v62 = vld [vmem:[#allocation121_spill] sm:$0xff]  ;;  %v15304_v11 = vld [vmem:[#allocation212_spill] sm:$0xff] }
 0x31e   : > { %15289 = vst [vmem:[#allocation162_spill] sm:$0xff] %v12048_v40  ;;  %v3474_v4 = vadd.f32 %v15297_v24, %v3456_v42  ;;  %v12067_v1 = vadd.f32 %v15298_v21, %v4054_v28  ;;  %v3125_v29 = vmul.f32 %v15188_v17, %v15299_v46  ;;  %v3279_v34 = vmul.f32 %v15189_v13, %v15299_v46  ;;  %v15302_v42 = vld [vmem:[#allocation149_spill] sm:$0xff]  ;;  %v15306_v21 = vld [vmem:[#allocation122_spill] sm:$0xff] }
 0x31f   : > { %15293 = vst [vmem:[#allocation191_spill] sm:$0xff] %v12056_v47  ;;  %v12074_v31 = vadd.f32 %v15300_v45, %v3610_v10  ;;  %v12077_v7 = vadd.f32 %v15301_v62, %v3764_v41  ;;  %v3433_v35 = vmul.f32 %v15190_v36, %v15299_v46  ;;  %v3587_v43 = vmul.f32 %v15191_v18, %v15299_v46  ;;  %v15303_v50 = vld [vmem:[#allocation217_spill] sm:$0xff]  ;;  %v15307_v45 = vld [vmem:[#allocation124_spill] sm:$0xff]  ;;  %v15308_v62 = vld [vmem:[#allocation214_spill] sm:$0xff] }
 0x320   : > { %v3133_v28 = vadd.f32 %v3125_v29, %v15302_v42  ;;  %v3287_v6 = vadd.f32 %v3279_v34, %v15303_v50  ;;  %v3741_v53 = vmul.f32 %v15192_v38, %v15299_v46  ;;  %v3895_v10 = vmul.f32 %v15193_v39, %v15299_v46  ;;  %v15305_v41 = vld [vmem:[#allocation213_spill] sm:$0xff]  ;;  %v15309_v50 = vld [vmem:[#allocation215_spill] sm:$0xff]  ;;  %v15311_v57 = vld [vmem:[#allocation126_spill] sm:$0xff] }
 0x321   : > { %v3441_v51 = vadd.f32 %v3433_v35, %v15304_v11  ;;  %v3595_v58 = vadd.f32 %v3587_v43, %v15305_v41  ;;  %v4049_v55 = vmul.f32 %v15194_v48, %v15299_v46  ;;  %v4203_v24 = vmul.f32 %v15195_v54, %v15299_v46  ;;  %v15312_v11 = vld [vmem:[#allocation138_spill] sm:$0xff]  ;;  %v15313_v41 = vld [vmem:[#allocation139_spill] sm:$0xff] }
 0x322   : > { %v3151_v29 = vadd.f32 %v15306_v21, %v3133_v28  ;;  %v3305_v34 = vadd.f32 %v15307_v45, %v3287_v6  ;;  %v3749_v42 = vadd.f32 %v3741_v53, %v15308_v62  ;;  %v3903_v26 = vadd.f32 %v3895_v10, %v15309_v50  ;;  %v15315_v47 = vld [vmem:[#allocation119_spill] sm:$0xff]  ;;  %v15318_v45 = vld [vmem:[#allocation129_spill] sm:$0xff]  ;;  %v15319_v62 = vld [vmem:[#allocation120_spill] sm:$0xff] }
 0x323   : > { %v3459_v22 = vadd.f32 %v15310_v9, %v3441_v51  ;;  %v3613_v35 = vadd.f32 %v15311_v57, %v3595_v58  ;;  %v4057_v43 = vadd.f32 %v4049_v55, %v15312_v11  ;;  %v12103_v32 = vadd.f32 %v4203_v24, %v15313_v41  ;;  %v15316_v46 = vld [vmem:[#allocation123_spill] sm:$0xff]  ;;  %v15320_v9 = vld [vmem:[#allocation128_spill] sm:$0xff]  ;;  %v15321_v57 = vld [vmem:[#allocation130_spill] sm:$0xff] }
 0x324   : > { %v12106_v40 = vadd.f32 %v15315_v47, %v3320_v16  ;;  %v3169_v28 = vadd.f32 %v15316_v46, %v3151_v29  ;;  %v15317_v21 = vld [vmem:[#allocation127_spill] sm:$0xff]  ;;  %v3767_v53 = vadd.f32 %v15318_v45, %v3749_v42  ;;  %v12112_v10 = vadd.f32 %v15319_v62, %v3474_v4  ;;  %v15323_v55 = vld [vmem:[#allocation208_spill] sm:$0xff]  ;;  %v15326_v16 = vld [vmem:[#allocation133_spill] sm:$0xff] }
 0x325   : > { %15314 = vst [vmem:[#allocation57_spill] sm:$0xff] %v12103_v32  ;;  %v3323_v6 = vadd.f32 %v15317_v21, %v3305_v34  ;;  %v3477_v51 = vadd.f32 %v15320_v9, %v3459_v22  ;;  %v12116_v58 = vadd.f32 %v15321_v57, %v3903_v26  ;;  %v3124_v24 = vmul.f32 %v15188_v17, %v15323_v55  ;;  %v15324_v50 = vld [vmem:[#allocation131_spill] sm:$0xff]  ;;  %v15328_v34 = vld [vmem:[#allocation134_spill] sm:$0xff]  ;;  %v15330_v42 = vld [vmem:[#allocation132_spill] sm:$0xff] }
 0x326   : > { %v12121_v47 = vadd.f32 %v15324_v50, %v3169_v28  ;;  %v12124_v29 = vadd.f32 %v15326_v16, %v3613_v35  ;;  %v12127_v11 = vadd.f32 %v15328_v34, %v4057_v43  ;;  %v3278_v4 = vmul.f32 %v15189_v13, %v15323_v55  ;;  %v15333_v57 = vld [vmem:[#allocation167_spill] sm:$0xff]  ;;  %v15334_v34 = vld [vmem:[#allocation142_spill] sm:$0xff] }
 0x327   : > { %15322 = vst [vmem:[#allocation186_spill] sm:$0xff] %v12116_v58  ;;  %v12132_v22 = vadd.f32 %v15330_v42, %v3323_v6  ;;  %v3132_v26 = vadd.f32 %v3124_v24, %v11750_v2  ;;  %v3432_v41 = vmul.f32 %v15190_v36, %v15323_v55  ;;  %v3586_v46 = vmul.f32 %v15191_v18, %v15323_v55  ;;  %v15332_v6 = vld [vmem:[#allocation137_spill] sm:$0xff] }
 0x328   : > { %15325 = vst [vmem:[#allocation65_spill] sm:$0xff] %v12121_v47  ;;  %15327 = vst [vmem:[#allocation50_spill] sm:$0xff] %v12124_v29  ;;  %v3286_v35 = vadd.f32 %v3278_v4, %v11753_v20  ;;  %v3740_v43 = vmul.f32 %v15192_v38, %v15323_v55  ;;  %v3894_v28 = vmul.f32 %v15193_v39, %v15323_v55  ;;  %v15335_v42 = vld [vmem:[#allocation169_spill] sm:$0xff]  ;;  %v12499_v29 = vstv %s12322_s9  ;;  %s12705_s9 = sld [smem:[#allocation7 + $0x180]] }
 0x329   : > { %15329 = vst [vmem:[#allocation52_spill] sm:$0xff] %v12127_v11  ;;  %15331 = vst [vmem:[#allocation83_spill] sm:$0xff] %v12132_v22  ;;  %v4048_v21 = vmul.f32 %v15194_v48, %v15323_v55  ;;  %v3150_v45 = vadd.f32 %v15332_v6, %v3132_v26  ;;  %v3440_v2 = vadd.f32 %v3432_v41, %v11756_v27  ;;  %v15336_v26 = vld [vmem:[#allocation172_spill] sm:$0xff] }
 0x32a   : > { %v3594_v62 = vadd.f32 %v3586_v46, %v11759_v15  ;;  %v4202_v9 = vmul.f32 %v15195_v54, %v15323_v55  ;;  %v3304_v20 = vadd.f32 %v15333_v57, %v3286_v35  ;;  %v3748_v24 = vadd.f32 %v3740_v43, %v11762_v12  ;;  %v15338_v15 = vld [vmem:[#allocation135_spill] sm:$0xff]  ;;  %v15340_v55 = vld [vmem:[#allocation136_spill] sm:$0xff]  ;;  %v15352_v57 = vld [vmem:[#allocation178_spill] sm:$0xff]  ;;  %15438 = vst [vmem:[#allocation101_spill] sm:$0xff] %v12499_v29 }
 0x32b   : > { %v3902_v50 = vadd.f32 %v3894_v28, %v11765_v56  ;;  %v4056_v16 = vadd.f32 %v4048_v21, %v11768_v14  ;;  %v3168_v4 = vadd.f32 %v15334_v34, %v3150_v45  ;;  %v3458_v32 = vadd.f32 %v15335_v42, %v3440_v2  ;;  %v15342_v12 = vld [vmem:[#allocation168_spill] sm:$0xff]  ;;  %v15343_v56 = vld [vmem:[#allocation175_spill] sm:$0xff]  ;;  %v15344_v14 = vld [vmem:[#allocation166_spill] sm:$0xff] }
 0x32c   : > { %v3612_v6 = vadd.f32 %v15336_v26, %v3594_v62  ;;  %v12159_v27 = vadd.f32 %v4202_v9, %v11771_v59  ;;  %v12162_v41 = vadd.f32 %v15338_v15, %v3477_v51  ;;  %v12165_v46 = vadd.f32 %v15340_v55, %v3767_v53  ;;  %v15346_v21 = vld [vmem:[#allocation171_spill] sm:$0xff]  ;;  %v15347_v2 = vld [vmem:[#allocation177_spill] sm:$0xff]  ;;  %v15349_v62 = vld [vmem:[#allocation216_spill] sm:$0xff] }
 0x32d   : > { %v3322_v35 = vadd.f32 %v15342_v12, %v3304_v20  ;;  %v3766_v43 = vadd.f32 %v15343_v56, %v3748_v24  ;;  %v12172_v28 = vadd.f32 %v15344_v14, %v3168_v4  ;;  %v3476_v45 = vadd.f32 %v15346_v21, %v3458_v32  ;;  %v15350_v53 = vld [vmem:[#allocation173_spill] sm:$0xff] }
 0x32e   : > { %15337 = vst [vmem:[#allocation91_spill] sm:$0xff] %v12159_v27  ;;  %15339 = vst [vmem:[#allocation61_spill] sm:$0xff] %v12162_v41  ;;  %v12176_v59 = vadd.f32 %v15347_v2, %v3902_v50  ;;  %v3126_v51 = vmul.f32 %v15188_v17, %v15349_v62  ;;  %v12183_v9 = vadd.f32 %v15350_v53, %v3612_v6  ;;  %v15354_v50 = vld [vmem:[#allocation170_spill] sm:$0xff]  ;;  %v15358_v21 = vld [vmem:[#allocation185_spill] sm:$0xff] }
 0x32f   : > { %15341 = vst [vmem:[#allocation53_spill] sm:$0xff] %v12165_v46  ;;  %15345 = vst [vmem:[#allocation68_spill] sm:$0xff] %v12172_v28  ;;  %v12186_v20 = vadd.f32 %v15352_v57, %v4056_v16  ;;  %v3280_v24 = vmul.f32 %v15189_v13, %v15349_v62  ;;  %v3434_v32 = vmul.f32 %v15190_v36, %v15349_v62  ;;  %v15359_v57 = vld [vmem:[#allocation180_spill] sm:$0xff] }
 0x330   : > { %15348 = vst [vmem:[#allocation75_spill] sm:$0xff] %v12176_v59  ;;  %15351 = vst [vmem:[#allocation56_spill] sm:$0xff] %v12183_v9  ;;  %v12195_v34 = vadd.f32 %v15354_v50, %v3322_v35  ;;  %v3134_v4 = vadd.f32 %v3126_v51, %v11830_v52  ;;  %v3588_v42 = vmul.f32 %v15191_v18, %v15349_v62  ;;  %v15356_v52 = vld [vmem:[#allocation179_spill] sm:$0xff]  ;;  %v12554_v59 = vstv %s12410_s22  ;;  %s12759_s22 = sld [smem:[#allocation8 + $0x3]] }
 0x331   : > { %15353 = vst [vmem:[#allocation38_spill] sm:$0xff] %v12186_v20  ;;  %v3742_v16 = vmul.f32 %v15192_v38, %v15349_v62  ;;  %v3288_v26 = vadd.f32 %v3280_v24, %v11833_v5  ;;  %v3442_v6 = vadd.f32 %v3434_v32, %v11836_v8  ;;  %v3896_v15 = vmul.f32 %v15193_v39, %v15349_v62  ;;  %v15357_v8 = vld [vmem:[#allocation182_spill] sm:$0xff] }
 0x332   : > { %15355 = vst [vmem:[#allocation39_spill] sm:$0xff] %v12195_v34  ;;  %v4050_v55 = vmul.f32 %v15194_v48, %v15349_v62  ;;  %v3152_v12 = vadd.f32 %v15356_v52, %v3134_v4  ;;  %v3596_v35 = vadd.f32 %v3588_v42, %v11839_v3  ;;  %v4204_v5 = vmul.f32 %v15195_v54, %v15349_v62  ;;  %v15360_v3 = vld [vmem:[#allocation189_spill] sm:$0xff]  ;;  %v15363_v42 = vld [vmem:[#allocation174_spill] sm:$0xff] }
 0x333   : > { %v3750_v56 = vadd.f32 %v3742_v16, %v11842_v25  ;;  %v3306_v14 = vadd.f32 %v15357_v8, %v3288_v26  ;;  %v3460_v2 = vadd.f32 %v15358_v21, %v3442_v6  ;;  %v3904_v51 = vadd.f32 %v3896_v15, %v11845_v60  ;;  %v15361_v25 = vld [vmem:[#allocation192_spill] sm:$0xff]  ;;  %v582_v4 = vld [vmem:[%s10424_s26 + $0xf8] sm:$0xff]  ;;  %v15367_v26 = vld [vmem:[#allocation183_spill] sm:$0xff]  ;;  %15446 = vst [vmem:[#allocation105_spill] sm:$0xff] %v12554_v59 }
 0x334   : > { %v4058_v53 = vadd.f32 %v4050_v55, %v11848_v63  ;;  %v3170_v24 = vadd.f32 %v15359_v57, %v3152_v12  ;;  %v3614_v32 = vadd.f32 %v15360_v3, %v3596_v35  ;;  %v12229_v62 = vadd.f32 %v4204_v5, %v11851_v33  ;;  %v15365_v60 = vld [vmem:[#allocation176_spill] sm:$0xff]  ;;  %v15368_v15 = vld [vmem:[#allocation187_spill] sm:$0xff]  ;;  %v15369_v52 = vld [vmem:[#allocation181_spill] sm:$0xff] }
 0x335   : > { %v3768_v50 = vadd.f32 %v15361_v25, %v3750_v56  ;;  %v12235_v16 = vadd.f32 %v15363_v42, %v3476_v45  ;;  %v12238_v63 = vadd.f32 %v15365_v60, %v3766_v43  ;;  %v3324_v6 = vadd.f32 %v15367_v26, %v3306_v14  ;;  %v15371_v33 = vld [vmem:[#allocation194_spill] sm:$0xff]  ;;  %v15373_v56 = vld [vmem:[#allocation195_spill] sm:$0xff]  ;;  %v15375_v45 = vld [vmem:[#allocation148_spill] sm:$0xff] }
 0x336   : > { %15362 = vst [vmem:[#allocation40_spill] sm:$0xff] %v12229_v62  ;;  %v3478_v55 = vadd.f32 %v15368_v15, %v3460_v2  ;;  %v12245_v12 = vadd.f32 %v15369_v52, %v3170_v24  ;;  %v12248_v35 = vadd.f32 %v15371_v33, %v3904_v51  ;;  %v12251_v5 = vadd.f32 %v15373_v56, %v4058_v53  ;;  %v15376_v43 = vld [vmem:[#allocation190_spill] sm:$0xff]  ;;  %v15378_v21 = vld [vmem:[#allocation193_spill] sm:$0xff]  ;;  %v9551_v3 = vld [vmem:[%s10424_s26 + $0xf0] sm:$0xff] }
 0x337   : > { %15364 = vst [vmem:[#allocation59_spill] sm:$0xff] %v12235_v16  ;;  %15366 = vst [vmem:[#allocation73_spill] sm:$0xff] %v12238_v63  ;;  %v3127_v8 = vmul.f32 %v15188_v17, %v15375_v45  ;;  %v12258_v14 = vadd.f32 %v15376_v43, %v3614_v32  ;;  %v12261_v2 = vadd.f32 %v15378_v21, %v3768_v50  ;;  %v15380_v57 = vld [vmem:[#allocation197_spill] sm:$0xff]  ;;  %v15381_v17 = vld [vmem:[#allocation44_spill] sm:$0xff]  ;;  %v12557_v63 = vstv %s12418_s17  ;;  %s9736_s17 = smov 48  }
 0x338   : > { %15370 = vst [vmem:[#allocation78_spill] sm:$0xff] %v12245_v12  ;;  %15372 = vst [vmem:[#allocation41_spill] sm:$0xff] %v12248_v35  ;;  %v3199_v24 = vmul.f32 %v15380_v57, %v582_v4  ;;  %v3281_v51 = vmul.f32 %v15189_v13, %v15375_v45  ;;  %v3335_v25 = vmul.f32 %v9551_v3, %v15381_v17  ;;  %v15382_v42 = vld [vmem:[#allocation199_spill] sm:$0xff]  ;;  %v15383_v26 = vld [vmem:[#allocation58_spill] sm:$0xff]  ;;  %v12567_v9 = vstv %s12429_s16  ;;  %s15821_s16 = sld [smem:[#allocation24_spill]] }
 0x339   : > { %15374 = vst [vmem:[#allocation82_spill] sm:$0xff] %v12251_v5  ;;  %15377 = vst [vmem:[#allocation42_spill] sm:$0xff] %v12258_v14  ;;  %v3135_v53 = vadd.f32 %v3127_v8, %v11790_v44  ;;  %v3353_v60 = vmul.f32 %v15382_v42, %v582_v4  ;;  %v3435_v32 = vmul.f32 %v15190_v36, %v15375_v45  ;;  %v9552_v52 = vld [vmem:[%s10424_s26 + $0xe8] sm:$0xff]  ;;  %v15384_v33 = vld [vmem:[#allocation64_spill] sm:$0xff] }
 0x33a   : > { %15379 = vst [vmem:[#allocation43_spill] sm:$0xff] %v12261_v2  ;;  %v3289_v50 = vadd.f32 %v3281_v51, %v11793_v49  ;;  %v3489_v15 = vmul.f32 %v9551_v3, %v15383_v26  ;;  %v3589_v13 = vmul.f32 %v15191_v18, %v15375_v45  ;;  %v3625_v44 = vmul.f32 %v9552_v52, %v15384_v33  ;;  %v15385_v56 = vld [vmem:[#allocation196_spill] sm:$0xff]  ;;  %v15387_v36 = vld [vmem:[#allocation201_spill] sm:$0xff]  ;;  %v15388_v51 = vld [vmem:[#allocation198_spill] sm:$0xff] }
 0x33b   : > { %v3153_v4 = vadd.f32 %v15385_v56, %v3135_v53  ;;  %v15386_v8 = vld [vmem:[#allocation140_spill] sm:$0xff]  ;;  %v3643_v21 = vmul.f32 %v9551_v3, %v15387_v36  ;;  %v3743_v49 = vmul.f32 %v15192_v38, %v15375_v45  ;;  %v15389_v18 = vld [vmem:[#allocation141_spill] sm:$0xff]  ;;  %v15390_v62 = vld [vmem:[#allocation66_spill] sm:$0xff]  ;;  %v3897_v33 = vmul.f32 %v15193_v39, %v15375_v45  ;;  %15447 = vst [vmem:[#allocation106_spill] sm:$0xff] %v12557_v63 }
 0x33c   : > { %v3443_v43 = vadd.f32 %v3435_v32, %v15386_v8  ;;  %v3307_v17 = vadd.f32 %v15388_v51, %v3289_v50  ;;  %v3597_v26 = vadd.f32 %v3589_v13, %v15389_v18  ;;  %v3779_v5 = vmul.f32 %v9552_v52, %v15390_v62  ;;  %v15391_v53 = vld [vmem:[#allocation200_spill] sm:$0xff]  ;;  %v15392_v56 = vld [vmem:[#allocation206_spill] sm:$0xff]  ;;  %v15395_v50 = vld [vmem:[#allocation205_spill] sm:$0xff]  ;;  %15449 = vst [vmem:[#allocation104_spill] sm:$0xff] %v12567_v9 }
 0x33d   : > { %v3171_v32 = vadd.f32 %v15391_v53, %v3153_v4  ;;  %v15393_v8 = vld [vmem:[#allocation158_spill] sm:$0xff]  ;;  %v15394_v2 = vld [vmem:[#allocation72_spill] sm:$0xff]  ;;  %v15396_v62 = vld [vmem:[#allocation207_spill] sm:$0xff] }
 0x33e   : > { %v3461_v3 = vadd.f32 %v15392_v56, %v3443_v43  ;;  %v3751_v35 = vadd.f32 %v3743_v49, %v15393_v8  ;;  %v9553_v38 = vld [vmem:[%s10424_s26 + $0xe0] sm:$0xff]  ;;  %v3325_v13 = vadd.f32 %v15395_v50, %v3307_v17  ;;  %v3615_v51 = vadd.f32 %v15396_v62, %v3597_v26  ;;  %v15397_v18 = vld [vmem:[#allocation159_spill] sm:$0xff]  ;;  %v15399_v4 = vld [vmem:[#allocation204_spill] sm:$0xff] }
 0x33f   : > { %v3915_v14 = vmul.f32 %v9553_v38, %v15394_v2  ;;  %v3905_v39 = vadd.f32 %v3897_v33, %v15397_v18  ;;  %v15398_v12 = vld [vmem:[#allocation202_spill] sm:$0xff]  ;;  %v3189_v43 = vadd.f32 %v15399_v4, %v3171_v32  ;;  %v15400_v53 = vld [vmem:[#allocation152_spill] sm:$0xff]  ;;  %v15401_v56 = vld [vmem:[#allocation153_spill] sm:$0xff]  ;;  %v4051_v2 = vmul.f32 %v15194_v48, %v15375_v45 }
 0x340   : > { %v3933_v11 = vmul.f32 %v9552_v52, %v15398_v12  ;;  %v3479_v49 = vadd.f32 %v15400_v53, %v3461_v3  ;;  %v3769_v8 = vadd.f32 %v15401_v56, %v3751_v35  ;;  %v3343_v17 = vadd.f32 %v3335_v25, %v3325_v13  ;;  %v15402_v62 = vld [vmem:[#allocation79_spill] sm:$0xff]  ;;  %v12320_v18 = vld [vmem:[%s10424_s26 + $0x18] sm:$0xff]  ;;  %v15403_v52 = vld [vmem:[#allocation184_spill] sm:$0xff] }
 0x341   : > { %v3633_v50 = vadd.f32 %v3625_v44, %v3615_v51  ;;  %v3923_v26 = vadd.f32 %v3915_v14, %v3905_v39  ;;  %v4069_v33 = vmul.f32 %v9553_v38, %v15402_v62  ;;  %v12325_v32 = vadd.f32 %v15403_v52, %v3324_v6  ;;  %v15405_v3 = vld [vmem:[#allocation188_spill] sm:$0xff] }
 0x342   : > { %v12328_v35 = vadd.f32 %v15405_v3, %v3478_v55  ;;  %v12330_v4 = vadd.f32 %v3199_v24, %v3189_v43  ;;  %v15408_v48 = vld [vmem:[#allocation160_spill] sm:$0xff]  ;;  %v12335_v14 = vadd.f32 %v3353_v60, %v3343_v17  ;;  %v12337_v44 = vadd.f32 %v3489_v15, %v3479_v49  ;;  %v15422_v3 = vld [vmem:[#allocation69_spill] sm:$0xff] }
 0x343   : > { %15404 = vst [vmem:[#allocation45_spill] sm:$0xff] %v12325_v32  ;;  %v4059_v25 = vadd.f32 %v4051_v2, %v15408_v48  ;;  %v12339_v13 = vadd.f32 %v3779_v5, %v3769_v8  ;;  %v4205_v6 = vmul.f32 %v15195_v54, %v15375_v45  ;;  %v12345_v55 = vadd.f32 %v3643_v21, %v3633_v50  ;;  %v15415_v5 = vld [vmem:[#allocation150_spill] sm:$0xff]  ;;  %v12375_v49 = vld [vmem:[%s10424_s26 + $0x10] sm:$0xff]  ;;  %v15419_v8 = vld [vmem:[#allocation203_spill] sm:$0xff] }
 0x344   : > { %15406 = vst [vmem:[#allocation54_spill] sm:$0xff] %v12328_v35  ;;  %15407 = vst [vmem:[#allocation62_spill] sm:$0xff] %v12330_v4  ;;  %v12347_v24 = vadd.f32 %v3933_v11, %v3923_v26  ;;  %v3192_v60 = vmul.f32 %v15380_v57, %v12320_v18  ;;  %v12359_v39 = vstv %s12192_s24  ;;  %v3346_v54 = vmul.f32 %v15382_v42, %v12320_v18  ;;  %v15418_v11 = vld [vmem:[#allocation63_spill] sm:$0xff]  ;;  %v15421_v17 = vld [vmem:[#allocation76_spill] sm:$0xff]  ;;  %s12456_s24 = sld [smem:[#allocation7 + $0x3]] }
 0x345   : > { %15409 = vst [vmem:[#allocation70_spill] sm:$0xff] %v12335_v14  ;;  %15410 = vst [vmem:[#allocation74_spill] sm:$0xff] %v12337_v44  ;;  %v12349_v51 = vadd.f32 %v4069_v33, %v4059_v25  ;;  %v12356_v15 = vadd.f32 %v4205_v6, %v15415_v5  ;;  %v12364_v45 = vstv %s12169_s23  ;;  %v12370_v43 = vstv %s12202_s29  ;;  %s12437_s23 = sld [smem:[#allocation7 + $0x1]] }
 0x346   : > { %15411 = vst [vmem:[#allocation80_spill] sm:$0xff] %v12339_v13  ;;  %15412 = vst [vmem:[#allocation85_spill] sm:$0xff] %v12345_v55  ;;  %v3200_v21 = vadd.f32 %v3192_v60, %v15418_v11  ;;  %v3500_v53 = vmul.f32 %v12364_v45, %v12320_v18  ;;  %v3636_v56 = vmul.f32 %v12375_v49, %v15387_v36  ;;  %v12386_v26 = vstv %s12217_s25  ;;  %s12466_s29 = sld [smem:[#allocation7 + $0x4]] }
 0x347   : > { %15413 = vst [vmem:[#allocation86_spill] sm:$0xff] %v12347_v24  ;;  %15414 = vst [vmem:[#allocation164_spill] sm:$0xff] %v12349_v51  ;;  %v12382_v2 = vmul.f32 %v9553_v38, %v15419_v8  ;;  %v3354_v50 = vadd.f32 %v3346_v54, %v15421_v17  ;;  %v12389_v62 = vstv %s12210_s27  ;;  %v12402_v6 = vstv %s12232_s28  ;;  %v9555_v17 = vld [vmem:[%s10424_s26 + $0x8] sm:$0xff]  ;;  %v15426_v24 = vld [vmem:[#allocation84_spill] sm:$0xff]  ;;  %s12474_s27 = sld [smem:[#allocation8 + $0x1]] }
 0x348   : > { %15416 = vst [vmem:[#allocation77_spill] sm:$0xff] %v12356_v15  ;;  %15417 = vst [vmem:[#allocation88_spill] sm:$0xff] %v12364_v45  ;;  %v3210_v33 = vadd.f32 %v12359_v39, %v3200_v21  ;;  %v3508_v52 = vadd.f32 %v3500_v53, %v11998_v0  ;;  %v3644_v48 = vadd.f32 %v3636_v56, %v15422_v3  ;;  %v12405_v60 = vstv %s12180_s14  ;;  %s12448_s14 = sld [smem:[#allocation7 + $0x2]] }
 0x349   : > { %15420 = vst [vmem:[#allocation93_spill] sm:$0xff] %v12382_v2  ;;  %v3654_v38 = vmul.f32 %v12389_v62, %v12320_v18  ;;  %v3364_v25 = vadd.f32 %v12370_v43, %v3354_v50  ;;  %v12408_v5 = vstv %s12242_s0  ;;  %v3790_v11 = vmul.f32 %v12375_v49, %v12405_v60  ;;  %s12484_s25 = sld [smem:[#allocation7 + $0x5]] }
 0x34a   : > { %15423 = vst [vmem:[#allocation209_spill] sm:$0xff] %v12408_v5  ;;  %v3518_v0 = vadd.f32 %v12386_v26, %v3508_v52  ;;  %v12416_v21 = vstv %s12274_s4  ;;  %v12420_v53 = vmax.f32 %v3210_v33, 0.0  ;;  %v3808_v56 = vmul.f32 %v12408_v5, %v12320_v18  ;;  %s12501_s28 = sld [smem:[#allocation7 + $0x7]] }
 0x34b   : > { %v3662_v54 = vadd.f32 %v3654_v38, %v3644_v48  ;;  %15424 = vst [vmem:[#allocation210_spill] sm:$0xff] %v12416_v21  ;;  %v3926_v50 = vmul.f32 %v9555_v17, %v15398_v12  ;;  %v12427_v52 = vstv %s12255_s2  ;;  %v12431_v3 = vmax.f32 %v3364_v25, 0.0  ;;  %s12511_s0 = sld [smem:[#allocation7 + $0x100]] }
 0x34c   : > { %15425 = vst [vmem:[#allocation89_spill] sm:$0xff] %v12427_v52  ;;  %v3798_v38 = vadd.f32 %v3790_v11, %v12001_v19  ;;  %v3944_v33 = vmul.f32 %v12375_v49, %v12427_v52  ;;  %v12439_v51 = vmax.f32 %v3518_v0, 0.0  ;;  %v12443_v55 = vstv %s12266_s3  ;;  %s12520_s2 = sld [smem:[#allocation8]] }
 0x34d   : > { %v3672_v48 = vadd.f32 %v12402_v6, %v3662_v54  ;;  %v3934_v13 = vadd.f32 %v3926_v50, %v15426_v24  ;;  %15427 = vst [vmem:[#allocation211_spill] sm:$0xff] %v12443_v55  ;;  %v12446_v44 = vstv %s12223_s21  ;;  %v3962_v19 = vmul.f32 %v12443_v55, %v12320_v18  ;;  %s12492_s21 = sld [smem:[#allocation7 + $0x6]] }
 0x34e   : > { %15428 = vst [vmem:[#allocation143_spill] sm:$0xff] %v12446_v44  ;;  %v3816_v25 = vadd.f32 %v3808_v56, %v3798_v38  ;;  %v12453_v54 = vstv %s12289_s6  ;;  %v4080_v11 = vmul.f32 %v9555_v17, %v12446_v44  ;;  %v12461_v50 = vstv %s12282_s5  ;;  %v15433_v38 = vld [vmem:[#allocation92_spill] sm:$0xff]  ;;  %s12531_s3 = sld [smem:[#allocation7 + $0x101]] }
 0x34f   : > { %15429 = vst [vmem:[#allocation144_spill] sm:$0xff] %v12453_v54  ;;  %v12458_v24 = vmax.f32 %v3672_v48, 0.0  ;;  %v3952_v0 = vadd.f32 %v3944_v33, %v3934_v13  ;;  %15431 = vst [vmem:[#allocation145_spill] sm:$0xff] %v12461_v50  ;;  %v12464_v14 = vstv %s12296_s11  ;;  %v4098_v2 = vmul.f32 %v12375_v49, %v12461_v50  ;;  %v9556_v48 = vld [vmem:[%s10424_s26] sm:$0xff]  ;;  %s12540_s4 = sld [smem:[#allocation7 + $0x102]] }
 0x350   : > { %15432 = vst [vmem:[#allocation146_spill] sm:$0xff] %v12464_v14  ;;  %v3826_v56 = vadd.f32 %v12416_v21, %v3816_v25  ;;  %v4088_v4 = vadd.f32 %v4080_v11, %v15433_v38  ;;  %v4116_v15 = vmul.f32 %v12464_v14, %v12320_v18  ;;  %v4216_v33 = vmul.f32 %v9556_v48, %v15419_v8  ;;  %s12549_s5 = sld [smem:[#allocation7 + $0x103]] }
 0x351   : > { %15430 = vst [vmem:[#allocation95_spill] sm:$0xff] %v12458_v24  ;;  %v3970_v13 = vadd.f32 %v3962_v19, %v3952_v0  ;;  %v12479_v35 = vstv %s12303_s12  ;;  %v12482_v25 = vstv %s12309_s7  ;;  %v12489_v32 = vstv %s12316_s8  ;;  %v15437_v0 = vld [vmem:[#allocation47_spill] sm:$0xff]  ;;  %s12559_s6 = sld [smem:[#allocation7 + $0x104]] }
 0x352   : > { %15434 = vst [vmem:[#allocation147_spill] sm:$0xff] %v12479_v35  ;;  %15435 = vst [vmem:[#allocation90_spill] sm:$0xff] %v12482_v25  ;;  %v12486_v11 = vmax.f32 %v3826_v56, 0.0  ;;  %v4106_v38 = vadd.f32 %v4098_v2, %v4088_v4  ;;  %v4234_v58 = vmul.f32 %v9555_v17, %v12479_v35  ;;  %v4224_v48 = vadd.f32 %v4216_v33, %v15437_v0  ;;  %s12569_s11 = sld [smem:[#allocation7 + $0x105]] }
 0x353   : > { %15436 = vst [vmem:[#allocation98_spill] sm:$0xff] %v12489_v32  ;;  %v3980_v19 = vadd.f32 %v12453_v54, %v3970_v13  ;;  %v4252_v46 = vmul.f32 %v12375_v49, %v12482_v25  ;;  %v4270_v2 = vmul.f32 %v12499_v29, %v12320_v18  ;;  %v12506_v17 = vstv %s12333_s30  ;;  %s12580_s12 = sld [smem:[#allocation7 + $0x106]] }
 0x354   : > { %v4124_v4 = vadd.f32 %v4116_v15, %v4106_v38  ;;  %15439 = vst [vmem:[#allocation103_spill] sm:$0xff] %v12506_v17  ;;  %v12509_v56 = vstv %s12343_s10  ;;  %v4242_v33 = vadd.f32 %v4234_v58, %v4224_v48  ;;  %v12518_v0 = vstv %s12353_s13  ;;  %s12589_s7 = sld [smem:[#allocation7 + $0x107]] }
 0x355   : > { %15440 = vst [vmem:[#allocation81_spill] sm:$0xff] %v12509_v56  ;;  %v12513_v13 = vmax.f32 %v3980_v19, 0.0  ;;  %v4541_v49 = vmul.f32 %v12509_v56, %v12420_v53  ;;  %15441 = vst [vmem:[#allocation87_spill] sm:$0xff] %v12518_v0  ;;  %v4551_v15 = vmul.f32 %v12518_v0, %v12431_v3  ;;  %v12526_v38 = vstv %s12366_s15  ;;  %s12601_s8 = sld [smem:[#allocation8 + $0x2]] }
 0x356   : > { %v4134_v18 = vadd.f32 %v12489_v32, %v4124_v4  ;;  %15442 = vst [vmem:[#allocation96_spill] sm:$0xff] %v12526_v38  ;;  %v12529_v19 = vstv %s12379_s18  ;;  %v4260_v58 = vadd.f32 %v4252_v46, %v4242_v33  ;;  %v4569_v48 = vmul.f32 %v12526_v38, %v12439_v51  ;;  %s12710_s30 = sld [smem:[#allocation7 + $0x181]] }
 0x357   : > { %15443 = vst [vmem:[#allocation165_spill] sm:$0xff] %v12529_v19  ;;  %v4587_v41 = vmul.f32 %v12529_v19, %v12458_v24  ;;  %v12538_v4 = vstv %s12391_s19  ;;  %v4559_v47 = vadd.f32 %v4551_v15, %v4541_v49  ;;  %v12547_v46 = vstv %s12398_s20  ;;  %s12717_s10 = sld [smem:[#allocation7 + $0x182]] }
 0x358   : > { %15444 = vst [vmem:[#allocation94_spill] sm:$0xff] %v12538_v4  ;;  %v12542_v22 = vmax.f32 %v4134_v18, 0.0  ;;  %v4605_v27 = vmul.f32 %v12538_v4, %v12486_v11  ;;  %15445 = vst [vmem:[#allocation99_spill] sm:$0xff] %v12547_v46  ;;  %v4278_v33 = vadd.f32 %v4270_v2, %v4260_v58  ;;  %v4623_v20 = vmul.f32 %v12547_v46, %v12513_v13  ;;  %s12723_s13 = sld [smem:[#allocation7 + $0x183]] }
 0x359   : > { %v4577_v49 = vadd.f32 %v4569_v48, %v4559_v47  ;;  %v12564_v15 = vstv %s12474_s27  ;;  %v4306_v58 = vmul.f32 %v12567_v9, %v12420_v53  ;;  %v12575_v16 = vstv %s12437_s23  ;;  %s12730_s15 = sld [smem:[#allocation7 + $0x184]] }
 0x35a   : > { %v4641_v18 = vmul.f32 %v12554_v59, %v12542_v22  ;;  %15448 = vst [vmem:[#allocation102_spill] sm:$0xff] %v12564_v15  ;;  %v4288_v2 = vadd.f32 %v12506_v17, %v4278_v33  ;;  %15450 = vst [vmem:[#allocation107_spill] sm:$0xff] %v12575_v16  ;;  %v12578_v34 = vstv %s12448_s14  ;;  %v4316_v48 = vmul.f32 %v12575_v16, %v12431_v3  ;;  %s12739_s18 = sld [smem:[#allocation7 + $0x185]] }
 0x35b   : > { %15451 = vst [vmem:[#allocation108_spill] sm:$0xff] %v12578_v34  ;;  %v4595_v47 = vadd.f32 %v4587_v41, %v4577_v49  ;;  %v4334_v28 = vmul.f32 %v12578_v34, %v12439_v51  ;;  %v12587_v33 = vstv %s12456_s24  ;;  %v12596_v41 = vstv %s12466_s29  ;;  %s12744_s19 = sld [smem:[#allocation7 + $0x186]] }
 0x35c   : > { %15452 = vst [vmem:[#allocation109_spill] sm:$0xff] %v12587_v33  ;;  %v12591_v23 = vmax.f32 %v4288_v2, 0.0  ;;  %v4352_v9 = vmul.f32 %v12587_v33, %v12458_v24  ;;  %15453 = vst [vmem:[#allocation110_spill] sm:$0xff] %v12596_v41  ;;  %v12599_v49 = vstv %s12484_s25  ;;  %v4324_v16 = vadd.f32 %v4316_v48, %v4306_v58  ;;  %s12754_s20 = sld [smem:[#allocation7 + $0x187]] }
 0x35d   : > { %15454 = vst [vmem:[#allocation97_spill] sm:$0xff] %v12599_v49  ;;  %v4613_v34 = vadd.f32 %v4605_v27, %v4595_v47  ;;  %v4370_v2 = vmul.f32 %v12596_v41, %v12486_v11  ;;  %v4388_v59 = vmul.f32 %v12599_v49, %v12513_v13  ;;  %v12610_v17 = vstv %s12492_s21  ;;  %s15822_s24 = sld [smem:[#allocation224_spill]] }
 0x35e   : > { %v4659_v33 = vmul.f32 %v12557_v63, %v12591_v23  ;;  %15455 = vst [vmem:[#allocation112_spill] sm:$0xff] %v12610_v17  ;;  %v12613_v46 = vstv %s12501_s28  ;;  %v12616_v32 = vstv %s12520_s2  ;;  %v4342_v27 = vadd.f32 %v4334_v28, %v4324_v16  ;;  %s15823_s28 = sld [smem:[#allocation225_spill]] }
 0x35f   : > { %15456 = vst [vmem:[#allocation113_spill] sm:$0xff] %v12613_v46  ;;  %15457 = vst [vmem:[#allocation100_spill] sm:$0xff] %v12616_v32  ;;  %v4631_v4 = vadd.f32 %v4623_v20, %v4613_v34  ;;  %v4406_v58 = vmul.f32 %v12610_v17, %v12542_v22  ;;  %v4424_v47 = vmul.f32 %v12613_v46, %v12591_v23  ;;  %v12623_v48 = vstv %s12511_s0 }
 0x360   : > { %15458 = vst [vmem:[#allocation111_spill] sm:$0xff] %v12623_v48  ;;  %v12626_v49 = vstv %s12531_s3  ;;  %v12629_v41 = vstv %s12540_s4  ;;  %v12632_v63 = vstv %s12549_s5  ;;  %v4360_v28 = vadd.f32 %v4352_v9, %v4342_v27  ;;  %v12651_v27 = vld [vmem:[%s10424_s26 + $0x58] sm:$0xff] }
 0x361   : > { %15459 = vst [vmem:[#allocation115_spill] sm:$0xff] %v12626_v49  ;;  %15460 = vst [vmem:[#allocation114_spill] sm:$0xff] %v12629_v41  ;;  %v4649_v19 = vadd.f32 %v4641_v18, %v4631_v4  ;;  %v5991_v20 = vmul.f32 %v12623_v48, %v12420_v53  ;;  %v6001_v34 = vmul.f32 %v12626_v49, %v12431_v3  ;;  %v12643_v17 = vstv %s12559_s6 }
 0x362   : > { %15461 = vst [vmem:[#allocation116_spill] sm:$0xff] %v12632_v63  ;;  %v6019_v16 = vmul.f32 %v12629_v41, %v12439_v51  ;;  %v6037_v46 = vmul.f32 %v12632_v63, %v12458_v24  ;;  %15462 = vst [vmem:[#allocation118_spill] sm:$0xff] %v12643_v17  ;;  %v12646_v54 = vstv %s12569_s11  ;;  %v4378_v4 = vadd.f32 %v4370_v2, %v4360_v28  ;;  %s15824_s11 = sld [smem:[#allocation16_spill]] }
 0x363   : > { %15463 = vst [vmem:[#allocation46_spill] sm:$0xff] %v12646_v54  ;;  %v4667_v38 = vadd.f32 %v4659_v33, %v4649_v19  ;;  %v6009_v18 = vadd.f32 %v6001_v34, %v5991_v20  ;;  %v6055_v9 = vmul.f32 %v12643_v17, %v12486_v11  ;;  %v6073_v49 = vmul.f32 %v12646_v54, %v12513_v13 }
 0x364   : > { %v12656_v41 = vstv %s12580_s12  ;;  %v12659_v48 = vstv %s12589_s7  ;;  %v12662_v63 = vstv %s12601_s8  ;;  %v4396_v19 = vadd.f32 %v4388_v59, %v4378_v4  ;;  %v9557_v4 = vld [vmem:[%s10424_s26 + $0x50] sm:$0xff] }
 0x365   : > { %15464 = vst [vmem:[#allocation117_spill] sm:$0xff] %v12656_v41  ;;  %15465 = vst [vmem:[#allocation121_spill] sm:$0xff] %v12659_v48  ;;  %v12665_v24 = vadd.f32 %v12564_v15, %v4667_v38  ;;  %v6027_v33 = vadd.f32 %v6019_v16, %v6009_v18  ;;  %v6091_v2 = vmul.f32 %v12656_v41, %v12542_v22 }
 0x366   : > { %15466 = vst [vmem:[#allocation149_spill] sm:$0xff] %v12662_v63  ;;  %v6109_v28 = vmul.f32 %v12659_v48, %v12591_v23  ;;  %v3194_v20 = vmul.f32 %v15380_v57, %v12651_v27  ;;  %v3348_v34 = vmul.f32 %v15382_v42, %v12651_v27  ;;  %v3502_v54 = vmul.f32 %v12364_v45, %v12651_v27 }
 0x367   : > { %15467 = vst [vmem:[#allocation217_spill] sm:$0xff] %v12665_v24  ;;  %v4685_v38 = vsel %vm4450_vm3, %v12665_v24, -inf  ;;  %v4414_v59 = vadd.f32 %v4406_v58, %v4396_v19  ;;  %v6045_v16 = vadd.f32 %v6037_v46, %v6027_v33  ;;  %v3638_v18 = vmul.f32 %v9557_v4, %v15387_v36 }
 0x368   : > { %4686 = vmax.xlane.f32.xlu0 %v4685_v38  ;;  %v3202_v48 = vadd.f32 %v3194_v20, %v12059_v61  ;;  %v3356_v41 = vadd.f32 %v3348_v34, %v12106_v40  ;;  %v3510_v17 = vadd.f32 %v3502_v54, %v12112_v10  ;;  %v3656_v15 = vmul.f32 %v12389_v62, %v12651_v27  ;;  %s394_s12 = sand.u32 1, %s15824_s11  }
 0x369   : > { %v4432_v45 = vadd.f32 %v4424_v47, %v4414_v59  ;;  %v6063_v42 = vadd.f32 %v6055_v9, %v6045_v16  ;;  %v3646_v24 = vadd.f32 %v3638_v18, %v12074_v31  ;;  %v3792_v46 = vmul.f32 %v9557_v4, %v12405_v60  ;;  %s8527_s7 = sshll.u32 %s394_s12, 6 }
 0x36a   : > { %v3212_v58 = vadd.f32 %v12359_v39, %v3202_v48  ;;  %v3366_v19 = vadd.f32 %v12370_v43, %v3356_v41  ;;  %v3520_v61 = vadd.f32 %v12386_v26, %v3510_v17  ;;  %v3810_v40 = vmul.f32 %v12408_v5, %v12651_v27  ;;  %v9558_v48 = vld [vmem:[%s10424_s26 + $0x48] sm:$0xff]  ;;  %s14467_s8 = scalar_lea.vmem [#allocation10], %s8527_s7 }
 0x36b   : > { %v12694_v10 = vadd.f32 %v12616_v32, %v4432_v45  ;;  %v6081_v54 = vadd.f32 %v6073_v49, %v6063_v42  ;;  %v3664_v33 = vadd.f32 %v3656_v15, %v3646_v24  ;;  %v3800_v47 = vadd.f32 %v3792_v46, %v12077_v7 }
 0x36c   : > { %v12697_v9 = vmax.f32 %v3212_v58, 0.0  ;;  %v12699_v31 = vmax.f32 %v3366_v19, 0.0  ;;  %v12701_v20 = vmax.f32 %v3520_v61, 0.0  ;;  %v3928_v41 = vmul.f32 %v9558_v48, %v15398_v12  ;;  %v9559_v58 = vld [vmem:[%s10424_s26 + $0x40] sm:$0xff] }
 0x36d   : > { %15468 = vst [vmem:[#allocation212_spill] sm:$0xff] %v12694_v10  ;;  %v4451_v17 = vsel %vm4450_vm3, %v12694_v10, -inf  ;;  %v6099_v45 = vadd.f32 %v6091_v2, %v6081_v54  ;;  %v3674_v42 = vadd.f32 %v12402_v6, %v3664_v33  ;;  %v3818_v24 = vadd.f32 %v3810_v40, %v3800_v47  ;;  %v15483_v10 = vld [vmem:[#allocation105_spill] sm:$0xff] }
 0x36e   : > { %4452 = vmax.xlane.f32.xlu1 %v4451_v17  ;;  %v3936_v7 = vadd.f32 %v3928_v41, %v12063_v30  ;;  %v3946_v15 = vmul.f32 %v9557_v4, %v12427_v52  ;;  %v3964_v49 = vmul.f32 %v12443_v55, %v12651_v27  ;;  %v4082_v34 = vmul.f32 %v9558_v48, %v12446_v44 }
 0x36f   : > { %v6117_v38 = vadd.f32 %v6109_v28, %v6099_v45  ;;  %v12719_v2 = vmax.f32 %v3674_v42, 0.0  ;;  %v3828_v59 = vadd.f32 %v12416_v21, %v3818_v24  ;;  %v4100_v16 = vmul.f32 %v9557_v4, %v12461_v50  ;;  %v15470_v45 = vld [vmem:[#allocation96_spill] sm:$0xff] }
 0x370   : > { %v3954_v18 = vadd.f32 %v3946_v15, %v3936_v7  ;;  %v4090_v30 = vadd.f32 %v4082_v34, %v12067_v1  ;;  %v4118_v46 = vmul.f32 %v12464_v14, %v12651_v27  ;;  %v4218_v19 = vmul.f32 %v9559_v58, %v15419_v8  ;;  %v15472_v15 = vld [vmem:[#allocation165_spill] sm:$0xff]  ;;  %v15476_v58 = vld [vmem:[#allocation98_spill] sm:$0xff] }
 0x371   : > { %v12733_v28 = vadd.f32 %v12662_v63, %v6117_v38  ;;  %v12735_v61 = vmax.f32 %v3828_v59, 0.0  ;;  %v4236_v40 = vmul.f32 %v9558_v48, %v12479_v35  ;;  %v4254_v54 = vmul.f32 %v9557_v4, %v12482_v25  ;;  %v15473_v38 = vld [vmem:[#allocation94_spill] sm:$0xff] }
 0x372   : > { %v3972_v1 = vadd.f32 %v3964_v49, %v3954_v18  ;;  %v4108_v33 = vadd.f32 %v4100_v16, %v4090_v30  ;;  %v4226_v47 = vadd.f32 %v4218_v19, %v12053_v37  ;;  %v4272_v41 = vmul.f32 %v12499_v29, %v12651_v27  ;;  %v15471_v37 = vld [vmem:[#allocation144_spill] sm:$0xff] }
 0x373   : > { %15469 = vst [vmem:[#allocation213_spill] sm:$0xff] %v12733_v28  ;;  %v6135_v17 = vsel %vm4450_vm3, %v12733_v28, -inf  ;;  %v4543_v48 = vmul.f32 %v12509_v56, %v12697_v9  ;;  %v4553_v4 = vmul.f32 %v12518_v0, %v12699_v31  ;;  %v4571_v42 = vmul.f32 %v15470_v45, %v12701_v20  ;;  %v15482_v28 = vld [vmem:[#allocation103_spill] sm:$0xff]  ;;  %v9560_v0 = vld [vmem:[%s10424_s26 + $0x30] sm:$0xff] }
 0x374   : > { %6136 = vmax.xlane.f32.xlu1 %v6135_v17  ;;  %v3982_v27 = vadd.f32 %v15471_v37, %v3972_v1  ;;  %v4126_v24 = vadd.f32 %v4118_v46, %v4108_v33  ;;  %v4244_v7 = vadd.f32 %v4236_v40, %v4226_v47  ;;  %v4589_v49 = vmul.f32 %v15472_v15, %v12719_v2 }
 0x375   : > { %v4561_v34 = vadd.f32 %v4553_v4, %v4543_v48  ;;  %v4607_v59 = vmul.f32 %v15473_v38, %v12735_v61  ;;  %v12764_v16 = vstv %s12705_s9  ;;  %v12767_v18 = vstv %s12710_s30  ;;  %s15825_s9 = sld [smem:[#allocation19_spill]] }
 0x376   : > { %15474 = vst [vmem:[#allocation122_spill] sm:$0xff] %v12764_v16  ;;  %15475 = vst [vmem:[#allocation124_spill] sm:$0xff] %v12767_v18  ;;  %v12769_v30 = vmax.f32 %v3982_v27, 0.0  ;;  %v4136_v19 = vadd.f32 %v15476_v58, %v4126_v24  ;;  %v4262_v46 = vadd.f32 %v4254_v54, %v4244_v7  ;;  %v6841_v40 = vmul.f32 %v12764_v16, %v12420_v53  ;;  %v15479_v27 = vld [vmem:[#allocation99_spill] sm:$0xff]  ;;  %s15826_s30 = sld [smem:[#allocation22_spill]] }
 0x377   : > { %v4579_v1 = vadd.f32 %v4571_v42, %v4561_v34  ;;  %v6851_v33 = vmul.f32 %v12767_v18, %v12431_v3  ;;  %v12777_v47 = vstv %s12717_s10  ;;  %v12780_v17 = vstv %s12723_s13  ;;  %v15480_v7 = vld [vmem:[#allocation95_spill] sm:$0xff]  ;;  %s8400_s13 = sshll.u32 %s14467_s8, 4  ;;  %s14494_s13 = int_to_ptr.vmem [resolvable:$true] %s8400_s13 }
 0x378   : > { %15477 = vst [vmem:[#allocation214_spill] sm:$0xff] %v12777_v47  ;;  %15478 = vst [vmem:[#allocation215_spill] sm:$0xff] %v12780_v17  ;;  %v12782_v48 = vmax.f32 %v4136_v19, 0.0  ;;  %v4280_v4 = vadd.f32 %v4272_v41, %v4262_v46  ;;  %v4625_v54 = vmul.f32 %v15479_v27, %v12769_v30  ;;  %v6869_v53 = vmul.f32 %v12777_v47, %v12439_v51  ;;  %v12802_v51 = vld [vmem:[%s10424_s26 + $0x38] sm:$0xff] }
 0x379   : > { %v4597_v42 = vadd.f32 %v4589_v49, %v4579_v1  ;;  %v6859_v24 = vadd.f32 %v6851_v33, %v6841_v40  ;;  %v6887_v3 = vmul.f32 %v12780_v17, %v15480_v7  ;;  %v12791_v34 = vstv %s12730_s15 }
 0x37a   : > { %15481 = vst [vmem:[#allocation125_spill] sm:$0xff] %v12791_v34  ;;  %v4290_v19 = vadd.f32 %v15482_v28, %v4280_v4  ;;  %v4643_v41 = vmul.f32 %v15483_v10, %v12782_v48  ;;  %v6905_v46 = vmul.f32 %v12791_v34, %v12486_v11  ;;  %v12799_v27 = vstv %s12739_s18 }
 0x37b   : > { %15484 = vst [vmem:[#allocation126_spill] sm:$0xff] %v12799_v27  ;;  %v4615_v49 = vadd.f32 %v4607_v59, %v4597_v42  ;;  %v6877_v40 = vadd.f32 %v6869_v53, %v6859_v24  ;;  %v6923_v1 = vmul.f32 %v12799_v27, %v12513_v13  ;;  %v12807_v33 = vstv %s12744_s19  ;;  %v15488_v13 = vld [vmem:[#allocation106_spill] sm:$0xff]  ;;  %v15489_v24 = vld [vmem:[#allocation199_spill] sm:$0xff]  ;;  %s8763_s10 = sshll.u32 %s15825_s9, 10  ;;  %s15827_s19 = sld [smem:[#allocation226_spill]] }
 0x37c   : > { %15485 = vst [vmem:[#allocation138_spill] sm:$0xff] %v12807_v33  ;;  %v12809_v7 = vmax.f32 %v4290_v19, 0.0  ;;  %v6941_v4 = vmul.f32 %v12807_v33, %v12542_v22  ;;  %v12814_v10 = vstv %s12754_s20  ;;  %v12817_v11 = vstv %s12759_s22  ;;  %v15490_v22 = vld [vmem:[#allocation88_spill] sm:$0xff]  ;;  %s14503_s22 = scalar_lea.sflag [#allocation3], %s394_s12  ;;  %p15828_p11 = scmp.ne.s32.totalorder %s15826_s30, 0 }
 0x37d   : > { %15486 = vst [vmem:[#allocation139_spill] sm:$0xff] %v12814_v10  ;;  %15487 = vst [vmem:[#allocation119_spill] sm:$0xff] %v12817_v11  ;;  %v4633_v38 = vadd.f32 %v4625_v54, %v4615_v49  ;;  %v6895_v15 = vadd.f32 %v6887_v3, %v6877_v40  ;;  %v6959_v59 = vmul.f32 %v12814_v10, %v12591_v23  ;;  %v15491_v49 = vld [vmem:[#allocation156_spill] sm:$0xff]  ;;  %v15494_v10 = vld [vmem:[#allocation157_spill] sm:$0xff] }
 0x37e   : > { %v3193_v53 = vmul.f32 %v15380_v57, %v12802_v51  ;;  %v4661_v42 = vmul.f32 %v15488_v13, %v12809_v7  ;;  %v3347_v19 = vmul.f32 %v15489_v24, %v12802_v51  ;;  %v3501_v45 = vmul.f32 %v15490_v22, %v12802_v51  ;;  %v15492_v57 = vld [vmem:[#allocation48_spill] sm:$0xff]  ;;  %v15493_v13 = vld [vmem:[#allocation55_spill] sm:$0xff] }
 0x37f   : > { %v3637_v56 = vmul.f32 %v9560_v0, %v15387_v36  ;;  %v4651_v54 = vadd.f32 %v4643_v41, %v4633_v38  ;;  %v6913_v3 = vadd.f32 %v6905_v46, %v6895_v15  ;;  %v3655_v23 = vmul.f32 %v12389_v62, %v12802_v51 }
 0x380   : > { %v3201_v40 = vadd.f32 %v3193_v53, %v15491_v49  ;;  %v3355_v63 = vadd.f32 %v3347_v19, %v15492_v57  ;;  %v3509_v32 = vadd.f32 %v3501_v45, %v15493_v13  ;;  %v3791_v33 = vmul.f32 %v9560_v0, %v12405_v60  ;;  %v15495_v53 = vld [vmem:[#allocation161_spill] sm:$0xff]  ;;  %v15496_v19 = vld [vmem:[#allocation102_spill] sm:$0xff]  ;;  %v9561_v13 = vld [vmem:[%s10424_s26 + $0x28] sm:$0xff] }
 0x381   : > { %v3645_v24 = vadd.f32 %v3637_v56, %v15494_v10  ;;  %v4669_v22 = vadd.f32 %v4661_v42, %v4651_v54  ;;  %v6931_v27 = vadd.f32 %v6923_v1, %v6913_v3  ;;  %v3809_v15 = vmul.f32 %v12408_v5, %v12802_v51  ;;  %s14492_s20 = scalar_lea.hbm %s15827_s19, %s8763_s10 }
 0x382   : > { %v3211_v36 = vadd.f32 %v12359_v39, %v3201_v40  ;;  %v3365_v38 = vadd.f32 %v12370_v43, %v3355_v63  ;;  %v3519_v41 = vadd.f32 %v12386_v26, %v3509_v32  ;;  %v3799_v57 = vadd.f32 %v3791_v33, %v15495_v53 }
 0x383   : > { %v3663_v46 = vadd.f32 %v3655_v23, %v3645_v24  ;;  %v12845_v45 = vadd.f32 %v15496_v19, %v4669_v22  ;;  %v6949_v56 = vadd.f32 %v6941_v4, %v6931_v27  ;;  %v3927_v1 = vmul.f32 %v9561_v13, %v15398_v12  ;;  %v15501_v24 = vld [vmem:[#allocation154_spill] sm:$0xff] }
 0x384   : > { %v12847_v10 = vmax.f32 %v3211_v36, 0.0  ;;  %v12851_v42 = vmax.f32 %v3365_v38, 0.0  ;;  %v12853_v54 = vmax.f32 %v3519_v41, 0.0  ;;  %v3817_v3 = vadd.f32 %v3809_v15, %v3799_v57  ;;  %v9562_v57 = vld [vmem:[%s10424_s26 + $0x20] sm:$0xff] }
 0x385   : > { %15497 = vst [vmem:[#allocation123_spill] sm:$0xff] %v12845_v45  ;;  %v3673_v63 = vadd.f32 %v12402_v6, %v3663_v46  ;;  %v4691_v32 = vsel %vm4450_vm3, %v12845_v45, -inf  ;;  %v6967_v33 = vadd.f32 %v6959_v59, %v6949_v56  ;;  %v3935_v22 = vadd.f32 %v3927_v1, %v15501_v24  ;;  %v15504_v46 = vld [vmem:[#allocation155_spill] sm:$0xff]  ;;  %v15508_v45 = vld [vmem:[#allocation108_spill] sm:$0xff] }
 0x386   : > { %15498 = vst [vmem:[#allocation127_spill] sm:$0xff] %v12847_v10  ;;  %15499 = vst [vmem:[#allocation129_spill] sm:$0xff] %v12851_v42  ;;  %v3945_v36 = vmul.f32 %v9560_v0, %v12427_v52  ;;  %4692 = vmax.xlane.f32.xlu0 %v4691_v32  ;;  %v3827_v4 = vadd.f32 %v12416_v21, %v3817_v3  ;;  %v3963_v49 = vmul.f32 %v12443_v55, %v12802_v51 }
 0x387   : > { %15500 = vst [vmem:[#allocation120_spill] sm:$0xff] %v12853_v54  ;;  %v12860_v27 = vmax.f32 %v3673_v63, 0.0  ;;  %v4081_v40 = vmul.f32 %v9561_v13, %v12446_v44  ;;  %v12867_v23 = vadd.f32 %v12817_v11, %v6967_v33  ;;  %v4099_v59 = vmul.f32 %v9560_v0, %v12461_v50 }
 0x388   : > { %v3953_v15 = vadd.f32 %v3945_v36, %v3935_v22  ;;  %v4117_v38 = vmul.f32 %v12464_v14, %v12802_v51  ;;  %v12872_v41 = vmax.f32 %v3827_v4, 0.0  ;;  %v4217_v56 = vmul.f32 %v9562_v57, %v15419_v8  ;;  %v15505_v22 = vld [vmem:[#allocation151_spill] sm:$0xff]  ;;  %v15506_v4 = vld [vmem:[#allocation104_spill] sm:$0xff] }
 0x389   : > { %15502 = vst [vmem:[#allocation128_spill] sm:$0xff] %v12860_v27  ;;  %15503 = vst [vmem:[#allocation130_spill] sm:$0xff] %v12867_v23  ;;  %v4089_v53 = vadd.f32 %v4081_v40, %v15504_v46  ;;  %v4235_v1 = vmul.f32 %v9561_v13, %v12479_v35  ;;  %v6985_v63 = vsel %vm4450_vm3, %v12867_v23, -inf  ;;  %v4253_v32 = vmul.f32 %v9560_v0, %v12482_v25  ;;  %v15507_v46 = vld [vmem:[#allocation107_spill] sm:$0xff]  ;;  %v15509_v0 = vld [vmem:[#allocation109_spill] sm:$0xff] }
 0x38a   : > { %v3971_v3 = vadd.f32 %v3963_v49, %v3953_v15  ;;  %v4271_v33 = vmul.f32 %v12499_v29, %v12802_v51  ;;  %6986 = vmax.xlane.f32.xlu1 %v6985_v63  ;;  %v4225_v36 = vadd.f32 %v4217_v56, %v15505_v22  ;;  %v4307_v40 = vmul.f32 %v15506_v4, %v12847_v10  ;;  %v15510_v51 = vld [vmem:[#allocation110_spill] sm:$0xff]  ;;  %v15511_v22 = vld [vmem:[#allocation111_spill] sm:$0xff]  ;;  %v15514_v35 = vld [vmem:[#allocation116_spill] sm:$0xff] }
 0x38b   : > { %v4107_v24 = vadd.f32 %v4099_v59, %v4089_v53  ;;  %v4317_v57 = vmul.f32 %v15507_v46, %v12851_v42  ;;  %v4335_v49 = vmul.f32 %v15508_v45, %v12853_v54  ;;  %v4353_v15 = vmul.f32 %v15509_v0, %v12860_v27  ;;  %v15512_v29 = vld [vmem:[#allocation115_spill] sm:$0xff] }
 0x38c   : > { %v3981_v13 = vadd.f32 %v15471_v37, %v3971_v3  ;;  %v4371_v63 = vmul.f32 %v15510_v51, %v12872_v41  ;;  %v4243_v53 = vadd.f32 %v4235_v1, %v4225_v36  ;;  %v5992_v23 = vmul.f32 %v15511_v22, %v12847_v10  ;;  %v15513_v37 = vld [vmem:[#allocation114_spill] sm:$0xff]  ;;  %v15516_v36 = vld [vmem:[#allocation97_spill] sm:$0xff] }
 0x38d   : > { %v4125_v59 = vadd.f32 %v4117_v38, %v4107_v24  ;;  %v4325_v56 = vadd.f32 %v4317_v57, %v4307_v40  ;;  %v6002_v3 = vmul.f32 %v15512_v29, %v12851_v42  ;;  %v6020_v25 = vmul.f32 %v15513_v37, %v12853_v54  ;;  %v15515_v1 = vld [vmem:[#allocation118_spill] sm:$0xff] }
 0x38e   : > { %v12897_v19 = vmax.f32 %v3981_v13, 0.0  ;;  %v6038_v8 = vmul.f32 %v15514_v35, %v12860_v27  ;;  %v4261_v14 = vadd.f32 %v4253_v32, %v4243_v53  ;;  %v6056_v24 = vmul.f32 %v15515_v1, %v12872_v41  ;;  %v15517_v13 = vld [vmem:[#allocation46_spill] sm:$0xff] }
 0x38f   : > { %v4135_v21 = vadd.f32 %v15476_v58, %v4125_v59  ;;  %v4343_v38 = vadd.f32 %v4335_v49, %v4325_v56  ;;  %v6010_v57 = vadd.f32 %v6002_v3, %v5992_v23  ;;  %v4308_v44 = vmul.f32 %v15506_v4, %v12697_v9 }
 0x390   : > { %v4389_v40 = vmul.f32 %v15516_v36, %v12897_v19  ;;  %v6074_v50 = vmul.f32 %v15517_v13, %v12897_v19  ;;  %v4279_v52 = vadd.f32 %v4271_v33, %v4261_v14  ;;  %v4318_v32 = vmul.f32 %v15507_v46, %v12699_v31  ;;  %v15519_v33 = vld [vmem:[#allocation117_spill] sm:$0xff] }
 0x391   : > { %v12914_v55 = vmax.f32 %v4135_v21, 0.0  ;;  %v4361_v12 = vadd.f32 %v4353_v15, %v4343_v38  ;;  %v6028_v49 = vadd.f32 %v6020_v25, %v6010_v57  ;;  %v4336_v59 = vmul.f32 %v15508_v45, %v12701_v20  ;;  %v15518_v21 = vld [vmem:[#allocation112_spill] sm:$0xff] }
 0x392   : > { %v4354_v23 = vmul.f32 %v15509_v0, %v12719_v2  ;;  %v4372_v53 = vmul.f32 %v15510_v51, %v12735_v61  ;;  %v4289_v56 = vadd.f32 %v15482_v28, %v4279_v52  ;;  %v4326_v25 = vadd.f32 %v4318_v32, %v4308_v44  ;;  %v15521_v52 = vld [vmem:[#allocation113_spill] sm:$0xff] }
 0x393   : > { %v4379_v3 = vadd.f32 %v4371_v63, %v4361_v12  ;;  %v4407_v14 = vmul.f32 %v15518_v21, %v12914_v55  ;;  %v6092_v15 = vmul.f32 %v15519_v33, %v12914_v55  ;;  %v6046_v38 = vadd.f32 %v6038_v8, %v6028_v49 }
 0x394   : > { %v4390_v57 = vmul.f32 %v15516_v36, %v12769_v30  ;;  %v4408_v0 = vmul.f32 %v15518_v21, %v12782_v48  ;;  %v12933_v45 = vmax.f32 %v4289_v56, 0.0  ;;  %v4426_v12 = vmul.f32 %v15521_v52, %v12809_v7 }
 0x395   : > { %v4397_v51 = vadd.f32 %v4389_v40, %v4379_v3  ;;  %v6842_v63 = vmul.f32 %v12764_v16, %v12847_v10  ;;  %v6064_v46 = vadd.f32 %v6056_v24, %v6046_v38  ;;  %v4344_v4 = vadd.f32 %v4336_v59, %v4326_v25  ;;  %v15522_v40 = vld [vmem:[#allocation121_spill] sm:$0xff]  ;;  %v15523_v25 = vld [vmem:[#allocation126_spill] sm:$0xff] }
 0x396   : > { %15520 = vst [vmem:[#allocation208_spill] sm:$0xff] %v12933_v45  ;;  %v6852_v44 = vmul.f32 %v12767_v18, %v12851_v42  ;;  %v6870_v8 = vmul.f32 %v12777_v47, %v12853_v54  ;;  %v4425_v49 = vmul.f32 %v15521_v52, %v12933_v45  ;;  %v6110_v56 = vmul.f32 %v15522_v40, %v12933_v45  ;;  %v15525_v42 = vld [vmem:[#allocation139_spill] sm:$0xff] }
 0x397   : > { %v4415_v32 = vadd.f32 %v4407_v14, %v4397_v51  ;;  %v6888_v3 = vmul.f32 %v12780_v17, %v12860_v27  ;;  %v6082_v21 = vadd.f32 %v6074_v50, %v6064_v46  ;;  %v4362_v10 = vadd.f32 %v4354_v23, %v4344_v4  ;;  %v15524_v14 = vld [vmem:[#allocation138_spill] sm:$0xff]  ;;  %v15526_v4 = vld [vmem:[#allocation100_spill] sm:$0xff] }
 0x398   : > { %v6860_v24 = vadd.f32 %v6852_v44, %v6842_v63  ;;  %v6906_v59 = vmul.f32 %v12791_v34, %v12872_v41  ;;  %v6924_v51 = vmul.f32 %v15523_v25, %v12897_v19  ;;  %v6942_v54 = vmul.f32 %v15524_v14, %v12914_v55 }
 0x399   : > { %v4433_v38 = vadd.f32 %v4425_v49, %v4415_v32  ;;  %v6960_v52 = vmul.f32 %v15525_v42, %v12933_v45  ;;  %v6100_v36 = vadd.f32 %v6092_v15, %v6082_v21  ;;  %v4380_v28 = vadd.f32 %v4372_v53, %v4362_v10  ;;  %v12971_v53 = vld [vmem:[%s10424_s26 + $0x78] sm:$0xff] }
 0x39a   : > { %v6878_v27 = vadd.f32 %v6870_v8, %v6860_v24  ;;  %v5993_v50 = vmul.f32 %v15511_v22, %v12697_v9  ;;  %v6003_v23 = vmul.f32 %v15512_v29, %v12699_v31  ;;  %v6021_v63 = vmul.f32 %v15513_v37, %v12701_v20  ;;  %v15538_v22 = vld [vmem:[#allocation67_spill] sm:$0xff] }
 0x39b   : > { %v12960_v46 = vadd.f32 %v15526_v4, %v4433_v38  ;;  %v6039_v44 = vmul.f32 %v15514_v35, %v12719_v2  ;;  %v6118_v32 = vadd.f32 %v6110_v56, %v6100_v36  ;;  %v4398_v49 = vadd.f32 %v4390_v57, %v4380_v28  ;;  %v15528_v36 = vld [vmem:[#allocation149_spill] sm:$0xff] }
 0x39c   : > { %v6896_v21 = vadd.f32 %v6888_v3, %v6878_v27  ;;  %v6057_v10 = vmul.f32 %v15515_v1, %v12735_v61  ;;  %v6011_v8 = vadd.f32 %v6003_v23, %v5993_v50  ;;  %v6075_v24 = vmul.f32 %v15517_v13, %v12769_v30  ;;  %v15531_v50 = vld [vmem:[#allocation199_spill] sm:$0xff]  ;;  %v15532_v13 = vld [vmem:[#allocation88_spill] sm:$0xff] }
 0x39d   : > { %15527 = vst [vmem:[#allocation131_spill] sm:$0xff] %v12960_v46  ;;  %v4454_v15 = vsel %vm4450_vm3, %v12960_v46, -inf  ;;  %v6093_v38 = vmul.f32 %v15519_v33, %v12782_v48  ;;  %v12980_v28 = vadd.f32 %v15528_v36, %v6118_v32  ;;  %v4416_v27 = vadd.f32 %v4408_v0, %v4398_v49  ;;  %v15530_v46 = vld [vmem:[#allocation197_spill] sm:$0xff]  ;;  %v9563_v0 = vld [vmem:[%s10424_s26 + $0x70] sm:$0xff] }
 0x39e   : > { %4455 = vmax.xlane.f32.xlu0 %v4454_v15  ;;  %v6914_v57 = vadd.f32 %v6906_v59, %v6896_v21  ;;  %v6111_v56 = vmul.f32 %v15522_v40, %v12809_v7  ;;  %v6029_v3 = vadd.f32 %v6021_v63, %v6011_v8  ;;  %v3195_v1 = vmul.f32 %v15530_v46, %v12971_v53  ;;  %v15533_v59 = vld [vmem:[#allocation201_spill] sm:$0xff]  ;;  %v15535_v8 = vld [vmem:[#allocation162_spill] sm:$0xff]  ;;  %v15536_v46 = vld [vmem:[#allocation191_spill] sm:$0xff] }
 0x39f   : > { %15529 = vst [vmem:[#allocation133_spill] sm:$0xff] %v12980_v28  ;;  %v3349_v23 = vmul.f32 %v15531_v50, %v12971_v53  ;;  %v3503_v35 = vmul.f32 %v15532_v13, %v12971_v53  ;;  %v6138_v15 = vsel %vm4450_vm3, %v12980_v28, -inf  ;;  %v4434_v32 = vadd.f32 %v4426_v12, %v4416_v27  ;;  %v15534_v40 = vld [vmem:[#allocation49_spill] sm:$0xff] }
 0x3a0   : > { %v6932_v33 = vadd.f32 %v6924_v51, %v6914_v57  ;;  %v3639_v49 = vmul.f32 %v9563_v0, %v15533_v59  ;;  %v6047_v21 = vadd.f32 %v6039_v44, %v6029_v3  ;;  %v3203_v63 = vadd.f32 %v3195_v1, %v15534_v40  ;;  %v15540_v3 = vld [vmem:[#allocation71_spill] sm:$0xff] }
 0x3a1   : > { %v3357_v37 = vadd.f32 %v3349_v23, %v15535_v8  ;;  %v3511_v29 = vadd.f32 %v3503_v35, %v15536_v46  ;;  %v12998_v50 = vadd.f32 %v15526_v4, %v4434_v32  ;;  %v3657_v12 = vmul.f32 %v12389_v62, %v12971_v53  ;;  %v15542_v32 = vld [vmem:[#allocation89_spill] sm:$0xff] }
 0x3a2   : > { %6139 = vmax.xlane.f32.xlu0 %v6138_v15  ;;  %v6950_v13 = vadd.f32 %v6942_v54, %v6932_v33  ;;  %v3647_v45 = vadd.f32 %v3639_v49, %v15538_v22  ;;  %v6065_v51 = vadd.f32 %v6057_v10, %v6047_v21  ;;  %v3213_v27 = vadd.f32 %v12359_v39, %v3203_v63  ;;  %v15543_v21 = vld [vmem:[#allocation211_spill] sm:$0xff] }
 0x3a3   : > { %15537 = vst [vmem:[#allocation134_spill] sm:$0xff] %v12998_v50  ;;  %v3367_v44 = vadd.f32 %v12370_v43, %v3357_v37  ;;  %v3521_v1 = vadd.f32 %v12386_v26, %v3511_v29  ;;  %v4457_v35 = vsel %vm4450_vm3, %v12998_v50, -inf  ;;  %v3793_v54 = vmul.f32 %v9563_v0, %v12405_v60  ;;  %v15549_v50 = vld [vmem:[#allocation60_spill] sm:$0xff] }
 0x3a4   : > { %v6968_v40 = vadd.f32 %v6960_v52, %v6950_v13  ;;  %v3665_v46 = vadd.f32 %v3657_v12, %v3647_v45  ;;  %4458 = vmax.xlane.f32.xlu1 %v4457_v35  ;;  %v6083_v22 = vadd.f32 %v6075_v24, %v6065_v51  ;;  %v13009_v33 = vmax.f32 %v3213_v27, 0.0  ;;  %v9564_v52 = vld [vmem:[%s10424_s26 + $0x68] sm:$0xff]  ;;  %v15541_v24 = vld [vmem:[#allocation202_spill] sm:$0xff] }
 0x3a5   : > { %v13011_v57 = vmax.f32 %v3367_v44, 0.0  ;;  %v13013_v10 = vmax.f32 %v3521_v1, 0.0  ;;  %v3801_v23 = vadd.f32 %v3793_v54, %v15540_v3  ;;  %v3811_v45 = vmul.f32 %v12408_v5, %v12971_v53  ;;  %v15544_v27 = vld [vmem:[#allocation143_spill] sm:$0xff]  ;;  %v15547_v54 = vld [vmem:[#allocation146_spill] sm:$0xff] }
 0x3a6   : > { %v13016_v37 = vadd.f32 %v12817_v11, %v6968_v40  ;;  %v3675_v29 = vadd.f32 %v12402_v6, %v3665_v46  ;;  %v6101_v13 = vadd.f32 %v6093_v38, %v6083_v22  ;;  %v3929_v15 = vmul.f32 %v9564_v52, %v15541_v24  ;;  %v15545_v38 = vld [vmem:[#allocation51_spill] sm:$0xff]  ;;  %v15546_v40 = vld [vmem:[#allocation145_spill] sm:$0xff]  ;;  %v15548_v3 = vld [vmem:[#allocation210_spill] sm:$0xff] }
 0x3a7   : > { %v3947_v49 = vmul.f32 %v9563_v0, %v15542_v32  ;;  %v3965_v63 = vmul.f32 %v15543_v21, %v12971_v53  ;;  %v3819_v51 = vadd.f32 %v3811_v45, %v3801_v23  ;;  %v4083_v44 = vmul.f32 %v9564_v52, %v15544_v27  ;;  %v9565_v32 = vld [vmem:[%s10424_s26 + $0x60] sm:$0xff]  ;;  %v15551_v24 = vld [vmem:[#allocation147_spill] sm:$0xff] }
 0x3a8   : > { %15539 = vst [vmem:[#allocation132_spill] sm:$0xff] %v13016_v37  ;;  %v6988_v8 = vsel %vm4450_vm3, %v13016_v37, -inf  ;;  %v13029_v12 = vmax.f32 %v3675_v29, 0.0  ;;  %v6119_v1 = vadd.f32 %v6111_v56, %v6101_v13  ;;  %v3937_v35 = vadd.f32 %v3929_v15, %v15545_v38  ;;  %v15550_v37 = vld [vmem:[#allocation203_spill] sm:$0xff]  ;;  %v15553_v13 = vld [vmem:[#allocation90_spill] sm:$0xff] }
 0x3a9   : > { %6989 = vmax.xlane.f32.xlu0 %v6988_v8  ;;  %v4101_v46 = vmul.f32 %v9563_v0, %v15546_v40  ;;  %v4119_v22 = vmul.f32 %v15547_v54, %v12971_v53  ;;  %v3829_v28 = vadd.f32 %v15548_v3, %v3819_v51  ;;  %v4091_v21 = vadd.f32 %v4083_v44, %v15549_v50  ;;  %v15554_v8 = vld [vmem:[#allocation101_spill] sm:$0xff]  ;;  %v15555_v51 = vld [vmem:[#allocation163_spill] sm:$0xff] }
 0x3aa   : > { %v4219_v29 = vmul.f32 %v9565_v32, %v15550_v37  ;;  %v4237_v23 = vmul.f32 %v9564_v52, %v15551_v24  ;;  %v13042_v45 = vadd.f32 %v15528_v36, %v6119_v1  ;;  %v3955_v56 = vadd.f32 %v3947_v49, %v3937_v35  ;;  %v15556_v50 = vld [vmem:[#allocation81_spill] sm:$0xff]  ;;  %v15557_v1 = vld [vmem:[#allocation87_spill] sm:$0xff] }
 0x3ab   : > { %v4255_v15 = vmul.f32 %v9563_v0, %v15553_v13  ;;  %v4273_v38 = vmul.f32 %v15554_v8, %v12971_v53  ;;  %v13047_v40 = vmax.f32 %v3829_v28, 0.0  ;;  %v4109_v54 = vadd.f32 %v4101_v46, %v4091_v21  ;;  %v15558_v0 = vld [vmem:[#allocation96_spill] sm:$0xff]  ;;  %v15559_v21 = vld [vmem:[#allocation165_spill] sm:$0xff] }
 0x3ac   : > { %15552 = vst [vmem:[#allocation137_spill] sm:$0xff] %v13042_v45  ;;  %v4227_v3 = vadd.f32 %v4219_v29, %v15555_v51  ;;  %v4544_v44 = vmul.f32 %v15556_v50, %v13009_v33  ;;  %v6141_v52 = vsel %vm4450_vm3, %v13042_v45, -inf  ;;  %v3973_v32 = vadd.f32 %v3965_v63, %v3955_v56  ;;  %v15560_v29 = vld [vmem:[#allocation94_spill] sm:$0xff]  ;;  %v15561_v8 = vld [vmem:[#allocation144_spill] sm:$0xff] }
 0x3ad   : > { %v4554_v49 = vmul.f32 %v15557_v1, %v13011_v57  ;;  %v4572_v35 = vmul.f32 %v15558_v0, %v13013_v10  ;;  %6142 = vmax.xlane.f32.xlu1 %v6141_v52  ;;  %v4127_v53 = vadd.f32 %v4119_v22, %v4109_v54  ;;  %v4590_v46 = vmul.f32 %v15559_v21, %v13029_v12 }
 0x3ae   : > { %v4245_v28 = vadd.f32 %v4237_v23, %v4227_v3  ;;  %v4608_v51 = vmul.f32 %v15560_v29, %v13047_v40  ;;  %v3983_v13 = vadd.f32 %v15561_v8, %v3973_v32  ;;  %v6843_v63 = vmul.f32 %v12764_v16, %v12697_v9 }
 0x3af   : > { %v4562_v24 = vadd.f32 %v4554_v49, %v4544_v44  ;;  %v6853_v56 = vmul.f32 %v12767_v18, %v12699_v31  ;;  %v4137_v45 = vadd.f32 %v15476_v58, %v4127_v53  ;;  %v6871_v54 = vmul.f32 %v12777_v47, %v12701_v20  ;;  %v15562_v53 = vld [vmem:[#allocation99_spill] sm:$0xff] }
 0x3b0   : > { %v4263_v52 = vadd.f32 %v4255_v15, %v4245_v28  ;;  %v6889_v22 = vmul.f32 %v12780_v17, %v12719_v2  ;;  %v13072_v3 = vmax.f32 %v3983_v13, 0.0  ;;  %v6907_v44 = vmul.f32 %v12791_v34, %v12735_v61  ;;  %v15564_v61 = vld [vmem:[#allocation105_spill] sm:$0xff] }
 0x3b1   : > { %v4580_v23 = vadd.f32 %v4572_v35, %v4562_v24  ;;  %v6861_v32 = vadd.f32 %v6853_v56, %v6843_v63  ;;  %v13076_v9 = vmax.f32 %v4137_v45, 0.0  ;;  %v6925_v31 = vmul.f32 %v15523_v25, %v12769_v30  ;;  %v15563_v35 = vld [vmem:[#allocation103_spill] sm:$0xff] }
 0x3b2   : > { %v4281_v49 = vadd.f32 %v4273_v38, %v4263_v52  ;;  %v6943_v15 = vmul.f32 %v15524_v14, %v12782_v48  ;;  %v4626_v2 = vmul.f32 %v15562_v53, %v13072_v3  ;;  %v6961_v24 = vmul.f32 %v15525_v42, %v12809_v7  ;;  %v15565_v38 = vld [vmem:[#allocation104_spill] sm:$0xff]  ;;  %v15566_v30 = vld [vmem:[#allocation107_spill] sm:$0xff]  ;;  %v15570_v14 = vld [vmem:[#allocation97_spill] sm:$0xff] }
 0x3b3   : > { %v4598_v20 = vadd.f32 %v4590_v46, %v4580_v23  ;;  %v6879_v13 = vadd.f32 %v6871_v54, %v6861_v32  ;;  %v4644_v45 = vmul.f32 %v15564_v61, %v13076_v9  ;;  %v4309_v63 = vmul.f32 %v15565_v38, %v13009_v33  ;;  %v15567_v52 = vld [vmem:[#allocation108_spill] sm:$0xff]  ;;  %v15568_v54 = vld [vmem:[#allocation109_spill] sm:$0xff] }
 0x3b4   : > { %v4291_v28 = vadd.f32 %v15563_v35, %v4281_v49  ;;  %v4319_v56 = vmul.f32 %v15566_v30, %v13011_v57  ;;  %v4337_v23 = vmul.f32 %v15567_v52, %v13013_v10  ;;  %v4355_v32 = vmul.f32 %v15568_v54, %v13029_v12  ;;  %v15569_v35 = vld [vmem:[#allocation110_spill] sm:$0xff]  ;;  %v15575_v30 = vld [vmem:[#allocation129_spill] sm:$0xff] }
 0x3b5   : > { %v4616_v48 = vadd.f32 %v4608_v51, %v4598_v20  ;;  %v6897_v46 = vadd.f32 %v6889_v22, %v6879_v13  ;;  %v4373_v42 = vmul.f32 %v15569_v35, %v13047_v40  ;;  %v4391_v38 = vmul.f32 %v15570_v14, %v13072_v3  ;;  %v15571_v51 = vld [vmem:[#allocation112_spill] sm:$0xff]  ;;  %v15572_v20 = vld [vmem:[#allocation127_spill] sm:$0xff]  ;;  %v15573_v52 = vld [vmem:[#allocation106_spill] sm:$0xff] }
 0x3b6   : > { %v13097_v7 = vmax.f32 %v4291_v28, 0.0  ;;  %v4327_v49 = vadd.f32 %v4319_v56, %v4309_v63  ;;  %v4409_v22 = vmul.f32 %v15571_v51, %v13076_v9  ;;  %v4542_v13 = vmul.f32 %v15556_v50, %v15572_v20  ;;  %v15574_v63 = vld [vmem:[#allocation113_spill] sm:$0xff] }
 0x3b7   : > { %v4634_v25 = vadd.f32 %v4626_v2, %v4616_v48  ;;  %v6915_v34 = vadd.f32 %v6907_v44, %v6897_v46  ;;  %v4552_v35 = vmul.f32 %v15557_v1, %v15575_v30  ;;  %v15576_v2 = vld [vmem:[#allocation120_spill] sm:$0xff]  ;;  %v4606_v47 = vmul.f32 %v15560_v29, %v12872_v41 }
 0x3b8   : > { %v4662_v54 = vmul.f32 %v15573_v52, %v13097_v7  ;;  %v4345_v28 = vadd.f32 %v4337_v23, %v4327_v49  ;;  %v4427_v56 = vmul.f32 %v15574_v63, %v13097_v7  ;;  %v4570_v44 = vmul.f32 %v15558_v0, %v15576_v2  ;;  %v15577_v48 = vld [vmem:[#allocation128_spill] sm:$0xff] }
 0x3b9   : > { %v4652_v17 = vadd.f32 %v4644_v45, %v4634_v25  ;;  %v6933_v14 = vadd.f32 %v6925_v31, %v6915_v34  ;;  %v4588_v46 = vmul.f32 %v15559_v21, %v15577_v48  ;;  %v4560_v20 = vadd.f32 %v4552_v35, %v4542_v13  ;;  %v15578_v25 = vld [vmem:[#allocation208_spill] sm:$0xff]  ;;  %v15580_v13 = vld [vmem:[#allocation115_spill] sm:$0xff] }
 0x3ba   : > { %v4363_v51 = vadd.f32 %v4355_v32, %v4345_v28  ;;  %v4624_v23 = vmul.f32 %v15562_v53, %v12897_v19  ;;  %v4642_v34 = vmul.f32 %v15564_v61, %v12914_v55  ;;  %v4660_v31 = vmul.f32 %v15573_v52, %v15578_v25  ;;  %v15579_v32 = vld [vmem:[#allocation111_spill] sm:$0xff]  ;;  %v15581_v28 = vld [vmem:[#allocation102_spill] sm:$0xff]  ;;  %v15584_v55 = vld [vmem:[#allocation116_spill] sm:$0xff] }
 0x3bb   : > { %v4670_v49 = vadd.f32 %v4662_v54, %v4652_v17  ;;  %v6951_v63 = vadd.f32 %v6943_v15, %v6933_v14  ;;  %v4578_v30 = vadd.f32 %v4570_v44, %v4560_v20  ;;  %v5994_v35 = vmul.f32 %v15579_v32, %v13009_v33  ;;  %v15583_v19 = vld [vmem:[#allocation114_spill] sm:$0xff]  ;;  %v13139_v20 = vld [vmem:[%s10424_s26 + $0x98] sm:$0xff] }
 0x3bc   : > { %v4381_v45 = vadd.f32 %v4373_v42, %v4363_v51  ;;  %v6004_v41 = vmul.f32 %v15580_v13, %v13011_v57  ;;  %v6022_v14 = vmul.f32 %v15583_v19, %v13013_v10  ;;  %v6040_v15 = vmul.f32 %v15584_v55, %v13029_v12  ;;  %v15585_v51 = vld [vmem:[#allocation118_spill] sm:$0xff]  ;;  %v15588_v55 = vld [vmem:[#allocation117_spill] sm:$0xff]  ;;  %v15591_v19 = vld [vmem:[#allocation199_spill] sm:$0xff] }
 0x3bd   : > { %v13130_v2 = vadd.f32 %v15581_v28, %v4670_v49  ;;  %v6969_v17 = vadd.f32 %v6961_v24, %v6951_v63  ;;  %v4596_v48 = vadd.f32 %v4588_v46, %v4578_v30  ;;  %v6058_v44 = vmul.f32 %v15585_v51, %v13047_v40  ;;  %v15587_v24 = vld [vmem:[#allocation46_spill] sm:$0xff] }
 0x3be   : > { %v4399_v54 = vadd.f32 %v4391_v38, %v4381_v45  ;;  %v6012_v42 = vadd.f32 %v6004_v41, %v5994_v35  ;;  %v6076_v63 = vmul.f32 %v15587_v24, %v13072_v3  ;;  %v6094_v38 = vmul.f32 %v15588_v55, %v13076_v9  ;;  %v15589_v35 = vld [vmem:[#allocation121_spill] sm:$0xff]  ;;  %v15592_v24 = vld [vmem:[#allocation88_spill] sm:$0xff]  ;;  %v15595_v55 = vld [vmem:[#allocation59_spill] sm:$0xff] }
 0x3bf   : > { %15582 = vst [vmem:[#allocation167_spill] sm:$0xff] %v13130_v2  ;;  %v4694_v25 = vsel %vm4450_vm3, %v13130_v2, -inf  ;;  %v13144_v49 = vadd.f32 %v12817_v11, %v6969_v17  ;;  %v4614_v45 = vadd.f32 %v4606_v47, %v4596_v48  ;;  %v6112_v41 = vmul.f32 %v15589_v35, %v13097_v7  ;;  %v15590_v17 = vld [vmem:[#allocation197_spill] sm:$0xff]  ;;  %v15593_v48 = vld [vmem:[#allocation68_spill] sm:$0xff]  ;;  %v15594_v35 = vld [vmem:[#allocation39_spill] sm:$0xff] }
 0x3c0   : > { %4695 = vmax.xlane.f32.xlu0 %v4694_v25  ;;  %v4417_v46 = vadd.f32 %v4409_v22, %v4399_v54  ;;  %v6030_v30 = vadd.f32 %v6022_v14, %v6012_v42  ;;  %v3196_v51 = vmul.f32 %v15590_v17, %v13139_v20  ;;  %v3350_v13 = vmul.f32 %v15591_v19, %v13139_v20  ;;  %v9566_v14 = vld [vmem:[%s10424_s26 + $0x90] sm:$0xff] }
 0x3c1   : > { %15586 = vst [vmem:[#allocation142_spill] sm:$0xff] %v13144_v49  ;;  %v6991_v2 = vsel %vm4450_vm3, %v13144_v49, -inf  ;;  %v3504_v32 = vmul.f32 %v15592_v24, %v13139_v20  ;;  %v4632_v22 = vadd.f32 %v4624_v23, %v4614_v45  ;;  %v3640_v54 = vmul.f32 %v9566_v14, %v15533_v59 }
 0x3c2   : > { %6992 = vmax.xlane.f32.xlu1 %v6991_v2  ;;  %v4435_v25 = vadd.f32 %v4427_v56, %v4417_v46  ;;  %v6048_v47 = vadd.f32 %v6040_v15, %v6030_v30  ;;  %v3204_v42 = vadd.f32 %v3196_v51, %v15593_v48  ;;  %v3358_v49 = vadd.f32 %v3350_v13, %v15594_v35  ;;  %v15597_v56 = vld [vmem:[#allocation56_spill] sm:$0xff] }
 0x3c3   : > { %v3512_v11 = vadd.f32 %v3504_v32, %v15595_v55  ;;  %v3658_v52 = vmul.f32 %v12389_v62, %v13139_v20  ;;  %v4650_v24 = vadd.f32 %v4642_v34, %v4632_v22  ;;  %v3648_v23 = vadd.f32 %v3640_v54, %v15597_v56  ;;  %v15601_v54 = vld [vmem:[#allocation89_spill] sm:$0xff] }
 0x3c4   : > { %v13168_v19 = vadd.f32 %v15526_v4, %v4435_v25  ;;  %v6066_v2 = vadd.f32 %v6058_v44, %v6048_v47  ;;  %v3214_v15 = vadd.f32 %v12359_v39, %v3204_v42  ;;  %v3368_v46 = vadd.f32 %v12370_v43, %v3358_v49  ;;  %v15598_v25 = vld [vmem:[#allocation73_spill] sm:$0xff]  ;;  %v15602_v42 = vld [vmem:[#allocation211_spill] sm:$0xff] }
 0x3c5   : > { %v3522_v51 = vadd.f32 %v12386_v26, %v3512_v11  ;;  %v3794_v13 = vmul.f32 %v9566_v14, %v12405_v60  ;;  %v4668_v55 = vadd.f32 %v4660_v31, %v4650_v24  ;;  %v3666_v30 = vadd.f32 %v3658_v52, %v3648_v23  ;;  %v9567_v24 = vld [vmem:[%s10424_s26 + $0x88] sm:$0xff]  ;;  %v15600_v52 = vld [vmem:[#allocation202_spill] sm:$0xff] }
 0x3c6   : > { %15596 = vst [vmem:[#allocation169_spill] sm:$0xff] %v13168_v19  ;;  %v4460_v32 = vsel %vm4450_vm3, %v13168_v19, -inf  ;;  %v6084_v45 = vadd.f32 %v6076_v63, %v6066_v2  ;;  %v13177_v34 = vmax.f32 %v3214_v15, 0.0  ;;  %v13179_v44 = vmax.f32 %v3368_v46, 0.0 }
 0x3c7   : > { %4461 = vmax.xlane.f32.xlu0 %v4460_v32  ;;  %v13181_v35 = vmax.f32 %v3522_v51, 0.0  ;;  %v3802_v49 = vadd.f32 %v3794_v13, %v15598_v25  ;;  %v13185_v22 = vadd.f32 %v15581_v28, %v4668_v55  ;;  %v3676_v47 = vadd.f32 %v12402_v6, %v3666_v30  ;;  %v15603_v51 = vld [vmem:[#allocation75_spill] sm:$0xff]  ;;  %v15604_v32 = vld [vmem:[#allocation38_spill] sm:$0xff] }
 0x3c8   : > { %v6102_v11 = vadd.f32 %v6094_v38, %v6084_v45  ;;  %v3812_v31 = vmul.f32 %v12408_v5, %v13139_v20  ;;  %v3930_v63 = vmul.f32 %v9567_v24, %v15600_v52  ;;  %v3948_v48 = vmul.f32 %v9566_v14, %v15601_v54  ;;  %v15605_v45 = vld [vmem:[#allocation145_spill] sm:$0xff]  ;;  %v15606_v25 = vld [vmem:[#allocation146_spill] sm:$0xff] }
 0x3c9   : > { %15599 = vst [vmem:[#allocation172_spill] sm:$0xff] %v13185_v22  ;;  %v3966_v2 = vmul.f32 %v15602_v42, %v13139_v20  ;;  %v4084_v56 = vmul.f32 %v9567_v24, %v15544_v27  ;;  %v4688_v23 = vsel %vm4450_vm3, %v13185_v22, -inf  ;;  %v13198_v15 = vmax.f32 %v3676_v47, 0.0  ;;  %v15608_v27 = vld [vmem:[#allocation210_spill] sm:$0xff] }
 0x3ca   : > { %v6120_v38 = vadd.f32 %v6112_v41, %v6102_v11  ;;  %v3820_v46 = vadd.f32 %v3812_v31, %v3802_v49  ;;  %4689 = vmax.xlane.f32.xlu1 %v4688_v23  ;;  %v3938_v13 = vadd.f32 %v3930_v63, %v15603_v51  ;;  %v4102_v30 = vmul.f32 %v9566_v14, %v15605_v45  ;;  %v9568_v22 = vld [vmem:[%s10424_s26 + $0x80] sm:$0xff]  ;;  %v15609_v11 = vld [vmem:[#allocation147_spill] sm:$0xff] }
 0x3cb   : > { %v4092_v55 = vadd.f32 %v4084_v56, %v15604_v32  ;;  %v4120_v19 = vmul.f32 %v15606_v25, %v13139_v20  ;;  %v4220_v41 = vmul.f32 %v9568_v22, %v15550_v37  ;;  %v4238_v49 = vmul.f32 %v9567_v24, %v15609_v11  ;;  %v15610_v63 = vld [vmem:[#allocation90_spill] sm:$0xff]  ;;  %v15611_v56 = vld [vmem:[#allocation101_spill] sm:$0xff] }
 0x3cc   : > { %v13206_v4 = vadd.f32 %v15528_v36, %v6120_v38  ;;  %v3830_v42 = vadd.f32 %v15608_v27, %v3820_v46  ;;  %v3956_v47 = vadd.f32 %v3948_v48, %v3938_v13  ;;  %v4256_v23 = vmul.f32 %v9566_v14, %v15610_v63  ;;  %v15612_v38 = vld [vmem:[#allocation91_spill] sm:$0xff] }
 0x3cd   : > { %v4110_v31 = vadd.f32 %v4102_v30, %v4092_v55  ;;  %v4274_v51 = vmul.f32 %v15611_v56, %v13139_v20  ;;  %v4228_v36 = vadd.f32 %v4220_v41, %v15612_v38  ;;  %v4545_v46 = vmul.f32 %v15556_v50, %v13177_v34  ;;  %v15615_v38 = vld [vmem:[#allocation125_spill] sm:$0xff] }
 0x3ce   : > { %15607 = vst [vmem:[#allocation135_spill] sm:$0xff] %v13206_v4  ;;  %v6144_v32 = vsel %vm4450_vm3, %v13206_v4, -inf  ;;  %v13217_v25 = vmax.f32 %v3830_v42, 0.0  ;;  %v3974_v22 = vadd.f32 %v3966_v2, %v3956_v47  ;;  %v4555_v48 = vmul.f32 %v15557_v1, %v13179_v44 }
 0x3cf   : > { %6145 = vmax.xlane.f32.xlu0 %v6144_v32  ;;  %v4128_v24 = vadd.f32 %v4120_v19, %v4110_v31  ;;  %v4573_v14 = vmul.f32 %v15558_v0, %v13181_v35  ;;  %v4246_v20 = vadd.f32 %v4238_v49, %v4228_v36  ;;  %v4591_v13 = vmul.f32 %v15559_v21, %v13198_v15  ;;  %v15613_v36 = vld [vmem:[#allocation214_spill] sm:$0xff]  ;;  %v15614_v31 = vld [vmem:[#allocation215_spill] sm:$0xff] }
 0x3d0   : > { %v4609_v42 = vmul.f32 %v15560_v29, %v13217_v25  ;;  %v6844_v55 = vmul.f32 %v12764_v16, %v13009_v33  ;;  %v3984_v30 = vadd.f32 %v15561_v8, %v3974_v22  ;;  %v4563_v2 = vadd.f32 %v4555_v48, %v4545_v46  ;;  %v15618_v48 = vld [vmem:[#allocation138_spill] sm:$0xff] }
 0x3d1   : > { %v4138_v19 = vadd.f32 %v15476_v58, %v4128_v24  ;;  %v6854_v41 = vmul.f32 %v12767_v18, %v13011_v57  ;;  %v4264_v47 = vadd.f32 %v4256_v23, %v4246_v20  ;;  %v6872_v49 = vmul.f32 %v15613_v36, %v13013_v10  ;;  %v15617_v57 = vld [vmem:[#allocation126_spill] sm:$0xff]  ;;  %v15619_v20 = vld [vmem:[#allocation139_spill] sm:$0xff]  ;;  %v15627_v18 = vld [vmem:[#allocation112_spill] sm:$0xff] }
 0x3d2   : > { %v6890_v32 = vmul.f32 %v15614_v31, %v13029_v12  ;;  %v6908_v4 = vmul.f32 %v15615_v38, %v13047_v40  ;;  %v13242_v29 = vmax.f32 %v3984_v30, 0.0  ;;  %v4581_v22 = vadd.f32 %v4573_v14, %v4563_v2  ;;  %v15620_v14 = vld [vmem:[#allocation103_spill] sm:$0xff]  ;;  %v15626_v38 = vld [vmem:[#allocation97_spill] sm:$0xff] }
 0x3d3   : > { %v13244_v33 = vmax.f32 %v4138_v19, 0.0  ;;  %v6862_v46 = vadd.f32 %v6854_v41, %v6844_v55  ;;  %v4282_v24 = vadd.f32 %v4274_v51, %v4264_v47  ;;  %v6926_v23 = vmul.f32 %v15617_v57, %v13072_v3  ;;  %v15621_v51 = vld [vmem:[#allocation104_spill] sm:$0xff]  ;;  %v15622_v3 = vld [vmem:[#allocation107_spill] sm:$0xff] }
 0x3d4   : > { %v6944_v10 = vmul.f32 %v15618_v48, %v13076_v9  ;;  %v6962_v12 = vmul.f32 %v15619_v20, %v13097_v7  ;;  %v4599_v31 = vadd.f32 %v4591_v13, %v4581_v22  ;;  %v4627_v40 = vmul.f32 %v15562_v53, %v13242_v29  ;;  %v15623_v9 = vld [vmem:[#allocation108_spill] sm:$0xff]  ;;  %v13264_v7 = vld [vmem:[%s10424_s26 + $0xb8] sm:$0xff] }
 0x3d5   : > { %15616 = vst [vmem:[#allocation136_spill] sm:$0xff] %v13244_v33  ;;  %v4645_v30 = vmul.f32 %v15564_v61, %v13244_v33  ;;  %v6880_v19 = vadd.f32 %v6872_v49, %v6862_v46  ;;  %v4292_v55 = vadd.f32 %v15620_v14, %v4282_v24  ;;  %v4310_v2 = vmul.f32 %v15621_v51, %v13177_v34  ;;  %v15624_v20 = vld [vmem:[#allocation109_spill] sm:$0xff]  ;;  %v15625_v49 = vld [vmem:[#allocation110_spill] sm:$0xff] }
 0x3d6   : > { %v4320_v41 = vmul.f32 %v15622_v3, %v13179_v44  ;;  %v4338_v47 = vmul.f32 %v15623_v9, %v13181_v35  ;;  %v4617_v13 = vadd.f32 %v4609_v42, %v4599_v31  ;;  %v4356_v48 = vmul.f32 %v15624_v20, %v13198_v15  ;;  %v15628_v31 = vld [vmem:[#allocation199_spill] sm:$0xff]  ;;  %v15634_v61 = vld [vmem:[#allocation61_spill] sm:$0xff] }
 0x3d7   : > { %v6898_v22 = vadd.f32 %v6890_v32, %v6880_v19  ;;  %v4374_v46 = vmul.f32 %v15625_v49, %v13217_v25  ;;  %v13270_v24 = vmax.f32 %v4292_v55, 0.0  ;;  %v4392_v36 = vmul.f32 %v15626_v38, %v13242_v29  ;;  %v15629_v19 = vld [vmem:[#allocation106_spill] sm:$0xff]  ;;  %v15631_v38 = vld [vmem:[#allocation88_spill] sm:$0xff] }
 0x3d8   : > { %v4328_v57 = vadd.f32 %v4320_v41, %v4310_v2  ;;  %v4410_v16 = vmul.f32 %v15627_v18, %v13244_v33  ;;  %v4635_v9 = vadd.f32 %v4627_v40, %v4617_v13  ;;  %v3197_v42 = vmul.f32 %v15590_v17, %v13264_v7  ;;  %v15630_v2 = vld [vmem:[#allocation113_spill] sm:$0xff]  ;;  %v15633_v13 = vld [vmem:[#allocation83_spill] sm:$0xff] }
 0x3d9   : > { %v6916_v3 = vadd.f32 %v6908_v4, %v6898_v22  ;;  %v3351_v32 = vmul.f32 %v15628_v31, %v13264_v7  ;;  %v4663_v55 = vmul.f32 %v15629_v19, %v13270_v24  ;;  %v4428_v41 = vmul.f32 %v15630_v2, %v13270_v24  ;;  %v15632_v40 = vld [vmem:[#allocation65_spill] sm:$0xff]  ;;  %v9569_v31 = vld [vmem:[%s10424_s26 + $0xb0] sm:$0xff] }
 0x3da   : > { %v4346_v49 = vadd.f32 %v4338_v47, %v4328_v57  ;;  %v3505_v20 = vmul.f32 %v15631_v38, %v13264_v7  ;;  %v4653_v51 = vadd.f32 %v4645_v30, %v4635_v9  ;;  %v3205_v4 = vadd.f32 %v3197_v42, %v15632_v40  ;;  %v15635_v9 = vld [vmem:[#allocation50_spill] sm:$0xff] }
 0x3db   : > { %v6934_v18 = vadd.f32 %v6926_v23, %v6916_v3  ;;  %v3359_v22 = vadd.f32 %v3351_v32, %v15633_v13  ;;  %v3641_v33 = vmul.f32 %v9569_v31, %v15533_v59  ;;  %v3659_v57 = vmul.f32 %v12389_v62, %v13264_v7  ;;  %v15640_v13 = vld [vmem:[#allocation211_spill] sm:$0xff] }
 0x3dc   : > { %v4364_v17 = vadd.f32 %v4356_v48, %v4346_v49  ;;  %v3513_v14 = vadd.f32 %v3505_v20, %v15634_v61  ;;  %v4671_v47 = vadd.f32 %v4663_v55, %v4653_v51  ;;  %v3215_v19 = vadd.f32 %v12359_v39, %v3205_v4  ;;  %v15637_v55 = vld [vmem:[#allocation53_spill] sm:$0xff] }
 0x3dd   : > { %v6952_v2 = vadd.f32 %v6944_v10, %v6934_v18  ;;  %v3369_v30 = vadd.f32 %v12370_v43, %v3359_v22  ;;  %v3649_v48 = vadd.f32 %v3641_v33, %v15635_v9  ;;  %v3795_v61 = vmul.f32 %v9569_v31, %v12405_v60  ;;  %v15638_v33 = vld [vmem:[#allocation119_spill] sm:$0xff] }
 0x3de   : > { %v4382_v23 = vadd.f32 %v4374_v46, %v4364_v17  ;;  %v3523_v3 = vadd.f32 %v12386_v26, %v3513_v14  ;;  %v13299_v20 = vadd.f32 %v15581_v28, %v4671_v47  ;;  %v13301_v42 = vmax.f32 %v3215_v19, 0.0 }
 0x3df   : > { %v6970_v49 = vadd.f32 %v6962_v12, %v6952_v2  ;;  %v13303_v51 = vmax.f32 %v3369_v30, 0.0  ;;  %v3667_v32 = vadd.f32 %v3659_v57, %v3649_v48  ;;  %v3803_v17 = vadd.f32 %v3795_v61, %v15637_v55  ;;  %v9570_v12 = vld [vmem:[%s10424_s26 + $0xa8] sm:$0xff]  ;;  %v15641_v30 = vld [vmem:[#allocation186_spill] sm:$0xff] }
 0x3e0   : > { %15636 = vst [vmem:[#allocation168_spill] sm:$0xff] %v13299_v20  ;;  %v4400_v18 = vadd.f32 %v4392_v36, %v4382_v23  ;;  %v13305_v10 = vmax.f32 %v3523_v3, 0.0  ;;  %v4697_v14 = vsel %vm4450_vm3, %v13299_v20, -inf  ;;  %v3813_v40 = vmul.f32 %v12408_v5, %v13264_v7  ;;  %v15642_v3 = vld [vmem:[#allocation143_spill] sm:$0xff] }
 0x3e1   : > { %v13311_v46 = vadd.f32 %v15638_v33, %v6970_v49  ;;  %v3931_v19 = vmul.f32 %v9570_v12, %v15600_v52  ;;  %4698 = vmax.xlane.f32.xlu1 %v4697_v14  ;;  %v3677_v36 = vadd.f32 %v12402_v6, %v3667_v32  ;;  %v3949_v4 = vmul.f32 %v9569_v31, %v15601_v54  ;;  %v15643_v49 = vld [vmem:[#allocation146_spill] sm:$0xff]  ;;  %v15644_v14 = vld [vmem:[#allocation52_spill] sm:$0xff] }
 0x3e2   : > { %v4418_v2 = vadd.f32 %v4410_v16, %v4400_v18  ;;  %v3967_v22 = vmul.f32 %v15640_v13, %v13264_v7  ;;  %v3821_v47 = vadd.f32 %v3813_v40, %v3803_v17  ;;  %v4085_v9 = vmul.f32 %v9570_v12, %v15642_v3  ;;  %v15645_v40 = vld [vmem:[#allocation100_spill] sm:$0xff]  ;;  %v15665_v3 = vld [vmem:[#allocation97_spill] sm:$0xff] }
 0x3e3   : > { %15639 = vst [vmem:[#allocation175_spill] sm:$0xff] %v13311_v46  ;;  %v6994_v57 = vsel %vm4450_vm3, %v13311_v46, -inf  ;;  %v3939_v23 = vadd.f32 %v3931_v19, %v15641_v30  ;;  %v13325_v61 = vmax.f32 %v3677_v36, 0.0  ;;  %v4103_v16 = vmul.f32 %v9569_v31, %v15605_v45  ;;  %v9571_v46 = vld [vmem:[%s10424_s26 + $0xa0] sm:$0xff] }
 0x3e4   : > { %6995 = vmax.xlane.f32.xlu0 %v6994_v57  ;;  %v4436_v48 = vadd.f32 %v4428_v41, %v4418_v2  ;;  %v4121_v18 = vmul.f32 %v15643_v49, %v13264_v7  ;;  %v3831_v32 = vadd.f32 %v15608_v27, %v3821_v47  ;;  %v4093_v20 = vadd.f32 %v4085_v9, %v15644_v14  ;;  %v15649_v14 = vld [vmem:[#allocation111_spill] sm:$0xff] }
 0x3e5   : > { %v3957_v55 = vadd.f32 %v3949_v4, %v3939_v23  ;;  %v4221_v17 = vmul.f32 %v9571_v46, %v15550_v37  ;;  %v4239_v41 = vmul.f32 %v9570_v12, %v15609_v11  ;;  %v4257_v2 = vmul.f32 %v9569_v31, %v15610_v63  ;;  %v15647_v4 = vld [vmem:[#allocation57_spill] sm:$0xff] }
 0x3e6   : > { %v13335_v19 = vadd.f32 %v15645_v40, %v4436_v48  ;;  %v4275_v36 = vmul.f32 %v15611_v56, %v13264_v7  ;;  %v13341_v57 = vmax.f32 %v3831_v32, 0.0  ;;  %v4111_v47 = vadd.f32 %v4103_v16, %v4093_v20  ;;  %v15648_v32 = vld [vmem:[#allocation94_spill] sm:$0xff]  ;;  %v15655_v56 = vld [vmem:[#allocation136_spill] sm:$0xff] }
 0x3e7   : > { %v3975_v30 = vadd.f32 %v3967_v22, %v3957_v55  ;;  %v4229_v23 = vadd.f32 %v4221_v17, %v15647_v4  ;;  %v4546_v46 = vmul.f32 %v15556_v50, %v13301_v42  ;;  %v4556_v12 = vmul.f32 %v15557_v1, %v13303_v51  ;;  %v15650_v4 = vld [vmem:[#allocation115_spill] sm:$0xff] }
 0x3e8   : > { %15646 = vst [vmem:[#allocation166_spill] sm:$0xff] %v13335_v19  ;;  %v4463_v9 = vsel %vm4450_vm3, %v13335_v19, -inf  ;;  %v4574_v31 = vmul.f32 %v15558_v0, %v13305_v10  ;;  %v4129_v48 = vadd.f32 %v4121_v18, %v4111_v47  ;;  %v4592_v20 = vmul.f32 %v15559_v21, %v13325_v61  ;;  %v15651_v18 = vld [vmem:[#allocation114_spill] sm:$0xff]  ;;  %v15658_v50 = vld [vmem:[#allocation103_spill] sm:$0xff] }
 0x3e9   : > { %4464 = vmax.xlane.f32.xlu1 %v4463_v9  ;;  %v3985_v7 = vadd.f32 %v15561_v8, %v3975_v30  ;;  %v4247_v22 = vadd.f32 %v4239_v41, %v4229_v23  ;;  %v4564_v16 = vadd.f32 %v4556_v12, %v4546_v46  ;;  %v4610_v55 = vmul.f32 %v15648_v32, %v13341_v57  ;;  %v15652_v46 = vld [vmem:[#allocation116_spill] sm:$0xff]  ;;  %v15653_v32 = vld [vmem:[#allocation118_spill] sm:$0xff] }
 0x3ea   : > { %v5995_v17 = vmul.f32 %v15649_v14, %v13177_v34  ;;  %v6005_v19 = vmul.f32 %v15650_v4, %v13179_v44  ;;  %v4139_v9 = vadd.f32 %v15476_v58, %v4129_v48  ;;  %v6023_v41 = vmul.f32 %v15651_v18, %v13181_v35  ;;  %v15654_v48 = vld [vmem:[#allocation46_spill] sm:$0xff] }
 0x3eb   : > { %v13361_v1 = vmax.f32 %v3985_v7, 0.0  ;;  %v4265_v30 = vadd.f32 %v4257_v2, %v4247_v22  ;;  %v4582_v47 = vadd.f32 %v4574_v31, %v4564_v16  ;;  %v6041_v12 = vmul.f32 %v15652_v46, %v13198_v15  ;;  %v15656_v31 = vld [vmem:[#allocation117_spill] sm:$0xff] }
 0x3ec   : > { %v6013_v23 = vadd.f32 %v6005_v19, %v5995_v17  ;;  %v6059_v8 = vmul.f32 %v15653_v32, %v13217_v25  ;;  %v13370_v21 = vmax.f32 %v4139_v9, 0.0  ;;  %v6077_v2 = vmul.f32 %v15654_v48, %v13242_v29  ;;  %v15657_v16 = vld [vmem:[#allocation121_spill] sm:$0xff] }
 0x3ed   : > { %v4283_v0 = vadd.f32 %v4275_v36, %v4265_v30  ;;  %v4628_v7 = vmul.f32 %v15562_v53, %v13361_v1  ;;  %v4600_v22 = vadd.f32 %v4592_v20, %v4582_v47  ;;  %v6095_v19 = vmul.f32 %v15656_v31, %v15655_v56  ;;  %v15659_v9 = vld [vmem:[#allocation105_spill] sm:$0xff]  ;;  %v15660_v36 = vld [vmem:[#allocation104_spill] sm:$0xff]  ;;  %v15661_v53 = vld [vmem:[#allocation107_spill] sm:$0xff] }
 0x3ee   : > { %v6031_v58 = vadd.f32 %v6023_v41, %v6013_v23  ;;  %v6113_v17 = vmul.f32 %v15657_v16, %v13270_v24  ;;  %v4646_v11 = vmul.f32 %v15659_v9, %v13370_v21  ;;  %v4311_v30 = vmul.f32 %v15660_v36, %v13301_v42  ;;  %v15662_v41 = vld [vmem:[#allocation108_spill] sm:$0xff]  ;;  %v15663_v23 = vld [vmem:[#allocation109_spill] sm:$0xff] }
 0x3ef   : > { %v4293_v63 = vadd.f32 %v15658_v50, %v4283_v0  ;;  %v4321_v37 = vmul.f32 %v15661_v53, %v13303_v51  ;;  %v4618_v27 = vadd.f32 %v4610_v55, %v4600_v22  ;;  %v4339_v47 = vmul.f32 %v15662_v41, %v13305_v10  ;;  %v15664_v50 = vld [vmem:[#allocation110_spill] sm:$0xff]  ;;  %v15666_v55 = vld [vmem:[#allocation112_spill] sm:$0xff] }
 0x3f0   : > { %v6049_v20 = vadd.f32 %v6041_v12, %v6031_v58  ;;  %v4357_v49 = vmul.f32 %v15663_v23, %v13325_v61  ;;  %v4375_v9 = vmul.f32 %v15664_v50, %v13341_v57  ;;  %v4393_v36 = vmul.f32 %v15665_v3, %v13361_v1  ;;  %v15667_v12 = vld [vmem:[#allocation122_spill] sm:$0xff]  ;;  %v15670_v50 = vld [vmem:[#allocation124_spill] sm:$0xff] }
 0x3f1   : > { %v13391_v45 = vmax.f32 %v4293_v63, 0.0  ;;  %v4329_v0 = vadd.f32 %v4321_v37, %v4311_v30  ;;  %v4636_v13 = vadd.f32 %v4628_v7, %v4618_v27  ;;  %v4411_v58 = vmul.f32 %v15666_v55, %v13370_v21  ;;  %v15668_v41 = vld [vmem:[#allocation106_spill] sm:$0xff]  ;;  %v15669_v37 = vld [vmem:[#allocation113_spill] sm:$0xff]  ;;  %v15672_v7 = vld [vmem:[#allocation215_spill] sm:$0xff] }
 0x3f2   : > { %v6067_v54 = vadd.f32 %v6059_v8, %v6049_v20  ;;  %v6845_v22 = vmul.f32 %v15667_v12, %v13177_v34  ;;  %v6855_v53 = vmul.f32 %v15670_v50, %v13179_v44  ;;  %v15671_v27 = vld [vmem:[#allocation214_spill] sm:$0xff]  ;;  %v6891_v20 = vmul.f32 %v15672_v7, %v13198_v15  ;;  %v15673_v12 = vld [vmem:[#allocation125_spill] sm:$0xff] }
 0x3f3   : > { %v4664_v23 = vmul.f32 %v15668_v41, %v13391_v45  ;;  %v4347_v63 = vadd.f32 %v4339_v47, %v4329_v0  ;;  %v4429_v30 = vmul.f32 %v15669_v37, %v13391_v45  ;;  %v4654_v52 = vadd.f32 %v4646_v11, %v4636_v13  ;;  %v15674_v47 = vld [vmem:[#allocation126_spill] sm:$0xff]  ;;  %v15676_v11 = vld [vmem:[#allocation139_spill] sm:$0xff] }
 0x3f4   : > { %v6085_v3 = vadd.f32 %v6077_v2, %v6067_v54  ;;  %v6873_v8 = vmul.f32 %v15671_v27, %v13181_v35  ;;  %v6863_v34 = vadd.f32 %v6855_v53, %v6845_v22  ;;  %v6909_v41 = vmul.f32 %v15673_v12, %v13217_v25  ;;  %v15675_v44 = vld [vmem:[#allocation138_spill] sm:$0xff] }
 0x3f5   : > { %v4365_v55 = vadd.f32 %v4357_v49, %v4347_v63  ;;  %v6927_v0 = vmul.f32 %v15674_v47, %v13242_v29  ;;  %v4672_v37 = vadd.f32 %v4664_v23, %v4654_v52  ;;  %v6945_v54 = vmul.f32 %v15675_v44, %v15655_v56 }
 0x3f6   : > { %v6103_v5 = vadd.f32 %v6095_v19, %v6085_v3  ;;  %v6963_v35 = vmul.f32 %v15676_v11, %v13270_v24  ;;  %v6881_v2 = vadd.f32 %v6873_v8, %v6863_v34  ;;  %v5996_v53 = vmul.f32 %v15649_v14, %v13301_v42 }
 0x3f7   : > { %v4383_v13 = vadd.f32 %v4375_v9, %v4365_v55  ;;  %v6006_v15 = vmul.f32 %v15650_v4, %v13303_v51  ;;  %v13424_v25 = vadd.f32 %v15581_v28, %v4672_v37  ;;  %v6024_v52 = vmul.f32 %v15651_v18, %v13305_v10  ;;  %v13433_v9 = vld [vmem:[%s10424_s26 + $0xd8] sm:$0xff]  ;;  %v15710_v18 = vld [vmem:[#allocation90_spill] sm:$0xff] }
 0x3f8   : > { %v6121_v29 = vadd.f32 %v6113_v17, %v6103_v5  ;;  %v6042_v56 = vmul.f32 %v15652_v46, %v13325_v61  ;;  %v6899_v24 = vadd.f32 %v6891_v20, %v6881_v2  ;;  %v6060_v19 = vmul.f32 %v15653_v32, %v13341_v57  ;;  %v15678_v55 = vld [vmem:[#allocation149_spill] sm:$0xff] }
 0x3f9   : > { %15677 = vst [vmem:[#allocation171_spill] sm:$0xff] %v13424_v25  ;;  %v4401_v3 = vadd.f32 %v4393_v36, %v4383_v13  ;;  %v6014_v49 = vadd.f32 %v6006_v15, %v5996_v53  ;;  %v4700_v23 = vsel %vm4450_vm3, %v13424_v25, -inf  ;;  %v6078_v5 = vmul.f32 %v15654_v48, %v13361_v1  ;;  %v13444_v36 = vpop.permute.xlu0 %4925  ;;  %v15681_v13 = vld [vmem:[#allocation197_spill] sm:$0xff]  ;;  %v15682_v53 = vld [vmem:[#allocation199_spill] sm:$0xff] }
 0x3fa   : > { %v13438_v22 = vadd.f32 %v15678_v55, %v6121_v29  ;;  %v6096_v17 = vmul.f32 %v15656_v31, %v13370_v21  ;;  %15680 = vst [vmem:[#allocation216_spill] sm:$0xff] %v13444_v36  ;;  %4701 = vmax.xlane.f32.xlu0 %v4700_v23  ;;  %v6917_v37 = vadd.f32 %v6909_v41, %v6899_v24  ;;  %v13456_v36 = vpop.permute.xlu1 %5077  ;;  %v15685_v25 = vld [vmem:[#allocation45_spill] sm:$0xff] }
 0x3fb   : > { %v4419_v63 = vadd.f32 %v4411_v58, %v4401_v3  ;;  %v6032_v8 = vadd.f32 %v6024_v52, %v6014_v49  ;;  %v6114_v20 = vmul.f32 %v15657_v16, %v13391_v45  ;;  %v3198_v2 = vmul.f32 %v15681_v13, %v13433_v9  ;;  %15683 = vst [vmem:[#allocation173_spill] sm:$0xff] %v13456_v36  ;;  %v9572_v3 = vld [vmem:[%s10424_s26 + $0xd0] sm:$0xff]  ;;  %v15684_v49 = vld [vmem:[#allocation78_spill] sm:$0xff] }
 0x3fc   : > { %15679 = vst [vmem:[#allocation177_spill] sm:$0xff] %v13438_v22  ;;  %v6147_v34 = vsel %vm4450_vm3, %v13438_v22, -inf  ;;  %v3352_v15 = vmul.f32 %v15682_v53, %v13433_v9  ;;  %v3506_v29 = vmul.f32 %v15631_v38, %v13433_v9  ;;  %v6935_v58 = vadd.f32 %v6927_v0, %v6917_v37  ;;  %v15686_v13 = vld [vmem:[#allocation54_spill] sm:$0xff] }
 0x3fd   : > { %6148 = vmax.xlane.f32.xlu1 %v6147_v34  ;;  %v4437_v41 = vadd.f32 %v4429_v30, %v4419_v63  ;;  %v6050_v52 = vadd.f32 %v6042_v56, %v6032_v8  ;;  %v3642_v24 = vmul.f32 %v9572_v3, %v15533_v59  ;;  %v3206_v23 = vadd.f32 %v3198_v2, %v15684_v49  ;;  %v15688_v30 = vld [vmem:[#allocation42_spill] sm:$0xff]  ;;  %v13473_v37 = vpop.permute.xlu0 %5001 }
 0x3fe   : > { %v3360_v22 = vadd.f32 %v3352_v15, %v15685_v25  ;;  %v3514_v16 = vadd.f32 %v3506_v29, %v15686_v13  ;;  %v3660_v53 = vmul.f32 %v12389_v62, %v13433_v9  ;;  %v6953_v36 = vadd.f32 %v6945_v54, %v6935_v58  ;;  %15689 = vst [vmem:[#allocation170_spill] sm:$0xff] %v13473_v37  ;;  %v13484_v58 = vpop.permute.xlu1 %5381  ;;  %v15701_v37 = vld [vmem:[#allocation146_spill] sm:$0xff] }
 0x3ff   : > { %v13466_v31 = vadd.f32 %v15645_v40, %v4437_v41  ;;  %v6068_v34 = vadd.f32 %v6060_v19, %v6050_v52  ;;  %v3650_v0 = vadd.f32 %v3642_v24, %v15688_v30  ;;  %v3216_v56 = vadd.f32 %v12359_v39, %v3206_v23  ;;  %15691 = vst [vmem:[#allocation179_spill] sm:$0xff] %v13484_v58  ;;  %v15694_v23 = vld [vmem:[#allocation202_spill] sm:$0xff]  ;;  %v15696_v30 = vld [vmem:[#allocation211_spill] sm:$0xff] }
 0x400   : > { %v3370_v59 = vadd.f32 %v12370_v43, %v3360_v22  ;;  %v3524_v63 = vadd.f32 %v12386_v26, %v3514_v16  ;;  %v3796_v25 = vmul.f32 %v9572_v3, %v12405_v60  ;;  %v6971_v2 = vadd.f32 %v6963_v35, %v6953_v36  ;;  %v15690_v22 = vld [vmem:[#allocation43_spill] sm:$0xff]  ;;  %v15693_v35 = vld [vmem:[#allocation209_spill] sm:$0xff] }
 0x401   : > { %15687 = vst [vmem:[#allocation178_spill] sm:$0xff] %v13466_v31  ;;  %v4466_v8 = vsel %vm4450_vm3, %v13466_v31, -inf  ;;  %v6086_v15 = vadd.f32 %v6078_v5, %v6068_v34  ;;  %v3668_v54 = vadd.f32 %v3660_v53, %v3650_v0  ;;  %v13477_v19 = vmax.f32 %v3216_v56, 0.0  ;;  %v9573_v36 = vld [vmem:[%s10424_s26 + $0xc8] sm:$0xff]  ;;  %v15695_v53 = vld [vmem:[#allocation89_spill] sm:$0xff]  ;;  %v13507_v48 = vpop.permute.xlu0 %5153 }
 0x402   : > { %4467 = vmax.xlane.f32.xlu0 %v4466_v8  ;;  %v13479_v29 = vmax.f32 %v3370_v59, 0.0  ;;  %v13481_v41 = vmax.f32 %v3524_v63, 0.0  ;;  %v3804_v16 = vadd.f32 %v3796_v25, %v15690_v22  ;;  %v13487_v52 = vadd.f32 %v15638_v33, %v6971_v2  ;;  %v15697_v56 = vld [vmem:[#allocation143_spill] sm:$0xff]  ;;  %v15698_v2 = vld [vmem:[#allocation41_spill] sm:$0xff]  ;;  %15702 = vst [vmem:[#allocation185_spill] sm:$0xff] %v13507_v48  ;;  %v13521_v14 = vpop.permute.xlu1 %5533 }
 0x403   : > { %v6104_v24 = vadd.f32 %v6096_v17, %v6086_v15  ;;  %v3678_v49 = vadd.f32 %v12402_v6, %v3668_v54  ;;  %v3814_v5 = vmul.f32 %v15693_v35, %v13433_v9  ;;  %v3932_v13 = vmul.f32 %v9573_v36, %v15694_v23  ;;  %v15699_v54 = vld [vmem:[#allocation82_spill] sm:$0xff]  ;;  %v15700_v23 = vld [vmem:[#allocation145_spill] sm:$0xff]  ;;  %15711 = vst [vmem:[#allocation192_spill] sm:$0xff] %v13521_v14 }
 0x404   : > { %15692 = vst [vmem:[#allocation182_spill] sm:$0xff] %v13487_v52  ;;  %v3950_v34 = vmul.f32 %v9572_v3, %v15695_v53  ;;  %v3968_v0 = vmul.f32 %v15696_v30, %v13433_v9  ;;  %v4086_v59 = vmul.f32 %v9573_v36, %v15697_v56  ;;  %v6997_v63 = vsel %vm4450_vm3, %v13487_v52, -inf  ;;  %v15704_v52 = vld [vmem:[#allocation210_spill] sm:$0xff] }
 0x405   : > { %v6122_v17 = vadd.f32 %v6114_v20, %v6104_v24  ;;  %v13500_v25 = vmax.f32 %v3678_v49, 0.0  ;;  %v3822_v8 = vadd.f32 %v3814_v5, %v3804_v16  ;;  %6998 = vmax.xlane.f32.xlu1 %v6997_v63  ;;  %v3940_v15 = vadd.f32 %v3932_v13, %v15698_v2  ;;  %v9574_v24 = vld [vmem:[%s10424_s26 + $0xc0] sm:$0xff]  ;;  %v15705_v49 = vld [vmem:[#allocation203_spill] sm:$0xff]  ;;  %v15707_v13 = vld [vmem:[#allocation77_spill] sm:$0xff] }
 0x406   : > { %v4094_v22 = vadd.f32 %v4086_v59, %v15699_v54  ;;  %v4104_v58 = vmul.f32 %v9572_v3, %v15700_v23  ;;  %v4122_v31 = vmul.f32 %v15701_v37, %v13433_v9  ;;  %v4222_v16 = vmul.f32 %v9574_v24, %v15705_v49  ;;  %v15706_v5 = vld [vmem:[#allocation147_spill] sm:$0xff]  ;;  %v15708_v2 = vld [vmem:[#allocation93_spill] sm:$0xff] }
 0x407   : > { %v13510_v32 = vadd.f32 %v15678_v55, %v6122_v17  ;;  %v3832_v20 = vadd.f32 %v15704_v52, %v3822_v8  ;;  %v4240_v63 = vmul.f32 %v9573_v36, %v15706_v5  ;;  %v13518_v59 = vadd.f32 %v15708_v2, %v15707_v13  ;;  %v15712_v8 = vld [vmem:[#allocation40_spill] sm:$0xff]  ;;  %v15713_v24 = vld [vmem:[#allocation81_spill] sm:$0xff] }
 0x408   : > { %v3958_v54 = vadd.f32 %v3950_v34, %v3940_v15  ;;  %v4112_v46 = vadd.f32 %v4104_v58, %v4094_v22  ;;  %v4258_v4 = vmul.f32 %v9572_v3, %v15710_v18  ;;  %v4230_v55 = vadd.f32 %v4222_v16, %v15712_v8  ;;  %v15714_v34 = vld [vmem:[#allocation101_spill] sm:$0xff]  ;;  %v15715_v3 = vld [vmem:[#allocation87_spill] sm:$0xff]  ;;  %v15716_v2 = vld [vmem:[#allocation96_spill] sm:$0xff] }
 0x409   : > { %15703 = vst [vmem:[#allocation180_spill] sm:$0xff] %v13510_v32  ;;  %15709 = vst [vmem:[#allocation189_spill] sm:$0xff] %v13518_v59  ;;  %v6150_v17 = vsel %vm4450_vm3, %v13510_v32, -inf  ;;  %v13525_v48 = vmax.f32 %v3832_v20, 0.0  ;;  %v4547_v36 = vmul.f32 %v15713_v24, %v13477_v19  ;;  %v4276_v58 = vmul.f32 %v15714_v34, %v13433_v9  ;;  %v15717_v20 = vld [vmem:[#allocation165_spill] sm:$0xff]  ;;  %v15718_v16 = vld [vmem:[#allocation122_spill] sm:$0xff] }
 0x40a   : > { %6151 = vmax.xlane.f32.xlu0 %v6150_v17  ;;  %v3976_v49 = vadd.f32 %v3968_v0, %v3958_v54  ;;  %v4130_v13 = vadd.f32 %v4122_v31, %v4112_v46  ;;  %v4557_v15 = vmul.f32 %v15715_v3, %v13479_v29  ;;  %v4248_v22 = vadd.f32 %v4240_v63, %v4230_v55  ;;  %v15719_v59 = vld [vmem:[#allocation144_spill] sm:$0xff]  ;;  %v15720_v0 = vld [vmem:[#allocation98_spill] sm:$0xff]  ;;  %v13544_v54 = vpop.permute.xlu0 %5305 }
 0x40b   : > { %v4575_v14 = vmul.f32 %v15716_v2, %v13481_v41  ;;  %v4593_v32 = vmul.f32 %v15717_v20, %v13500_v25  ;;  %v6846_v8 = vmul.f32 %v15718_v16, %v13301_v42  ;;  %v6856_v9 = vmul.f32 %v15670_v50, %v13303_v51  ;;  %15721 = vst [vmem:[#allocation174_spill] sm:$0xff] %v13544_v54  ;;  %v15722_v63 = vld [vmem:[#allocation94_spill] sm:$0xff] }
 0x40c   : > { %v3986_v17 = vadd.f32 %v15719_v59, %v3976_v49  ;;  %v4140_v46 = vadd.f32 %v15720_v0, %v4130_v13  ;;  %v4565_v31 = vadd.f32 %v4557_v15, %v4547_v36  ;;  %v4266_v55 = vadd.f32 %v4258_v4, %v4248_v22  ;;  %v13556_v15 = vpop.permute.xlu1 %5685  ;;  %v15736_v50 = vld [vmem:[#allocation62_spill] sm:$0xff] }
 0x40d   : > { %v4611_v2 = vmul.f32 %v15722_v63, %v13525_v48  ;;  %v6874_v20 = vmul.f32 %v15671_v27, %v13305_v10  ;;  %v6892_v42 = vmul.f32 %v15672_v7, %v13325_v61  ;;  %v6864_v13 = vadd.f32 %v6856_v9, %v6846_v8  ;;  %15724 = vst [vmem:[#allocation183_spill] sm:$0xff] %v13556_v15  ;;  %v15725_v61 = vld [vmem:[#allocation99_spill] sm:$0xff]  ;;  %v15734_v7 = vld [vmem:[#allocation97_spill] sm:$0xff] }
 0x40e   : > { %v13552_v16 = vmax.f32 %v3986_v17, 0.0  ;;  %v13554_v49 = vmax.f32 %v4140_v46, 0.0  ;;  %v4583_v36 = vadd.f32 %v4575_v14, %v4565_v31  ;;  %v4284_v51 = vadd.f32 %v4276_v58, %v4266_v55  ;;  %v15726_v8 = vld [vmem:[#allocation103_spill] sm:$0xff]  ;;  %v15727_v58 = vld [vmem:[#allocation105_spill] sm:$0xff] }
 0x40f   : > { %v6910_v4 = vmul.f32 %v15673_v12, %v13341_v57  ;;  %v6928_v22 = vmul.f32 %v15674_v47, %v13361_v1  ;;  %v6946_v10 = vmul.f32 %v15675_v44, %v13370_v21  ;;  %v6882_v46 = vadd.f32 %v6874_v20, %v6864_v13  ;;  %v15728_v57 = vld [vmem:[#allocation104_spill] sm:$0xff]  ;;  %v15729_v1 = vld [vmem:[#allocation107_spill] sm:$0xff]  ;;  %v15731_v13 = vld [vmem:[#allocation109_spill] sm:$0xff] }
 0x410   : > { %15723 = vst [vmem:[#allocation176_spill] sm:$0xff] %v13554_v49  ;;  %v4601_v54 = vadd.f32 %v4593_v32, %v4583_v36  ;;  %v4629_v17 = vmul.f32 %v15725_v61, %v13552_v16  ;;  %v6964_v14 = vmul.f32 %v15676_v11, %v13391_v45  ;;  %v4294_v31 = vadd.f32 %v15726_v8, %v4284_v51  ;;  %v15730_v36 = vld [vmem:[#allocation108_spill] sm:$0xff]  ;;  %v13579_v11 = vpop.permute.xlu0 %5457  ;;  %v15733_v47 = vld [vmem:[#allocation110_spill] sm:$0xff] }
 0x411   : > { %v4647_v9 = vmul.f32 %v15727_v58, %v13554_v49  ;;  %v4312_v55 = vmul.f32 %v15728_v57, %v13477_v19  ;;  %v4322_v15 = vmul.f32 %v15729_v1, %v13479_v29  ;;  %v6900_v32 = vadd.f32 %v6892_v42, %v6882_v46  ;;  %15732 = vst [vmem:[#allocation187_spill] sm:$0xff] %v13579_v11  ;;  %v15735_v42 = vld [vmem:[#allocation112_spill] sm:$0xff]  ;;  %v13591_v58 = vpop.permute.xlu1 %5229  ;;  %v15739_v11 = vld [vmem:[#allocation70_spill] sm:$0xff] }
 0x412   : > { %v4619_v21 = vadd.f32 %v4611_v2, %v4601_v54  ;;  %v4340_v20 = vmul.f32 %v15730_v36, %v13481_v41  ;;  %v4358_v45 = vmul.f32 %v15731_v13, %v13500_v25  ;;  %v13581_v51 = vmax.f32 %v4294_v31, 0.0  ;;  %15737 = vst [vmem:[#allocation181_spill] sm:$0xff] %v13591_v58  ;;  %v15738_v31 = vld [vmem:[#allocation106_spill] sm:$0xff]  ;;  %v9575_v36 = vld [vmem:[%s10424_s26 + $0xf8] sm:$0xff] }
 0x413   : > { %v4330_v44 = vadd.f32 %v4322_v15, %v4312_v55  ;;  %v4376_v12 = vmul.f32 %v15733_v47, %v13525_v48  ;;  %v4394_v27 = vmul.f32 %v15734_v7, %v13552_v16  ;;  %v6918_v54 = vadd.f32 %v6910_v4, %v6900_v32  ;;  %v15740_v32 = vld [vmem:[#allocation113_spill] sm:$0xff] }
 0x414   : > { %v4637_v2 = vadd.f32 %v4629_v17, %v4619_v21  ;;  %v4412_v46 = vmul.f32 %v15735_v42, %v13554_v49  ;;  %v3217_v13 = vadd.f32 %v12359_v39, %v15736_v50  ;;  %v4665_v15 = vmul.f32 %v15738_v31, %v13581_v51  ;;  %v15741_v50 = vld [vmem:[#allocation74_spill] sm:$0xff]  ;;  %v9576_v31 = vld [vmem:[%s10424_s26 + $0xf0] sm:$0xff] }
 0x415   : > { %v4348_v55 = vadd.f32 %v4340_v20, %v4330_v44  ;;  %v3371_v47 = vadd.f32 %v12370_v43, %v15739_v11  ;;  %v3507_v17 = vmul.f32 %v9575_v36, %v15631_v38  ;;  %v6936_v21 = vadd.f32 %v6928_v22, %v6918_v54  ;;  %v13609_v22 = vpop.permute.xlu0 %5609  ;;  %v15743_v54 = vld [vmem:[#allocation80_spill] sm:$0xff] }
 0x416   : > { %v4655_v4 = vadd.f32 %v4647_v9, %v4637_v2  ;;  %v4430_v42 = vmul.f32 %v15740_v32, %v13581_v51  ;;  %v13601_v7 = vmax.f32 %v3217_v13, 0.0  ;;  %v3661_v49 = vmul.f32 %v9575_v36, %v12389_v62 }
 0x417   : > { %v4366_v39 = vadd.f32 %v4358_v45, %v4348_v55  ;;  %v3515_v58 = vadd.f32 %v3507_v17, %v15741_v50  ;;  %v3797_v44 = vmul.f32 %v9576_v31, %v12405_v60  ;;  %v6954_v43 = vadd.f32 %v6946_v10, %v6936_v21  ;;  %v15742_v45 = vld [vmem:[#allocation85_spill] sm:$0xff]  ;;  %v13619_v17 = vpop.permute.xlu1 %5837 }
 0x418   : > { %v4673_v20 = vadd.f32 %v4665_v15, %v4655_v4  ;;  %v3815_v11 = vmul.f32 %v9575_v36, %v15693_v35  ;;  %v3951_v38 = vmul.f32 %v9576_v31, %v15695_v53  ;;  %v3669_v2 = vadd.f32 %v3661_v49, %v15742_v45  ;;  %v15744_v15 = vld [vmem:[#allocation86_spill] sm:$0xff] }
 0x419   : > { %v4384_v9 = vadd.f32 %v4376_v12, %v4366_v39  ;;  %v3525_v13 = vadd.f32 %v12386_v26, %v3515_v58  ;;  %v3805_v55 = vadd.f32 %v3797_v44, %v15743_v54  ;;  %v6972_v60 = vadd.f32 %v6964_v14, %v6954_v43  ;;  %v9577_v14 = vld [vmem:[%s10424_s26 + $0xe8] sm:$0xff]  ;;  %s15799_s26 = smov 64  }
 0x41a   : > { %v13615_v62 = vadd.f32 %v15581_v28, %v4673_v20  ;;  %v3959_v10 = vadd.f32 %v3951_v38, %v15744_v15  ;;  %v3969_v35 = vmul.f32 %v9575_v36, %v15696_v30  ;;  %v13621_v4 = vmax.f32 %v3371_v47, 0.0  ;;  %v15745_v20 = vld [vmem:[#allocation164_spill] sm:$0xff]  ;;  %v13640_v38 = vpop.permute.xlu0 %5761 }
 0x41b   : > { %v4402_v53 = vadd.f32 %v4394_v27, %v4384_v9  ;;  %v3679_v12 = vadd.f32 %v12402_v6, %v3669_v2  ;;  %v3823_v26 = vadd.f32 %v3815_v11, %v3805_v55  ;;  %v13627_v58 = vadd.f32 %v15638_v33, %v6972_v60  ;;  %v13652_v2 = vpop.permute.xlu1 %6223 }
 0x41c   : > { %v4703_v49 = vsel %vm4450_vm3, %v13615_v62, -inf  ;;  %v3977_v21 = vadd.f32 %v3969_v35, %v3959_v10  ;;  %v4087_v39 = vmul.f32 %v9577_v14, %v15697_v56  ;;  %v13631_v50 = vmax.f32 %v3525_v13, 0.0  ;;  %v15748_v35 = vld [vmem:[#allocation111_spill] sm:$0xff] }
 0x41d   : > { %4704 = vmax.xlane.f32.xlu1 %v4703_v49  ;;  %v4420_v30 = vadd.f32 %v4412_v46, %v4402_v53  ;;  %v3833_v27 = vadd.f32 %v15704_v52, %v3823_v26  ;;  %v4105_v47 = vmul.f32 %v9576_v31, %v15700_v23  ;;  %v7000_v6 = vsel %vm4450_vm3, %v13627_v58, -inf }
 0x41e   : > { %v3987_v44 = vadd.f32 %v15719_v59, %v3977_v21  ;;  %v4095_v43 = vadd.f32 %v4087_v39, %v15745_v20  ;;  %v4123_v11 = vmul.f32 %v9575_v36, %v15701_v37  ;;  %7001 = vmax.xlane.f32.xlu0 %v7000_v6  ;;  %v13642_v46 = vmax.f32 %v3679_v12, 0.0  ;;  %v13672_v49 = vpop.permute.xlu0 %5913 }
 0x41f   : > { %v4438_v56 = vadd.f32 %v4430_v42, %v4420_v30  ;;  %v4241_v9 = vmul.f32 %v9577_v14, %v15706_v5  ;;  %v4259_v52 = vmul.f32 %v9576_v31, %v15710_v18  ;;  %v13646_v23 = vmax.f32 %v3833_v27, 0.0  ;;  %v15746_v42 = vld [vmem:[#allocation189_spill] sm:$0xff]  ;;  %v15747_v31 = vld [vmem:[#allocation96_spill] sm:$0xff]  ;;  %15751 = vst [vmem:[#allocation194_spill] sm:$0xff] %v13672_v49 }
 0x420   : > { %v13648_v13 = vmax.f32 %v3987_v44, 0.0  ;;  %v4113_v45 = vadd.f32 %v4105_v47, %v4095_v43  ;;  %v4548_v59 = vmul.f32 %v15713_v24, %v13601_v7  ;;  %v4277_v55 = vmul.f32 %v9575_v36, %v15714_v34  ;;  %v15749_v34 = vld [vmem:[#allocation165_spill] sm:$0xff]  ;;  %v15753_v44 = vld [vmem:[#allocation116_spill] sm:$0xff]  ;;  %v13684_v43 = vpop.permute.xlu1 %6375 }
 0x421   : > { %v13655_v37 = vadd.f32 %v15645_v40, %v4438_v56  ;;  %v4249_v54 = vadd.f32 %v4241_v9, %v15746_v42  ;;  %v4558_v18 = vmul.f32 %v15715_v3, %v13621_v4  ;;  %v4576_v60 = vmul.f32 %v15747_v31, %v13631_v50  ;;  %v15750_v3 = vld [vmem:[#allocation115_spill] sm:$0xff] }
 0x422   : > { %v4131_v5 = vadd.f32 %v4123_v11, %v4113_v45  ;;  %v5997_v53 = vmul.f32 %v15748_v35, %v13477_v19  ;;  %v4594_v36 = vmul.f32 %v15749_v34, %v13642_v46  ;;  %v6007_v26 = vmul.f32 %v15750_v3, %v13479_v29 }
 0x423   : > { %v4469_v15 = vsel %vm4450_vm3, %v13655_v37, -inf  ;;  %v4267_v24 = vadd.f32 %v4259_v52, %v4249_v54  ;;  %v4566_v10 = vadd.f32 %v4558_v18, %v4548_v59  ;;  %v4612_v39 = vmul.f32 %v15722_v63, %v13646_v23  ;;  %v15754_v52 = vld [vmem:[#allocation118_spill] sm:$0xff]  ;;  %v15756_v54 = vld [vmem:[#allocation176_spill] sm:$0xff] }
 0x424   : > { %4470 = vmax.xlane.f32.xlu1 %v4469_v15  ;;  %v4141_v12 = vadd.f32 %v15720_v0, %v4131_v5  ;;  %v4630_v30 = vmul.f32 %v15725_v61, %v13648_v13  ;;  %v6015_v47 = vadd.f32 %v6007_v26, %v5997_v53  ;;  %v15752_v0 = vld [vmem:[#allocation114_spill] sm:$0xff]  ;;  %v6043_v20 = vmul.f32 %v15753_v44, %v13500_v25  ;;  %v15759_v15 = vld [vmem:[#allocation105_spill] sm:$0xff] }
 0x425   : > { %v4285_v21 = vadd.f32 %v4277_v55, %v4267_v24  ;;  %v4584_v14 = vadd.f32 %v4576_v60, %v4566_v10  ;;  %v6025_v6 = vmul.f32 %v15752_v0, %v13481_v41  ;;  %v4313_v63 = vmul.f32 %v15728_v57, %v13601_v7  ;;  %v15755_v59 = vld [vmem:[#allocation46_spill] sm:$0xff]  ;;  %v15757_v55 = vld [vmem:[#allocation117_spill] sm:$0xff]  ;;  %v15758_v60 = vld [vmem:[#allocation108_spill] sm:$0xff] }
 0x426   : > { %v13678_v27 = vmax.f32 %v4141_v12, 0.0  ;;  %v4323_v61 = vmul.f32 %v15729_v1, %v13621_v4  ;;  %v6061_v45 = vmul.f32 %v15754_v52, %v13525_v48  ;;  %v6079_v42 = vmul.f32 %v15755_v59, %v13552_v16  ;;  %v15760_v10 = vld [vmem:[#allocation121_spill] sm:$0xff]  ;;  %v15761_v12 = vld [vmem:[#allocation122_spill] sm:$0xff] }
 0x427   : > { %v4295_v11 = vadd.f32 %v15726_v8, %v4285_v21  ;;  %v4602_v56 = vadd.f32 %v4594_v36, %v4584_v14  ;;  %v6033_v9 = vadd.f32 %v6025_v6, %v6015_v47  ;;  %v6097_v18 = vmul.f32 %v15757_v55, %v15756_v54  ;;  %v13707_v36 = vpop.permute.xlu0 %6299  ;;  %v15763_v14 = vld [vmem:[#allocation109_spill] sm:$0xff]  ;;  %v15764_v47 = vld [vmem:[#allocation110_spill] sm:$0xff] }
 0x428   : > { %v4331_v31 = vadd.f32 %v4323_v61, %v4313_v63  ;;  %v4341_v57 = vmul.f32 %v15758_v60, %v13631_v50  ;;  %v4648_v1 = vmul.f32 %v15759_v15, %v13678_v27  ;;  %v6115_v53 = vmul.f32 %v15760_v10, %v13581_v51  ;;  %15762 = vst [vmem:[#allocation195_spill] sm:$0xff] %v13707_v36  ;;  %v15766_v61 = vld [vmem:[#allocation112_spill] sm:$0xff] }
 0x429   : > { %v13697_v5 = vmax.f32 %v4295_v11, 0.0  ;;  %v4620_v8 = vadd.f32 %v4612_v39, %v4602_v56  ;;  %v6051_v24 = vadd.f32 %v6043_v20, %v6033_v9  ;;  %v6847_v34 = vmul.f32 %v15761_v12, %v13477_v19  ;;  %v13713_v11 = vpop.xlane.xlu1 %4452  ;;  %v15765_v20 = vld [vmem:[#allocation97_spill] sm:$0xff]  ;;  %v15767_v19 = vld [vmem:[#allocation124_spill] sm:$0xff] }
 0x42a   : > { %v4349_v21 = vadd.f32 %v4341_v57, %v4331_v31  ;;  %v4359_v39 = vmul.f32 %v15763_v14, %v13642_v46  ;;  %v4377_v6 = vmul.f32 %v15764_v47, %v13646_v23  ;;  %v4395_v63 = vmul.f32 %v15765_v20, %v13648_v13  ;;  %v15770_v20 = vld [vmem:[#allocation215_spill] sm:$0xff] }
 0x42b   : > { %v4638_v26 = vadd.f32 %v4630_v30, %v4620_v8  ;;  %v6069_v56 = vadd.f32 %v6061_v45, %v6051_v24  ;;  %v4413_v9 = vmul.f32 %v15766_v61, %v13678_v27  ;;  %v6857_v60 = vmul.f32 %v15767_v19, %v13479_v29  ;;  %v15768_v8 = vld [vmem:[#allocation106_spill] sm:$0xff] }
 0x42c   : > { %v4666_v31 = vmul.f32 %v15768_v8, %v13697_v5  ;;  %v4367_v57 = vadd.f32 %v4359_v39, %v4349_v21  ;;  %v4431_v15 = vmul.f32 %v15740_v32, %v13697_v5  ;;  %v15769_v45 = vld [vmem:[#allocation214_spill] sm:$0xff]  ;;  %v6893_v36 = vmul.f32 %v15770_v20, %v13500_v25  ;;  %v15771_v32 = vld [vmem:[#allocation125_spill] sm:$0xff] }
 0x42d   : > { %v4656_v30 = vadd.f32 %v4648_v1, %v4638_v26  ;;  %v6087_v14 = vadd.f32 %v6079_v42, %v6069_v56  ;;  %v6865_v47 = vadd.f32 %v6857_v60, %v6847_v34  ;;  %v6875_v24 = vmul.f32 %v15769_v45, %v13481_v41  ;;  %v15772_v34 = vld [vmem:[#allocation126_spill] sm:$0xff]  ;;  %v13737_v41 = vpop.permute.xlu0 %6451  ;;  %v6137_v60 = vpop.xlane.xlu1 %6136 }
 0x42e   : > { %v4385_v49 = vadd.f32 %v4377_v6, %v4367_v57  ;;  %v5998_v29 = vmul.f32 %v15748_v35, %v13601_v7  ;;  %v6008_v1 = vmul.f32 %v15750_v3, %v13621_v4  ;;  %v6911_v42 = vmul.f32 %v15771_v32, %v13525_v48  ;;  %v15774_v48 = vld [vmem:[#allocation139_spill] sm:$0xff] }
 0x42f   : > { %v4674_v61 = vadd.f32 %v4666_v31, %v4656_v30  ;;  %v6105_v26 = vadd.f32 %v6097_v18, %v6087_v14  ;;  %v6883_v21 = vadd.f32 %v6875_v24, %v6865_v47  ;;  %v6929_v39 = vmul.f32 %v15772_v34, %v13552_v16  ;;  %v15773_v30 = vld [vmem:[#allocation138_spill] sm:$0xff] }
 0x430   : > { %v4403_v6 = vadd.f32 %v4395_v63, %v4385_v49  ;;  %v6016_v56 = vadd.f32 %v6008_v1, %v5998_v29  ;;  %v6026_v35 = vmul.f32 %v15752_v0, %v13631_v50  ;;  %v6947_v8 = vmul.f32 %v15773_v30, %v15756_v54  ;;  %v15775_v63 = vld [vmem:[#allocation149_spill] sm:$0xff] }
 0x431   : > { %v13740_v25 = vadd.f32 %v15581_v28, %v4674_v61  ;;  %v6123_v3 = vadd.f32 %v6115_v53, %v6105_v26  ;;  %v6901_v18 = vadd.f32 %v6893_v36, %v6883_v21  ;;  %v6965_v31 = vmul.f32 %v15774_v48, %v13581_v51  ;;  %v15776_v21 = vld [vmem:[#allocation217_spill] sm:$0xff] }
 0x432   : > { %v4421_v57 = vadd.f32 %v4413_v9, %v4403_v6  ;;  %v6034_v28 = vadd.f32 %v6026_v35, %v6016_v56  ;;  %v6044_v49 = vmul.f32 %v15753_v44, %v13642_v46  ;;  %v6848_v36 = vmul.f32 %v15761_v12, %v13601_v7  ;;  %v4687_v44 = vpop.xlane.xlu0 %4686  ;;  %v15778_v6 = vld [vmem:[#allocation213_spill] sm:$0xff] }
 0x433   : > { %v4706_v16 = vsel %vm4450_vm3, %v13740_v25, -inf  ;;  %v13753_v0 = vadd.f32 %v15775_v63, %v6123_v3  ;;  %v6919_v53 = vadd.f32 %v6911_v42, %v6901_v18  ;;  %v6858_v54 = vmul.f32 %v15767_v19, %v13621_v4  ;;  %v6987_v19 = vpop.xlane.xlu1 %6986 }
 0x434   : > { %4707 = vmax.xlane.f32.xlu0 %v4706_v16  ;;  %v4439_v51 = vadd.f32 %v4431_v15, %v4421_v57  ;;  %v6052_v14 = vadd.f32 %v6044_v49, %v6034_v28  ;;  %v6062_v9 = vmul.f32 %v15754_v52, %v13646_v23  ;;  %v6080_v47 = vmul.f32 %v15755_v59, %v13648_v13  ;;  %v15779_v16 = vld [vmem:[#allocation130_spill] sm:$0xff] }
 0x435   : > { %v6153_v24 = vsel %vm4450_vm3, %v13753_v0, -inf  ;;  %v6937_v61 = vadd.f32 %v6929_v39, %v6919_v53  ;;  %v6866_v29 = vadd.f32 %v6858_v54, %v6848_v36  ;;  %v6876_v7 = vmul.f32 %v15769_v45, %v13631_v50  ;;  %v15777_v45 = vld [vmem:[#allocation212_spill] sm:$0xff]  ;;  %v15780_v54 = vld [vmem:[#allocation123_spill] sm:$0xff] }
 0x436   : > { %6154 = vmax.xlane.f32.xlu1 %v6153_v24  ;;  %v13768_v4 = vadd.f32 %v15645_v40, %v4439_v51  ;;  %v6070_v12 = vadd.f32 %v6062_v9, %v6052_v14  ;;  %v6098_v52 = vmul.f32 %v15757_v55, %v13678_v27  ;;  %v6116_v59 = vmul.f32 %v15760_v10, %v13697_v5 }
 0x437   : > { %v6955_v15 = vadd.f32 %v6947_v8, %v6937_v61  ;;  %v6884_v1 = vadd.f32 %v6876_v7, %v6866_v29  ;;  %v6894_v26 = vmul.f32 %v15770_v20, %v13642_v46  ;;  %v4709_v42 = vsub.f32 %v15776_v21, %v4687_v44  ;;  %v4693_v8 = vpop.xlane.xlu0 %4692 }
 0x438   : > { %v4472_v50 = vsel %vm4450_vm3, %v13768_v4, -inf  ;;  %v6088_v40 = vadd.f32 %v6080_v47, %v6070_v12  ;;  %v4475_v39 = vsub.f32 %v15777_v45, %v13713_v11  ;;  %v6159_v55 = vsub.f32 %v15778_v6, %v6137_v60  ;;  %v15781_v47 = vld [vmem:[#allocation134_spill] sm:$0xff] }
 0x439   : > { %4473 = vmax.xlane.f32.xlu0 %v4472_v50  ;;  %v6973_v56 = vadd.f32 %v6965_v31, %v6955_v15  ;;  %v6902_v10 = vadd.f32 %v6894_v26, %v6884_v1  ;;  %v6912_v35 = vmul.f32 %v15771_v32, %v13646_v23  ;;  %v4717_v3 = vmul.f32 1.442695, %v4709_v42  ;;  %v4459_v32 = vpop.xlane.xlu1 %4458  ;;  %v15783_v26 = vld [vmem:[#allocation142_spill] sm:$0xff] }
 0x43a   : > { %v6106_v18 = vadd.f32 %v6098_v52, %v6088_v40  ;;  %v4483_v46 = vmul.f32 1.442695, %v4475_v39  ;;  %v6167_v20 = vmul.f32 1.442695, %v6159_v55  ;;  %v7009_v57 = vsub.f32 %v15779_v16, %v6987_v19 }
 0x43b   : > { %v13786_v28 = vadd.f32 %v15638_v33, %v6973_v56  ;;  %v6920_v49 = vadd.f32 %v6912_v35, %v6902_v10  ;;  %v6930_v11 = vmul.f32 %v15772_v34, %v13648_v13  ;;  %9391 = vpow2.f32 %v4717_v3  ;;  %v4456_v29 = vpop.xlane.xlu0 %4455  ;;  %v15784_v56 = vld [vmem:[#allocation131_spill] sm:$0xff]  ;;  %v15785_v3 = vld [vmem:[#allocation172_spill] sm:$0xff] }
 0x43c   : > { %v6124_v60 = vadd.f32 %v6116_v59, %v6106_v18  ;;  %v6948_v31 = vmul.f32 %v15773_v30, %v13678_v27  ;;  %9393 = vpow2.f32 %v4483_v46  ;;  %v7017_v23 = vmul.f32 1.442695, %v7009_v57  ;;  %v15786_v57 = vld [vmem:[#allocation132_spill] sm:$0xff] }
 0x43d   : > { %v7003_v53 = vsel %vm4450_vm3, %v13786_v28, -inf  ;;  %v6938_v36 = vadd.f32 %v6930_v11, %v6920_v49  ;;  %9395 = vpow2.f32 %v6167_v20  ;;  %v4711_v51 = vsub.f32 %v15780_v54, %v4693_v8  ;;  %v6143_v24 = vpop.xlane.xlu1 %6142 }
 0x43e   : > { %7004 = vmax.xlane.f32.xlu1 %v7003_v53  ;;  %v13796_v14 = vadd.f32 %v15775_v63, %v6124_v60  ;;  %v6966_v34 = vmul.f32 %v15774_v48, %v13697_v5  ;;  %9397 = vpow2.f32 %v7017_v23  ;;  %v4477_v44 = vsub.f32 %v15781_v47, %v4459_v32  ;;  %v15782_v5 = vld [vmem:[#allocation137_spill] sm:$0xff]  ;;  %v15787_v32 = vld [vmem:[#allocation167_spill] sm:$0xff] }
 0x43f   : > { %v6956_v13 = vadd.f32 %v6948_v31, %v6938_v36  ;;  %v4721_v9 = vmul.f32 1.442695, %v4711_v51  ;;  %v6161_v48 = vsub.f32 %v15782_v5, %v6143_v24  ;;  %v13813_v59 = vpop.xlane.xlu0 %6139  ;;  %v4476_v10 = vsub.f32 %v15784_v56, %v4456_v29  ;;  %v15789_v5 = vld [vmem:[#allocation168_spill] sm:$0xff] }
 0x440   : > { %v6156_v27 = vsel %vm4450_vm3, %v13796_v14, -inf  ;;  %v4487_v7 = vmul.f32 1.442695, %v4477_v44 }
 0x441   : > { %6157 = vmax.xlane.f32.xlu0 %v6156_v27  ;;  %v6974_v30 = vadd.f32 %v6966_v34, %v6956_v13  ;;  %9399 = vpow2.f32 %v4721_v9  ;;  %v6171_v19 = vmul.f32 1.442695, %v6161_v48  ;;  %v4485_v16 = vmul.f32 1.442695, %v4476_v10  ;;  %v15788_v34 = vld [vmem:[#allocation169_spill] sm:$0xff] }
 0x442   : > { %9401 = vpow2.f32 %v4487_v7 }
 0x443   : > { %v13804_v61 = vadd.f32 %v15638_v33, %v6974_v30  ;;  %9403 = vpow2.f32 %v6171_v19  ;;  %v6990_v39 = vpop.xlane.xlu0 %6989 }
 0x444   : > { %v7010_v49 = vsub.f32 %v15786_v57, %v6990_v39  ;;  %v15792_v57 = vld [vmem:[#allocation177_spill] sm:$0xff] }
 0x445   : > { %v7006_v63 = vsel %vm4450_vm3, %v13804_v61, -inf }
 0x446   : > { %7007 = vmax.xlane.f32.xlu0 %v7006_v63  ;;  %v7019_v23 = vmul.f32 1.442695, %v7010_v49 }
 0x448   : > { %v13809_v12 = vpop.eup %9391 }
 0x449   : > { %v13811_v52 = vpop.eup %9393  ;;  %v4733_v33 = vsel %vm4450_vm3, %v13809_v12, 0.0  ;;  %v4696_v46 = vpop.xlane.xlu0 %4695 }
 0x44a   : > { %v13817_v15 = vpop.eup %9395  ;;  %4734 = vadd.xlane.f32.xlu1 %v4733_v33  ;;  %v4499_v45 = vsel %vm4450_vm3, %v13811_v52, 0.0  ;;  %v4712_v53 = vsub.f32 %v15787_v32, %v4696_v46  ;;  %v15793_v32 = vld [vmem:[#allocation182_spill] sm:$0xff] }
 0x44b   : > { %v6993_v1 = vpop.xlane.xlu1 %6992  ;;  %v6183_v42 = vsel %vm4450_vm3, %v13817_v15, 0.0  ;;  %v13822_v50 = vpop.eup %9397 }
 0x44c   : > { %v7011_v21 = vsub.f32 %v15783_v26, %v6993_v1  ;;  %6184 = vadd.xlane.f32.xlu0 %v6183_v42  ;;  %v7033_v6 = vsel %vm4450_vm3, %v13822_v50, 0.0  ;;  %v4723_v13 = vmul.f32 1.442695, %v4712_v53  ;;  %v15790_v26 = vld [vmem:[#allocation133_spill] sm:$0xff] }
 0x44e   : > { %v7021_v40 = vmul.f32 1.442695, %v7011_v21  ;;  %4500 = vadd.xlane.f32.xlu1 %v4499_v45  ;;  %v13828_v55 = vpop.eup %9399  ;;  %v6160_v21 = vsub.f32 %v15790_v26, %v13813_v59 }
 0x44f   : > { %v4739_v20 = vsel %vm4450_vm3, %v13828_v55, 0.0  ;;  %v13834_v8 = vpop.eup %9401 }
 0x450   : > { %9405 = vpow2.f32 %v7021_v40  ;;  %v4505_v60 = vsel %vm4450_vm3, %v13834_v8, 0.0  ;;  %v13839_v31 = vpop.eup %9403  ;;  %v4462_v36 = vpop.xlane.xlu0 %4461  ;;  %v15791_v40 = vld [vmem:[#allocation166_spill] sm:$0xff]  ;;  %v6169_v56 = vmul.f32 1.442695, %v6160_v21 }
 0x451   : > { %v6189_v54 = vsel %vm4450_vm3, %v13839_v31, 0.0  ;;  %v4478_v27 = vsub.f32 %v15788_v34, %v4462_v36 }
 0x452   : > { %7034 = vadd.xlane.f32.xlu1 %v7033_v6 }
 0x453   : > { %v4690_v35 = vpop.xlane.xlu1 %4689  ;;  %v4489_v9 = vmul.f32 1.442695, %v4478_v27 }
 0x454   : > { %v4710_v18 = vsub.f32 %v15785_v3, %v4690_v35 }
 0x456   : > { %v4719_v11 = vmul.f32 1.442695, %v4710_v18  ;;  %4740 = vadd.xlane.f32.xlu1 %v4739_v20 }
 0x458   : > { %9407 = vpow2.f32 %v4719_v11  ;;  %v6146_v34 = vpop.xlane.xlu0 %6145 }
 0x459   : > { %9409 = vpow2.f32 %v4485_v16 }
 0x45a   : > { %4506 = vadd.xlane.f32.xlu1 %v4505_v60  ;;  %9411 = vpow2.f32 %v7019_v23 }
 0x45b   : > { %9413 = vpow2.f32 %v4723_v13 }
 0x45c   : > { %9415 = vpow2.f32 %v4489_v9 }
 0x45d   : > { %v13844_v51 = vpop.eup %9405 }
 0x45e   : > { %6190 = vadd.xlane.f32.xlu1 %v6189_v54  ;;  %v7039_v30 = vsel %vm4450_vm3, %v13844_v51, 0.0 }
 0x462   : > { %7040 = vadd.xlane.f32.xlu1 %v7039_v30 }
 0x465   : > { %v13849_v47 = vpop.eup %9407 }
 0x466   : > { %v4736_v44 = vsel %vm4450_vm3, %v13849_v47, 0.0  ;;  %v13853_v24 = vpop.eup %9409 }
 0x467   : > { %4737 = vadd.xlane.f32.xlu0 %v4736_v44  ;;  %v4502_v63 = vsel %vm4450_vm3, %v13853_v24, 0.0  ;;  %v13857_v7 = vpop.eup %9411 }
 0x468   : > { %v7036_v33 = vsel %vm4450_vm3, %v13857_v7, 0.0  ;;  %v13862_v1 = vpop.eup %9413 }
 0x469   : > { %v4742_v39 = vsel %vm4450_vm3, %v13862_v1, 0.0  ;;  %v13869_v6 = vpop.eup %9415 }
 0x46a   : > { %v4699_v29 = vpop.xlane.xlu1 %4698  ;;  %v4508_v35 = vsel %vm4450_vm3, %v13869_v6, 0.0 }
 0x46b   : > { %v4713_v48 = vsub.f32 %v15789_v5, %v4699_v29  ;;  %4503 = vadd.xlane.f32.xlu0 %v4502_v63 }
 0x46d   : > { %v4725_v19 = vmul.f32 1.442695, %v4713_v48  ;;  %v6996_v9 = vpop.xlane.xlu0 %6995  ;;  %v15794_v48 = vld [vmem:[#allocation135_spill] sm:$0xff] }
 0x46f   : > { %9417 = vpow2.f32 %v4725_v19  ;;  %7037 = vadd.xlane.f32.xlu0 %v7036_v33  ;;  %v6162_v19 = vsub.f32 %v15794_v48, %v6146_v34 }
 0x472   : > { %v4465_v42 = vpop.xlane.xlu1 %4464 }
 0x473   : > { %v4479_v45 = vsub.f32 %v15791_v40, %v4465_v42  ;;  %4743 = vadd.xlane.f32.xlu0 %v4742_v39  ;;  %v6173_v42 = vmul.f32 1.442695, %v6162_v19  ;;  %v15795_v40 = vld [vmem:[#allocation175_spill] sm:$0xff] }
 0x475   : > { %v4491_v10 = vmul.f32 1.442695, %v4479_v45  ;;  %v7012_v45 = vsub.f32 %v15795_v40, %v6996_v9 }
 0x477   : > { %9419 = vpow2.f32 %v4491_v10  ;;  %4509 = vadd.xlane.f32.xlu0 %v4508_v35  ;;  %v15796_v10 = vld [vmem:[#allocation171_spill] sm:$0xff] }
 0x478   : > { %9421 = vpow2.f32 %v6169_v56  ;;  %v7023_v56 = vmul.f32 1.442695, %v7012_v45 }
 0x47c   : > { %v13873_v3 = vpop.eup %9417 }
 0x47d   : > { %v4745_v59 = vsel %vm4450_vm3, %v13873_v3, 0.0 }
 0x47e   : > { %4746 = vadd.xlane.f32.xlu1 %v4745_v59 }
 0x483   : > { %v4702_v63 = vpop.xlane.xlu0 %4701 }
 0x484   : > { %v13877_v18 = vpop.eup %9419  ;;  %v4714_v35 = vsub.f32 %v15796_v10, %v4702_v63 }
 0x485   : > { %v4511_v46 = vsel %vm4450_vm3, %v13877_v18, 0.0  ;;  %v13881_v20 = vpop.eup %9421 }
 0x486   : > { %v6149_v16 = vpop.xlane.xlu1 %6148  ;;  %4512 = vadd.xlane.f32.xlu1 %v4511_v46  ;;  %v6186_v60 = vsel %vm4450_vm3, %v13881_v20, 0.0  ;;  %v4727_v46 = vmul.f32 1.442695, %v4714_v35 }
 0x487   : > { %v6163_v49 = vsub.f32 %v15792_v57, %v6149_v16  ;;  %v15797_v16 = vld [vmem:[#allocation178_spill] sm:$0xff] }
 0x489   : > { %v6175_v11 = vmul.f32 1.442695, %v6163_v49 }
 0x48a   : > { %6187 = vadd.xlane.f32.xlu1 %v6186_v60  ;;  %v15798_v60 = vld [vmem:[#allocation180_spill] sm:$0xff] }
 0x48b   : > { %9423 = vpow2.f32 %v6175_v11  ;;  %v4468_v21 = vpop.xlane.xlu0 %4467 }
 0x48c   : > { %v4480_v57 = vsub.f32 %v15797_v16, %v4468_v21 }
 0x48e   : > { %v6999_v23 = vpop.xlane.xlu1 %6998  ;;  %v4493_v11 = vmul.f32 1.442695, %v4480_v57 }
 0x48f   : > { %v7013_v53 = vsub.f32 %v15793_v32, %v6999_v23 }
 0x491   : > { %v7025_v36 = vmul.f32 1.442695, %v7013_v53 }
 0x493   : > { %9425 = vpow2.f32 %v7025_v36  ;;  %v6152_v59 = vpop.xlane.xlu0 %6151 }
 0x494   : > { %v6164_v23 = vsub.f32 %v15798_v60, %v6152_v59 }
 0x496   : > { %v6177_v53 = vmul.f32 1.442695, %v6164_v23 }
 0x498   : > { %v13887_v54 = vpop.eup %9423 }
 0x499   : > { %v6195_v13 = vsel %vm4450_vm3, %v13887_v54, 0.0 }
 0x49a   : > { %6196 = vadd.xlane.f32.xlu1 %v6195_v13 }
 0x4a0   : > { %v13891_v27 = vpop.eup %9425 }
 0x4a1   : > { %v7045_v30 = vsel %vm4450_vm3, %v13891_v27, 0.0 }
 0x4a2   : > { %7046 = vadd.xlane.f32.xlu1 %v7045_v30 }
 0x4a6   : > { %v4705_v44 = vpop.xlane.xlu1 %4704 }
 0x4a7   : > { %v4715_v29 = vsub.f32 %v13615_v62, %v4705_v44  ;;  %v7002_v49 = vpop.xlane.xlu0 %7001 }
 0x4a8   : > { %v7014_v36 = vsub.f32 %v13627_v58, %v7002_v49 }
 0x4a9   : > { %v4729_v5 = vmul.f32 1.442695, %v4715_v29 }
 0x4aa   : > { %v7027_v9 = vmul.f32 1.442695, %v7014_v36 }
 0x4ab   : > { %9427 = vpow2.f32 %v4729_v5 }
 0x4ad   : > { %v4471_v33 = vpop.xlane.xlu1 %4470 }
 0x4ae   : > { %v4481_v26 = vsub.f32 %v13655_v37, %v4471_v33  ;;  %v15800_v33 = vld [vmem:[#allocation30_spill] sm:$0xff] }
 0x4b0   : > { %v4495_v39 = vmul.f32 1.442695, %v4481_v26 }
 0x4b2   : > { %9429 = vpow2.f32 %v4495_v39 }
 0x4b3   : > { %9431 = vpow2.f32 %v6173_v42 }
 0x4b4   : > { %9433 = vpow2.f32 %v7023_v56 }
 0x4b5   : > { %9435 = vpow2.f32 %v4727_v46 }
 0x4b6   : > { %9437 = vpow2.f32 %v4493_v11 }
 0x4b7   : > { %9439 = vpow2.f32 %v6177_v53 }
 0x4b8   : > { %v13900_v62 = vpop.eup %9427  ;;  %9441 = vpow2.f32 %v7027_v9  ;;  %v15802_v9 = vmov 0.0  }
 0x4b9   : > { %v4751_v37 = vsel %vm4450_vm3, %v13900_v62, 0.0 }
 0x4ba   : > { %4752 = vadd.xlane.f32.xlu1 %v4751_v37 }
 0x4bd   : > { %v4708_v30 = vpop.xlane.xlu0 %4707 }
 0x4be   : > { %v4716_v44 = vsub.f32 %v13740_v25, %v4708_v30 }
 0x4bf   : > { %v13906_v32 = vpop.eup %9429  ;;  %v6155_v19 = vpop.xlane.xlu1 %6154 }
 0x4c0   : > { %v4517_v13 = vsel %vm4450_vm3, %v13906_v32, 0.0  ;;  %v13911_v34 = vpop.eup %9431  ;;  %v4731_v5 = vmul.f32 1.442695, %v4716_v44  ;;  %v6165_v10 = vsub.f32 %v13753_v0, %v6155_v19 }
 0x4c1   : > { %4518 = vadd.xlane.f32.xlu0 %v4517_v13  ;;  %v6192_v29 = vsel %vm4450_vm3, %v13911_v34, 0.0  ;;  %v13916_v63 = vpop.eup %9433 }
 0x4c2   : > { %v7042_v58 = vsel %vm4450_vm3, %v13916_v63, 0.0  ;;  %v13920_v48 = vpop.eup %9435  ;;  %9443 = vpow2.f32 %v4731_v5  ;;  %v6179_v16 = vmul.f32 1.442695, %v6165_v10  ;;  %v4474_v37 = vpop.xlane.xlu0 %4473 }
 0x4c3   : > { %v4748_v25 = vsel %vm4450_vm3, %v13920_v48, 0.0  ;;  %v13926_v26 = vpop.eup %9437  ;;  %v4482_v0 = vsub.f32 %v13768_v4, %v4474_v37 }
 0x4c4   : > { %v4514_v42 = vsel %vm4450_vm3, %v13926_v26, 0.0  ;;  %v13930_v40 = vpop.eup %9439 }
 0x4c5   : > { %6193 = vadd.xlane.f32.xlu0 %v6192_v29  ;;  %v6198_v45 = vsel %vm4450_vm3, %v13930_v40, 0.0  ;;  %v13934_v56 = vpop.eup %9441  ;;  %v4497_v53 = vmul.f32 1.442695, %v4482_v0 }
 0x4c6   : > { %v7048_v35 = vsel %vm4450_vm3, %v13934_v56, 0.0 }
 0x4c7   : > { %v7005_v21 = vpop.xlane.xlu1 %7004 }
 0x4c8   : > { %v7015_v57 = vsub.f32 %v13786_v28, %v7005_v21  ;;  %v15801_v28 = vld [vmem:[#allocation216_spill] sm:$0xff] }
 0x4c9   : > { %7043 = vadd.xlane.f32.xlu0 %v7042_v58 }
 0x4ca   : > { %v7029_v60 = vmul.f32 1.442695, %v7015_v57  ;;  %v6158_v13 = vpop.xlane.xlu0 %6157 }
 0x4cb   : > { %6527 = vrot.lane.b32.xlu1 %v15800_v33, %s15799_s26 }
 0x4cd   : > { %4749 = vadd.xlane.f32.xlu0 %v4748_v25 }
 0x4cf   : > { %v13941_v46 = vpop.eup %9443  ;;  %v13955_v4 = vpop.xlane.xlu0 %7007 }
 0x4d0   : > { %v4754_v49 = vsel %vm4450_vm3, %v13941_v46, 0.0 }
 0x4d1   : > { %4515 = vadd.xlane.f32.xlu0 %v4514_v42  ;;  %v15803_v42 = vld [vmem:[#allocation173_spill] sm:$0xff] }
 0x4d3   : > { %v4735_v39 = vpop.xlane.xlu1 %4734 }
 0x4d4   : > { %9445 = vrcp.f32 %v4735_v39  ;;  %v15804_v39 = vld [vmem:[#allocation26_spill] sm:$0xff] }
 0x4d5   : > { %6199 = vadd.xlane.f32.xlu0 %v6198_v45  ;;  %9447 = vpow2.f32 %v6179_v16  ;;  %v13959_v29 = vpop.xlane.xlu0 %6184  ;;  %v15805_v16 = vld [vmem:[#allocation28_spill] sm:$0xff] }
 0x4d7   : > { %v13939_v59 = vpop.xlane.xlu1 %4500 }
 0x4d9   : > { %7049 = vadd.xlane.f32.xlu0 %v7048_v35 }
 0x4db   : > { %v13946_v11 = vpop.xlane.xlu1 %7034 }
 0x4dd   : > { %4755 = vadd.xlane.f32.xlu0 %v4754_v49  ;;  %v6166_v49 = vsub.f32 %v13796_v14, %v6158_v13  ;;  %v15807_v14 = vld [vmem:[#allocation29_spill] sm:$0xff] }
 0x4df   : > { %v4741_v23 = vpop.xlane.xlu1 %4740 }
 0x4e0   : > { %9449 = vrcp.f32 %v4741_v23 }
 0x4e1   : > { %9451 = vpow2.f32 %v7029_v60  ;;  %v9446_v36 = vpop.eup %9445 }
 0x4e2   : > { %v4765_v30 = vmul.f32 %v9446_v36, %v13809_v12  ;;  %9453 = vpow2.f32 %v4497_v53  ;;  %v13957_v44 = vpop.eup %9447  ;;  %v6181_v53 = vmul.f32 1.442695, %v6166_v49 }
 0x4e3   : > { %v6201_v12 = vsel %vm4450_vm3, %v13957_v44, 0.0  ;;  %v4507_v35 = vpop.xlane.xlu1 %4506 }
 0x4e4   : > { %9103 = vmatmul.mubr.msk.f32.vlgmr.msra.gmra.mxu0 %vm4450_vm3, %v4765_v30  ;;  %v15806_v30 = vld [vmem:[#allocation170_spill] sm:$0xff] }
 0x4e5   : > { %9111 = vmatpush3.msra.mxu0 %v15801_v28  ;;  %9112 = vmatprep.mubr.msk.f32.mxu0 %vm9725_vm1, %v15802_v9 }
 0x4e6   : > { %9120 = vmatprep.subr.mxu0 %v15802_v9 }
 0x4e7   : > { %v13985_v37 = vpop.xlane.xlu1 %6190 }
 0x4eb   : > { %v13989_v36 = vpop.xlane.xlu1 %7040 }
 0x4ed   : > { %v9450_v5 = vpop.eup %9449 }
 0x4ee   : > { %v13963_v58 = vpop.eup %9451  ;;  %v4767_v19 = vmul.f32 %v9450_v5, %v13828_v55 }
 0x4ef   : > { %6202 = vadd.xlane.f32.xlu1 %v6201_v12  ;;  %v7051_v21 = vsel %vm4450_vm3, %v13963_v58, 0.0  ;;  %v13972_v45 = vpop.eup %9453  ;;  %v15809_v12 = vld [vmem:[#allocation185_spill] sm:$0xff] }
 0x4f0   : > { %v4738_v25 = vpop.xlane.xlu0 %4737  ;;  %9113 = vmatmul.mubr.msk.f32.vlgmr.msra.gmra.mxu0 %vm4450_vm3, %v4767_v19  ;;  %v4520_v10 = vsel %vm4450_vm3, %v13972_v45, 0.0  ;;  %v15810_v19 = vld [vmem:[#allocation31_spill] sm:$0xff] }
 0x4f1   : > { %9455 = vrcp.f32 %v4738_v25  ;;  %9121 = vmatpush3.msra.mxu0 %v15803_v42  ;;  %9122 = vmatprep.mubr.msk.f32.mxu0 %vm9725_vm1, %v15802_v9 }
 0x4f2   : > { %9130 = vmatprep.subr.mxu0 %v15802_v9 }
 0x4f3   : > { %7073 = vrot.lane.b32.xlu0 %v15804_v39, %s9736_s17  ;;  %7052 = vadd.xlane.f32.xlu1 %v7051_v21  ;;  %v15811_v21 = vld [vmem:[#allocation25_spill] sm:$0xff] }
 0x4f4   : > { %v13977_v55 = vpop.xlane.xlu0 %4503 }
 0x4f7   : > { %7225 = vrot.lane.b32.xlu0 %v15805_v16, %s9736_s17  ;;  %4521 = vadd.xlane.f32.xlu1 %v4520_v10  ;;  %v15812_v10 = vld [vmem:[#allocation27_spill] sm:$0xff]  ;;  %v15813_v16 = vld [vmem:[#allocation181_spill] sm:$0xff] }
 0x4f8   : > { %v13983_v57 = vpop.xlane.xlu0 %7037 }
 0x4fc   : > { %v4744_v0 = vpop.xlane.xlu0 %4743 }
 0x4fd   : > { %9457 = vrcp.f32 %v4744_v0  ;;  %v7016_v0 = vsub.f32 %v13804_v61, %v13955_v4 }
 0x4fe   : > { %v9456_v60 = vpop.eup %9455  ;;  %9459 = vpow2.f32 %v6181_v53 }
 0x4ff   : > { %v4766_v23 = vmul.f32 %v9456_v60, %v13849_v47  ;;  %v15808_v47 = vld [vmem:[#allocation32_spill] sm:$0xff]  ;;  %v7031_v60 = vmul.f32 1.442695, %v7016_v0 }
 0x501   : > { %9108 = vmatmul.mubr.msk.f32.vlgmr.msra.gmra.mxu1 %vm4450_vm3, %v4766_v23 }
 0x502   : > { %9116 = vmatpush3.msra.mxu1 %v15806_v30  ;;  %9117 = vmatprep.mubr.msk.f32.mxu1 %vm9725_vm1, %v15802_v9 }
 0x503   : > { %9125 = vmatprep.subr.mxu1 %v15802_v9 }
 0x507   : > { %v4747_v13 = vpop.xlane.xlu1 %4746 }
 0x508   : > { %6603 = vrot.lane.b32.xlu1 %v15807_v14, %s15799_s26  ;;  %9461 = vrcp.f32 %v4747_v13 }
 0x509   : > { %9463 = vpow2.f32 %v7031_v60 }
 0x50a   : > { %v9458_v28 = vpop.eup %9457 }
 0x50b   : > { %v4768_v5 = vmul.f32 %v9458_v28, %v13862_v1  ;;  %v14008_v25 = vpop.eup %9459 }
 0x50c   : > { %6679 = vrot.lane.b32.xlu1 %v15808_v47, %s15799_s26  ;;  %v6204_v1 = vsel %vm4450_vm3, %v14008_v25, 0.0 }
 0x50d   : > { %9118 = vmatmul.mubr.msk.f32.vlgmr.msra.gmra.mxu1 %vm4450_vm3, %v4768_v5 }
 0x50e   : > { %9126 = vmatpush3.msra.mxu1 %v15809_v12  ;;  %9127 = vmatprep.mubr.msk.f32.mxu1 %vm9725_vm1, %v15802_v9 }
 0x50f   : > { %9135 = vmatprep.subr.mxu1 %v15802_v9  ;;  %v4513_v49 = vpop.xlane.xlu1 %4512 }
 0x510   : > { %6755 = vrot.lane.b32.xlu1 %v15810_v19, %s15799_s26  ;;  %s9646_s26 = scalar_lea.vmem %s14494_s13, 1024 }
 0x511   : > { %p9647_p8 = scmp.ne.s32.totalorder %s14494_s13, %s9646_s26 }
 0x513   : > { %p9648_p13 = pnand %p9647_p8, %p15828_p11 }
 0x514   : > { %7149 = vrot.lane.b32.xlu1 %v15811_v21, %s9736_s17 }
 0x515   : > { %v9462_v42 = vpop.eup %9461  ;;  %p9649_p1 = pneg %p9648_p13 }
 0x516   : > { %6205 = vadd.xlane.f32.xlu0 %v6204_v1  ;;  %v4769_v39 = vmul.f32 %v9462_v42, %v13873_v3  ;;  %v14028_v3 = vpop.xlane.xlu1 %6187  ;;  %v14037_v13 = vpop.eup %9463 }
 0x517   : > { %v7054_v28 = vsel %vm4450_vm3, %v14037_v13, 0.0 }
 0x518   : > { %7301 = vrot.lane.b32.xlu1 %v15812_v10, %s9736_s17  ;;  %9123 = vmatmul.mubr.msk.f32.vlgmr.msra.gmra.mxu0 %vm4450_vm3, %v4769_v39 }
 0x519   : > { %9131 = vmatpush3.msra.mxu0 %v15813_v16  ;;  %9132 = vmatprep.mubr.msk.f32.mxu0 %vm9725_vm1, %v15802_v9 }
 0x51a   : > { %9140 = vmatprep.subr.mxu0 %v15802_v9 }
 0x51c   : > { %7453 = vrot.lane.b32.xlu1 %v15807_v14, %s9736_s17  ;;  %v14035_v14 = vpop.xlane.xlu0 %4509 }
 0x520   : > { %7605 = vrot.lane.b32.xlu1 %v15810_v19, %s9736_s17  ;;  %v15814_v19 = vld [vmem:[#allocation179_spill] sm:$0xff] }
 0x523   : > { %v6197_v23 = vpop.xlane.xlu1 %6196 }
 0x52b   : > { %v14032_v53 = vpop.xlane.xlu1 %7046 }
 0x52c   : > { %7377 = vrot.lane.b32.xlu0 %v15800_v33, %s9736_s17 }
 0x543   : > { %v4753_v30 = vpop.xlane.xlu1 %4752 }
 0x544   : > { %9465 = vrcp.f32 %v4753_v30 }
 0x545   : > { %9467 = vrcp.f32 %v13939_v59 }
 0x546   : > { %9469 = vrcp.f32 %v4507_v35 }
 0x547   : > { %9471 = vrcp.f32 %v4513_v49 }
 0x54a   : > { %v4519_v33 = vpop.xlane.xlu0 %4518 }
 0x54b   : > { %7055 = vadd.xlane.f32.xlu0 %v7054_v28  ;;  %9473 = vrcp.f32 %v4519_v33 }
 0x54c   : > { %9475 = vrcp.f32 %v13959_v29 }
 0x54e   : > { %v14041_v61 = vpop.xlane.xlu0 %6193 }
 0x551   : > { %v9466_v4 = vpop.eup %9465 }
 0x552   : > { %v14043_v5 = vpop.xlane.xlu0 %7043  ;;  %v4771_v12 = vmul.f32 %v9466_v4, %v13900_v62  ;;  %v9468_v59 = vpop.eup %9467  ;;  %v15815_v62 = vld [vmem:[#allocation192_spill] sm:$0xff] }
 0x553   : > { %v4531_v21 = vmul.f32 %v9468_v59, %v13811_v52  ;;  %v9470_v1 = vpop.eup %9469  ;;  %v15816_v52 = vld [vmem:[#allocation183_spill] sm:$0xff] }
 0x554   : > { %9133 = vmatmul.mubr.msk.f32.vlgmr.msra.gmra.mxu0 %vm4450_vm3, %v4771_v12  ;;  %v4533_v29 = vmul.f32 %v9470_v1, %v13834_v8  ;;  %v9472_v39 = vpop.eup %9471 }
 0x555   : > { %9141 = vmatpush3.msra.mxu0 %v15814_v19  ;;  %9142 = vmatprep.mubr.msk.f32.mxu0 %vm9725_vm1, %v15802_v9 }
 0x556   : > { %v4750_v35 = vpop.xlane.xlu0 %4749  ;;  %9150 = vmatprep.subr.mxu0 %v15802_v9 }
 0x557   : > { %9477 = vrcp.f32 %v4750_v35 }
 0x558   : > { %9143 = vmatmul.mubr.msk.f32.vlgmr.msra.gmra.mxu0 %vm4450_vm3, %v4531_v21  ;;  %9479 = vrcp.f32 %v13985_v37  ;;  %v4535_v37 = vmul.f32 %v9472_v39, %v13877_v18  ;;  %v9474_v16 = vpop.eup %9473 }
 0x559   : > { %9151 = vmatpush3.msra.mxu0 %v15815_v62  ;;  %9152 = vmatprep.mubr.msk.f32.mxu0 %vm9725_vm1, %v15802_v9  ;;  %9481 = vrcp.f32 %v6197_v23  ;;  %v4537_v49 = vmul.f32 %v9474_v16, %v13906_v32  ;;  %v9476_v0 = vpop.eup %9475  ;;  %v15817_v32 = vld [vmem:[#allocation174_spill] sm:$0xff] }
 0x55a   : > { %v4516_v42 = vpop.xlane.xlu0 %4515  ;;  %9160 = vmatprep.subr.mxu0 %v15802_v9 }
 0x55c   : > { %9153 = vmatmul.mubr.msk.f32.vlgmr.msra.gmra.mxu0 %vm4450_vm3, %v4533_v29 }
 0x55d   : > { %9161 = vmatpush3.msra.mxu0 %v15816_v52  ;;  %9162 = vmatprep.mubr.msk.f32.mxu0 %vm9725_vm1, %v15802_v9 }
 0x55e   : > { %v14064_v10 = vpop.xlane.xlu0 %6199  ;;  %9170 = vmatprep.subr.mxu0 %v15802_v9 }
 0x560   : > { %9163 = vmatmul.mubr.msk.f32.vlgmr.msra.gmra.mxu0 %vm4450_vm3, %v4535_v37 }
 0x561   : > { %7529 = vrot.lane.b32.xlu0 %v15808_v47, %s9736_s17  ;;  %9171 = vmatpush3.msra.mxu0 %v13619_v17  ;;  %v6215_v47 = vmul.f32 %v9476_v0, %v13817_v15  ;;  %s9737_s17 = smov [#allocation10]  }
 0x562   : > { %v14072_v8 = vpop.xlane.xlu0 %7049  ;;  %9172 = vmatprep.mubr.msk.f32.mxu0 %vm9725_vm1, %v15802_v9  ;;  %9180 = vmatprep.subr.mxu0 %v15802_v9 }
 0x564   : > { %v9478_v60 = vpop.eup %9477  ;;  %9173 = vmatmul.mubr.msk.f32.vlgmr.msra.gmra.mxu0 %vm4450_vm3, %v4537_v49 }
 0x565   : > { %v4770_v18 = vmul.f32 %v9478_v60, %v13920_v48  ;;  %9181 = vmatpush3.msra.mxu0 %v13652_v2  ;;  %9182 = vmatprep.mubr.msk.f32.mxu0 %vm9725_vm1, %v15802_v9  ;;  %v9480_v23 = vpop.eup %9479  ;;  %v6528_v48 = vpop.permute.xlu1 %6527 }
 0x566   : > { %v4756_v17 = vpop.xlane.xlu0 %4755  ;;  %9190 = vmatprep.subr.mxu0 %v15802_v9  ;;  %v6217_v2 = vmul.f32 %v9480_v23, %v13839_v31  ;;  %v9482_v15 = vpop.eup %9481 }
 0x567   : > { %9483 = vrcp.f32 %v4756_v17  ;;  %9128 = vmatmul.mubr.msk.f32.vlgmr.msra.gmra.mxu1 %vm4450_vm3, %v4770_v18 }
 0x568   : > { %9136 = vmatpush3.msra.mxu1 %v15817_v32  ;;  %9183 = vmatmul.mubr.msk.f32.vlgmr.msra.gmra.mxu0 %vm4450_vm3, %v6215_v47  ;;  %9485 = vrcp.f32 %v13977_v55 }
 0x569   : > { %9191 = vmatpush3.msra.mxu0 %v13684_v43  ;;  %9192 = vmatprep.mubr.msk.f32.mxu0 %vm9725_vm1, %v15802_v9  ;;  %9487 = vrcp.f32 %v14035_v14  ;;  %v6219_v43 = vmul.f32 %v9482_v15, %v13887_v54  ;;  %v15818_v14 = vld [vmem:[#allocation187_spill] sm:$0xff] }
 0x56a   : > { %9200 = vmatprep.subr.mxu0 %v15802_v9  ;;  %9137 = vmatprep.mubr.msk.f32.mxu1 %vm9725_vm1, %v15802_v9  ;;  %9489 = vrcp.f32 %v4516_v42  ;;  %v7074_v59 = vpop.permute.xlu0 %7073  ;;  %v15820_v42 = vld [vmem:[#allocation195_spill] sm:$0xff] }
 0x56b   : > { %9145 = vmatprep.subr.mxu1 %v15802_v9 }
 0x56c   : > { %9193 = vmatmul.mubr.msk.f32.vlgmr.msra.gmra.mxu0 %vm4450_vm3, %v6217_v2 }
 0x56d   : > { %9201 = vmatpush3.msra.mxu0 %v6528_v48  ;;  %9202 = vmatprep.mubr.msk.f32.mxu0 %vm9725_vm1, %v15802_v9 }
 0x56e   : > { %9210 = vmatprep.subr.mxu0 %v15802_v9  ;;  %v7226_v35 = vpop.permute.xlu0 %7225 }
 0x570   : > { %9203 = vmatmul.mubr.msk.f32.vlgmr.msra.gmra.mxu0 %vm4450_vm3, %v6219_v43 }
 0x571   : > { %9212 = vmatprep.mubr.msk.f32.mxu0 %vm9725_vm1, %v15802_v9 }
 0x574   : > { %v9484_v31 = vpop.eup %9483 }
 0x575   : > { %v4772_v55 = vmul.f32 %v9484_v31, %v13941_v46  ;;  %v9486_v30 = vpop.eup %9485 }
 0x576   : > { %v4532_v33 = vmul.f32 %v9486_v30, %v13853_v24  ;;  %v9488_v28 = vpop.eup %9487 }
 0x577   : > { %9138 = vmatmul.mubr.msk.f32.vlgmr.msra.gmra.mxu1 %vm4450_vm3, %v4772_v55  ;;  %v4534_v4 = vmul.f32 %v9488_v28, %v13869_v6  ;;  %v9490_v12 = vpop.eup %9489  ;;  %v15819_v6 = vld [vmem:[#allocation194_spill] sm:$0xff] }
 0x578   : > { %9146 = vmatpush3.msra.mxu1 %v15818_v14  ;;  %9147 = vmatprep.mubr.msk.f32.mxu1 %vm9725_vm1, %v15802_v9  ;;  %v6203_v54 = vpop.xlane.xlu1 %6202  ;;  %v4536_v24 = vmul.f32 %v9490_v12, %v13926_v26 }
 0x579   : > { %9155 = vmatprep.subr.mxu1 %v15802_v9  ;;  %9491 = vrcp.f32 %v6203_v54 }
 0x57a   : > { %9493 = vrcp.f32 %v13946_v11 }
 0x57b   : > { %9148 = vmatmul.mubr.msk.f32.vlgmr.msra.gmra.mxu1 %vm4450_vm3, %v4532_v33  ;;  %9495 = vrcp.f32 %v13989_v36 }
 0x57c   : > { %9156 = vmatpush3.msra.mxu1 %v13609_v22  ;;  %9157 = vmatprep.mubr.msk.f32.mxu1 %vm9725_vm1, %v15802_v9  ;;  %v14118_v46 = vpop.xlane.xlu1 %7052 }
 0x57d   : > { %9165 = vmatprep.subr.mxu1 %v15802_v9 }
 0x57f   : > { %9158 = vmatmul.mubr.msk.f32.vlgmr.msra.gmra.mxu1 %vm4450_vm3, %v4534_v4 }
 0x580   : > { %9166 = vmatpush3.msra.mxu1 %v13640_v38  ;;  %9167 = vmatprep.mubr.msk.f32.mxu1 %vm9725_vm1, %v15802_v9  ;;  %v4522_v22 = vpop.xlane.xlu1 %4521 }
 0x581   : > { %9175 = vmatprep.subr.mxu1 %v15802_v9  ;;  %9497 = vrcp.f32 %v4522_v22 }
 0x582   : > { %9499 = vrcp.f32 %v14028_v3 }
 0x583   : > { %9168 = vmatmul.mubr.msk.f32.vlgmr.msra.gmra.mxu1 %vm4450_vm3, %v4536_v24  ;;  %9501 = vrcp.f32 %v14041_v61 }
 0x584   : > { %9176 = vmatpush3.msra.mxu1 %v15819_v6  ;;  %v6604_v11 = vpop.permute.xlu1 %6603  ;;  %9177 = vmatprep.mubr.msk.f32.mxu1 %vm9725_vm1, %v15802_v9  ;;  %9503 = vrcp.f32 %v14064_v10 }
 0x585   : > { %9185 = vmatprep.subr.mxu1 %v15802_v9  ;;  %9505 = vrcp.f32 %v14032_v53 }
 0x586   : > { %v9492_v38 = vpop.eup %9491 }
 0x587   : > { %v6221_v36 = vmul.f32 %v9492_v38, %v13957_v44  ;;  %v9494_v19 = vpop.eup %9493 }
 0x588   : > { %v6680_v26 = vpop.permute.xlu1 %6679  ;;  %v7065_v3 = vmul.f32 %v9494_v19, %v13822_v50  ;;  %v9496_v61 = vpop.eup %9495 }
 0x589   : > { %9211 = vmatpush3.msra.mxu0 %v6680_v26  ;;  %v7067_v62 = vmul.f32 %v9496_v61, %v13844_v51 }
 0x58a   : > { %9213 = vmatmul.mubr.msk.f32.vlgmr.msra.gmra.mxu0 %vm4450_vm3, %v6221_v36  ;;  %9220 = vmatprep.subr.mxu0 %v15802_v9 }
 0x58b   : > { %9221 = vmatpush3.msra.mxu0 %v7074_v59  ;;  %9222 = vmatprep.mubr.msk.f32.mxu0 %vm9725_vm1, %v15802_v9 }
 0x58c   : > { %9230 = vmatprep.subr.mxu0 %v15802_v9  ;;  %v6756_v29 = vpop.permute.xlu1 %6755 }
 0x58e   : > { %v9498_v44 = vpop.eup %9497  ;;  %9223 = vmatmul.mubr.msk.f32.vlgmr.msra.gmra.mxu0 %vm4450_vm3, %v7065_v3 }
 0x58f   : > { %9231 = vmatpush3.msra.mxu0 %v7226_v35  ;;  %v4538_v21 = vmul.f32 %v9498_v44, %v13972_v45  ;;  %9232 = vmatprep.mubr.msk.f32.mxu0 %vm9725_vm1, %v15802_v9  ;;  %v9500_v1 = vpop.eup %9499 }
 0x590   : > { %9240 = vmatprep.subr.mxu0 %v15802_v9  ;;  %v6216_v50 = vmul.f32 %v9500_v1, %v13881_v20  ;;  %v9502_v45 = vpop.eup %9501  ;;  %v7150_v37 = vpop.permute.xlu1 %7149 }
 0x591   : > { %9178 = vmatmul.mubr.msk.f32.vlgmr.msra.gmra.mxu1 %vm4450_vm3, %v4538_v21  ;;  %v6218_v51 = vmul.f32 %v9502_v45, %v13911_v34  ;;  %v9504_v53 = vpop.eup %9503 }
 0x592   : > { %9186 = vmatpush3.msra.mxu1 %v15820_v42  ;;  %9233 = vmatmul.mubr.msk.f32.vlgmr.msra.gmra.mxu0 %vm4450_vm3, %v7067_v62  ;;  %v6220_v20 = vmul.f32 %v9504_v53, %v13930_v40  ;;  %v9506_v34 = vpop.eup %9505 }
 0x593   : > { %9187 = vmatprep.mubr.msk.f32.mxu1 %vm9725_vm1, %v15802_v9  ;;  %9195 = vmatprep.subr.mxu1 %v15802_v9  ;;  %v7069_v52 = vmul.f32 %v9506_v34, %v13891_v27 }
 0x594   : > { %9242 = vmatprep.mubr.msk.f32.mxu0 %vm9725_vm1, %v15802_v9  ;;  %v7302_v49 = vpop.permute.xlu1 %7301 }
 0x595   : > { %9188 = vmatmul.mubr.msk.f32.vlgmr.msra.gmra.mxu1 %vm4450_vm3, %v6216_v50 }
 0x596   : > { %9196 = vmatpush3.msra.mxu1 %v13737_v41  ;;  %9197 = vmatprep.mubr.msk.f32.mxu1 %vm9725_vm1, %v15802_v9 }
 0x597   : > { %9205 = vmatprep.subr.mxu1 %v15802_v9 }
 0x599   : > { %9198 = vmatmul.mubr.msk.f32.vlgmr.msra.gmra.mxu1 %vm4450_vm3, %v6218_v51 }
 0x59a   : > { %9206 = vmatpush3.msra.mxu1 %v6604_v11  ;;  %9207 = vmatprep.mubr.msk.f32.mxu1 %vm9725_vm1, %v15802_v9 }
 0x59b   : > { %9215 = vmatprep.subr.mxu1 %v15802_v9 }
 0x59d   : > { %9208 = vmatmul.mubr.msk.f32.vlgmr.msra.gmra.mxu1 %vm4450_vm3, %v6220_v20 }
 0x59e   : > { %9216 = vmatpush3.msra.mxu1 %v6756_v29  ;;  %9217 = vmatprep.mubr.msk.f32.mxu1 %vm9725_vm1, %v15802_v9 }
 0x59f   : > { %v6206_v41 = vpop.xlane.xlu0 %6205  ;;  %9225 = vmatprep.subr.mxu1 %v15802_v9 }
 0x5a0   : > { %9507 = vrcp.f32 %v6206_v41 }
 0x5a1   : > { %9509 = vrcp.f32 %v13983_v57 }
 0x5a2   : > { %9511 = vrcp.f32 %v14043_v5 }
 0x5a3   : > { %v7378_v39 = vpop.permute.xlu0 %7377  ;;  %9513 = vrcp.f32 %v14072_v8 }
 0x5a4   : > { %9241 = vmatpush3.msra.mxu0 %v7378_v39  ;;  %v14182_v40 = vpop.f32.mrf.mxu0  ;;  %9515 = vrcp.f32 %v14118_v46 }
 0x5a5   : > { %9243 = vmatmul.mubr.msk.f32.vlgmr.msra.gmra.mxu0 %vm4450_vm3, %v7069_v52  ;;  %9250 = vmatprep.subr.mxu0 %v15802_v9 }
 0x5a6   : > { %9252 = vmatprep.mubr.msk.f32.mxu0 %vm9725_vm1, %v15802_v9  ;;  %v9104_v10 = vpop.f32.mrf.mxu0 }
 0x5ad   : > { %v9508_v57 = vpop.eup %9507 }
 0x5ae   : > { %v6222_v16 = vmul.f32 %v9508_v57, %v14008_v25  ;;  %v9510_v27 = vpop.eup %9509  ;;  %v7454_v25 = vpop.permute.xlu1 %7453 }
 0x5af   : > { %v7066_v0 = vmul.f32 %v9510_v27, %v13857_v7  ;;  %v9512_v60 = vpop.eup %9511 }
 0x5b0   : > { %9218 = vmatmul.mubr.msk.f32.vlgmr.msra.gmra.mxu1 %vm4450_vm3, %v6222_v16  ;;  %v14189_v5 = vpop.f32.mrf.mxu0  ;;  %v7068_v18 = vmul.f32 %v9512_v60, %v13916_v63  ;;  %v9514_v17 = vpop.eup %9513  ;;  %v9578_v16 = vld [vmem:[%s15821_s16] sm:$0xff] }
 0x5b1   : > { %9226 = vmatpush3.msra.mxu1 %v7150_v37  ;;  %9227 = vmatprep.mubr.msk.f32.mxu1 %vm9725_vm1, %v15802_v9  ;;  %v7070_v7 = vmul.f32 %v9514_v17, %v13934_v56  ;;  %v9516_v48 = vpop.eup %9515  ;;  %v9579_v17 = vld [vmem:[%s15821_s16 + $0x10] sm:$0xff] }
 0x5b2   : > { %9235 = vmatprep.subr.mxu1 %v15802_v9  ;;  %v9114_v8 = vpop.f32.mrf.mxu0  ;;  %v7606_v47 = vpop.permute.xlu1 %7605  ;;  %v7071_v56 = vmul.f32 %v9516_v48, %v13963_v58 }
 0x5b4   : > { %9228 = vmatmul.mubr.msk.f32.vlgmr.msra.gmra.mxu1 %vm4450_vm3, %v7066_v0 }
 0x5b5   : > { %9236 = vmatpush3.msra.mxu1 %v7302_v49  ;;  %9237 = vmatprep.mubr.msk.f32.mxu1 %vm9725_vm1, %v15802_v9 }
 0x5b6   : > { %9245 = vmatprep.subr.mxu1 %v15802_v9 }
 0x5b8   : > { %9238 = vmatmul.mubr.msk.f32.vlgmr.msra.gmra.mxu1 %vm4450_vm3, %v7068_v18 }
 0x5b9   : > { %9246 = vmatpush3.msra.mxu1 %v7454_v25  ;;  %9247 = vmatprep.mubr.msk.f32.mxu1 %vm9725_vm1, %v15802_v9 }
 0x5ba   : > { %9255 = vmatprep.subr.mxu1 %v15802_v9 }
 0x5bc   : > { %9248 = vmatmul.mubr.msk.f32.vlgmr.msra.gmra.mxu1 %vm4450_vm3, %v7070_v7 }
 0x5bd   : > { %9256 = vmatpush3.msra.mxu1 %v7606_v47  ;;  %9257 = vmatprep.mubr.msk.f32.mxu1 %vm9725_vm1, %v15802_v9 }
 0x5c1   : > { %v14206_v23 = vpop.f32.mrf.mxu1 }
 0x5c3   : > { %v9109_v63 = vpop.f32.mrf.mxu1 }
 0x5cd   : > { %v14209_v32 = vpop.f32.mrf.mxu1 }
 0x5cf   : > { %v9119_v2 = vpop.f32.mrf.mxu1 }
 0x5d4   : > { %v7056_v15 = vpop.xlane.xlu0 %7055 }
 0x5d5   : > { %9517 = vrcp.f32 %v7056_v15 }
 0x5d8   : > { %v7530_v43 = vpop.permute.xlu0 %7529  ;;  %v5149_v31 = vpop.f32.mrf.mxu0 }
 0x5d9   : > { %9251 = vmatpush3.msra.mxu0 %v7530_v43 }
 0x5da   : > { %9253 = vmatmul.mubr.msk.f32.vlgmr.msra.gmra.mxu0 %vm4450_vm3, %v7071_v56  ;;  %v9124_v55 = vpop.f32.mrf.mxu0 }
 0x5e2   : > { %v9518_v9 = vpop.eup %9517 }
 0x5e3   : > { %v7072_v30 = vmul.f32 %v9518_v9, %v14037_v13 }
 0x5e5   : > { %9258 = vmatmul.mubr.msk.f32.vlgmr.msra.gmra.mxu1 %vm4450_vm3, %v7072_v30 }
 0x614   : > { %v5301_v14 = vpop.f32.mrf.mxu0 }
 0x616   : > { %v9134_v54 = vpop.f32.mrf.mxu0 }
 0x618   : > { %v5453_v33 = vpop.f32.mrf.mxu0 }
 0x619   : > { %v5454_v20 = vadd.f32 %v5453_v33, %v14182_v40 }
 0x61a   : > { %v9144_v28 = vpop.f32.mrf.mxu0 }
 0x61c   : > { %v5605_v46 = vpop.f32.mrf.mxu0 }
 0x61d   : > { %v5606_v52 = vadd.f32 %v5605_v46, %v14189_v5 }
 0x61e   : > { %v9154_v4 = vpop.f32.mrf.mxu0 }
 0x620   : > { %v5757_v12 = vpop.f32.mrf.mxu0 }
 0x621   : > { %v5758_v19 = vadd.f32 %v5757_v12, %v5149_v31 }
 0x622   : > { %v9164_v22 = vpop.f32.mrf.mxu0 }
 0x623   : > { %v9580_v22 = vld [vmem:[%s15821_s16 + $0x8] sm:$0xff] }
 0x624   : > { %v5909_v24 = vpop.f32.mrf.mxu0 }
 0x625   : > { %v5910_v58 = vadd.f32 %v5909_v24, %v5301_v14 }
 0x626   : > { %v9174_v6 = vpop.f32.mrf.mxu0 }
 0x627   : > { %v14215_v11 = vpop.f32.mrf.mxu1 }
 0x628   : > { %v6295_v38 = vpop.f32.mrf.mxu0 }
 0x629   : > { %v9129_v36 = vpop.f32.mrf.mxu1  ;;  %v6831_v34 = vadd.f32 %v6295_v38, %v5454_v20  ;;  %v9581_v38 = vld [vmem:[%s15821_s16 + $0x20] sm:$0xff] }
 0x62a   : > { %v9184_v59 = vpop.f32.mrf.mxu0 }
 0x62c   : > { %v6447_v26 = vpop.f32.mrf.mxu0 }
 0x62d   : > { %v6833_v57 = vadd.f32 %v6447_v26, %v5606_v52 }
 0x62e   : > { %v9194_v13 = vpop.f32.mrf.mxu0 }
 0x62f   : > { %v9582_v13 = vld [vmem:[%s15821_s16 + $0x18] sm:$0xff] }
 0x630   : > { %v6599_v3 = vpop.f32.mrf.mxu0 }
 0x631   : > { %v6835_v61 = vadd.f32 %v6599_v3, %v5758_v19 }
 0x632   : > { %v9204_v44 = vpop.f32.mrf.mxu0 }
 0x637   : > { %v5377_v35 = vpop.f32.mrf.mxu1 }
 0x639   : > { %v9139_v21 = vpop.f32.mrf.mxu1 }
 0x63a   : > { %v9583_v21 = vld [vmem:[%s15821_s16 + $0x28] sm:$0xff] }
 0x63b   : > { %v5529_v1 = vpop.f32.mrf.mxu1 }
 0x63c   : > { %v5530_v9 = vadd.f32 %v5529_v1, %v14206_v23 }
 0x63d   : > { %v9149_v62 = vpop.f32.mrf.mxu1 }
 0x63f   : > { %v5681_v42 = vpop.f32.mrf.mxu1 }
 0x640   : > { %v5682_v33 = vadd.f32 %v5681_v42, %v14209_v32 }
 0x641   : > { %v9159_v50 = vpop.f32.mrf.mxu1 }
 0x643   : > { %v5833_v45 = vpop.f32.mrf.mxu1 }
 0x644   : > { %v5834_v6 = vadd.f32 %v5833_v45, %v14215_v11 }
 0x645   : > { %v9169_v51 = vpop.f32.mrf.mxu1 }
 0x646   : > { %v9584_v51 = vld [vmem:[%s15821_s16 + $0x30] sm:$0xff] }
 0x64a   : > { %v6751_v53 = vpop.f32.mrf.mxu0 }
 0x64b   : > { %v14218_v29 = vadd.f32 %v6751_v53, %v5910_v58 }
 0x64c   : > { %v9214_v41 = vpop.f32.mrf.mxu0 }
 0x64e   : > { %v7145_v39 = vpop.f32.mrf.mxu0 }
 0x64f   : > { %v7681_v10 = vadd.f32 %v7145_v39, %v6831_v34 }
 0x650   : > { %v9224_v37 = vpop.f32.mrf.mxu0 }
 0x651   : > { %v14222_v27 = vadd.f32 %v9578_v16, %v7681_v10  ;;  %v5985_v49 = vpop.f32.mrf.mxu1  ;;  %v9585_v10 = vld [vmem:[%s15821_s16 + $0x38] sm:$0xff]  ;;  %s9650_s16 = sshll.u32 %s9737_s17, 4  ;;  %s9651_s16 = int_to_ptr.vmem [resolvable:$false] %s9650_s16 }
 0x652   : > { %v5986_v0 = vadd.f32 %v5985_v49, %v5377_v35  ;;  %v7297_v60 = vpop.f32.mrf.mxu0  ;;  %s9652_s23 = scalar_lea.vmem %s9651_s16, 2048  ;;  %p9653_p2 = scmp.lt.s32.totalorder %s14494_s13, %s9651_s16 }
 0x653   : > { %v7683_v8 = vadd.f32 %v7297_v60, %v6833_v57  ;;  %v9179_v25 = vpop.f32.mrf.mxu1  ;;  %v7697_v40 = vsel %vm421_vm0, %v14222_v27, 0.0  ;;  %p9654_p3 = scmp.lt.s32.totalorder %s9652_s23, %s9646_s26 }
 0x654   : > { %7698 = vadd.xlane.f32.xlu0 %v7697_v40  ;;  %v9234_v18 = vpop.f32.mrf.mxu0 }
 0x655   : > { %v14227_v7 = vadd.f32 %v9579_v17, %v7683_v8  ;;  %v6371_v5 = vpop.f32.mrf.mxu1  ;;  %p9655_p4 = por %p9654_p3, %p9653_p2 }
 0x656   : > { %v6832_v14 = vadd.f32 %v6371_v5, %v5530_v9 }
 0x657   : > { %v9189_v47 = vpop.f32.mrf.mxu1  ;;  %v7703_v63 = vsel %vm421_vm0, %v14227_v7, 0.0  ;;  %p9656_p9 = pnand %p9655_p4, %p9649_p1 }
 0x658   : > { %7704 = vadd.xlane.f32.xlu0 %v7703_v63 }
 0x659   : > { %v6523_v2 = vpop.f32.mrf.mxu1 }
 0x65a   : > { %v6834_v12 = vadd.f32 %v6523_v2, %v5682_v33 }
 0x65b   : > { %v9199_v15 = vpop.f32.mrf.mxu1 }
 0x65d   : > { %v6675_v48 = vpop.f32.mrf.mxu1 }
 0x65e   : > { %v6836_v26 = vadd.f32 %v6675_v48, %v5834_v6 }
 0x65f   : > { %v9209_v43 = vpop.f32.mrf.mxu1 }
 0x665   : > { %v7449_v56 = vpop.f32.mrf.mxu0 }
 0x666   : > { %v7685_v28 = vadd.f32 %v7449_v56, %v6835_v61 }
 0x667   : > { %v9244_v31 = vpop.f32.mrf.mxu0 }
 0x668   : > { %v14238_v36 = vadd.f32 %v9581_v38, %v7685_v28 }
 0x66a   : > { %v7709_v44 = vsel %vm421_vm0, %v14238_v36, 0.0 }
 0x670   : > { %v6827_v55 = vpop.f32.mrf.mxu1 }
 0x671   : > { %v6838_v41 = vadd.f32 %v6827_v55, %v5986_v0 }
 0x672   : > { %v9219_v30 = vpop.f32.mrf.mxu1 }
 0x674   : > { %v7221_v54 = vpop.f32.mrf.mxu1 }
 0x675   : > { %v7682_v46 = vadd.f32 %v7221_v54, %v6832_v14 }
 0x676   : > { %v9229_v4 = vpop.f32.mrf.mxu1 }
 0x677   : > { %v14234_v24 = vadd.f32 %v9580_v22, %v7682_v46 }
 0x678   : > { %v7373_v58 = vpop.f32.mrf.mxu1 }
 0x679   : > { %v7684_v23 = vadd.f32 %v7373_v58, %v6834_v12  ;;  %v7700_v59 = vsel %vm421_vm0, %v14234_v24, 0.0 }
 0x67a   : > { %7701 = vadd.xlane.f32.xlu1 %v7700_v59  ;;  %v9239_v32 = vpop.f32.mrf.mxu1 }
 0x67b   : > { %v14243_v19 = vadd.f32 %v9582_v13, %v7684_v23 }
 0x67c   : > { %v7525_v3 = vpop.f32.mrf.mxu1 }
 0x67d   : > { %v7686_v61 = vadd.f32 %v7525_v3, %v6836_v26  ;;  %v7706_v11 = vsel %vm421_vm0, %v14243_v19, 0.0 }
 0x67e   : > { %v9249_v35 = vpop.f32.mrf.mxu1  ;;  %7707 = vadd.xlane.f32.xlu0 %v7706_v11  ;;  %7710 = vadd.xlane.f32.xlu1 %v7709_v44 }
 0x67f   : > { %v14250_v1 = vadd.f32 %v9583_v21, %v7686_v61 }
 0x681   : > { %v7712_v62 = vsel %vm421_vm0, %v14250_v1, 0.0 }
 0x682   : > { %7713 = vadd.xlane.f32.xlu0 %v7712_v62 }
 0x69a   : > { %v7601_v42 = vpop.f32.mrf.mxu0 }
 0x69b   : > { %v7687_v50 = vadd.f32 %v7601_v42, %v14218_v29 }
 0x69c   : > { %v9254_v45 = vpop.f32.mrf.mxu0 }
 0x69d   : > { %v14256_v53 = vadd.f32 %v9584_v51, %v7687_v50 }
 0x69f   : > { %v7715_v20 = vsel %vm421_vm0, %v14256_v53, 0.0 }
 0x6a0   : > { %7716 = vadd.xlane.f32.xlu1 %v7715_v20 }
 0x6a5   : > { %v7677_v34 = vpop.f32.mrf.mxu1 }
 0x6a6   : > { %v7688_v39 = vadd.f32 %v7677_v34, %v6838_v41 }
 0x6a7   : > { %v9259_v52 = vpop.f32.mrf.mxu1 }
 0x6a8   : > { %v14261_v37 = vadd.f32 %v9585_v10, %v7688_v39 }
 0x6aa   : > { %v7718_v57 = vsel %vm421_vm0, %v14261_v37, 0.0 }
 0x6ab   : > { %7719 = vadd.xlane.f32.xlu0 %v7718_v57 }
 0x6dd   : > { %v7699_v29 = vpop.xlane.xlu0 %7698 }
 0x6de   : > { %v7721_v16 = vrot.slane %v7699_v29, 4 }
 0x6e0   : > { %v7722_v49 = vadd.f32 %v7721_v16, %v7699_v29 }
 0x6e1   : > { %v7705_v60 = vpop.xlane.xlu0 %7704 }
 0x6e2   : > { %v7723_v8 = vrot.slane %v7722_v49, 2  ;;  %v7733_v25 = vrot.slane %v7705_v60, 4 }
 0x6e4   : > { %v7724_v40 = vadd.f32 %v7723_v8, %v7722_v49  ;;  %v7734_v18 = vadd.f32 %v7733_v25, %v7705_v60 }
 0x6e6   : > { %v7725_v17 = vrot.slane %v7724_v40, 1  ;;  %v7735_v0 = vrot.slane %v7734_v18, 2 }
 0x6e8   : > { %v7726_v5 = vadd.f32 %v7725_v17, %v7724_v40  ;;  %v7736_v47 = vadd.f32 %v7735_v0, %v7734_v18 }
 0x6ea   : > { %v7769_v63 = vmul.f32 0.0078125, %v7726_v5  ;;  %v7737_v2 = vrot.slane %v7736_v47, 1 }
 0x6ec   : > { %v7738_v15 = vadd.f32 %v7737_v2, %v7736_v47  ;;  %v14266_v48 = vsub.f32 %v14222_v27, %v7769_v63 }
 0x6ee   : > { %v7771_v43 = vmul.f32 0.0078125, %v7738_v15  ;;  %v7785_v56 = vmul.f32 %v14266_v48, %v14266_v48 }
 0x6f0   : > { %v7793_v31 = vsel %vm421_vm0, %v7785_v56, 0.0  ;;  %v14272_v55 = vsub.f32 %v14227_v7, %v7771_v43 }
 0x6f1   : > { %7794 = vadd.xlane.f32.xlu1 %v7793_v31  ;;  %v7898_v31 = vld [vmem:[%s15822_s24 + $0x8] sm:$0xff] }
 0x6f2   : > { %v7787_v9 = vmul.f32 %v14272_v55, %v14272_v55  ;;  %9260 = vmatprep.subr.mxu0 %v7898_v31 }
 0x6f3   : > { %9261 = vmatpush3.msra.mxu0 %v7898_v31 }
 0x6f4   : > { %v7799_v30 = vsel %vm421_vm0, %v7787_v9, 0.0  ;;  %v7897_v9 = vld [vmem:[%s15822_s24] sm:$0xff] }
 0x6f5   : > { %7800 = vadd.xlane.f32.xlu1 %v7799_v30  ;;  %9262 = vmatprep.subr.mxu0 %v7897_v9 }
 0x6f6   : > { %9263 = vmatpush3.msra.mxu0 %v7897_v9 }
 0x703   : > { %v7702_v14 = vpop.xlane.xlu1 %7701 }
 0x704   : > { %v7727_v54 = vrot.slane %v7702_v14, 4 }
 0x706   : > { %v7728_v27 = vadd.f32 %v7727_v54, %v7702_v14 }
 0x707   : > { %v7708_v33 = vpop.xlane.xlu0 %7707  ;;  %v7711_v28 = vpop.xlane.xlu1 %7710 }
 0x708   : > { %v7729_v46 = vrot.slane %v7728_v27, 2  ;;  %v7739_v4 = vrot.slane %v7708_v33, 4  ;;  %v7745_v12 = vrot.slane %v7711_v28, 4 }
 0x70a   : > { %v7730_v22 = vadd.f32 %v7729_v46, %v7728_v27  ;;  %v7740_v58 = vadd.f32 %v7739_v4, %v7708_v33  ;;  %v7746_v6 = vadd.f32 %v7745_v12, %v7711_v28  ;;  %v8039_v12 = vld [vmem:[%s15823_s28 + $0x18] sm:$0xff] }
 0x70b   : > { %v7714_v7 = vpop.xlane.xlu0 %7713  ;;  %9276 = vmatprep.subr.mxu1 %v8039_v12 }
 0x70c   : > { %v7731_v38 = vrot.slane %v7730_v22, 1  ;;  %v7741_v23 = vrot.slane %v7740_v58, 2  ;;  %v7747_v59 = vrot.slane %v7746_v6, 2  ;;  %v7751_v32 = vrot.slane %v7714_v7, 4  ;;  %9277 = vmatpush3.msra.mxu1 %v8039_v12 }
 0x70e   : > { %v7732_v26 = vadd.f32 %v7731_v38, %v7730_v22  ;;  %v7742_v13 = vadd.f32 %v7741_v23, %v7740_v58  ;;  %v7748_v3 = vadd.f32 %v7747_v59, %v7746_v6  ;;  %v7752_v61 = vadd.f32 %v7751_v32, %v7714_v7 }
 0x710   : > { %v7770_v11 = vmul.f32 0.0078125, %v7732_v26  ;;  %v7743_v44 = vrot.slane %v7742_v13, 1  ;;  %v7749_v35 = vrot.slane %v7748_v3, 1  ;;  %v7753_v21 = vrot.slane %v7752_v61, 2 }
 0x712   : > { %v7744_v62 = vadd.f32 %v7743_v44, %v7742_v13  ;;  %v7750_v42 = vadd.f32 %v7749_v35, %v7748_v3  ;;  %v7754_v50 = vadd.f32 %v7753_v21, %v7752_v61  ;;  %v14278_v45 = vsub.f32 %v14234_v24, %v7770_v11 }
 0x714   : > { %v7772_v51 = vmul.f32 0.0078125, %v7744_v62  ;;  %v7773_v20 = vmul.f32 0.0078125, %v7750_v42  ;;  %v7755_v41 = vrot.slane %v7754_v50, 1  ;;  %v7786_v34 = vmul.f32 %v14278_v45, %v14278_v45 }
 0x716   : > { %v7756_v39 = vadd.f32 %v7755_v41, %v7754_v50  ;;  %v7796_v52 = vsel %vm421_vm0, %v7786_v34, 0.0  ;;  %v14284_v10 = vsub.f32 %v14243_v19, %v7772_v51  ;;  %v14287_v57 = vsub.f32 %v14238_v36, %v7773_v20 }
 0x717   : > { %7797 = vadd.xlane.f32.xlu0 %v7796_v52 }
 0x718   : > { %v7774_v29 = vmul.f32 0.0078125, %v7756_v39  ;;  %v7788_v24 = vmul.f32 %v14284_v10, %v14284_v10  ;;  %v7789_v16 = vmul.f32 %v14287_v57, %v14287_v57 }
 0x71a   : > { %v7802_v49 = vsel %vm421_vm0, %v7788_v24, 0.0  ;;  %v7805_v60 = vsel %vm421_vm0, %v7789_v16, 0.0  ;;  %v14296_v8 = vsub.f32 %v14250_v1, %v7774_v29 }
 0x71b   : > { %7803 = vadd.xlane.f32.xlu0 %v7802_v49  ;;  %7806 = vadd.xlane.f32.xlu1 %v7805_v60 }
 0x71c   : > { %v7790_v36 = vmul.f32 %v14296_v8, %v14296_v8 }
 0x71e   : > { %v7808_v19 = vsel %vm421_vm0, %v7790_v36, 0.0 }
 0x71f   : > { %7809 = vadd.xlane.f32.xlu0 %v7808_v19 }
 0x729   : > { %v7717_v25 = vpop.xlane.xlu1 %7716 }
 0x72a   : > { %v7757_v40 = vrot.slane %v7717_v25, 4 }
 0x72c   : > { %v7758_v18 = vadd.f32 %v7757_v40, %v7717_v25 }
 0x72e   : > { %v7759_v17 = vrot.slane %v7758_v18, 2 }
 0x730   : > { %v7760_v0 = vadd.f32 %v7759_v17, %v7758_v18 }
 0x732   : > { %v7761_v5 = vrot.slane %v7760_v0, 1 }
 0x734   : > { %v7762_v47 = vadd.f32 %v7761_v5, %v7760_v0  ;;  %v7720_v63 = vpop.xlane.xlu0 %7719 }
 0x735   : > { %v7763_v2 = vrot.slane %v7720_v63, 4 }
 0x736   : > { %v7775_v15 = vmul.f32 0.0078125, %v7762_v47 }
 0x737   : > { %v7764_v1 = vadd.f32 %v7763_v2, %v7720_v63 }
 0x738   : > { %v14302_v43 = vsub.f32 %v14256_v53, %v7775_v15 }
 0x739   : > { %v7765_v56 = vrot.slane %v7764_v1, 2 }
 0x73a   : > { %v7791_v30 = vmul.f32 %v14302_v43, %v14302_v43 }
 0x73b   : > { %v7766_v14 = vadd.f32 %v7765_v56, %v7764_v1 }
 0x73c   : > { %v7811_v54 = vsel %vm421_vm0, %v7791_v30, 0.0 }
 0x73d   : > { %v7767_v53 = vrot.slane %v7766_v14, 1  ;;  %7812 = vadd.xlane.f32.xlu1 %v7811_v54 }
 0x73f   : > { %v7768_v27 = vadd.f32 %v7767_v53, %v7766_v14 }
 0x741   : > { %v7776_v33 = vmul.f32 0.0078125, %v7768_v27 }
 0x743   : > { %v14314_v28 = vsub.f32 %v14261_v37, %v7776_v33 }
 0x745   : > { %v7792_v46 = vmul.f32 %v14314_v28, %v14314_v28 }
 0x747   : > { %v7814_v4 = vsel %vm421_vm0, %v7792_v46, 0.0 }
 0x748   : > { %7815 = vadd.xlane.f32.xlu0 %v7814_v4 }
 0x77a   : > { %v7795_v22 = vpop.xlane.xlu1 %7794 }
 0x77b   : > { %v7817_v58 = vrot.slane %v7795_v22, 4 }
 0x77d   : > { %v7818_v6 = vadd.f32 %v7817_v58, %v7795_v22 }
 0x77e   : > { %v7801_v26 = vpop.xlane.xlu1 %7800 }
 0x77f   : > { %v7819_v7 = vrot.slane %v7818_v6, 2  ;;  %v7829_v13 = vrot.slane %v7801_v26, 4 }
 0x781   : > { %v7820_v38 = vadd.f32 %v7819_v7, %v7818_v6  ;;  %v7830_v3 = vadd.f32 %v7829_v13, %v7801_v26 }
 0x783   : > { %v7821_v23 = vrot.slane %v7820_v38, 1  ;;  %v7831_v11 = vrot.slane %v7830_v3, 2 }
 0x785   : > { %v7822_v37 = vadd.f32 %v7821_v23, %v7820_v38  ;;  %v7832_v35 = vadd.f32 %v7831_v11, %v7830_v3 }
 0x787   : > { %v7865_v59 = vmul.f32 0.007874016, %v7822_v37  ;;  %v7833_v21 = vrot.slane %v7832_v35, 1 }
 0x789   : > { %v7873_v32 = vadd.f32 1e-05, %v7865_v59  ;;  %v7834_v51 = vadd.f32 %v7833_v21, %v7832_v35 }
 0x78b   : > { %9519 = vrsqrt.f32 %v7873_v32  ;;  %v7867_v49 = vmul.f32 0.007874016, %v7834_v51 }
 0x78d   : > { %v7875_v5 = vadd.f32 1e-05, %v7867_v49 }
 0x78f   : > { %9521 = vrsqrt.f32 %v7875_v5 }
 0x798   : > { %v9520_v61 = vpop.eup %9519 }
 0x799   : > { %v14323_v44 = vmul.f32 %v9520_v61, %v14266_v48 }
 0x79b   : > { %9264 = vmatprep.mubr.msk.f32.mxu0 %vm421_vm0, %v14323_v44 }
 0x79c   : > { %v9522_v12 = vpop.eup %9521 }
 0x79d   : > { %v14331_v6 = vmul.f32 %v9522_v12, %v14272_v55 }
 0x7a0   : > { %v7798_v62 = vpop.xlane.xlu0 %7797 }
 0x7a1   : > { %v7823_v42 = vrot.slane %v7798_v62, 4 }
 0x7a3   : > { %v7824_v50 = vadd.f32 %v7823_v42, %v7798_v62 }
 0x7a4   : > { %v7804_v20 = vpop.xlane.xlu0 %7803  ;;  %v7807_v41 = vpop.xlane.xlu1 %7806 }
 0x7a5   : > { %v7825_v34 = vrot.slane %v7824_v50, 2  ;;  %v7835_v39 = vrot.slane %v7804_v20, 4  ;;  %v7841_v52 = vrot.slane %v7807_v41, 4 }
 0x7a7   : > { %v7826_v29 = vadd.f32 %v7825_v34, %v7824_v50  ;;  %v7836_v24 = vadd.f32 %v7835_v39, %v7804_v20  ;;  %v7842_v16 = vadd.f32 %v7841_v52, %v7807_v41 }
 0x7a8   : > { %v7810_v48 = vpop.xlane.xlu0 %7809 }
 0x7a9   : > { %v7827_v60 = vrot.slane %v7826_v29, 1  ;;  %v7837_v36 = vrot.slane %v7836_v24, 2  ;;  %v7843_v19 = vrot.slane %v7842_v16, 2  ;;  %v7847_v25 = vrot.slane %v7810_v48, 4 }
 0x7ab   : > { %v7828_v40 = vadd.f32 %v7827_v60, %v7826_v29  ;;  %v7838_v18 = vadd.f32 %v7837_v36, %v7836_v24  ;;  %v7844_v17 = vadd.f32 %v7843_v19, %v7842_v16  ;;  %v7848_v0 = vadd.f32 %v7847_v25, %v7810_v48  ;;  %v8038_v24 = vld [vmem:[%s15823_s28 + $0x10] sm:$0xff]  ;;  %v8037_v16 = vld [vmem:[%s15823_s28 + $0x8] sm:$0xff] }
 0x7ac   : > { %9278 = vmatprep.subr.mxu1 %v8038_v24 }
 0x7ad   : > { %v7866_v47 = vmul.f32 0.007874016, %v7828_v40  ;;  %v7839_v63 = vrot.slane %v7838_v18, 1  ;;  %v7845_v2 = vrot.slane %v7844_v17, 1  ;;  %v7849_v15 = vrot.slane %v7848_v0, 2  ;;  %9279 = vmatpush3.msra.mxu1 %v8038_v24 }
 0x7ae   : > { %9280 = vmatprep.subr.mxu1 %v8037_v16 }
 0x7af   : > { %v7874_v1 = vadd.f32 1e-05, %v7866_v47  ;;  %v7840_v56 = vadd.f32 %v7839_v63, %v7838_v18  ;;  %v7846_v31 = vadd.f32 %v7845_v2, %v7844_v17  ;;  %v7850_v9 = vadd.f32 %v7849_v15, %v7848_v0  ;;  %9281 = vmatpush3.msra.mxu1 %v8037_v16 }
 0x7b1   : > { %9523 = vrsqrt.f32 %v7874_v1  ;;  %v7868_v30 = vmul.f32 0.007874016, %v7840_v56  ;;  %v7869_v14 = vmul.f32 0.007874016, %v7846_v31  ;;  %v7851_v54 = vrot.slane %v7850_v9, 1 }
 0x7b3   : > { %v7876_v53 = vadd.f32 1e-05, %v7868_v30  ;;  %v7877_v27 = vadd.f32 1e-05, %v7869_v14  ;;  %v7852_v33 = vadd.f32 %v7851_v54, %v7850_v9 }
 0x7b5   : > { %9525 = vrsqrt.f32 %v7876_v53  ;;  %v7870_v46 = vmul.f32 0.007874016, %v7852_v33 }
 0x7b6   : > { %9527 = vrsqrt.f32 %v7877_v27 }
 0x7b7   : > { %v7878_v4 = vadd.f32 1e-05, %v7870_v46 }
 0x7b9   : > { %9529 = vrsqrt.f32 %v7878_v4 }
 0x7be   : > { %v9524_v22 = vpop.eup %9523 }
 0x7bf   : > { %v14328_v58 = vmul.f32 %v9524_v22, %v14278_v45 }
 0x7c1   : > { %9265 = vmatmul.mubr.msk.f32.vlgmr.msra.gmra.mxu0 %vm421_vm0, %v14328_v58 }
 0x7c2   : > { %v9526_v7 = vpop.eup %9525  ;;  %9267 = vmatprep.mubr.msk.f32.mxu0 %vm421_vm0, %v14331_v6 }
 0x7c3   : > { %v9528_v38 = vpop.eup %9527  ;;  %v14338_v23 = vmul.f32 %v9526_v7, %v14284_v10 }
 0x7c4   : > { %v14341_v37 = vmul.f32 %v9528_v38, %v14287_v57 }
 0x7c5   : > { %9268 = vmatmul.mubr.msk.f32.gmra.mxu0 %vm421_vm0, %v14338_v23 }
 0x7c6   : > { %v9530_v45 = vpop.eup %9529  ;;  %9270 = vmatprep.mubr.msk.f32.mxu0 %vm421_vm0, %v14341_v37  ;;  %v7813_v55 = vpop.xlane.xlu1 %7812 }
 0x7c7   : > { %v7853_v59 = vrot.slane %v7813_v55, 4  ;;  %v14348_v32 = vmul.f32 %v9530_v45, %v14296_v8 }
 0x7c9   : > { %v7854_v26 = vadd.f32 %v7853_v59, %v7813_v55  ;;  %9271 = vmatmul.mubr.msk.f32.gmra.mxu0 %vm421_vm0, %v14348_v32 }
 0x7cb   : > { %v7855_v10 = vrot.slane %v7854_v26, 2 }
 0x7cd   : > { %v7856_v13 = vadd.f32 %v7855_v10, %v7854_v26 }
 0x7cf   : > { %v7857_v57 = vrot.slane %v7856_v13, 1 }
 0x7d1   : > { %v7858_v3 = vadd.f32 %v7857_v57, %v7856_v13  ;;  %v7816_v61 = vpop.xlane.xlu0 %7815 }
 0x7d2   : > { %v7859_v11 = vrot.slane %v7816_v61, 4 }
 0x7d3   : > { %v7871_v35 = vmul.f32 0.007874016, %v7858_v3 }
 0x7d4   : > { %v7860_v21 = vadd.f32 %v7859_v11, %v7816_v61 }
 0x7d5   : > { %v7879_v62 = vadd.f32 1e-05, %v7871_v35 }
 0x7d6   : > { %v7861_v42 = vrot.slane %v7860_v21, 2 }
 0x7d7   : > { %9531 = vrsqrt.f32 %v7879_v62 }
 0x7d8   : > { %v7862_v50 = vadd.f32 %v7861_v42, %v7860_v21 }
 0x7da   : > { %v7863_v51 = vrot.slane %v7862_v50, 1 }
 0x7dc   : > { %v7864_v20 = vadd.f32 %v7863_v51, %v7862_v50 }
 0x7de   : > { %v7872_v8 = vmul.f32 0.007874016, %v7864_v20 }
 0x7e0   : > { %v7880_v41 = vadd.f32 1e-05, %v7872_v8 }
 0x7e2   : > { %9533 = vrsqrt.f32 %v7880_v41 }
 0x7e4   : > { %v9532_v34 = vpop.eup %9531 }
 0x7e5   : > { %v14353_v39 = vmul.f32 %v9532_v34, %v14302_v43  ;;  %v8036_v43 = vld [vmem:[%s15823_s28] sm:$0xff] }
 0x7e6   : > { %9282 = vmatprep.subr.mxu1 %v8036_v43 }
 0x7e7   : > { %9273 = vmatprep.mubr.msk.f32.mxu0 %vm421_vm0, %v14353_v39  ;;  %9283 = vmatpush3.msra.mxu1 %v8036_v43 }
 0x7ef   : > { %v9534_v52 = vpop.eup %9533 }
 0x7f0   : > { %v7896_v29 = vmul.f32 %v9534_v52, %v14314_v28 }
 0x7f2   : > { %9274 = vmatmul.mubr.msk.f32.gmra.mxu0 %vm421_vm0, %v7896_v29 }
 0x881   : > { %v9266_v28 = vpop.f32.mrf.mxu0 }
 0x882   : > { %v8029_v60 = vmax.f32 %v9266_v28, 0.0 }
 0x883   : > { %v7989_v49 = vpop.f32.mrf.mxu0 }
 0x884   : > { %v8028_v48 = vmax.f32 %v7989_v49, 0.0 }
 0x885   : > { %v9269_v36 = vpop.f32.mrf.mxu0 }
 0x886   : > { %9284 = vmatprep.mubr.msk.f32.mxu1 %vm8040_vm4, %v8028_v48  ;;  %v8031_v40 = vmax.f32 %v9269_v36, 0.0 }
 0x887   : > { %v7999_v19 = vpop.f32.mrf.mxu0  ;;  %9285 = vmatmul.mubr.msk.f32.vlgmr.msra.gmra.mxu1 %vm8040_vm4, %v8029_v60 }
 0x888   : > { %v8030_v25 = vmax.f32 %v7999_v19, 0.0 }
 0x889   : > { %v9272_v18 = vpop.f32.mrf.mxu0 }
 0x88a   : > { %9287 = vmatprep.mubr.msk.f32.mxu1 %vm8040_vm4, %v8030_v25  ;;  %v8033_v5 = vmax.f32 %v9272_v18, 0.0 }
 0x88b   : > { %v8009_v17 = vpop.f32.mrf.mxu0  ;;  %9288 = vmatmul.mubr.msk.f32.gmra.mxu1 %vm8040_vm4, %v8031_v40 }
 0x88c   : > { %v8032_v0 = vmax.f32 %v8009_v17, 0.0 }
 0x88e   : > { %9290 = vmatprep.mubr.msk.f32.mxu1 %vm8040_vm4, %v8032_v0 }
 0x88f   : > { %9291 = vmatmul.mubr.msk.f32.gmra.mxu1 %vm8040_vm4, %v8033_v5 }
 0x8b2   : > { %v9275_v47 = vpop.f32.mrf.mxu0 }
 0x8b3   : > { %v8035_v15 = vmax.f32 %v9275_v47, 0.0 }
 0x8b4   : > { %v8019_v63 = vpop.f32.mrf.mxu0 }
 0x8b5   : > { %v8034_v2 = vmax.f32 %v8019_v63, 0.0 }
 0x8b7   : > { %9293 = vmatprep.mubr.msk.f32.mxu1 %vm8040_vm4, %v8034_v2 }
 0x8b8   : > { %9294 = vmatmul.mubr.msk.f32.gmra.mxu1 %vm8040_vm4, %v8035_v15 }
 0x947   : > { %v9286_v1 = vpop.f32.mrf.mxu1 }
 0x948   : > { %v14377_v56 = vadd.f32 %v9286_v1, %v14328_v58 }
 0x949   : > { %v8131_v31 = vpop.f32.mrf.mxu1 }
 0x94a   : > { %v14380_v9 = vadd.f32 %v8131_v31, %v14323_v44  ;;  %v8181_v30 = vsel %vm421_vm0, %v14377_v56, 0.0 }
 0x94b   : > { %8182 = vadd.xlane.f32.xlu0 %v8181_v30  ;;  %v9289_v14 = vpop.f32.mrf.mxu1 }
 0x94c   : > { %v14385_v54 = vadd.f32 %v9289_v14, %v14338_v23  ;;  %v8178_v53 = vsel %vm421_vm0, %v14380_v9, 0.0 }
 0x94d   : > { %8179 = vadd.xlane.f32.xlu1 %v8178_v53  ;;  %v8141_v27 = vpop.f32.mrf.mxu1 }
 0x94e   : > { %v14390_v33 = vadd.f32 %v8141_v27, %v14331_v6  ;;  %v8187_v44 = vsel %vm421_vm0, %v14385_v54, 0.0 }
 0x94f   : > { %8188 = vadd.xlane.f32.xlu0 %v8187_v44  ;;  %v9292_v46 = vpop.f32.mrf.mxu1 }
 0x950   : > { %v14395_v4 = vadd.f32 %v9292_v46, %v14348_v32  ;;  %v8184_v12 = vsel %vm421_vm0, %v14390_v33, 0.0 }
 0x951   : > { %8185 = vadd.xlane.f32.xlu1 %v8184_v12  ;;  %v8151_v22 = vpop.f32.mrf.mxu1 }
 0x952   : > { %v14400_v58 = vadd.f32 %v8151_v22, %v14341_v37  ;;  %v8193_v6 = vsel %vm421_vm0, %v14395_v4, 0.0 }
 0x953   : > { %8194 = vadd.xlane.f32.xlu0 %v8193_v6 }
 0x954   : > { %v8190_v7 = vsel %vm421_vm0, %v14400_v58, 0.0 }
 0x955   : > { %8191 = vadd.xlane.f32.xlu1 %v8190_v7 }
 0x978   : > { %v9295_v38 = vpop.f32.mrf.mxu1 }
 0x979   : > { %v14406_v23 = vadd.f32 %v9295_v38, %v7896_v29 }
 0x97a   : > { %v8161_v45 = vpop.f32.mrf.mxu1 }
 0x97b   : > { %v14409_v55 = vadd.f32 %v8161_v45, %v14353_v39  ;;  %v8199_v59 = vsel %vm421_vm0, %v14406_v23, 0.0 }
 0x97c   : > { %8200 = vadd.xlane.f32.xlu0 %v8199_v59 }
 0x97d   : > { %v8196_v37 = vsel %vm421_vm0, %v14409_v55, 0.0 }
 0x97e   : > { %8197 = vadd.xlane.f32.xlu1 %v8196_v37 }
 0x9d4   : > { %v8183_v32 = vpop.xlane.xlu0 %8182 }
 0x9d5   : > { %v8208_v26 = vrot.slane %v8183_v32, 4 }
 0x9d6   : > { %v8180_v10 = vpop.xlane.xlu1 %8179 }
 0x9d7   : > { %v8209_v13 = vadd.f32 %v8208_v26, %v8183_v32  ;;  %v8202_v57 = vrot.slane %v8180_v10, 4 }
 0x9d8   : > { %v8189_v3 = vpop.xlane.xlu0 %8188 }
 0x9d9   : > { %v8210_v61 = vrot.slane %v8209_v13, 2  ;;  %v8203_v11 = vadd.f32 %v8202_v57, %v8180_v10  ;;  %v8220_v35 = vrot.slane %v8189_v3, 4 }
 0x9da   : > { %v8186_v21 = vpop.xlane.xlu1 %8185 }
 0x9db   : > { %v8211_v62 = vadd.f32 %v8210_v61, %v8209_v13  ;;  %v8204_v42 = vrot.slane %v8203_v11, 2  ;;  %v8221_v50 = vadd.f32 %v8220_v35, %v8189_v3  ;;  %v8214_v51 = vrot.slane %v8186_v21, 4 }
 0x9dc   : > { %v8195_v20 = vpop.xlane.xlu0 %8194 }
 0x9dd   : > { %v8212_v8 = vrot.slane %v8211_v62, 1  ;;  %v8205_v41 = vadd.f32 %v8204_v42, %v8203_v11  ;;  %v8222_v34 = vrot.slane %v8221_v50, 2  ;;  %v8215_v39 = vadd.f32 %v8214_v51, %v8186_v21 }
 0x9de   : > { %v8232_v52 = vrot.slane %v8195_v20, 4  ;;  %v8192_v29 = vpop.xlane.xlu1 %8191 }
 0x9df   : > { %v8213_v24 = vadd.f32 %v8212_v8, %v8211_v62  ;;  %v8206_v16 = vrot.slane %v8205_v41, 1  ;;  %v8223_v43 = vadd.f32 %v8222_v34, %v8221_v50  ;;  %v8216_v28 = vrot.slane %v8215_v39, 2 }
 0x9e0   : > { %v8233_v49 = vadd.f32 %v8232_v52, %v8195_v20  ;;  %v8226_v48 = vrot.slane %v8192_v29, 4 }
 0x9e1   : > { %v8251_v60 = vmul.f32 0.0078125, %v8213_v24  ;;  %v8207_v36 = vadd.f32 %v8206_v16, %v8205_v41  ;;  %v8224_v19 = vrot.slane %v8223_v43, 1  ;;  %v8217_v25 = vadd.f32 %v8216_v28, %v8215_v39 }
 0x9e2   : > { %v8234_v40 = vrot.slane %v8233_v49, 2  ;;  %v8227_v18 = vadd.f32 %v8226_v48, %v8192_v29 }
 0x9e3   : > { %v8250_v17 = vmul.f32 0.0078125, %v8207_v36  ;;  %v8225_v0 = vadd.f32 %v8224_v19, %v8223_v43  ;;  %v8218_v5 = vrot.slane %v8217_v25, 1  ;;  %v14416_v47 = vsub.f32 %v14377_v56, %v8251_v60 }
 0x9e4   : > { %v8235_v63 = vadd.f32 %v8234_v40, %v8233_v49  ;;  %v8228_v2 = vrot.slane %v8227_v18, 2 }
 0x9e5   : > { %v8253_v15 = vmul.f32 0.0078125, %v8225_v0  ;;  %v8219_v1 = vadd.f32 %v8218_v5, %v8217_v25  ;;  %v8267_v31 = vmul.f32 %v14416_v47, %v14416_v47  ;;  %v14421_v30 = vsub.f32 %v14380_v9, %v8250_v17 }
 0x9e6   : > { %v8236_v14 = vrot.slane %v8235_v63, 1  ;;  %v8229_v53 = vadd.f32 %v8228_v2, %v8227_v18 }
 0x9e7   : > { %v8252_v27 = vmul.f32 0.0078125, %v8219_v1  ;;  %v8277_v44 = vsel %vm421_vm0, %v8267_v31, 0.0  ;;  %v8266_v46 = vmul.f32 %v14421_v30, %v14421_v30  ;;  %v14427_v56 = vsub.f32 %v14385_v54, %v8253_v15 }
 0x9e8   : > { %v8237_v12 = vadd.f32 %v8236_v14, %v8235_v63  ;;  %v8230_v22 = vrot.slane %v8229_v53, 1  ;;  %8278 = vadd.xlane.f32.xlu0 %v8277_v44 }
 0x9e9   : > { %v8274_v6 = vsel %vm421_vm0, %v8266_v46, 0.0  ;;  %v8269_v9 = vmul.f32 %v14427_v56, %v14427_v56  ;;  %v14433_v7 = vsub.f32 %v14390_v33, %v8252_v27 }
 0x9ea   : > { %v8255_v38 = vmul.f32 0.0078125, %v8237_v12  ;;  %v8231_v45 = vadd.f32 %v8230_v22, %v8229_v53  ;;  %8275 = vadd.xlane.f32.xlu1 %v8274_v6 }
 0x9eb   : > { %v8283_v59 = vsel %vm421_vm0, %v8269_v9, 0.0  ;;  %v8268_v54 = vmul.f32 %v14433_v7, %v14433_v7 }
 0x9ec   : > { %v8254_v37 = vmul.f32 0.0078125, %v8231_v45  ;;  %8284 = vadd.xlane.f32.xlu0 %v8283_v59  ;;  %v14439_v32 = vsub.f32 %v14395_v4, %v8255_v38 }
 0x9ed   : > { %v8280_v26 = vsel %vm421_vm0, %v8268_v54, 0.0 }
 0x9ee   : > { %8281 = vadd.xlane.f32.xlu1 %v8280_v26  ;;  %v8271_v33 = vmul.f32 %v14439_v32, %v14439_v32  ;;  %v14445_v10 = vsub.f32 %v14400_v58, %v8254_v37 }
 0x9f0   : > { %v8289_v13 = vsel %vm421_vm0, %v8271_v33, 0.0  ;;  %v8270_v57 = vmul.f32 %v14445_v10, %v14445_v10 }
 0x9f1   : > { %8290 = vadd.xlane.f32.xlu0 %v8289_v13 }
 0x9f2   : > { %v8286_v3 = vsel %vm421_vm0, %v8270_v57, 0.0 }
 0x9f3   : > { %8287 = vadd.xlane.f32.xlu1 %v8286_v3 }
 0xa05   : > { %v8201_v4 = vpop.xlane.xlu0 %8200 }
 0xa06   : > { %v8244_v61 = vrot.slane %v8201_v4, 4 }
 0xa07   : > { %v8198_v11 = vpop.xlane.xlu1 %8197 }
 0xa08   : > { %v8245_v35 = vadd.f32 %v8244_v61, %v8201_v4  ;;  %v8238_v21 = vrot.slane %v8198_v11, 4 }
 0xa0a   : > { %v8246_v62 = vrot.slane %v8245_v35, 2  ;;  %v8239_v42 = vadd.f32 %v8238_v21, %v8198_v11 }
 0xa0c   : > { %v8247_v50 = vadd.f32 %v8246_v62, %v8245_v35  ;;  %v8240_v51 = vrot.slane %v8239_v42, 2 }
 0xa0e   : > { %v8248_v58 = vrot.slane %v8247_v50, 1  ;;  %v8241_v20 = vadd.f32 %v8240_v51, %v8239_v42 }
 0xa10   : > { %v8249_v8 = vadd.f32 %v8248_v58, %v8247_v50  ;;  %v8242_v41 = vrot.slane %v8241_v20, 1 }
 0xa12   : > { %v8257_v34 = vmul.f32 0.0078125, %v8249_v8  ;;  %v8243_v39 = vadd.f32 %v8242_v41, %v8241_v20 }
 0xa14   : > { %v8256_v52 = vmul.f32 0.0078125, %v8243_v39  ;;  %v14452_v29 = vsub.f32 %v14406_v23, %v8257_v34 }
 0xa16   : > { %v8273_v24 = vmul.f32 %v14452_v29, %v14452_v29  ;;  %v14457_v16 = vsub.f32 %v14409_v55, %v8256_v52 }
 0xa18   : > { %v8295_v43 = vsel %vm421_vm0, %v8273_v24, 0.0  ;;  %v8272_v28 = vmul.f32 %v14457_v16, %v14457_v16 }
 0xa19   : > { %8296 = vadd.xlane.f32.xlu0 %v8295_v43 }
 0xa1a   : > { %v8292_v49 = vsel %vm421_vm0, %v8272_v28, 0.0 }
 0xa1b   : > { %8293 = vadd.xlane.f32.xlu1 %v8292_v49 }
 0xa71   : > { %v8279_v48 = vpop.xlane.xlu0 %8278 }
 0xa72   : > { %v8304_v60 = vrot.slane %v8279_v48, 4 }
 0xa73   : > { %v8276_v36 = vpop.xlane.xlu1 %8275 }
 0xa74   : > { %v8305_v23 = vadd.f32 %v8304_v60, %v8279_v48  ;;  %v8298_v19 = vrot.slane %v8276_v36, 4 }
 0xa75   : > { %v8285_v25 = vpop.xlane.xlu0 %8284 }
 0xa76   : > { %v8306_v40 = vrot.slane %v8305_v23, 2  ;;  %v8299_v18 = vadd.f32 %v8298_v19, %v8276_v36  ;;  %v8316_v17 = vrot.slane %v8285_v25, 4 }
 0xa77   : > { %v8282_v55 = vpop.xlane.xlu1 %8281 }
 0xa78   : > { %v8307_v0 = vadd.f32 %v8306_v40, %v8305_v23  ;;  %v8300_v5 = vrot.slane %v8299_v18, 2  ;;  %v8317_v63 = vadd.f32 %v8316_v17, %v8285_v25  ;;  %v8310_v2 = vrot.slane %v8282_v55, 4 }
 0xa7a   : > { %v8308_v15 = vrot.slane %v8307_v0, 1  ;;  %v8301_v1 = vadd.f32 %v8300_v5, %v8299_v18  ;;  %v8318_v31 = vrot.slane %v8317_v63, 2  ;;  %v8311_v14 = vadd.f32 %v8310_v2, %v8282_v55  ;;  %v8291_v53 = vpop.xlane.xlu0 %8290 }
 0xa7b   : > { %v8328_v27 = vrot.slane %v8291_v53, 4 }
 0xa7c   : > { %v8309_v44 = vadd.f32 %v8308_v15, %v8307_v0  ;;  %v8302_v46 = vrot.slane %v8301_v1, 1  ;;  %v8319_v12 = vadd.f32 %v8318_v31, %v8317_v63  ;;  %v8312_v22 = vrot.slane %v8311_v14, 2  ;;  %v8288_v6 = vpop.xlane.xlu1 %8287 }
 0xa7d   : > { %v8329_v9 = vadd.f32 %v8328_v27, %v8291_v53  ;;  %v8322_v38 = vrot.slane %v8288_v6, 4 }
 0xa7e   : > { %v8347_v45 = vmul.f32 0.007874016, %v8309_v44  ;;  %v8303_v59 = vadd.f32 %v8302_v46, %v8301_v1  ;;  %v8320_v54 = vrot.slane %v8319_v12, 1  ;;  %v8313_v37 = vadd.f32 %v8312_v22, %v8311_v14 }
 0xa7f   : > { %v8330_v26 = vrot.slane %v8329_v9, 2  ;;  %v8323_v33 = vadd.f32 %v8322_v38, %v8288_v6 }
 0xa80   : > { %v8355_v13 = vadd.f32 1e-05, %v8347_v45  ;;  %v8346_v57 = vmul.f32 0.007874016, %v8303_v59  ;;  %v8321_v3 = vadd.f32 %v8320_v54, %v8319_v12  ;;  %v8314_v4 = vrot.slane %v8313_v37, 1 }
 0xa81   : > { %v8331_v61 = vadd.f32 %v8330_v26, %v8329_v9  ;;  %v8324_v11 = vrot.slane %v8323_v33, 2 }
 0xa82   : > { %9535 = vrsqrt.f32 %v8355_v13  ;;  %v8354_v35 = vadd.f32 1e-05, %v8346_v57  ;;  %v8349_v21 = vmul.f32 0.007874016, %v8321_v3  ;;  %v8315_v62 = vadd.f32 %v8314_v4, %v8313_v37 }
 0xa83   : > { %v8332_v42 = vrot.slane %v8331_v61, 1  ;;  %v8325_v50 = vadd.f32 %v8324_v11, %v8323_v33 }
 0xa84   : > { %9537 = vrsqrt.f32 %v8354_v35  ;;  %v8357_v51 = vadd.f32 1e-05, %v8349_v21  ;;  %v8348_v58 = vmul.f32 0.007874016, %v8315_v62 }
 0xa85   : > { %v8333_v20 = vadd.f32 %v8332_v42, %v8331_v61  ;;  %v8326_v8 = vrot.slane %v8325_v50, 1 }
 0xa86   : > { %9539 = vrsqrt.f32 %v8357_v51  ;;  %v8356_v41 = vadd.f32 1e-05, %v8348_v58 }
 0xa87   : > { %v8351_v34 = vmul.f32 0.007874016, %v8333_v20  ;;  %v8327_v39 = vadd.f32 %v8326_v8, %v8325_v50 }
 0xa88   : > { %9541 = vrsqrt.f32 %v8356_v41 }
 0xa89   : > { %v8359_v52 = vadd.f32 1e-05, %v8351_v34  ;;  %v8350_v24 = vmul.f32 0.007874016, %v8327_v39 }
 0xa8b   : > { %9543 = vrsqrt.f32 %v8359_v52  ;;  %v8358_v43 = vadd.f32 1e-05, %v8350_v24 }
 0xa8d   : > { %9545 = vrsqrt.f32 %v8358_v43 }
 0xa8f   : > { %v9536_v28 = vpop.eup %9535 }
 0xa90   : > { %v8371_v49 = vmul.f32 %v9536_v28, %v14416_v47 }
 0xa91   : > { %v9538_v48 = vpop.eup %9537 }
 0xa92   : > { %8379 = vst.msk [vmem:[%s14467_s8 + $0x8] sm:$0xff] %vm421_vm0, %v8371_v49  ;;  %v8370_v60 = vmul.f32 %v9538_v48, %v14421_v30 }
 0xa93   : > { %v9540_v36 = vpop.eup %9539 }
 0xa94   : > { %8378 = vst.msk [vmem:[%s14467_s8] sm:$0xff] %vm421_vm0, %v8370_v60  ;;  %v8373_v23 = vmul.f32 %v9540_v36, %v14427_v56 }
 0xa95   : > { %v9542_v19 = vpop.eup %9541 }
 0xa96   : > { %8381 = vst.msk [vmem:[%s14467_s8 + $0x18] sm:$0xff] %vm421_vm0, %v8373_v23  ;;  %v8372_v47 = vmul.f32 %v9542_v19, %v14433_v7 }
 0xa98   : > { %v9544_v25 = vpop.eup %9543  ;;  %8380 = vst.msk [vmem:[%s14467_s8 + $0x10] sm:$0xff] %vm421_vm0, %v8372_v47 }
 0xa99   : > { %v8375_v40 = vmul.f32 %v9544_v25, %v14439_v32 }
 0xa9a   : > { %v9546_v18 = vpop.eup %9545 }
 0xa9b   : > { %8383 = vst.msk [vmem:[%s14467_s8 + $0x28] sm:$0xff] %vm421_vm0, %v8375_v40  ;;  %v8374_v30 = vmul.f32 %v9546_v18, %v14445_v10 }
 0xa9d   : > { %8382 = vst.msk [vmem:[%s14467_s8 + $0x20] sm:$0xff] %vm421_vm0, %v8374_v30 }
 0xaa2   : > { %v8297_v17 = vpop.xlane.xlu0 %8296 }
 0xaa3   : > { %v8340_v55 = vrot.slane %v8297_v17, 4 }
 0xaa4   : > { %v8294_v56 = vpop.xlane.xlu1 %8293 }
 0xaa5   : > { %v8341_v0 = vadd.f32 %v8340_v55, %v8297_v17  ;;  %v8334_v5 = vrot.slane %v8294_v56, 4 }
 0xaa7   : > { %v8342_v63 = vrot.slane %v8341_v0, 2  ;;  %v8335_v7 = vadd.f32 %v8334_v5, %v8294_v56 }
 0xaa9   : > { %v8343_v2 = vadd.f32 %v8342_v63, %v8341_v0  ;;  %v8336_v15 = vrot.slane %v8335_v7, 2 }
 0xaab   : > { %v8344_v1 = vrot.slane %v8343_v2, 1  ;;  %v8337_v32 = vadd.f32 %v8336_v15, %v8335_v7 }
 0xaad   : > { %v8345_v31 = vadd.f32 %v8344_v1, %v8343_v2  ;;  %v8338_v14 = vrot.slane %v8337_v32, 1 }
 0xaaf   : > { %v8353_v53 = vmul.f32 0.007874016, %v8345_v31  ;;  %v8339_v10 = vadd.f32 %v8338_v14, %v8337_v32 }
 0xab1   : > { %v8361_v27 = vadd.f32 1e-05, %v8353_v53  ;;  %v8352_v44 = vmul.f32 0.007874016, %v8339_v10 }
 0xab3   : > { %9547 = vrsqrt.f32 %v8361_v27  ;;  %v8360_v46 = vadd.f32 1e-05, %v8352_v44 }
 0xab5   : > { %9549 = vrsqrt.f32 %v8360_v46 }
 0xac0   : > { %v9548_v12 = vpop.eup %9547 }
 0xac1   : > { %v8377_v22 = vmul.f32 %v9548_v12, %v14452_v29 }
 0xac2   : > { %v9550_v6 = vpop.eup %9549 }
 0xac3   : > { %8385 = vst.msk [vmem:[%s14467_s8 + $0x38] sm:$0xff] %vm421_vm0, %v8377_v22  ;;  %v8376_v9 = vmul.f32 %v9550_v6, %v14457_v16 }
 0xac5   : > { %8384 = vst.msk [vmem:[%s14467_s8 + $0x30] sm:$0xff] %vm421_vm0, %v8376_v9 }
 0xac6   : > { %9659 = shalt.err (!%p9656_p9)
}
 0xac7   : > { %s9660_s14 = scalar_lea.hbm %s14492_s20, 1024  ;;  %s9664_s25 = scalar_lea.hbm %s15827_s19, 2048 }
 0xac8   : > { %p9661_p7 = scmp.ne.s32.totalorder %s14492_s20, %s9660_s14  ;;  %p9665_p6 = scmp.lt.s32.totalorder %s14492_s20, %s15827_s19 }
 0xac9   : > { %p9666_p12 = scmp.lt.s32.totalorder %s9664_s25, %s9660_s14 }
 0xaca   : > { %p9662_p0 = pnand %p9661_p7, %p15828_p11 }
 0xacb   : > { %p9667_p10 = por %p9666_p12, %p9665_p6 }
 0xacc   : > { %p9663_p5 = pneg %p9662_p0 }
 0xace   : > { %p9668_p8 = pnand %p9667_p10, %p9663_p5 }
 0xad0   : > { %9671 = shalt.err (!%p9668_p8)
}
 0xad1   : > { %s9738_s2 = smov 128   ;;  %s9739_s3 = smov 8  }
 0xad2   : > { %9312 = dma.vmem_to_hbm [thread:$0]  (%p15828_p11), %s14494_s13, 1024, %s14492_s20, %s14503_s22, %s9738_s2, %s9738_s2, %s9739_s3  }
 0xad3 PF: > { %s15829_s4 = sld [smem:[#allocation18_spill]] }
 0xad4   : > { %s15830_s5 = sld [smem:[#allocation15_spill]] }
 0xad5   : > { %s15831_s6 = sld [smem:[#allocation23_spill]] }
 0xad9   : > { %p9339_p13 = scmp.ge.s32.totalorder %s15829_s4, 2 }
 0xada   : > { %s8415_s11 = sand.u32 1, %s15830_s5  }
 0xadb   : > { %p15832_p1 = scmp.ne.s32.totalorder %s15831_s6, 0  ;;  %s8416_s12 = scalar_lea.sflag [#allocation3], %s8415_s11 }
 0xadd   : > { %p9328_p2 = pnand %p9339_p13, %p15832_p1 }
 0xadf   : > { %p9329_p3 = pneg %p9328_p2 }
 0xae1   : > { %9701 = dma.done.wait (%p9329_p3), %s8416_s12, 1024  }
 0xae2   : > { %9703 = vsyncadd (%p9329_p3), %s8416_s12, 4294966272  ;;  %s15833_s12 = sld [smem:[#allocation20_spill]] }
 0xae3   : > { %s15834_s30 = sld [smem:[#allocation16_spill]] }
 0xae4   : > { %s15835_s10 = sld [smem:[#allocation17_spill]] }
 0xae5   : > { %s15836_s11 = sld [smem:[#allocation21_spill]] }
 0xae8   : > { %p22_p4 = scmp.ge.s32.totalorder %s15833_s12, 4  }
 0xaea   :  { %24 = sbr.rel (!%p22_p4) target bundleno = 16 (0x10), region = 111 }
 0xaef   :  { %8421 = vsyncpa [#allocation3], 1 }
 0xaf0   :  { %8423 = vsyncpa [#allocation3 + $0x1], 1 }
 0xaf1   :  { %8424 = vsyncpa [#allocation4], 1 }
 0xaf2   :  { %8426 = vsyncpa [#allocation4 + $0x1], 1 }
 0xaf3   :  { %8427 = vsyncpa [#allocation6], 1 }
 0xaf4   :  { %8428 = vsyncpa [#allocation9], 1 }

</bundles_post_ra>
